<compile_context>
chip_gen: v5e
topology: v5e:2x2
jax: 0.10.0
libtpu: 0.0.40
codegen_flags: <defaults>
</compile_context>

<pallas_src>
import math
from functools import partial

import jax
import jax.numpy as jnp
from jax.experimental import pallas as pl
from jax.experimental.pallas import tpu as pltpu


# --------------------------------------------------------------------------
# Pallas kernels
# --------------------------------------------------------------------------
def _block1_kernel(xp_ref, w_ref, b_ref, g_ref, t_ref, mw_ref, mb_ref, o_ref,
                   *, H, W):
    """conv3x3 + bias -> RMSNorm -> (scale+1)*x+shift (time MLP in-kernel) -> SiLU."""
    W2 = W + 2
    HW2 = H * W2
    Cout = o_ref.shape[-1]

    # ---- 3x3 conv: 9 shifted-slab bf16 matmuls, f32 accumulation (MXU) ----
    acc = None
    for dy in range(3):
        for dx in range(3):
            start = dy * W2 + dx                       # static offset
            slab = xp_ref[0, start:start + HW2, :]     # (HW2, Cin) bf16
            part = jnp.dot(slab, w_ref[dy * 3 + dx],
                           preferred_element_type=jnp.float32)
            acc = part if acc is None else acc + part
    x = acc + b_ref[...]                               # (HW2, Cout) f32

    # ---- RMSNorm: x / max(||x||_2, 1e-12) * (g * sqrt(Cout))  (pre-folded g)
    ssq = jnp.sum(x * x, axis=-1, keepdims=True)
    x = x * jax.lax.rsqrt(jnp.maximum(ssq, 1e-24)) * g_ref[...]

    # ---- time embedding: SiLU(t_b) @ W_mlp + b -> (scale, shift) ----------
    b_idx = pl.program_id(0)
    t = t_ref[pl.ds(b_idx, 1), :]                      # (1, T) f32
    te = jnp.dot(t * jax.nn.sigmoid(t), mw_ref[...],
                 preferred_element_type=jnp.float32) + mb_ref[...]
    x = x * (te[:, :Cout] + 1.0) + te[:, Cout:]

    # ---- SiLU (dropout p=0.0 -> identity) ----------------------------------
    x = x * jax.nn.sigmoid(x)
    o_ref[0] = x.astype(o_ref.dtype)


def _block2_kernel(hp_ref, w_ref, b_ref, g_ref, xp_ref, wr_ref, br_ref, o_ref,
                   *, H, W):
    """conv3x3 + bias -> RMSNorm -> SiLU, fused with the residual 1x1 conv."""
    W2 = W + 2
    HW2 = H * W2

    acc = None
    for dy in range(3):
        for dx in range(3):
            start = dy * W2 + dx
            slab = hp_ref[0, start:start + HW2, :]
            part = jnp.dot(slab, w_ref[dy * 3 + dx],
                           preferred_element_type=jnp.float32)
            acc = part if acc is None else acc + part
    x = acc + b_ref[...]

    ssq = jnp.sum(x * x, axis=-1, keepdims=True)
    x = x * jax.lax.rsqrt(jnp.maximum(ssq, 1e-24)) * g_ref[...]
    x = x * jax.nn.sigmoid(x)

    # fused residual 1x1 conv: interior pixel (h, w) lives at padded row
    # (h+1)*(W+2) + (w+1)  =  q + (W+3)  in the same padded-row layout.
    res = jnp.dot(xp_ref[0, W + 3:W + 3 + HW2, :], wr_ref[...],
                  preferred_element_type=jnp.float32) + br_ref[...]
    o_ref[0] = (x + res).astype(o_ref.dtype)


# --------------------------------------------------------------------------
# pallas_call wrappers
# --------------------------------------------------------------------------
_VMEM_LIMIT = 64 * 1024 * 1024   # explicit scoped-VMEM limit (fits v5e/v6e/v7x)


def _block1_call(xp, prep, t, *, H, W):
    B, R, Cin = xp.shape
    Cout = prep["b1"].shape[-1]
    T = t.shape[-1]
    HW2 = H * (W + 2)
    return pl.pallas_call(
        partial(_block1_kernel, H=H, W=W),
        out_shape=jax.ShapeDtypeStruct((B, HW2, Cout), jnp.bfloat16),
        grid=(B,),
        in_specs=[
            pl.BlockSpec((1, R, Cin), lambda i: (i, 0, 0)),       # padded x rows
            pl.BlockSpec((9, Cin, Cout), lambda i: (0, 0, 0)),    # conv1 weight
            pl.BlockSpec((1, Cout), lambda i: (0, 0)),            # conv1 bias
            pl.BlockSpec((1, Cout), lambda i: (0, 0)),            # g1 * sqrt(Cout)
            pl.BlockSpec((B, T), lambda i: (0, 0)),               # time emb (tiny)
            pl.BlockSpec((T, 2 * Cout), lambda i: (0, 0)),        # mlp weight
            pl.BlockSpec((1, 2 * Cout), lambda i: (0, 0)),        # mlp bias
        ],
        out_specs=pl.BlockSpec((1, HW2, Cout), lambda i: (i, 0, 0)),
        compiler_params=pltpu.CompilerParams(
            dimension_semantics=("parallel",),
            vmem_limit_bytes=_VMEM_LIMIT),
    )(xp, prep["w1"], prep["b1"], prep["g1"], t, prep["mlp_w"], prep["mlp_b"])


def _block2_call(hp, xp, prep, *, H, W):
    B, R, Cout = hp.shape
    Cin = xp.shape[-1]
    HW2 = H * (W + 2)
    return pl.pallas_call(
        partial(_block2_kernel, H=H, W=W),
        out_shape=jax.ShapeDtypeStruct((B, HW2, Cout), jnp.float32),
        grid=(B,),
        in_specs=[
            pl.BlockSpec((1, R, Cout), lambda i: (i, 0, 0)),      # padded h rows
            pl.BlockSpec((9, Cout, Cout), lambda i: (0, 0, 0)),   # conv2 weight
            pl.BlockSpec((1, Cout), lambda i: (0, 0)),            # conv2 bias
            pl.BlockSpec((1, Cout), lambda i: (0, 0)),            # g2 * sqrt(Cout)
            pl.BlockSpec((1, R, Cin), lambda i: (i, 0, 0)),       # padded x rows (residual)
            pl.BlockSpec((Cin, Cout), lambda i: (0, 0)),          # res 1x1 weight
            pl.BlockSpec((1, Cout), lambda i: (0, 0)),            # res bias
        ],
        out_specs=pl.BlockSpec((1, HW2, Cout), lambda i: (i, 0, 0)),
        compiler_params=pltpu.CompilerParams(
            dimension_semantics=("parallel",),
            vmem_limit_bytes=_VMEM_LIMIT),
    )(hp, prep["w2"], prep["b2"], prep["g2"], xp, prep["res_w"], prep["res_b"])


# --------------------------------------------------------------------------
# Glue: padded-row layout and the full ResnetBlock forward
# --------------------------------------------------------------------------
def _pad_to_rows(img_nhwc, rows, dtype):
    """Zero-pad H,W by 1, flatten (H+2)*(W+2) into one row axis, pad to `rows`
    (slack for the bottom-right conv tap, rounded to a multiple of 8)."""
    B, H, W, C = img_nhwc.shape
    xp = jnp.pad(img_nhwc, ((0, 0), (1, 1), (1, 1), (0, 0)))
    xp = xp.reshape(B, (H + 2) * (W + 2), C)
    xp = jnp.pad(xp, ((0, 0), (0, rows - (H + 2) * (W + 2)), (0, 0)))
    return xp.astype(dtype)


def prepare_params(params, matmul_dtype=jnp.bfloat16):
    """One-time layout/dtype conversion (hoisted out of the forward path)."""
    Cout, Cin = params["b1_w"].shape[:2]
    f32 = jnp.float32
    return {
        "w1": jnp.transpose(params["b1_w"], (2, 3, 1, 0))
                 .reshape(9, Cin, Cout).astype(matmul_dtype),
        "b1": params["b1_b"].astype(f32)[None, :],
        "g1": (params["g1"].astype(f32) * math.sqrt(Cout))[None, :],
        "w2": jnp.transpose(params["b2_w"], (2, 3, 1, 0))
                 .reshape(9, Cout, Cout).astype(matmul_dtype),
        "b2": params["b2_b"].astype(f32)[None, :],
        "g2": (params["g2"].astype(f32) * math.sqrt(Cout))[None, :],
        "res_w": params["res_w"].reshape(Cout, Cin).T.astype(matmul_dtype),
        "res_b": params["res_b"].astype(f32)[None, :],
        "mlp_w": params["mlp_w"].T.astype(f32),          # (T, 2*Cout)
        "mlp_b": params["mlp_b"].astype(f32)[None, :],
    }


def resnet_block_forward(prep, x_nchw, time_emb):
    B, Cin, H, W = x_nchw.shape
    Cout = prep["b1"].shape[-1]
    W2, HW2 = W + 2, H * (W + 2)
    R = ((H + 2) * W2 + 2 + 7) // 8 * 8          # padded-row count (+ tap slack)

    x_nhwc = jnp.transpose(x_nchw, (0, 2, 3, 1)).astype(jnp.float32)
    xp = _pad_to_rows(x_nhwc, R, jnp.bfloat16)                      # (B, R, Cin)

    # block1: conv3x3 + RMSNorm + time scale/shift + SiLU (fused)
    h = _block1_call(xp, prep, time_emb.astype(jnp.float32), H=H, W=W)
    h_img = h.reshape(B, H, W2, Cout)[:, :, :W, :]                  # drop pad cols
    hp = _pad_to_rows(h_img, R, jnp.bfloat16)                       # (B, R, Cout)

    # block2: conv3x3 + RMSNorm + SiLU + fused residual 1x1 conv
    out = _block2_call(hp, xp, prep, H=H, W=W)                      # (B, HW2, Cout)
    out = out.reshape(B, H, W2, Cout)[:, :, :W, :]
    return jnp.transpose(out, (0, 3, 1, 2))                         # NCHW f32


# --------------------------------------------------------------------------
# Plain-XLA f32 reference (matches the PyTorch module) for a sanity check
# --------------------------------------------------------------------------
def reference_forward(params, x, t):
    Cout = params["b1_b"].shape[0]

    def block(x, w, b, g, scale_shift=None):
        y = jax.lax.conv_general_dilated(
            x, w, (1, 1), ((1, 1), (1, 1)),
            dimension_numbers=("NCHW", "OIHW", "NCHW"))
        y = y + b[None, :, None, None]
        n = jnp.sqrt(jnp.sum(y * y, axis=1, keepdims=True))
        y = y / jnp.maximum(n, 1e-12) * g[None, :, None, None] * math.sqrt(Cout)
        if scale_shift is not None:
            s, sh = scale_shift
            y = y * (s[:, :, None, None] + 1.0) + sh[:, :, None, None]
        return y * jax.nn.sigmoid(y)

    te = jax.nn.silu(t) @ params["mlp_w"].T + params["mlp_b"]
    scale, shift = jnp.split(te, 2, axis=1)
    h = block(x, params["b1_w"], params["b1_b"], params["g1"], (scale, shift))
    h = block(h, params["b2_w"], params["b2_b"], params["g2"])
    res = jax.lax.conv_general_dilated(
        x, params["res_w"], (1, 1), ((0, 0), (0, 0)),
        dimension_numbers=("NCHW", "OIHW", "NCHW"))
    return h + res + params["res_b"][None, :, None, None]


# --------------------------------------------------------------------------
if __name__ == "__main__":
    # Small but TPU-friendly: Cout=128 keeps the output lane-dense.
    B, Cin, Cout, H, W, T = 2, 64, 128, 16, 16, 32

    key = jax.random.PRNGKey(0)
    ks = jax.random.split(key, 10)
    params = {
        # nn.Linear(time_emb_dim, dim_out*2): PyTorch weight is (out, in)
        "mlp_w": jax.random.normal(ks[0], (2 * Cout, T), jnp.float32) * 0.1,
        "mlp_b": jax.random.normal(ks[1], (2 * Cout,), jnp.float32) * 0.1,
        # nn.Conv2d(dim, dim_out, 3, padding=1): (Cout, Cin, 3, 3)
        "b1_w": jax.random.normal(ks[2], (Cout, Cin, 3, 3), jnp.float32) * 0.1,
        "b1_b": jax.random.normal(ks[3], (Cout,), jnp.float32) * 0.1,
        "g1": jnp.ones((Cout,), jnp.float32),
        # nn.Conv2d(dim_out, dim_out, 3, padding=1)
        "b2_w": jax.random.normal(ks[4], (Cout, Cout, 3, 3), jnp.float32) * 0.1,
        "b2_b": jax.random.normal(ks[5], (Cout,), jnp.float32) * 0.1,
        "g2": jnp.ones((Cout,), jnp.float32),
        # nn.Conv2d(dim, dim_out, 1) residual projection
        "res_w": jax.random.normal(ks[6], (Cout, Cin, 1, 1), jnp.float32) * 0.1,
        "res_b": jax.random.normal(ks[7], (Cout,), jnp.float32) * 0.1,
    }

    x = jax.random.normal(ks[8], (B, Cin, H, W), jnp.float32)
    time_emb = jax.random.normal(ks[9], (B, T), jnp.float32)

    prep = prepare_params(params)                 # hoisted weight prep (bf16)
    out = jax.jit(resnet_block_forward)(prep, x, time_emb)
    jax.block_until_ready(out)
    assert out.shape == (B, Cout, H, W)

    # correctness vs plain-XLA f32 reference (loose tol: bf16 matmul inputs)
    ref = reference_forward(params, x, time_emb)
    max_err = float(jnp.max(jnp.abs(out - ref)))
    assert max_err < 2e-1, f"max abs error {max_err}"
    print("KERNEL_OK")
</pallas_src>

<mosaic_0001>
module attributes {stable_mosaic.version = 11 : i64} {
  func.func @_block1_kernel(%arg0: i32, %arg1: memref<1x328x64xbf16, #tpu.memory_space<vmem>>, %arg2: memref<9x64x128xbf16, #tpu.memory_space<vmem>>, %arg3: memref<1x128xf32, #tpu.memory_space<vmem>>, %arg4: memref<1x128xf32, #tpu.memory_space<vmem>>, %arg5: memref<2x32xf32, #tpu.memory_space<vmem>>, %arg6: memref<32x256xf32, #tpu.memory_space<vmem>>, %arg7: memref<1x256xf32, #tpu.memory_space<vmem>>, %arg8: memref<1x288x128xbf16, #tpu.memory_space<vmem>>) attributes {dimension_semantics = [#tpu.dimension_semantics<parallel>], iteration_bounds = array<i64: 2>, scalar_prefetch = 0 : i64, scratch_operands = 0 : i64, tpu.core_type = #tpu.core_type<tc>, window_params = [{transform_indices = @transform_0, window_bounds = array<i64: 1, 328, 64>}, {pipeline_mode = #tpu.pipeline_mode<synchronous>, transform_indices = @transform_1, window_bounds = array<i64: 9, 64, 128>}, {pipeline_mode = #tpu.pipeline_mode<synchronous>, transform_indices = @transform_2, window_bounds = array<i64: 1, 128>}, {pipeline_mode = #tpu.pipeline_mode<synchronous>, transform_indices = @transform_3, window_bounds = array<i64: 1, 128>}, {pipeline_mode = #tpu.pipeline_mode<synchronous>, transform_indices = @transform_4, window_bounds = array<i64: 2, 32>}, {pipeline_mode = #tpu.pipeline_mode<synchronous>, transform_indices = @transform_5, window_bounds = array<i64: 32, 256>}, {pipeline_mode = #tpu.pipeline_mode<synchronous>, transform_indices = @transform_6, window_bounds = array<i64: 1, 256>}, {transform_indices = @transform_7, window_bounds = array<i64: 1, 288, 128>}]} {
    %c0 = arith.constant 0 : index
    %c0_0 = arith.constant 0 : index
    %c0_1 = arith.constant 0 : index
    %0 = vector.load %arg1[%c0, %c0_0, %c0_1] : memref<1x328x64xbf16, #tpu.memory_space<vmem>>, vector<1x288x64xbf16>
    %1 = vector.shape_cast %0 : vector<1x288x64xbf16> to vector<288x64xbf16>
    %c0_2 = arith.constant 0 : index
    %c0_3 = arith.constant 0 : index
    %c0_4 = arith.constant 0 : index
    %2 = vector.load %arg2[%c0_2, %c0_3, %c0_4] : memref<9x64x128xbf16, #tpu.memory_space<vmem>>, vector<1x64x128xbf16>
    %3 = vector.shape_cast %2 : vector<1x64x128xbf16> to vector<64x128xbf16>
    %cst = arith.constant dense<0.000000e+00> : vector<288x128xf32>
    %4 = tpu.matmul %1, %3, %cst {dimension_numbers = #tpu.dot_dimension_numbers<[1], [0], [0], [1], [0, 0, 1, 1], [], []>} : vector<288x64xbf16>, vector<64x128xbf16>, vector<288x128xf32> -> vector<288x128xf32>
    %c0_5 = arith.constant 0 : index
    %c1 = arith.constant 1 : index
    %c0_6 = arith.constant 0 : index
    %5 = vector.load %arg1[%c0_5, %c1, %c0_6] : memref<1x328x64xbf16, #tpu.memory_space<vmem>>, vector<1x288x64xbf16>
    %6 = vector.shape_cast %5 : vector<1x288x64xbf16> to vector<288x64xbf16>
    %c1_7 = arith.constant 1 : index
    %c0_8 = arith.constant 0 : index
    %c0_9 = arith.constant 0 : index
    %7 = vector.load %arg2[%c1_7, %c0_8, %c0_9] : memref<9x64x128xbf16, #tpu.memory_space<vmem>>, vector<1x64x128xbf16>
    %8 = vector.shape_cast %7 : vector<1x64x128xbf16> to vector<64x128xbf16>
    %cst_10 = arith.constant dense<0.000000e+00> : vector<288x128xf32>
    %9 = tpu.matmul %6, %8, %cst_10 {dimension_numbers = #tpu.dot_dimension_numbers<[1], [0], [0], [1], [0, 0, 1, 1], [], []>} : vector<288x64xbf16>, vector<64x128xbf16>, vector<288x128xf32> -> vector<288x128xf32>
    %10 = arith.addf %4, %9 : vector<288x128xf32>
    %c0_11 = arith.constant 0 : index
    %c2 = arith.constant 2 : index
    %c0_12 = arith.constant 0 : index
    %11 = vector.load %arg1[%c0_11, %c2, %c0_12] : memref<1x328x64xbf16, #tpu.memory_space<vmem>>, vector<1x288x64xbf16>
    %12 = vector.shape_cast %11 : vector<1x288x64xbf16> to vector<288x64xbf16>
    %c2_13 = arith.constant 2 : index
    %c0_14 = arith.constant 0 : index
    %c0_15 = arith.constant 0 : index
    %13 = vector.load %arg2[%c2_13, %c0_14, %c0_15] : memref<9x64x128xbf16, #tpu.memory_space<vmem>>, vector<1x64x128xbf16>
    %14 = vector.shape_cast %13 : vector<1x64x128xbf16> to vector<64x128xbf16>
    %cst_16 = arith.constant dense<0.000000e+00> : vector<288x128xf32>
    %15 = tpu.matmul %12, %14, %cst_16 {dimension_numbers = #tpu.dot_dimension_numbers<[1], [0], [0], [1], [0, 0, 1, 1], [], []>} : vector<288x64xbf16>, vector<64x128xbf16>, vector<288x128xf32> -> vector<288x128xf32>
    %16 = arith.addf %10, %15 : vector<288x128xf32>
    %c0_17 = arith.constant 0 : index
    %c18 = arith.constant 18 : index
    %c0_18 = arith.constant 0 : index
    %17 = vector.load %arg1[%c0_17, %c18, %c0_18] : memref<1x328x64xbf16, #tpu.memory_space<vmem>>, vector<1x288x64xbf16>
    %18 = vector.shape_cast %17 : vector<1x288x64xbf16> to vector<288x64xbf16>
    %c3 = arith.constant 3 : index
    %c0_19 = arith.constant 0 : index
    %c0_20 = arith.constant 0 : index
    %19 = vector.load %arg2[%c3, %c0_19, %c0_20] : memref<9x64x128xbf16, #tpu.memory_space<vmem>>, vector<1x64x128xbf16>
    %20 = vector.shape_cast %19 : vector<1x64x128xbf16> to vector<64x128xbf16>
    %cst_21 = arith.constant dense<0.000000e+00> : vector<288x128xf32>
    %21 = tpu.matmul %18, %20, %cst_21 {dimension_numbers = #tpu.dot_dimension_numbers<[1], [0], [0], [1], [0, 0, 1, 1], [], []>} : vector<288x64xbf16>, vector<64x128xbf16>, vector<288x128xf32> -> vector<288x128xf32>
    %22 = arith.addf %16, %21 : vector<288x128xf32>
    %c0_22 = arith.constant 0 : index
    %c19 = arith.constant 19 : index
    %c0_23 = arith.constant 0 : index
    %23 = vector.load %arg1[%c0_22, %c19, %c0_23] : memref<1x328x64xbf16, #tpu.memory_space<vmem>>, vector<1x288x64xbf16>
    %24 = vector.shape_cast %23 : vector<1x288x64xbf16> to vector<288x64xbf16>
    %c4 = arith.constant 4 : index
    %c0_24 = arith.constant 0 : index
    %c0_25 = arith.constant 0 : index
    %25 = vector.load %arg2[%c4, %c0_24, %c0_25] : memref<9x64x128xbf16, #tpu.memory_space<vmem>>, vector<1x64x128xbf16>
    %26 = vector.shape_cast %25 : vector<1x64x128xbf16> to vector<64x128xbf16>
    %cst_26 = arith.constant dense<0.000000e+00> : vector<288x128xf32>
    %27 = tpu.matmul %24, %26, %cst_26 {dimension_numbers = #tpu.dot_dimension_numbers<[1], [0], [0], [1], [0, 0, 1, 1], [], []>} : vector<288x64xbf16>, vector<64x128xbf16>, vector<288x128xf32> -> vector<288x128xf32>
    %28 = arith.addf %22, %27 : vector<288x128xf32>
    %c0_27 = arith.constant 0 : index
    %c20 = arith.constant 20 : index
    %c0_28 = arith.constant 0 : index
    %29 = vector.load %arg1[%c0_27, %c20, %c0_28] : memref<1x328x64xbf16, #tpu.memory_space<vmem>>, vector<1x288x64xbf16>
    %30 = vector.shape_cast %29 : vector<1x288x64xbf16> to vector<288x64xbf16>
    %c5 = arith.constant 5 : index
    %c0_29 = arith.constant 0 : index
    %c0_30 = arith.constant 0 : index
    %31 = vector.load %arg2[%c5, %c0_29, %c0_30] : memref<9x64x128xbf16, #tpu.memory_space<vmem>>, vector<1x64x128xbf16>
    %32 = vector.shape_cast %31 : vector<1x64x128xbf16> to vector<64x128xbf16>
    %cst_31 = arith.constant dense<0.000000e+00> : vector<288x128xf32>
    %33 = tpu.matmul %30, %32, %cst_31 {dimension_numbers = #tpu.dot_dimension_numbers<[1], [0], [0], [1], [0, 0, 1, 1], [], []>} : vector<288x64xbf16>, vector<64x128xbf16>, vector<288x128xf32> -> vector<288x128xf32>
    %34 = arith.addf %28, %33 : vector<288x128xf32>
    %c0_32 = arith.constant 0 : index
    %c36 = arith.constant 36 : index
    %c0_33 = arith.constant 0 : index
    %35 = vector.load %arg1[%c0_32, %c36, %c0_33] : memref<1x328x64xbf16, #tpu.memory_space<vmem>>, vector<1x288x64xbf16>
    %36 = vector.shape_cast %35 : vector<1x288x64xbf16> to vector<288x64xbf16>
    %c6 = arith.constant 6 : index
    %c0_34 = arith.constant 0 : index
    %c0_35 = arith.constant 0 : index
    %37 = vector.load %arg2[%c6, %c0_34, %c0_35] : memref<9x64x128xbf16, #tpu.memory_space<vmem>>, vector<1x64x128xbf16>
    %38 = vector.shape_cast %37 : vector<1x64x128xbf16> to vector<64x128xbf16>
    %cst_36 = arith.constant dense<0.000000e+00> : vector<288x128xf32>
    %39 = tpu.matmul %36, %38, %cst_36 {dimension_numbers = #tpu.dot_dimension_numbers<[1], [0], [0], [1], [0, 0, 1, 1], [], []>} : vector<288x64xbf16>, vector<64x128xbf16>, vector<288x128xf32> -> vector<288x128xf32>
    %40 = arith.addf %34, %39 : vector<288x128xf32>
    %c0_37 = arith.constant 0 : index
    %c37 = arith.constant 37 : index
    %c0_38 = arith.constant 0 : index
    %41 = vector.load %arg1[%c0_37, %c37, %c0_38] : memref<1x328x64xbf16, #tpu.memory_space<vmem>>, vector<1x288x64xbf16>
    %42 = vector.shape_cast %41 : vector<1x288x64xbf16> to vector<288x64xbf16>
    %c7 = arith.constant 7 : index
    %c0_39 = arith.constant 0 : index
    %c0_40 = arith.constant 0 : index
    %43 = vector.load %arg2[%c7, %c0_39, %c0_40] : memref<9x64x128xbf16, #tpu.memory_space<vmem>>, vector<1x64x128xbf16>
    %44 = vector.shape_cast %43 : vector<1x64x128xbf16> to vector<64x128xbf16>
    %cst_41 = arith.constant dense<0.000000e+00> : vector<288x128xf32>
    %45 = tpu.matmul %42, %44, %cst_41 {dimension_numbers = #tpu.dot_dimension_numbers<[1], [0], [0], [1], [0, 0, 1, 1], [], []>} : vector<288x64xbf16>, vector<64x128xbf16>, vector<288x128xf32> -> vector<288x128xf32>
    %46 = arith.addf %40, %45 : vector<288x128xf32>
    %c0_42 = arith.constant 0 : index
    %c38 = arith.constant 38 : index
    %c0_43 = arith.constant 0 : index
    %47 = vector.load %arg1[%c0_42, %c38, %c0_43] : memref<1x328x64xbf16, #tpu.memory_space<vmem>>, vector<1x288x64xbf16>
    %48 = vector.shape_cast %47 : vector<1x288x64xbf16> to vector<288x64xbf16>
    %c8 = arith.constant 8 : index
    %c0_44 = arith.constant 0 : index
    %c0_45 = arith.constant 0 : index
    %49 = vector.load %arg2[%c8, %c0_44, %c0_45] : memref<9x64x128xbf16, #tpu.memory_space<vmem>>, vector<1x64x128xbf16>
    %50 = vector.shape_cast %49 : vector<1x64x128xbf16> to vector<64x128xbf16>
    %cst_46 = arith.constant dense<0.000000e+00> : vector<288x128xf32>
    %51 = tpu.matmul %48, %50, %cst_46 {dimension_numbers = #tpu.dot_dimension_numbers<[1], [0], [0], [1], [0, 0, 1, 1], [], []>} : vector<288x64xbf16>, vector<64x128xbf16>, vector<288x128xf32> -> vector<288x128xf32>
    %52 = arith.addf %46, %51 : vector<288x128xf32>
    %c0_47 = arith.constant 0 : index
    %c0_48 = arith.constant 0 : index
    %53 = vector.load %arg3[%c0_47, %c0_48] : memref<1x128xf32, #tpu.memory_space<vmem>>, vector<1x128xf32>
    %54 = vector.broadcast %53 : vector<1x128xf32> to vector<288x128xf32>
    %55 = arith.addf %52, %54 : vector<288x128xf32>
    %56 = arith.mulf %55, %55 : vector<288x128xf32>
    %cst_49 = arith.constant dense<0.000000e+00> : vector<288xf32>
    %57 = vector.multi_reduction <add>, %56, %cst_49 [1] : vector<288x128xf32> to vector<288xf32>
    %58 = vector.shape_cast %57 : vector<288xf32> to vector<288x1xf32>
    %cst_50 = arith.constant 1.000000e-24 : f32
    %59 = vector.broadcast %cst_50 : f32 to vector<288x1xf32>
    %60 = arith.maximumf %58, %59 : vector<288x1xf32>
    %61 = math.rsqrt %60 : vector<288x1xf32>
    %62 = vector.broadcast %61 : vector<288x1xf32> to vector<288x128xf32>
    %63 = arith.mulf %55, %62 : vector<288x128xf32>
    %c0_51 = arith.constant 0 : index
    %c0_52 = arith.constant 0 : index
    %64 = vector.load %arg4[%c0_51, %c0_52] : memref<1x128xf32, #tpu.memory_space<vmem>>, vector<1x128xf32>
    %65 = vector.broadcast %64 : vector<1x128xf32> to vector<288x128xf32>
    %66 = arith.mulf %63, %65 : vector<288x128xf32>
    %67 = arith.index_cast %arg0 : i32 to index
    %c0_53 = arith.constant 0 : index
    %68 = vector.load %arg5[%67, %c0_53] : memref<2x32xf32, #tpu.memory_space<vmem>>, vector<1x32xf32>
    %69 = arith.negf %68 : vector<1x32xf32>
    %70 = math.exp %69 : vector<1x32xf32>
    %cst_54 = arith.constant 1.000000e+00 : f32
    %71 = vector.broadcast %cst_54 : f32 to vector<1x32xf32>
    %72 = arith.addf %71, %70 : vector<1x32xf32>
    %73 = arith.divf %71, %72 : vector<1x32xf32>
    %74 = arith.mulf %68, %73 : vector<1x32xf32>
    %c0_55 = arith.constant 0 : index
    %c0_56 = arith.constant 0 : index
    %75 = vector.load %arg6[%c0_55, %c0_56] : memref<32x256xf32, #tpu.memory_space<vmem>>, vector<32x256xf32>
    %cst_57 = arith.constant dense<0.000000e+00> : vector<1x256xf32>
    %76 = tpu.matmul %74, %75, %cst_57 {dimension_numbers = #tpu.dot_dimension_numbers<[1], [0], [0], [1], [0, 0, 1, 1], [], []>} : vector<1x32xf32>, vector<32x256xf32>, vector<1x256xf32> -> vector<1x256xf32>
    %c0_58 = arith.constant 0 : index
    %c0_59 = arith.constant 0 : index
    %77 = vector.load %arg7[%c0_58, %c0_59] : memref<1x256xf32, #tpu.memory_space<vmem>>, vector<1x256xf32>
    %78 = arith.addf %76, %77 : vector<1x256xf32>
    %79 = vector.extract_strided_slice %78 {offsets = [0, 0], sizes = [1, 128], strides = [1, 1]} : vector<1x256xf32> to vector<1x128xf32>
    %cst_60 = arith.constant 1.000000e+00 : f32
    %80 = vector.broadcast %cst_60 : f32 to vector<1x128xf32>
    %81 = arith.addf %79, %80 : vector<1x128xf32>
    %82 = vector.broadcast %81 : vector<1x128xf32> to vector<288x128xf32>
    %83 = arith.mulf %66, %82 : vector<288x128xf32>
    %84 = vector.extract_strided_slice %78 {offsets = [0, 128], sizes = [1, 128], strides = [1, 1]} : vector<1x256xf32> to vector<1x128xf32>
    %85 = vector.broadcast %84 : vector<1x128xf32> to vector<288x128xf32>
    %86 = arith.addf %83, %85 : vector<288x128xf32>
    %87 = arith.negf %86 : vector<288x128xf32>
    %88 = math.exp %87 : vector<288x128xf32>
    %cst_61 = arith.constant 1.000000e+00 : f32
    %89 = vector.broadcast %cst_61 : f32 to vector<288x128xf32>
    %90 = arith.addf %89, %88 : vector<288x128xf32>
    %91 = arith.divf %89, %90 : vector<288x128xf32>
    %92 = arith.mulf %86, %91 : vector<288x128xf32>
    %93 = arith.truncf %92 : vector<288x128xf32> to vector<288x128xbf16>
    %c0_62 = arith.constant 0 : index
    %c0_63 = arith.constant 0 : index
    %c0_64 = arith.constant 0 : index
    %94 = vector.load %arg8[%c0_62, %c0_63, %c0_64] : memref<1x288x128xbf16, #tpu.memory_space<vmem>>, vector<1x288x128xbf16>
    %95 = vector.shape_cast %94 : vector<1x288x128xbf16> to vector<288x128xbf16>
    %96 = vector.shape_cast %93 : vector<288x128xbf16> to vector<1x288x128xbf16>
    tpu.vector_store %arg8[%c0_62, %c0_63, %c0_64], %96 {strides = array<i32>} : memref<1x288x128xbf16, #tpu.memory_space<vmem>>, vector<1x288x128xbf16>,
    return
  }
  func.func @transform_0(%arg0: i32) -> (i32, i32, i32) {
    %c0_i32 = arith.constant 0 : i32
    %c0_i32_0 = arith.constant 0 : i32
    %c0_i32_1 = arith.constant 0 : i32
    return %arg0, %c0_i32, %c0_i32_0 : i32, i32, i32
  }
  func.func @transform_1(%arg0: i32) -> (i32, i32, i32) {
    %c0_i32 = arith.constant 0 : i32
    %c0_i32_0 = arith.constant 0 : i32
    %c0_i32_1 = arith.constant 0 : i32
    %c0_i32_2 = arith.constant 0 : i32
    return %c0_i32, %c0_i32_0, %c0_i32_1 : i32, i32, i32
  }
  func.func @transform_2(%arg0: i32) -> (i32, i32) {
    %c0_i32 = arith.constant 0 : i32
    %c0_i32_0 = arith.constant 0 : i32
    %c0_i32_1 = arith.constant 0 : i32
    return %c0_i32, %c0_i32_0 : i32, i32
  }
  func.func @transform_3(%arg0: i32) -> (i32, i32) {
    %c0_i32 = arith.constant 0 : i32
    %c0_i32_0 = arith.constant 0 : i32
    %c0_i32_1 = arith.constant 0 : i32
    return %c0_i32, %c0_i32_0 : i32, i32
  }
  func.func @transform_4(%arg0: i32) -> (i32, i32) {
    %c0_i32 = arith.constant 0 : i32
    %c0_i32_0 = arith.constant 0 : i32
    %c0_i32_1 = arith.constant 0 : i32
    return %c0_i32, %c0_i32_0 : i32, i32
  }
  func.func @transform_5(%arg0: i32) -> (i32, i32) {
    %c0_i32 = arith.constant 0 : i32
    %c0_i32_0 = arith.constant 0 : i32
    %c0_i32_1 = arith.constant 0 : i32
    return %c0_i32, %c0_i32_0 : i32, i32
  }
  func.func @transform_6(%arg0: i32) -> (i32, i32) {
    %c0_i32 = arith.constant 0 : i32
    %c0_i32_0 = arith.constant 0 : i32
    %c0_i32_1 = arith.constant 0 : i32
    return %c0_i32, %c0_i32_0 : i32, i32
  }
  func.func @transform_7(%arg0: i32) -> (i32, i32, i32) {
    %c0_i32 = arith.constant 0 : i32
    %c0_i32_0 = arith.constant 0 : i32
    %c0_i32_1 = arith.constant 0 : i32
    return %arg0, %c0_i32, %c0_i32_0 : i32, i32, i32
  }
}

module attributes {stable_mosaic.version = 11 : i64} {
  func.func @_block2_kernel(%arg0: i32, %arg1: memref<1x328x128xbf16, #tpu.memory_space<vmem>>, %arg2: memref<9x128x128xbf16, #tpu.memory_space<vmem>>, %arg3: memref<1x128xf32, #tpu.memory_space<vmem>>, %arg4: memref<1x128xf32, #tpu.memory_space<vmem>>, %arg5: memref<1x328x64xbf16, #tpu.memory_space<vmem>>, %arg6: memref<64x128xbf16, #tpu.memory_space<vmem>>, %arg7: memref<1x128xf32, #tpu.memory_space<vmem>>, %arg8: memref<1x288x128xf32, #tpu.memory_space<vmem>>) attributes {dimension_semantics = [#tpu.dimension_semantics<parallel>], iteration_bounds = array<i64: 2>, scalar_prefetch = 0 : i64, scratch_operands = 0 : i64, tpu.core_type = #tpu.core_type<tc>, window_params = [{transform_indices = @transform_0, window_bounds = array<i64: 1, 328, 128>}, {pipeline_mode = #tpu.pipeline_mode<synchronous>, transform_indices = @transform_1, window_bounds = array<i64: 9, 128, 128>}, {pipeline_mode = #tpu.pipeline_mode<synchronous>, transform_indices = @transform_2, window_bounds = array<i64: 1, 128>}, {pipeline_mode = #tpu.pipeline_mode<synchronous>, transform_indices = @transform_3, window_bounds = array<i64: 1, 128>}, {transform_indices = @transform_4, window_bounds = array<i64: 1, 328, 64>}, {pipeline_mode = #tpu.pipeline_mode<synchronous>, transform_indices = @transform_5, window_bounds = array<i64: 64, 128>}, {pipeline_mode = #tpu.pipeline_mode<synchronous>, transform_indices = @transform_6, window_bounds = array<i64: 1, 128>}, {transform_indices = @transform_7, window_bounds = array<i64: 1, 288, 128>}]} {
    %c0 = arith.constant 0 : index
    %c0_0 = arith.constant 0 : index
    %c0_1 = arith.constant 0 : index
    %0 = vector.load %arg1[%c0, %c0_0, %c0_1] : memref<1x328x128xbf16, #tpu.memory_space<vmem>>, vector<1x288x128xbf16>
    %1 = vector.shape_cast %0 : vector<1x288x128xbf16> to vector<288x128xbf16>
    %c0_2 = arith.constant 0 : index
    %c0_3 = arith.constant 0 : index
    %c0_4 = arith.constant 0 : index
    %2 = vector.load %arg2[%c0_2, %c0_3, %c0_4] : memref<9x128x128xbf16, #tpu.memory_space<vmem>>, vector<1x128x128xbf16>
    %3 = vector.shape_cast %2 : vector<1x128x128xbf16> to vector<128x128xbf16>
    %cst = arith.constant dense<0.000000e+00> : vector<288x128xf32>
    %4 = tpu.matmul %1, %3, %cst {dimension_numbers = #tpu.dot_dimension_numbers<[1], [0], [0], [1], [0, 0, 1, 1], [], []>} : vector<288x128xbf16>, vector<128x128xbf16>, vector<288x128xf32> -> vector<288x128xf32>
    %c0_5 = arith.constant 0 : index
    %c1 = arith.constant 1 : index
    %c0_6 = arith.constant 0 : index
    %5 = vector.load %arg1[%c0_5, %c1, %c0_6] : memref<1x328x128xbf16, #tpu.memory_space<vmem>>, vector<1x288x128xbf16>
    %6 = vector.shape_cast %5 : vector<1x288x128xbf16> to vector<288x128xbf16>
    %c1_7 = arith.constant 1 : index
    %c0_8 = arith.constant 0 : index
    %c0_9 = arith.constant 0 : index
    %7 = vector.load %arg2[%c1_7, %c0_8, %c0_9] : memref<9x128x128xbf16, #tpu.memory_space<vmem>>, vector<1x128x128xbf16>
    %8 = vector.shape_cast %7 : vector<1x128x128xbf16> to vector<128x128xbf16>
    %cst_10 = arith.constant dense<0.000000e+00> : vector<288x128xf32>
    %9 = tpu.matmul %6, %8, %cst_10 {dimension_numbers = #tpu.dot_dimension_numbers<[1], [0], [0], [1], [0, 0, 1, 1], [], []>} : vector<288x128xbf16>, vector<128x128xbf16>, vector<288x128xf32> -> vector<288x128xf32>
    %10 = arith.addf %4, %9 : vector<288x128xf32>
    %c0_11 = arith.constant 0 : index
    %c2 = arith.constant 2 : index
    %c0_12 = arith.constant 0 : index
    %11 = vector.load %arg1[%c0_11, %c2, %c0_12] : memref<1x328x128xbf16, #tpu.memory_space<vmem>>, vector<1x288x128xbf16>
    %12 = vector.shape_cast %11 : vector<1x288x128xbf16> to vector<288x128xbf16>
    %c2_13 = arith.constant 2 : index
    %c0_14 = arith.constant 0 : index
    %c0_15 = arith.constant 0 : index
    %13 = vector.load %arg2[%c2_13, %c0_14, %c0_15] : memref<9x128x128xbf16, #tpu.memory_space<vmem>>, vector<1x128x128xbf16>
    %14 = vector.shape_cast %13 : vector<1x128x128xbf16> to vector<128x128xbf16>
    %cst_16 = arith.constant dense<0.000000e+00> : vector<288x128xf32>
    %15 = tpu.matmul %12, %14, %cst_16 {dimension_numbers = #tpu.dot_dimension_numbers<[1], [0], [0], [1], [0, 0, 1, 1], [], []>} : vector<288x128xbf16>, vector<128x128xbf16>, vector<288x128xf32> -> vector<288x128xf32>
    %16 = arith.addf %10, %15 : vector<288x128xf32>
    %c0_17 = arith.constant 0 : index
    %c18 = arith.constant 18 : index
    %c0_18 = arith.constant 0 : index
    %17 = vector.load %arg1[%c0_17, %c18, %c0_18] : memref<1x328x128xbf16, #tpu.memory_space<vmem>>, vector<1x288x128xbf16>
    %18 = vector.shape_cast %17 : vector<1x288x128xbf16> to vector<288x128xbf16>
    %c3 = arith.constant 3 : index
    %c0_19 = arith.constant 0 : index
    %c0_20 = arith.constant 0 : index
    %19 = vector.load %arg2[%c3, %c0_19, %c0_20] : memref<9x128x128xbf16, #tpu.memory_space<vmem>>, vector<1x128x128xbf16>
    %20 = vector.shape_cast %19 : vector<1x128x128xbf16> to vector<128x128xbf16>
    %cst_21 = arith.constant dense<0.000000e+00> : vector<288x128xf32>
    %21 = tpu.matmul %18, %20, %cst_21 {dimension_numbers = #tpu.dot_dimension_numbers<[1], [0], [0], [1], [0, 0, 1, 1], [], []>} : vector<288x128xbf16>, vector<128x128xbf16>, vector<288x128xf32> -> vector<288x128xf32>
    %22 = arith.addf %16, %21 : vector<288x128xf32>
    %c0_22 = arith.constant 0 : index
    %c19 = arith.constant 19 : index
    %c0_23 = arith.constant 0 : index
    %23 = vector.load %arg1[%c0_22, %c19, %c0_23] : memref<1x328x128xbf16, #tpu.memory_space<vmem>>, vector<1x288x128xbf16>
    %24 = vector.shape_cast %23 : vector<1x288x128xbf16> to vector<288x128xbf16>
    %c4 = arith.constant 4 : index
    %c0_24 = arith.constant 0 : index
    %c0_25 = arith.constant 0 : index
    %25 = vector.load %arg2[%c4, %c0_24, %c0_25] : memref<9x128x128xbf16, #tpu.memory_space<vmem>>, vector<1x128x128xbf16>
    %26 = vector.shape_cast %25 : vector<1x128x128xbf16> to vector<128x128xbf16>
    %cst_26 = arith.constant dense<0.000000e+00> : vector<288x128xf32>
    %27 = tpu.matmul %24, %26, %cst_26 {dimension_numbers = #tpu.dot_dimension_numbers<[1], [0], [0], [1], [0, 0, 1, 1], [], []>} : vector<288x128xbf16>, vector<128x128xbf16>, vector<288x128xf32> -> vector<288x128xf32>
    %28 = arith.addf %22, %27 : vector<288x128xf32>
    %c0_27 = arith.constant 0 : index
    %c20 = arith.constant 20 : index
    %c0_28 = arith.constant 0 : index
    %29 = vector.load %arg1[%c0_27, %c20, %c0_28] : memref<1x328x128xbf16, #tpu.memory_space<vmem>>, vector<1x288x128xbf16>
    %30 = vector.shape_cast %29 : vector<1x288x128xbf16> to vector<288x128xbf16>
    %c5 = arith.constant 5 : index
    %c0_29 = arith.constant 0 : index
    %c0_30 = arith.constant 0 : index
    %31 = vector.load %arg2[%c5, %c0_29, %c0_30] : memref<9x128x128xbf16, #tpu.memory_space<vmem>>, vector<1x128x128xbf16>
    %32 = vector.shape_cast %31 : vector<1x128x128xbf16> to vector<128x128xbf16>
    %cst_31 = arith.constant dense<0.000000e+00> : vector<288x128xf32>
    %33 = tpu.matmul %30, %32, %cst_31 {dimension_numbers = #tpu.dot_dimension_numbers<[1], [0], [0], [1], [0, 0, 1, 1], [], []>} : vector<288x128xbf16>, vector<128x128xbf16>, vector<288x128xf32> -> vector<288x128xf32>
    %34 = arith.addf %28, %33 : vector<288x128xf32>
    %c0_32 = arith.constant 0 : index
    %c36 = arith.constant 36 : index
    %c0_33 = arith.constant 0 : index
    %35 = vector.load %arg1[%c0_32, %c36, %c0_33] : memref<1x328x128xbf16, #tpu.memory_space<vmem>>, vector<1x288x128xbf16>
    %36 = vector.shape_cast %35 : vector<1x288x128xbf16> to vector<288x128xbf16>
    %c6 = arith.constant 6 : index
    %c0_34 = arith.constant 0 : index
    %c0_35 = arith.constant 0 : index
    %37 = vector.load %arg2[%c6, %c0_34, %c0_35] : memref<9x128x128xbf16, #tpu.memory_space<vmem>>, vector<1x128x128xbf16>
    %38 = vector.shape_cast %37 : vector<1x128x128xbf16> to vector<128x128xbf16>
    %cst_36 = arith.constant dense<0.000000e+00> : vector<288x128xf32>
    %39 = tpu.matmul %36, %38, %cst_36 {dimension_numbers = #tpu.dot_dimension_numbers<[1], [0], [0], [1], [0, 0, 1, 1], [], []>} : vector<288x128xbf16>, vector<128x128xbf16>, vector<288x128xf32> -> vector<288x128xf32>
    %40 = arith.addf %34, %39 : vector<288x128xf32>
    %c0_37 = arith.constant 0 : index
    %c37 = arith.constant 37 : index
    %c0_38 = arith.constant 0 : index
    %41 = vector.load %arg1[%c0_37, %c37, %c0_38] : memref<1x328x128xbf16, #tpu.memory_space<vmem>>, vector<1x288x128xbf16>
    %42 = vector.shape_cast %41 : vector<1x288x128xbf16> to vector<288x128xbf16>
    %c7 = arith.constant 7 : index
    %c0_39 = arith.constant 0 : index
    %c0_40 = arith.constant 0 : index
    %43 = vector.load %arg2[%c7, %c0_39, %c0_40] : memref<9x128x128xbf16, #tpu.memory_space<vmem>>, vector<1x128x128xbf16>
    %44 = vector.shape_cast %43 : vector<1x128x128xbf16> to vector<128x128xbf16>
    %cst_41 = arith.constant dense<0.000000e+00> : vector<288x128xf32>
    %45 = tpu.matmul %42, %44, %cst_41 {dimension_numbers = #tpu.dot_dimension_numbers<[1], [0], [0], [1], [0, 0, 1, 1], [], []>} : vector<288x128xbf16>, vector<128x128xbf16>, vector<288x128xf32> -> vector<288x128xf32>
    %46 = arith.addf %40, %45 : vector<288x128xf32>
    %c0_42 = arith.constant 0 : index
    %c38 = arith.constant 38 : index
    %c0_43 = arith.constant 0 : index
    %47 = vector.load %arg1[%c0_42, %c38, %c0_43] : memref<1x328x128xbf16, #tpu.memory_space<vmem>>, vector<1x288x128xbf16>
    %48 = vector.shape_cast %47 : vector<1x288x128xbf16> to vector<288x128xbf16>
    %c8 = arith.constant 8 : index
    %c0_44 = arith.constant 0 : index
    %c0_45 = arith.constant 0 : index
    %49 = vector.load %arg2[%c8, %c0_44, %c0_45] : memref<9x128x128xbf16, #tpu.memory_space<vmem>>, vector<1x128x128xbf16>
    %50 = vector.shape_cast %49 : vector<1x128x128xbf16> to vector<128x128xbf16>
    %cst_46 = arith.constant dense<0.000000e+00> : vector<288x128xf32>
    %51 = tpu.matmul %48, %50, %cst_46 {dimension_numbers = #tpu.dot_dimension_numbers<[1], [0], [0], [1], [0, 0, 1, 1], [], []>} : vector<288x128xbf16>, vector<128x128xbf16>, vector<288x128xf32> -> vector<288x128xf32>
    %52 = arith.addf %46, %51 : vector<288x128xf32>
    %c0_47 = arith.constant 0 : index
    %c0_48 = arith.constant 0 : index
    %53 = vector.load %arg3[%c0_47, %c0_48] : memref<1x128xf32, #tpu.memory_space<vmem>>, vector<1x128xf32>
    %54 = vector.broadcast %53 : vector<1x128xf32> to vector<288x128xf32>
    %55 = arith.addf %52, %54 : vector<288x128xf32>
    %56 = arith.mulf %55, %55 : vector<288x128xf32>
    %cst_49 = arith.constant dense<0.000000e+00> : vector<288xf32>
    %57 = vector.multi_reduction <add>, %56, %cst_49 [1] : vector<288x128xf32> to vector<288xf32>
    %58 = vector.shape_cast %57 : vector<288xf32> to vector<288x1xf32>
    %cst_50 = arith.constant 1.000000e-24 : f32
    %59 = vector.broadcast %cst_50 : f32 to vector<288x1xf32>
    %60 = arith.maximumf %58, %59 : vector<288x1xf32>
    %61 = math.rsqrt %60 : vector<288x1xf32>
    %62 = vector.broadcast %61 : vector<288x1xf32> to vector<288x128xf32>
    %63 = arith.mulf %55, %62 : vector<288x128xf32>
    %c0_51 = arith.constant 0 : index
    %c0_52 = arith.constant 0 : index
    %64 = vector.load %arg4[%c0_51, %c0_52] : memref<1x128xf32, #tpu.memory_space<vmem>>, vector<1x128xf32>
    %65 = vector.broadcast %64 : vector<1x128xf32> to vector<288x128xf32>
    %66 = arith.mulf %63, %65 : vector<288x128xf32>
    %67 = arith.negf %66 : vector<288x128xf32>
    %68 = math.exp %67 : vector<288x128xf32>
    %cst_53 = arith.constant 1.000000e+00 : f32
    %69 = vector.broadcast %cst_53 : f32 to vector<288x128xf32>
    %70 = arith.addf %69, %68 : vector<288x128xf32>
    %71 = arith.divf %69, %70 : vector<288x128xf32>
    %72 = arith.mulf %66, %71 : vector<288x128xf32>
    %c0_54 = arith.constant 0 : index
    %c19_55 = arith.constant 19 : index
    %c0_56 = arith.constant 0 : index
    %73 = vector.load %arg5[%c0_54, %c19_55, %c0_56] : memref<1x328x64xbf16, #tpu.memory_space<vmem>>, vector<1x288x64xbf16>
    %74 = vector.shape_cast %73 : vector<1x288x64xbf16> to vector<288x64xbf16>
    %c0_57 = arith.constant 0 : index
    %c0_58 = arith.constant 0 : index
    %75 = vector.load %arg6[%c0_57, %c0_58] : memref<64x128xbf16, #tpu.memory_space<vmem>>, vector<64x128xbf16>
    %cst_59 = arith.constant dense<0.000000e+00> : vector<288x128xf32>
    %76 = tpu.matmul %74, %75, %cst_59 {dimension_numbers = #tpu.dot_dimension_numbers<[1], [0], [0], [1], [0, 0, 1, 1], [], []>} : vector<288x64xbf16>, vector<64x128xbf16>, vector<288x128xf32> -> vector<288x128xf32>
    %c0_60 = arith.constant 0 : index
    %c0_61 = arith.constant 0 : index
    %77 = vector.load %arg7[%c0_60, %c0_61] : memref<1x128xf32, #tpu.memory_space<vmem>>, vector<1x128xf32>
    %78 = vector.broadcast %77 : vector<1x128xf32> to vector<288x128xf32>
    %79 = arith.addf %76, %78 : vector<288x128xf32>
    %80 = arith.addf %72, %79 : vector<288x128xf32>
    %c0_62 = arith.constant 0 : index
    %c0_63 = arith.constant 0 : index
    %c0_64 = arith.constant 0 : index
    %81 = vector.load %arg8[%c0_62, %c0_63, %c0_64] : memref<1x288x128xf32, #tpu.memory_space<vmem>>, vector<1x288x128xf32>
    %82 = vector.shape_cast %81 : vector<1x288x128xf32> to vector<288x128xf32>
    %83 = vector.shape_cast %80 : vector<288x128xf32> to vector<1x288x128xf32>
    tpu.vector_store %arg8[%c0_62, %c0_63, %c0_64], %83 {strides = array<i32>} : memref<1x288x128xf32, #tpu.memory_space<vmem>>, vector<1x288x128xf32>,
    return
  }
  func.func @transform_0(%arg0: i32) -> (i32, i32, i32) {
    %c0_i32 = arith.constant 0 : i32
    %c0_i32_0 = arith.constant 0 : i32
    %c0_i32_1 = arith.constant 0 : i32
    return %arg0, %c0_i32, %c0_i32_0 : i32, i32, i32
  }
  func.func @transform_1(%arg0: i32) -> (i32, i32, i32) {
    %c0_i32 = arith.constant 0 : i32
    %c0_i32_0 = arith.constant 0 : i32
    %c0_i32_1 = arith.constant 0 : i32
    %c0_i32_2 = arith.constant 0 : i32
    return %c0_i32, %c0_i32_0, %c0_i32_1 : i32, i32, i32
  }
  func.func @transform_2(%arg0: i32) -> (i32, i32) {
    %c0_i32 = arith.constant 0 : i32
    %c0_i32_0 = arith.constant 0 : i32
    %c0_i32_1 = arith.constant 0 : i32
    return %c0_i32, %c0_i32_0 : i32, i32
  }
  func.func @transform_3(%arg0: i32) -> (i32, i32) {
    %c0_i32 = arith.constant 0 : i32
    %c0_i32_0 = arith.constant 0 : i32
    %c0_i32_1 = arith.constant 0 : i32
    return %c0_i32, %c0_i32_0 : i32, i32
  }
  func.func @transform_4(%arg0: i32) -> (i32, i32, i32) {
    %c0_i32 = arith.constant 0 : i32
    %c0_i32_0 = arith.constant 0 : i32
    %c0_i32_1 = arith.constant 0 : i32
    return %arg0, %c0_i32, %c0_i32_0 : i32, i32, i32
  }
  func.func @transform_5(%arg0: i32) -> (i32, i32) {
    %c0_i32 = arith.constant 0 : i32
    %c0_i32_0 = arith.constant 0 : i32
    %c0_i32_1 = arith.constant 0 : i32
    return %c0_i32, %c0_i32_0 : i32, i32
  }
  func.func @transform_6(%arg0: i32) -> (i32, i32) {
    %c0_i32 = arith.constant 0 : i32
    %c0_i32_0 = arith.constant 0 : i32
    %c0_i32_1 = arith.constant 0 : i32
    return %c0_i32, %c0_i32_0 : i32, i32
  }
  func.func @transform_7(%arg0: i32) -> (i32, i32, i32) {
    %c0_i32 = arith.constant 0 : i32
    %c0_i32_0 = arith.constant 0 : i32
    %c0_i32_1 = arith.constant 0 : i32
    return %arg0, %c0_i32, %c0_i32_0 : i32, i32, i32
  }
}

</mosaic_0001>

<bundles_post_ra>
// kernel: resnet_block_forward.2
= control target key start
LH: loop header
LB: loop body
LE: loop exit
PB: predicated region body
PF: predicated region fallthrough
CT: control target
= control target key end

     0   :  { %s6041_s24 = smov 0   ;;  %s9223_s0 = inlined_call_operand.vmem [shape: bf16[2,328,64], index: 0, kind: input, shape index: {}]   ;;  %s9224_s1 = inlined_call_operand.vmem [shape: bf16[9,64,128], index: 1, kind: input, shape index: {}]   ;;  %s9225_s2 = inlined_call_operand.vmem [shape: f32[1,128], index: 2, kind: input, shape index: {}]   ;;  %s9226_s3 = inlined_call_operand.vmem [shape: f32[1,128], index: 3, kind: input, shape index: {}]   ;;  %s9227_s4 = inlined_call_operand.vmem [shape: f32[2,32], index: 4, kind: input, shape index: {}]   ;;  %s9228_s5 = inlined_call_operand.vmem [shape: f32[32,256], index: 5, kind: input, shape index: {}]   ;;  %s9229_s6 = inlined_call_operand.vmem [shape: f32[1,256], index: 6, kind: input, shape index: {}]   ;;  %s9230_s7 = inlined_call_operand.vmem [shape: bf16[2,288,128], index: 7, kind: output, shape index: {}]  }
   0x1 LB: > { %s6047_s25 = sadd.s32 4294967295, %s5999_s24   ;;  %p4904_p0 = scmp.ge.s32.totalorder %s5999_s24, 1  ;;  %s5999_s24 = sphi %s6041_s24, %s17_s24  }
   0x2   : > { %p237_p1 = scmp.lt.s32.totalorder %s5999_s24, 3 }
   0x4   : > { %p238_p2 = pnand %p4904_p0, %p237_p1 }
   0x6   : > { %241 = sbr.rel (%p238_p2) target bundleno = 1069 (0x42d), region = 48 }
   0xb   : > { %v5546_v0 = vld [vmem:[%s9224_s1 + $0x38] sm:$0xff]  ;;  %p269_p3 = scmp.lt.s32.totalorder %s6047_s25, 1  ;;  %v5545_v1 = vld [vmem:[%s9224_s1 + $0x30] sm:$0xff]  ;;  %v5544_v2 = vld [vmem:[%s9224_s1 + $0x28] sm:$0xff]  ;;  %vm427_vm0 = vsmask.f32 7424  ;;  %s3897_s11 = scalar_lea.vmem %s9227_s4, %s6047_s25 }
   0xc   : > { %659 = vmatpush.bf16.msra.mxu0 %v5546_v0  ;;  %5723 = vmatpush.bf16.msra.mxu1 %v5546_v0  ;;  %v5543_v16 = vld [vmem:[%s9224_s1 + $0x20] sm:$0xff]  ;;  %v5571_v29 = vld [vmem:[%s9224_s1 + $0x78] sm:$0xff]  ;;  %vm600_vm1 = vcmask 523264   ;;  %v5570_v43 = vld [vmem:[%s9224_s1 + $0x70] sm:$0xff]  ;;  %vm926_vm2 = vcmask 1046528   ;;  %vm1976_vm4 = vcmask 1045504  }
   0xd   : > { %s6059_s30 = scalar_select %p269_p3, %s6047_s25, 1  ;;  %5724 = vmatpush.bf16.msra.mxu2 %v5546_v0  ;;  %5725 = vmatpush.bf16.msra.mxu3 %v5546_v0  ;;  %v5542_v30 = vld [vmem:[%s9224_s1 + $0x18] sm:$0xff]  ;;  %v5541_v44 = vld [vmem:[%s9224_s1 + $0x10] sm:$0xff]  ;;  %v5569_v52 = vld [vmem:[%s9224_s1 + $0x68] sm:$0xff]  ;;  %vm1579_vm3 = vsmask.f32 6400 }
   0xe   : > { %v5575_v40 = vld [vmem:[%s9224_s1 + $0x98] sm:$0xff]  ;;  %v5574_v48 = vld [vmem:[%s9224_s1 + $0x90] sm:$0xff]  ;;  %v5540_v53 = vld [vmem:[%s9224_s1 + $0x8] sm:$0xff]  ;;  %vm3026_vm5 = vcmask 1044480   ;;  %vm2629_vm6 = vsmask.f32 5376 }
   0xf   : > { %s5735_s8 = smul.u32 164, %s6059_s30  ;;  %v5550_v41 = vld [vmem:[%s9224_s1 + $0x58] sm:$0xff]  ;;  %v5549_v51 = vld [vmem:[%s9224_s1 + $0x50] sm:$0xff]  ;;  %v5548_v62 = vld [vmem:[%s9224_s1 + $0x48] sm:$0xff]  ;;  %vm3933_vm11 = vcmask 261120  }
  0x10   : > { %660 = vmatpush.bf16.msra.mxu0 %v5545_v1  ;;  %5726 = vmatpush.bf16.msra.mxu1 %v5545_v1  ;;  %s5736_s9 = smul.u32 144, %s6059_s30 }
  0x11   : > { %s6068_s13 = scalar_lea.vmem %s9223_s0, %s5735_s8  ;;  %5727 = vmatpush.bf16.msra.mxu2 %v5545_v1  ;;  %5728 = vmatpush.bf16.msra.mxu3 %v5545_v1 }
  0x12   : > { %v6071_v3 = vld [vmem:[%s6068_s13] sm:$0xff]   ;;  %v6074_v4 = vld [vmem:[%s6068_s13 + $0x8] sm:$0xff]  ;;  %v6082_v8 = vld [vmem:[%s6068_s13 + $0x30] sm:$0xff] }
  0x13   : > { %v6077_v5 = vld [vmem:[%s6068_s13 + $0x28] sm:$0xff]  ;;  %v429_v6 = vshrl.u32 %v6071_v3, 16  ;;  %v431_v7 = vshll.u32 %v6071_v3, 16  ;;  %v6085_v9 = vld [vmem:[%s6068_s13 + $0x50] sm:$0xff]  ;;  %v6088_v10 = vld [vmem:[%s6068_s13 + $0x58] sm:$0xff]  ;;  %v436_v11 = vshll.u32 %v6074_v4, 16 }
  0x14   : > { %v468_v12 = vshll.u32 %v6077_v5, 16  ;;  %v472_v13 = vshrl.u32 %v6077_v5, 16  ;;  %v6094_v14 = vld [vmem:[%s6068_s13 + $0x68] sm:$0xff]  ;;  %v6097_v15 = vld [vmem:[%s6068_s13 + $0x70] sm:$0xff]  ;;  %661 = vmatpush.bf16.msra.mxu0 %v5544_v2  ;;  %5729 = vmatpush.bf16.msra.mxu1 %v5544_v2  ;;  %v476_v18 = vshll.u32 %v6082_v8, 16  ;;  %v508_v19 = vshll.u32 %v6085_v9, 16 }
  0x15   : > { %v433_v17 = vrot.slane %v431_v7, 1  ;;  %v512_v20 = vshrl.u32 %v6085_v9, 16  ;;  %5730 = vmatpush.bf16.msra.mxu2 %v5544_v2  ;;  %5731 = vmatpush.bf16.msra.mxu3 %v5544_v2  ;;  %v438_v21 = vrot.slane %v436_v11, 1  ;;  %v516_v23 = vshll.u32 %v6088_v10, 16  ;;  %v6145_v46 = vld [vmem:[%s6068_s13 + $0x10] sm:$0xff]  ;;  %v6148_v47 = vld [vmem:[%s6068_s13 + $0x38] sm:$0xff] }
  0x16   : > { %v6105_v22 = vrot.slane %v468_v12, 1  ;;  %v532_v24 = vshll.u32 %v6094_v14, 16  ;;  %v478_v26 = vrot.slane %v476_v18, 1  ;;  %v6109_v27 = vrot.slane %v508_v19, 1  ;;  %v6154_v49 = vld [vmem:[%s6068_s13 + $0x60] sm:$0xff]  ;;  %v6157_v50 = vld [vmem:[%s6068_s13 + $0x78] sm:$0xff] }
  0x17   : > { %v434_v25 = vor.u32 %v433_v17, %v429_v6  ;;  %v536_v28 = vshrl.u32 %v6094_v14, 16  ;;  %v518_v32 = vrot.slane %v516_v23, 1  ;;  %v540_v34 = vshll.u32 %v6097_v15, 16  ;;  %v6180_v6 = vld [vmem:[%s6068_s13 + $0x20] sm:$0xff]  ;;  %v6193_v23 = vld [vmem:[%s6068_s13 + $0x18] sm:$0xff] }
  0x18   : > { %v474_v31 = vor.u32 %v472_v13, %v6105_v22  ;;  %v6119_v33 = vrot.slane %v532_v24, 1  ;;  %662 = vmatpush.bf16.msra.mxu0 %v5543_v16  ;;  %5732 = vmatpush.bf16.msra.mxu1 %v5543_v16  ;;  %v514_v36 = vor.u32 %v512_v20, %v6109_v27  ;;  %v440_v54 = vshrl.u32 %v6074_v4, 16  ;;  %v6196_v24 = vld [vmem:[%s6068_s13 + $0x40] sm:$0xff] }
  0x19   : > { %v439_v35 = vsel %vm427_vm0, %v434_v25, %v438_v21  ;;  %5733 = vmatpush.bf16.msra.mxu2 %v5543_v16  ;;  %5734 = vmatpush.bf16.msra.mxu3 %v5543_v16  ;;  %v542_v39 = vrot.slane %v540_v34, 1  ;;  %v444_v55 = vshll.u32 %v6145_v46, 16  ;;  %v480_v56 = vshrl.u32 %v6082_v8, 16  ;;  %v5547_v16 = vld [vmem:[%s9224_s1 + $0x40] sm:$0xff] }
  0x1a   : > { %v479_v37 = vsel %vm427_vm0, %v474_v31, %v478_v26  ;;  %v538_v38 = vor.u32 %v536_v28, %v6119_v33  ;;  %v519_v42 = vsel %vm427_vm0, %v514_v36, %v518_v32  ;;  %v484_v57 = vshll.u32 %v6148_v47, 16  ;;  %v5568_v28 = vld [vmem:[%s9224_s1 + $0x60] sm:$0xff] }
  0x1b   : > { %4999 = vmatmul.msk.bf16.vlgmr.msra.gmra.mxu0 %vm600_vm1, %v439_v35  ;;  %5004 = vmatmul.msk.bf16.vlgmr.msra.gmra.mxu1 %vm600_vm1, %v479_v37  ;;  %v520_v58 = vshrl.u32 %v6088_v10, 16  ;;  %v524_v59 = vshll.u32 %v6154_v49, 16  ;;  %v544_v60 = vshrl.u32 %v6097_v15, 16  ;;  %v548_v61 = vshll.u32 %v6157_v50, 16  ;;  %v6211_v31 = vld [vmem:[%s6068_s13 + $0x80] sm:$0xff]  ;;  %v6215_v35 = vld [vmem:[%s6068_s13 + $0x48] sm:$0xff] }
  0x1c   : > { %818 = vmatpush.bf16.msrb.mxu1 %v5542_v30  ;;  %v543_v45 = vsel %vm427_vm0, %v538_v38, %v542_v39  ;;  %5009 = vmatmul.msk.bf16.vlgmr.msra.gmra.mxu2 %vm600_vm1, %v519_v42  ;;  %v442_v63 = vor.u32 %v440_v54, %v438_v21  ;;  %v446_v0 = vrot.slane %v444_v55, 1  ;;  %v482_v1 = vor.u32 %v480_v56, %v478_v26  ;;  %v5573_v26 = vld [vmem:[%s9224_s1 + $0x88] sm:$0xff] }
  0x1d   : > { %1435 = vmatpush.bf16.msrb.mxu3 %v5571_v29  ;;  %1832 = vmatpush.bf16.msrb.mxu0 %v5575_v40  ;;  %v486_v2 = vrot.slane %v484_v57, 1  ;;  %v522_v7 = vor.u32 %v520_v58, %v518_v32  ;;  %v526_v11 = vrot.slane %v524_v59, 1  ;;  %v546_v12 = vor.u32 %v544_v60, %v542_v39  ;;  %v5539_v29 = vld [vmem:[%s9224_s1] sm:$0xff] }
  0x1e   : > { %5012 = vmatmul.msk.bf16.vlgmr.msra.gmra.mxu3 %vm600_vm1, %v543_v45  ;;  %1046 = vmatpush.bf16.msrb.mxu2 %v5550_v41  ;;  %v550_v13 = vrot.slane %v548_v61, 1  ;;  %v447_v17 = vsel %vm427_vm0, %v442_v63, %v446_v0  ;;  %v460_v19 = vshll.u32 %v6180_v6, 16  ;;  %v464_v30 = vshrl.u32 %v6180_v6, 16  ;;  %v6247_v63 = vld [vmem:[%s6068_s13 + $0x88] sm:$0xff] }
  0x1f   : > { %v487_v18 = vsel %vm427_vm0, %v482_v1, %v486_v2  ;;  %v527_v20 = vsel %vm427_vm0, %v522_v7, %v526_v11  ;;  %v448_v34 = vshrl.u32 %v6145_v46, 16  ;;  %v452_v36 = vshll.u32 %v6193_v23, 16  ;;  %v5704_v1 = vld [vmem:[%s6068_s13] sm:$0xe] }
  0x20   : > { %819 = vmatpush.bf16.msrb.mxu1 %v5541_v44  ;;  %v551_v21 = vsel %vm427_vm0, %v546_v12, %v550_v13  ;;  %v462_v25 = vrot.slane %v460_v19, 1  ;;  %v488_v37 = vshrl.u32 %v6148_v47, 16  ;;  %v492_v38 = vshll.u32 %v6196_v24, 16 }
  0x21   : > { %1436 = vmatpush.bf16.msrb.mxu3 %v5570_v43  ;;  %1833 = vmatpush.bf16.msrb.mxu0 %v5574_v48  ;;  %v528_v40 = vshrl.u32 %v6154_v49, 16  ;;  %v552_v41 = vshrl.u32 %v6157_v50, 16  ;;  %v556_v42 = vshll.u32 %v6211_v31, 16  ;;  %v500_v43 = vshll.u32 %v6215_v35, 16 }
  0x22   : > { %1047 = vmatpush.bf16.msrb.mxu2 %v5549_v51  ;;  %v466_v32 = vor.u32 %v464_v30, %v462_v25  ;;  %v450_v44 = vor.u32 %v448_v34, %v446_v0  ;;  %v454_v45 = vrot.slane %v452_v36, 1  ;;  %v490_v48 = vor.u32 %v488_v37, %v486_v2  ;;  %v5703_v0 = vld [vmem:[%s6068_s13] sm:$0xf0]  ;;  %v5579_v34 = vld [vmem:[%s9224_s1 + $0xb8] sm:$0xff] }
  0x23   : > { %v494_v51 = vrot.slane %v492_v38, 1  ;;  %v558_v54 = vrot.slane %v556_v42, 1  ;;  %v502_v55 = vrot.slane %v500_v43, 1  ;;  %v496_v2 = vshrl.u32 %v6196_v24, 16  ;;  %v5608_v36 = vld [vmem:[%s9224_s1 + $0x118] sm:$0xff] }
  0x24   : > { %820 = vmatpush.bf16.msrb.mxu1 %v5540_v53  ;;  %v6222_v39 = vsel %vm427_vm0, %v466_v32, %v6105_v22  ;;  %v554_v53 = vor.u32 %v552_v41, %v550_v13  ;;  %v504_v22 = vshrl.u32 %v6215_v35, 16  ;;  %v455_v56 = vsel %vm427_vm0, %v450_v44, %v454_v45  ;;  %v1177_v41 = vld [vmem:[%s6068_s13 + $0x8] sm:$0xe]  ;;  %v6280_v42 = vld [vmem:[%s6068_s13 + $0xc] sm:$0xf] }
  0x25   : > { %1437 = vmatpush.bf16.msrb.mxu3 %v5569_v52  ;;  %1834 = vmatpush.bf16.msrb.mxu0 %v5573_v26  ;;  %v530_v52 = vor.u32 %v528_v40, %v526_v11  ;;  %v495_v57 = vsel %vm427_vm0, %v490_v48, %v494_v51  ;;  %v560_v7 = vshrl.u32 %v6211_v31, 16  ;;  %v564_v11 = vshll.u32 %v6247_v63, 16 }
  0x26   : > { %1048 = vmatpush.bf16.msrb.mxu2 %v5548_v62  ;;  %v559_v59 = vsel %vm427_vm0, %v554_v53, %v558_v54  ;;  %v506_v60 = vor.u32 %v504_v22, %v502_v55  ;;  %v5572_v62 = vld [vmem:[%s9224_s1 + $0x80] sm:$0xff]  ;;  %v5705_v12 = vor.u32 %v5704_v1, %v5703_v0  ;;  %v568_v38 = vshrl.u32 %v6247_v63, 16 }
  0x27   : > { %v535_v58 = vsel %vm427_vm0, %v530_v52, %v6119_v33  ;;  %v5600_v33 = vld [vmem:[%s9224_s1 + $0xd8] sm:$0xff]  ;;  %v1260_v43 = vunpack.c.l.b16 %v1177_v41  ;;  %v9231_v44 = vunpack.c.l.b16 %v6280_v42  ;;  %v5551_v52 = vld [vmem:[%s6068_s13 + $0x10] sm:$0xff] }
  0x28   : > { %821 = vmatpush.bf16.msrb.mxu1 %v5539_v29  ;;  %v511_v61 = vsel %vm427_vm0, %v506_v60, %v6109_v27  ;;  %v456_v27 = vshrl.u32 %v6193_v23, 16  ;;  %v927_v19 = vrot.slane %v5705_v12, 1 }
  0x29   : > { %1438 = vmatpush.bf16.msrb.mxu3 %v5568_v28  ;;  %1835 = vmatpush.bf16.msrb.mxu0 %v5572_v62  ;;  %v1297_v53 = vpack.c.b16 %v9231_v44, %v1260_v43  ;;  %v5554_v43 = vld [vmem:[%s6068_s13 + $0x28] sm:$0xff] }
  0x2a   : > { %1049 = vmatpush.bf16.msrb.mxu2 %v5547_v16  ;;  %v458_v13 = vor.u32 %v456_v27, %v454_v45  ;;  %v498_v16 = vor.u32 %v496_v2, %v494_v51  ;;  %v930_v51 = vrot.slane %v6145_v46, 1  ;;  %v932_v27 = vrot.slane %v6193_v23, 1 }
  0x2b   : > { %5000 = vmatmul.msk.bf16.gmra.mxu0 %vm600_vm1, %v447_v17  ;;  %5005 = vmatmul.msk.bf16.gmra.mxu1 %vm600_vm1, %v487_v18  ;;  %v562_v17 = vor.u32 %v560_v7, %v558_v54  ;;  %v566_v18 = vrot.slane %v564_v11, 1  ;;  %v1581_v22 = vshrl.u32 %v1297_v53, 16  ;;  %v1317_v2 = vrot.slane %v5551_v52, 1  ;;  %v5552_v7 = vld [vmem:[%s6068_s13 + $0x18] sm:$0xff] }
  0x2c   : > { %5010 = vmatmul.msk.bf16.gmra.mxu2 %vm600_vm1, %v527_v20  ;;  %v928_v20 = vrot.slane %v6074_v4, 1  ;;  %v463_v26 = vsel %vm427_vm0, %v458_v13, %v462_v25  ;;  %v503_v28 = vsel %vm427_vm0, %v498_v16, %v502_v55  ;;  %v5604_v25 = vld [vmem:[%s9224_s1 + $0xf8] sm:$0xff]  ;;  %2096 = vmatpush.bf16.msra.mxu1 %v5579_v34  ;;  %v933_v11 = vsel %vm926_vm2, %v930_v51, %v932_v27 }
  0x2d   : > { %v567_v29 = vsel %vm427_vm0, %v562_v17, %v566_v18  ;;  %2882 = vmatpush.bf16.msra.mxu3 %v5604_v25  ;;  %3146 = vmatpush.bf16.msra.mxu0 %v5608_v36  ;;  %v570_v45 = vor.u32 %v568_v38, %v566_v18  ;;  %v1598_v13 = vshrl.u32 %v5552_v7, 16  ;;  %v1601_v16 = vshll.u32 %v5552_v7, 16 }
  0x2e   : > { %5013 = vmatmul.msk.bf16.gmra.mxu3 %vm600_vm1, %v551_v21  ;;  %2485 = vmatpush.bf16.msra.mxu2 %v5600_v33  ;;  %v324_v21 = vld [vmem:[%s6068_s13 + $0x90] sm:$0x1]  ;;  %v929_v30 = vsel %vm926_vm2, %v927_v19, %v928_v20  ;;  %v931_v55 = vsel %vm926_vm2, %v928_v20, %v930_v51  ;;  %v934_v20 = vrot.slane %v6180_v6, 1  ;;  %v936_v38 = vrot.slane %v6077_v5, 1 }
  0x2f   : > { %v407_v32 = vunpack.c.l.b16 %v324_v21  ;;  %v1600_v17 = vrot.slane %v1598_v13, 1  ;;  %v1603_v18 = vrot.slane %v1601_v16, 2  ;;  %v1319_v21 = vrot.slane %v5552_v7, 1 }
  0x30   : > { %v1619_v51 = vshll.u32 %v5554_v43, 16  ;;  %v940_v16 = vrot.slane %v6148_v47, 1 }
  0x31   : > { %v6274_v37 = vpack.c.b16 %v407_v32, %v407_v32  ;;  %v1604_v19 = vor.u32 %v1603_v18, %v1600_v17 }
  0x33   : > { %v572_v40 = vshll.u32 %v6274_v37, 16 }
  0x35   : > { %v574_v48 = vrot.slane %v572_v40, 1 }
  0x37   : > { %v575_v54 = vsel %vm427_vm0, %v570_v45, %v574_v48  ;;  %v937_v45 = vsel %vm926_vm2, %v934_v20, %v936_v38  ;;  %v1616_v48 = vshrl.u32 %v5554_v43, 16 }
  0x3b   : > { %5001 = vmatmul.msk.bf16.gmra.mxu0 %vm600_vm1, %v455_v56  ;;  %5006 = vmatmul.msk.bf16.gmra.mxu1 %vm600_vm1, %v495_v57  ;;  %v1584_v56 = vshll.u32 %v1297_v53, 16  ;;  %v1589_v57 = vshrl.u32 %v5551_v52, 16 }
  0x3c   : > { %5011 = vmatmul.msk.bf16.gmra.mxu2 %vm600_vm1, %v535_v58  ;;  %v1592_v58 = vshll.u32 %v5551_v52, 16  ;;  %v1618_v52 = vrot.slane %v1616_v48, 1 }
  0x3d   : > { %v1586_v60 = vrot.slane %v1584_v56, 2  ;;  %v1591_v62 = vrot.slane %v1589_v57, 1  ;;  %v938_v56 = vrot.slane %v6082_v8, 1  ;;  %v1323_v57 = vrot.slane %v5554_v43, 1 }
  0x3e   : > { %5014 = vmatmul.msk.bf16.gmra.mxu3 %vm600_vm1, %v559_v59  ;;  %v1583_v59 = vrot.slane %v1581_v22, 1  ;;  %v1594_v33 = vrot.slane %v1592_v58, 2  ;;  %v942_v43 = vrot.slane %v6196_v24, 1 }
  0x40   : > { %v1587_v0 = vor.u32 %v1586_v60, %v1583_v59  ;;  %v1595_v1 = vor.u32 %v1594_v33, %v1591_v62  ;;  %v5555_v62 = vld [vmem:[%s6068_s13 + $0x30] sm:$0xff]  ;;  %v939_v33 = vsel %vm926_vm2, %v936_v38, %v938_v56 }
  0x41   : > { %v1325_v17 = vrot.slane %v5555_v62, 1 }
  0x4b   : > { %5002 = vmatmul.msk.bf16.gmra.mxu0 %vm600_vm1, %v463_v26  ;;  %5007 = vmatmul.msk.bf16.gmra.mxu1 %vm600_vm1, %v503_v28  ;;  %v1605_v26 = vsel %vm1579_vm3, %v1595_v1, %v1604_v19  ;;  %v5553_v28 = vld [vmem:[%s6068_s13 + $0x20] sm:$0xff] }
  0x4c   : > { %5075 = vmatmul.msk.bf16.vlgmr.msrb.gmra.mxu2 %vm600_vm1, %v929_v30  ;;  %v1607_v30 = vshrl.u32 %v5553_v28, 16  ;;  %v1610_v32 = vshll.u32 %v5553_v28, 16  ;;  %v1321_v40 = vrot.slane %v5553_v28, 1  ;;  %v5556_v28 = vld [vmem:[%s6068_s13 + $0x38] sm:$0xff] }
  0x4e   : > { %5015 = vmatmul.msk.bf16.gmra.mxu3 %vm600_vm1, %v567_v29  ;;  %v1320_v29 = vsel %vm926_vm2, %v1317_v2, %v1319_v21  ;;  %v1609_v25 = vrot.slane %v1607_v30, 1  ;;  %v1612_v34 = vrot.slane %v1610_v32, 2  ;;  %v1634_v30 = vshrl.u32 %v5556_v28, 16 }
  0x4f   : > { %v1637_v32 = vshll.u32 %v5556_v28, 16 }
  0x50   : > { %v1613_v36 = vor.u32 %v1612_v34, %v1609_v25 }
  0x52   : > { %v1614_v41 = vsel %vm1579_vm3, %v1604_v19, %v1613_v36 }
  0x5b   : > { %5003 = vmatmul.msk.bf16.gmra.mxu0 %vm600_vm1, %v6222_v39  ;;  %5008 = vmatmul.msk.bf16.gmra.mxu1 %vm600_vm1, %v511_v61  ;;  %v1316_v39 = vrot.slane %v1297_v53, 1  ;;  %v1596_v61 = vsel %vm1579_vm3, %v1587_v0, %v1595_v1  ;;  %v1621_v53 = vrot.slane %v1619_v51, 2  ;;  %v1324_v0 = vsel %vm926_vm2, %v1321_v40, %v1323_v57 }
  0x5c   : > { %5076 = vmatmul.msk.bf16.gmra.mxu2 %vm600_vm1, %v931_v55  ;;  %v5603_v55 = vld [vmem:[%s9224_s1 + $0xf0] sm:$0xff]  ;;  %v1625_v1 = vshrl.u32 %v5555_v62, 16 }
  0x5d   : > { %v1318_v12 = vsel %vm926_vm2, %v1316_v39, %v1317_v2  ;;  %2883 = vmatpush.bf16.msra.mxu3 %v5603_v55  ;;  %v1622_v22 = vor.u32 %v1621_v53, %v1618_v52  ;;  %v5607_v39 = vld [vmem:[%s9224_s1 + $0x110] sm:$0xff]  ;;  %v943_v55 = vsel %vm926_vm2, %v940_v16, %v942_v43 }
  0x5e   : > { %5016 = vmatmul.msk.bf16.gmra.mxu3 %vm600_vm1, %v575_v54  ;;  %v5599_v54 = vld [vmem:[%s9224_s1 + $0xd0] sm:$0xff]  ;;  %3147 = vmatpush.bf16.msra.mxu0 %v5607_v39 }
  0x5f   : > { %2486 = vmatpush.bf16.msra.mxu2 %v5599_v54  ;;  %v1623_v60 = vsel %vm1579_vm3, %v1613_v36, %v1622_v22  ;;  %v5557_v54 = vld [vmem:[%s6068_s13 + $0x40] sm:$0xff] }
  0x60   : > { %v1329_v39 = vrot.slane %v5557_v54, 1 }
  0x6b   : > { %5033 = vmatmul.msk.bf16.vlgmr.msrb.gmra.mxu1 %vm600_vm1, %v6071_v3  ;;  %5227 = vmatmul.msk.bf16.vlgmr.msrb.gmra.mxu0 %vm600_vm1, %v1596_v61  ;;  %v935_v3 = vsel %vm926_vm2, %v932_v27, %v934_v20  ;;  %v1628_v27 = vshll.u32 %v5555_v62, 16 }
  0x6c   : > { %5077 = vmatmul.msk.bf16.gmra.mxu2 %vm600_vm1, %v933_v11  ;;  %v1627_v11 = vrot.slane %v1625_v1, 1 }
  0x6e   : > { %5185 = vmatmul.msk.bf16.vlgmr.msrb.gmra.mxu3 %vm600_vm1, %v1318_v12  ;;  %v1630_v12 = vrot.slane %v1628_v27, 2  ;;  %v944_v27 = vrot.slane %v6215_v35, 1 }
  0x70   : > { %v1631_v13 = vor.u32 %v1630_v12, %v1627_v11 }
  0x7b   : > { %5034 = vmatmul.msk.bf16.gmra.mxu1 %vm600_vm1, %v6074_v4  ;;  %5228 = vmatmul.msk.bf16.gmra.mxu0 %vm600_vm1, %v1605_v26  ;;  %v1322_v4 = vsel %vm926_vm2, %v1319_v21, %v1321_v40  ;;  %v1632_v26 = vsel %vm1579_vm3, %v1622_v22, %v1631_v13  ;;  %v1636_v40 = vrot.slane %v1634_v30, 1  ;;  %v1643_v22 = vshrl.u32 %v5557_v54, 16 }
  0x7c   : > { %5078 = vmatmul.msk.bf16.gmra.mxu2 %vm600_vm1, %v935_v3  ;;  %v941_v3 = vsel %vm926_vm2, %v938_v56, %v940_v16  ;;  %v1646_v56 = vshll.u32 %v5557_v54, 16 }
  0x7e   : > { %5186 = vmatmul.msk.bf16.gmra.mxu3 %vm600_vm1, %v1320_v29  ;;  %v1326_v29 = vsel %vm926_vm2, %v1323_v57, %v1325_v17  ;;  %v1648_v1 = vrot.slane %v1646_v56, 2 }
  0x8b   : > { %5035 = vmatmul.msk.bf16.gmra.mxu1 %vm600_vm1, %v6145_v46  ;;  %5229 = vmatmul.msk.bf16.gmra.mxu0 %vm600_vm1, %v1614_v41  ;;  %v5578_v46 = vld [vmem:[%s9224_s1 + $0xb0] sm:$0xff]  ;;  %v1639_v41 = vrot.slane %v1637_v32, 2 }
  0x8c   : > { %5079 = vmatmul.msk.bf16.gmra.mxu2 %vm600_vm1, %v937_v45  ;;  %2097 = vmatpush.bf16.msra.mxu1 %v5578_v46  ;;  %v1327_v45 = vrot.slane %v5556_v28, 1  ;;  %v945_v28 = vsel %vm926_vm2, %v942_v43, %v944_v27 }
  0x8e   : > { %5187 = vmatmul.msk.bf16.gmra.mxu3 %vm600_vm1, %v1322_v4  ;;  %v1328_v46 = vsel %vm926_vm2, %v1325_v17, %v1327_v45 }
  0x98   : > { %v6334_v58 = vpop.f32.mrf.mxu0  ;;  %v6336_v59 = vpop.f32.mrf.mxu1 }
  0x9b   : > { %5036 = vmatmul.msk.bf16.gmra.mxu1 %vm600_vm1, %v6193_v23  ;;  %5230 = vmatmul.msk.bf16.gmra.mxu0 %vm600_vm1, %v1623_v60 }
  0x9c   : > { %5080 = vmatmul.msk.bf16.gmra.mxu2 %vm600_vm1, %v939_v33 }
  0x9e   : > { %5188 = vmatmul.msk.bf16.gmra.mxu3 %vm600_vm1, %v1324_v0  ;;  %v1645_v0 = vrot.slane %v1643_v22, 1 }
  0x9f   : > { %v6350_v2 = vpop.f32.mrf.mxu2 }
  0xa0   : > { %v6354_v7 = vpop.f32.mrf.mxu0  ;;  %v6356_v23 = vpop.f32.mrf.mxu1 }
  0xa1   : > { %v6352_v61 = vpop.f32.mrf.mxu3 }
  0xa2   : > { %9259 = vst [vmem:[#allocation2_spill] sm:$0xff] %v6352_v61 }
  0xa7   : > { %v6359_v18 = vpop.f32.mrf.mxu2 }
  0xa8   : > { %v6363_v20 = vpop.f32.mrf.mxu0  ;;  %v6365_v21 = vpop.f32.mrf.mxu1 }
  0xa9   : > { %v6361_v19 = vpop.f32.mrf.mxu3 }
  0xaa   : > { %9260 = vst [vmem:[#allocation3_spill] sm:$0xff] %v6361_v19 }
  0xab   : > { %5037 = vmatmul.msk.bf16.gmra.mxu1 %vm600_vm1, %v6180_v6  ;;  %5231 = vmatmul.msk.bf16.gmra.mxu0 %vm600_vm1, %v1632_v26  ;;  %v1640_v6 = vor.u32 %v1639_v41, %v1636_v40  ;;  %v5558_v26 = vld [vmem:[%s6068_s13 + $0x48] sm:$0xff] }
  0xac   : > { %5081 = vmatmul.msk.bf16.gmra.mxu2 %vm600_vm1, %v941_v3  ;;  %v1330_v3 = vsel %vm926_vm2, %v1327_v45, %v1329_v39  ;;  %v1655_v30 = vshll.u32 %v5558_v26, 16  ;;  %v1331_v54 = vrot.slane %v5558_v26, 1 }
  0xad   : > { %v1641_v53 = vsel %vm1579_vm3, %v1631_v13, %v1640_v6 }
  0xae   : > { %5189 = vmatmul.msk.bf16.gmra.mxu3 %vm600_vm1, %v1326_v29  ;;  %v1652_v29 = vshrl.u32 %v5558_v26, 16  ;;  %v1657_v45 = vrot.slane %v1655_v30, 2 }
  0xaf   : > { %v6376_v25 = vpop.f32.mrf.mxu2 }
  0xb0   : > { %v6380_v36 = vpop.f32.mrf.mxu0  ;;  %v6382_v38 = vpop.f32.mrf.mxu1  ;;  %v1654_v43 = vrot.slane %v1652_v29, 1 }
  0xb1   : > { %v6378_v34 = vpop.f32.mrf.mxu3 }
  0xb2   : > { %9261 = vst [vmem:[#allocation4_spill] sm:$0xff] %v6378_v34 }
  0xb7   : > { %v6385_v4 = vpop.f32.mrf.mxu2 }
  0xb8   : > { %v6389_v51 = vpop.f32.mrf.mxu0  ;;  %v6391_v52 = vpop.f32.mrf.mxu1 }
  0xb9   : > { %v6387_v48 = vpop.f32.mrf.mxu3 }
  0xba   : > { %9262 = vst [vmem:[#allocation5_spill] sm:$0xff] %v6387_v48 }
  0xbb   : > { %5038 = vmatmul.msk.bf16.gmra.mxu1 %vm600_vm1, %v6077_v5  ;;  %5232 = vmatmul.msk.bf16.gmra.mxu0 %vm600_vm1, %v1641_v53  ;;  %v1649_v5 = vor.u32 %v1648_v1, %v1645_v0  ;;  %v1658_v53 = vor.u32 %v1657_v45, %v1654_v43  ;;  %v6443_v1 = vld [vmem:[%s6068_s13 + $0x50] sm:$0xff] }
  0xbc   : > { %5082 = vmatmul.msk.bf16.gmra.mxu2 %vm600_vm1, %v943_v55  ;;  %v1664_v26 = vshll.u32 %v6443_v1, 16 }
  0xbd   : > { %v1650_v17 = vsel %vm1579_vm3, %v1640_v6, %v1649_v5  ;;  %v1659_v0 = vsel %vm1579_vm3, %v1649_v5, %v1658_v53  ;;  %v1661_v5 = vshrl.u32 %v6443_v1, 16 }
  0xbe   : > { %5190 = vmatmul.msk.bf16.gmra.mxu3 %vm600_vm1, %v1328_v46 }
  0xbf   : > { %v6402_v57 = vpop.f32.mrf.mxu2  ;;  %v1663_v45 = vrot.slane %v1661_v5, 1 }
  0xc0   : > { %v6406_v62 = vpop.f32.mrf.mxu0  ;;  %v6408_v33 = vpop.f32.mrf.mxu1 }
  0xc1   : > { %v6404_v60 = vpop.f32.mrf.mxu3 }
  0xc2   : > { %9263 = vst [vmem:[#allocation6_spill] sm:$0xff] %v6404_v60 }
  0xc7   : > { %v6411_v11 = vpop.f32.mrf.mxu2 }
  0xc8   : > { %9264 = vst [vmem:[#allocation7_spill] sm:$0xff] %v6411_v11  ;;  %v6415_v13 = vpop.f32.mrf.mxu0  ;;  %v6417_v16 = vpop.f32.mrf.mxu1  ;;  %v6497_v11 = vld [vmem:[%s6068_s13 + $0x60] sm:$0xff] }
  0xc9   : > { %v6413_v12 = vpop.f32.mrf.mxu3 }
  0xca   : > { %9265 = vst [vmem:[#allocation8_spill] sm:$0xff] %v6413_v12  ;;  %v6478_v12 = vld [vmem:[%s6068_s13 + $0x58] sm:$0xff] }
  0xcb   : > { %5039 = vmatmul.msk.bf16.gmra.mxu1 %vm600_vm1, %v6082_v8  ;;  %5233 = vmatmul.msk.bf16.gmra.mxu0 %vm600_vm1, %v1650_v17  ;;  %v946_v8 = vrot.slane %v6085_v9, 1 }
  0xcc   : > { %5083 = vmatmul.msk.bf16.gmra.mxu2 %vm600_vm1, %v945_v28  ;;  %v1332_v28 = vsel %vm926_vm2, %v1329_v39, %v1331_v54  ;;  %v5577_v39 = vld [vmem:[%s9224_s1 + $0xa8] sm:$0xff] }
  0xcd   : > { %v947_v17 = vsel %vm926_vm2, %v944_v27, %v946_v8  ;;  %v5602_v27 = vld [vmem:[%s9224_s1 + $0xe8] sm:$0xff]  ;;  %2098 = vmatpush.bf16.msra.mxu1 %v5577_v39 }
  0xce   : > { %5191 = vmatmul.msk.bf16.gmra.mxu3 %vm600_vm1, %v1330_v3  ;;  %v5598_v3 = vld [vmem:[%s9224_s1 + $0xc8] sm:$0xff] }
  0xcf   : > { %v1051_v40 = vpop.f32.mrf.mxu2  ;;  %2487 = vmatpush.bf16.msra.mxu2 %v5598_v3  ;;  %2884 = vmatpush.bf16.msra.mxu3 %v5602_v27  ;;  %v948_v3 = vrot.slane %v6088_v10, 1  ;;  %v1333_v27 = vrot.slane %v6443_v1, 1 }
  0xd0   : > { %v6430_v41 = vpop.f32.mrf.mxu0  ;;  %v6432_v6 = vpop.f32.mrf.mxu1 }
  0xd1   : > { %v6428_v32 = vpop.f32.mrf.mxu3 }
  0xd2   : > { %9266 = vst [vmem:[#allocation9_spill] sm:$0xff] %v6428_v32 }
  0xd7   : > { %v1053_v46 = vpop.f32.mrf.mxu2 }
  0xd8   : > { %v6437_v22 = vpop.f32.mrf.mxu0  ;;  %v6439_v56 = vpop.f32.mrf.mxu1 }
  0xd9   : > { %v6435_v55 = vpop.f32.mrf.mxu3 }
  0xda   : > { %9267 = vst [vmem:[#allocation10_spill] sm:$0xff] %v6435_v55 }
  0xdb   : > { %5040 = vmatmul.msk.bf16.gmra.mxu1 %vm600_vm1, %v6148_v47  ;;  %5234 = vmatmul.msk.bf16.gmra.mxu0 %vm600_vm1, %v1659_v0  ;;  %v1666_v0 = vrot.slane %v1664_v26, 2  ;;  %v949_v26 = vsel %vm926_vm2, %v946_v8, %v948_v3 }
  0xdc   : > { %5084 = vmatmul.msk.bf16.gmra.mxu2 %vm600_vm1, %v947_v17  ;;  %v5606_v17 = vld [vmem:[%s9224_s1 + $0x108] sm:$0xff] }
  0xdd   : > { %3148 = vmatpush.bf16.msra.mxu0 %v5606_v17  ;;  %v1334_v17 = vsel %vm926_vm2, %v1331_v54, %v1333_v27 }
  0xde   : > { %5192 = vmatmul.msk.bf16.gmra.mxu3 %vm600_vm1, %v1332_v28  ;;  %v1667_v28 = vor.u32 %v1666_v0, %v1663_v45  ;;  %v1673_v45 = vshll.u32 %v6478_v12, 16 }
  0xdf   : > { %v1056_v29 = vpop.f32.mrf.mxu2 }
  0xe0   : > { %v6465_v30 = vpop.f32.mrf.mxu0  ;;  %v6467_v43 = vpop.f32.mrf.mxu1  ;;  %v1668_v32 = vsel %vm1579_vm3, %v1658_v53, %v1667_v28  ;;  %v1670_v53 = vshrl.u32 %v6478_v12, 16  ;;  %v1675_v60 = vrot.slane %v1673_v45, 2 }
  0xe1   : > { %v6463_v47 = vpop.f32.mrf.mxu3 }
  0xe2   : > { %9268 = vst [vmem:[#allocation11_spill] sm:$0xff] %v6463_v47 }
  0xe7   : > { %v1058_v44 = vpop.f32.mrf.mxu2 }
  0xe8   : > { %v823_v47 = vpop.f32.mrf.mxu1  ;;  %v1837_v55 = vpop.f32.mrf.mxu0 }
  0xe9   : > { %v6474_v39 = vpop.f32.mrf.mxu3  ;;  %v824_v5 = vadd.f32 %v823_v47, %v6334_v58 }
  0xea   : > { %9269 = vst [vmem:[#allocation12_spill] sm:$0xff] %v6474_v39  ;;  %v1672_v39 = vrot.slane %v1670_v53, 1 }
  0xeb   : > { %5041 = vmatmul.msk.bf16.gmra.mxu1 %vm600_vm1, %v6196_v24  ;;  %5235 = vmatmul.msk.bf16.gmra.mxu0 %vm600_vm1, %v1668_v32  ;;  %v1141_v1 = vadd.f32 %v1051_v40, %v824_v5 }
  0xec   : > { %5085 = vmatmul.msk.bf16.gmra.mxu2 %vm600_vm1, %v949_v26  ;;  %v1676_v5 = vor.u32 %v1675_v60, %v1672_v39  ;;  %v950_v26 = vrot.slane %v6154_v49, 1 }
  0xee   : > { %5193 = vmatmul.msk.bf16.gmra.mxu3 %vm600_vm1, %v1334_v17  ;;  %v1335_v17 = vrot.slane %v6478_v12, 1  ;;  %v1679_v12 = vshrl.u32 %v6497_v11, 16 }
  0xef   : > { %v1061_v0 = vpop.f32.mrf.mxu2 }
  0xf0   : > { %v825_v8 = vpop.f32.mrf.mxu1  ;;  %v1839_v54 = vpop.f32.mrf.mxu0 }
  0xf1   : > { %v1440_v58 = vpop.f32.mrf.mxu3  ;;  %v826_v24 = vadd.f32 %v825_v8, %v6354_v7  ;;  %v951_v7 = vsel %vm926_vm2, %v948_v3, %v950_v26  ;;  %v952_v8 = vrot.slane %v6094_v14, 1 }
  0xf2   : > { %v1530_v47 = vadd.f32 %v1440_v58, %v1141_v1  ;;  %v1677_v58 = vsel %vm1579_vm3, %v1667_v28, %v1676_v5 }
  0xf3   : > { %v1142_v40 = vadd.f32 %v1053_v46, %v826_v24 }
  0xf4   : > { %v6491_v32 = vadd.f32 %v1837_v55, %v1530_v47  ;;  %v1336_v55 = vsel %vm926_vm2, %v1333_v27, %v1335_v17  ;;  %v1681_v27 = vrot.slane %v1679_v12, 1 }
  0xf7   : > { %v1063_v48 = vpop.f32.mrf.mxu2 }
  0xf8   : > { %v828_v61 = vpop.f32.mrf.mxu1  ;;  %v1842_v1 = vpop.f32.mrf.mxu0 }
  0xf9   : > { %v1442_v34 = vpop.f32.mrf.mxu3  ;;  %v829_v53 = vadd.f32 %v828_v61, %v6363_v20  ;;  %v1682_v61 = vshll.u32 %v6497_v11, 16 }
  0xfa   : > { %v1531_v19 = vadd.f32 %v1442_v34, %v1142_v40 }
  0xfb   : > { %5042 = vmatmul.msk.bf16.gmra.mxu1 %vm600_vm1, %v6215_v35  ;;  %5236 = vmatmul.msk.bf16.gmra.mxu0 %vm600_vm1, %v1677_v58  ;;  %v1143_v34 = vadd.f32 %v1056_v29, %v829_v53  ;;  %v1684_v39 = vrot.slane %v1682_v61, 2 }
  0xfc   : > { %v6502_v60 = vadd.f32 %v1839_v54, %v1531_v19  ;;  %5086 = vmatmul.msk.bf16.gmra.mxu2 %vm600_vm1, %v951_v7  ;;  %v1337_v54 = vrot.slane %v6497_v11, 1 }
  0xfd   : > { %v1685_v47 = vor.u32 %v1684_v39, %v1681_v27  ;;  %v954_v39 = vrot.slane %v6097_v15, 1 }
  0xfe   : > { %5194 = vmatmul.msk.bf16.gmra.mxu3 %vm600_vm1, %v1336_v55 }
  0xff   : > { %v1066_v20 = vpop.f32.mrf.mxu2  ;;  %v1686_v55 = vsel %vm1579_vm3, %v1676_v5, %v1685_v47 }
 0x100   : > { %v830_v3 = vpop.f32.mrf.mxu1  ;;  %v1844_v19 = vpop.f32.mrf.mxu0 }
 0x101   : > { %v1445_v46 = vpop.f32.mrf.mxu3  ;;  %v831_v35 = vadd.f32 %v830_v3, %v6380_v36  ;;  %v953_v36 = vsel %vm926_vm2, %v950_v26, %v952_v8 }
 0x102   : > { %v1532_v28 = vadd.f32 %v1445_v46, %v1143_v34  ;;  %v6518_v34 = vld [vmem:[%s6068_s13 + $0x68] sm:$0xff] }
 0x103   : > { %v1144_v29 = vadd.f32 %v1058_v44, %v831_v35  ;;  %v1338_v44 = vsel %vm926_vm2, %v1335_v17, %v1337_v54  ;;  %v1688_v11 = vshrl.u32 %v6518_v34, 16  ;;  %v1339_v35 = vrot.slane %v6518_v34, 1 }
 0x104   : > { %v6512_v45 = vadd.f32 %v1842_v1, %v1532_v28 }
 0x105   : > { %v1690_v28 = vrot.slane %v1688_v11, 1 }
 0x107   : > { %v1068_v24 = vpop.f32.mrf.mxu2 }
 0x108   : > { %v833_v53 = vpop.f32.mrf.mxu1  ;;  %v1847_v7 = vpop.f32.mrf.mxu0 }
 0x109   : > { %v1447_v40 = vpop.f32.mrf.mxu3  ;;  %v834_v12 = vadd.f32 %v833_v53, %v6389_v51  ;;  %v1691_v51 = vshll.u32 %v6518_v34, 16 }
 0x10a   : > { %v1533_v58 = vadd.f32 %v1447_v40, %v1144_v29 }
 0x10b   : > { %5043 = vmatmul.msk.bf16.gmra.mxu1 %vm600_vm1, %v6085_v9  ;;  %5237 = vmatmul.msk.bf16.gmra.mxu0 %vm600_vm1, %v1686_v55  ;;  %v1145_v14 = vadd.f32 %v1061_v0, %v834_v12  ;;  %v1693_v9 = vrot.slane %v1691_v51, 2 }
 0x10c   : > { %v6523_v1 = vadd.f32 %v1844_v19, %v1533_v58  ;;  %5087 = vmatmul.msk.bf16.gmra.mxu2 %vm600_vm1, %v953_v36  ;;  %v6543_v36 = vld [vmem:[%s6068_s13 + $0x70] sm:$0xff] }
 0x10d   : > { %v1694_v27 = vor.u32 %v1693_v9, %v1690_v28 }
 0x10e   : > { %5195 = vmatmul.msk.bf16.gmra.mxu3 %vm600_vm1, %v1338_v44 }
 0x10f   : > { %v6532_v5 = vpop.f32.mrf.mxu2  ;;  %v1695_v12 = vsel %vm1579_vm3, %v1685_v47, %v1694_v27  ;;  %v1697_v47 = vshrl.u32 %v6543_v36, 16 }
 0x110   : > { %v835_v61 = vpop.f32.mrf.mxu1  ;;  %v1849_v46 = vpop.f32.mrf.mxu0 }
 0x111   : > { %v1450_v26 = vpop.f32.mrf.mxu3  ;;  %v836_v3 = vadd.f32 %v835_v61, %v6406_v62  ;;  %v1699_v51 = vrot.slane %v1697_v47, 1  ;;  %v5576_v61 = vld [vmem:[%s9224_s1 + $0xa0] sm:$0xff] }
 0x112   : > { %v1534_v17 = vadd.f32 %v1450_v26, %v1145_v14  ;;  %2099 = vmatpush.bf16.msra.mxu1 %v5576_v61 }
 0x113   : > { %v1146_v19 = vadd.f32 %v1063_v48, %v836_v3  ;;  %v1340_v48 = vsel %vm926_vm2, %v1337_v54, %v1339_v35  ;;  %v1341_v3 = vrot.slane %v6543_v36, 1 }
 0x114   : > { %v6535_v0 = vadd.f32 %v1847_v7, %v1534_v17  ;;  %v955_v7 = vsel %vm926_vm2, %v952_v8, %v954_v39  ;;  %v5601_v17 = vld [vmem:[%s9224_s1 + $0xe0] sm:$0xff] }
 0x115   : > { %2885 = vmatpush.bf16.msra.mxu3 %v5601_v17 }
 0x117   : > { %v6539_v29 = vpop.f32.mrf.mxu2 }
 0x118   : > { %v838_v53 = vpop.f32.mrf.mxu1  ;;  %v1852_v55 = vpop.f32.mrf.mxu0 }
 0x119   : > { %v1452_v40 = vpop.f32.mrf.mxu3  ;;  %v839_v62 = vadd.f32 %v838_v53, %v6415_v13  ;;  %v1700_v13 = vshll.u32 %v6543_v36, 16 }
 0x11a   : > { %v1535_v58 = vadd.f32 %v1452_v40, %v1146_v19 }
 0x11b   : > { %5044 = vmatmul.msk.bf16.gmra.mxu1 %vm600_vm1, %v6088_v10  ;;  %5238 = vmatmul.msk.bf16.gmra.mxu0 %vm600_vm1, %v1695_v12  ;;  %v1147_v15 = vadd.f32 %v1066_v20, %v839_v62  ;;  %v1702_v26 = vrot.slane %v1700_v13, 2  ;;  %v5597_v20 = vld [vmem:[%s9224_s1 + $0xc0] sm:$0xff] }
 0x11c   : > { %v6548_v44 = vadd.f32 %v1849_v46, %v1535_v58  ;;  %5088 = vmatmul.msk.bf16.gmra.mxu2 %vm600_vm1, %v955_v7  ;;  %v6575_v7 = vld [vmem:[%s6068_s13 + $0x78] sm:$0xff] }
 0x11d   : > { %2488 = vmatpush.bf16.msra.mxu2 %v5597_v20  ;;  %v1703_v9 = vor.u32 %v1702_v26, %v1699_v51  ;;  %v958_v26 = vrot.slane %v6211_v31, 1  ;;  %v5967_v31 = vld [vmem:[%s6068_s13 + $0x68] sm:$0xff] }
 0x11e   : > { %5196 = vmatmul.msk.bf16.gmra.mxu3 %vm600_vm1, %v1340_v48  ;;  %v1342_v48 = vsel %vm926_vm2, %v1339_v35, %v1341_v3 }
 0x11f   : > { %v6557_v34 = vpop.f32.mrf.mxu2  ;;  %v1704_v62 = vsel %vm1579_vm3, %v1694_v27, %v1703_v9  ;;  %v1706_v27 = vshrl.u32 %v6575_v7, 16 }
 0x120   : > { %v840_v14 = vpop.f32.mrf.mxu1  ;;  %v1854_v11 = vpop.f32.mrf.mxu0 }
 0x121   : > { %v1455_v8 = vpop.f32.mrf.mxu3  ;;  %v841_v10 = vadd.f32 %v840_v14, %v6430_v41  ;;  %v956_v41 = vrot.slane %v6157_v50, 1 }
 0x122   : > { %v1536_v54 = vadd.f32 %v1455_v8, %v1147_v15 }
 0x123   : > { %v1148_v28 = vadd.f32 %v1068_v24, %v841_v10  ;;  %v957_v24 = vsel %vm926_vm2, %v954_v39, %v956_v41  ;;  %v5605_v39 = vld [vmem:[%s9224_s1 + $0x100] sm:$0xff]  ;;  %v1343_v10 = vrot.slane %v6575_v7, 1 }
 0x124   : > { %v6569_v46 = vadd.f32 %v1852_v55, %v1536_v54  ;;  %3149 = vmatpush.bf16.msra.mxu0 %v5605_v39 }
 0x127   : > { %v1078_v19 = vpop.f32.mrf.mxu2 }
 0x128   : > { %v843_v53 = vpop.f32.mrf.mxu1  ;;  %v1857_v12 = vpop.f32.mrf.mxu0 }
 0x129   : > { %v1457_v40 = vpop.f32.mrf.mxu3  ;;  %v844_v55 = vadd.f32 %v843_v53, %v6437_v22  ;;  %v1709_v22 = vshll.u32 %v6575_v7, 16  ;;  %v6601_v53 = vld [vmem:[%s6068_s13 + $0x80] sm:$0xff] }
 0x12a   : > { %v1537_v58 = vadd.f32 %v1457_v40, %v1148_v28 }
 0x12b   : > { %5045 = vmatmul.msk.bf16.gmra.mxu1 %vm600_vm1, %v6154_v49  ;;  %5239 = vmatmul.msk.bf16.gmra.mxu0 %vm600_vm1, %v1704_v62  ;;  %v1149_v50 = vadd.f32 %v6532_v5, %v844_v55  ;;  %v1708_v5 = vrot.slane %v1706_v27, 1  ;;  %v1711_v8 = vrot.slane %v1709_v22, 2 }
 0x12c   : > { %v6580_v15 = vadd.f32 %v1854_v11, %v1537_v58  ;;  %5089 = vmatmul.msk.bf16.gmra.mxu2 %vm600_vm1, %v957_v24 }
 0x12d   : > { %v1712_v51 = vor.u32 %v1711_v8, %v1708_v5 }
 0x12e   : > { %5197 = vmatmul.msk.bf16.gmra.mxu3 %vm600_vm1, %v1342_v48 }
 0x12f   : > { %v1081_v35 = vpop.f32.mrf.mxu2  ;;  %v1713_v58 = vsel %vm1579_vm3, %v1703_v9, %v1712_v51  ;;  %v1715_v9 = vshrl.u32 %v6601_v53, 16 }
 0x130   : > { %v845_v47 = vpop.f32.mrf.mxu1  ;;  %v1859_v13 = vpop.f32.mrf.mxu0 }
 0x131   : > { %v1460_v36 = vpop.f32.mrf.mxu3  ;;  %v846_v54 = vadd.f32 %v845_v47, %v6465_v30  ;;  %v1345_v47 = vrot.slane %v6601_v53, 1 }
 0x132   : > { %v1538_v49 = vadd.f32 %v1460_v36, %v1149_v50  ;;  %v1717_v50 = vrot.slane %v1715_v9, 1 }
 0x133   : > { %v1150_v11 = vadd.f32 %v6539_v29, %v846_v54  ;;  %v1344_v29 = vsel %vm926_vm2, %v1341_v3, %v1343_v10 }
 0x134   : > { %v6594_v14 = vadd.f32 %v1857_v12, %v1538_v49  ;;  %v959_v12 = vsel %vm926_vm2, %v956_v41, %v958_v26  ;;  %v960_v49 = vrot.slane %v6247_v63, 1  ;;  %v5968_v63 = vld [vmem:[%s6068_s13 + $0x70] sm:$0xff] }
 0x137   : > { %v1083_v20 = vpop.f32.mrf.mxu2 }
 0x138   : > { %v848_v28 = vpop.f32.mrf.mxu1  ;;  %v1862_v40 = vpop.f32.mrf.mxu0 }
 0x139   : > { %v1462_v17 = vpop.f32.mrf.mxu3  ;;  %v849_v30 = vadd.f32 %v848_v28, %v6336_v59  ;;  %v1718_v59 = vshll.u32 %v6601_v53, 16  ;;  %v961_v28 = vsel %vm926_vm2, %v958_v26, %v960_v49 }
 0x13a   : > { %v1539_v61 = vadd.f32 %v1462_v17, %v1150_v11 }
 0x13b   : > { %5046 = vmatmul.msk.bf16.gmra.mxu1 %vm600_vm1, %v5967_v31  ;;  %5240 = vmatmul.msk.bf16.gmra.mxu0 %vm600_vm1, %v1713_v58  ;;  %v1151_v7 = vadd.f32 %v6557_v34, %v849_v30  ;;  %v1720_v27 = vrot.slane %v1718_v59, 2 }
 0x13c   : > { %v6606_v62 = vadd.f32 %v1859_v13, %v1539_v61  ;;  %5090 = vmatmul.msk.bf16.gmra.mxu2 %vm600_vm1, %v959_v12  ;;  %v6625_v61 = vld [vmem:[%s6068_s13 + $0x88] sm:$0xff] }
 0x13d   : > { %v1721_v36 = vor.u32 %v1720_v27, %v1717_v50 }
 0x13e   : > { %5198 = vmatmul.msk.bf16.gmra.mxu3 %vm600_vm1, %v1344_v29 }
 0x13f   : > { %v1086_v41 = vpop.f32.mrf.mxu2  ;;  %v1722_v17 = vsel %vm1579_vm3, %v1712_v51, %v1721_v36  ;;  %v1724_v51 = vshrl.u32 %v6625_v61, 16 }
 0x140   : > { %v850_v24 = vpop.f32.mrf.mxu1  ;;  %v1864_v48 = vpop.f32.mrf.mxu0 }
 0x141   : > { %v1465_v55 = vpop.f32.mrf.mxu3  ;;  %v851_v22 = vadd.f32 %v850_v24, %v6356_v23  ;;  %v1726_v29 = vrot.slane %v1724_v51, 1 }
 0x142   : > { %v1540_v3 = vadd.f32 %v1465_v55, %v1151_v7  ;;  %v962_v55 = vrot.slane %v6274_v37, 1  ;;  %v6657_v37 = vld [vmem:[%s6068_s13 + $0x14] sm:$0xf] }
 0x143   : > { %v1152_v34 = vadd.f32 %v1078_v19, %v851_v22  ;;  %v1346_v19 = vsel %vm926_vm2, %v1343_v10, %v1345_v47 }
 0x144   : > { %v6617_v39 = vadd.f32 %v1862_v40, %v1540_v3  ;;  %v1347_v3 = vrot.slane %v6625_v61, 1 }
 0x147   : > { %v6621_v13 = vpop.f32.mrf.mxu2 }
 0x148   : > { %v853_v54 = vpop.f32.mrf.mxu1  ;;  %v1867_v11 = vpop.f32.mrf.mxu0 }
 0x149   : > { %v1467_v5 = vpop.f32.mrf.mxu3  ;;  %v854_v23 = vadd.f32 %v853_v54, %v6365_v21  ;;  %v1727_v21 = vshll.u32 %v6625_v61, 16  ;;  %v2227_v54 = vld [vmem:[%s6068_s13 + $0x10] sm:$0xc]  ;;  %v2311_v61 = vunpack.c.l.b16 %v6657_v37 }
 0x14a   : > { %v1541_v8 = vadd.f32 %v1467_v5, %v1152_v34 }
 0x14b   : > { %5047 = vmatmul.msk.bf16.gmra.mxu1 %vm600_vm1, %v5968_v63  ;;  %5241 = vmatmul.msk.bf16.gmra.mxu0 %vm600_vm1, %v1722_v17  ;;  %v1153_v58 = vadd.f32 %v1081_v35, %v854_v23  ;;  %v1729_v31 = vrot.slane %v1727_v21, 2  ;;  %v5969_v17 = vld [vmem:[%s6068_s13 + $0x78] sm:$0xff] }
 0x14c   : > { %v6630_v40 = vadd.f32 %v1864_v48, %v1541_v8  ;;  %5091 = vmatmul.msk.bf16.gmra.mxu2 %vm600_vm1, %v961_v28  ;;  %v1348_v8 = vsel %vm926_vm2, %v1345_v47, %v1347_v3  ;;  %v2310_v47 = vunpack.c.l.b16 %v2227_v54  ;;  %v1213_v54 = vld [vmem:[%s6068_s13 + $0x98] sm:$0x1] }
 0x14d   : > { %v1730_v59 = vor.u32 %v1729_v31, %v1726_v29 }
 0x14e   : > { %5199 = vmatmul.msk.bf16.gmra.mxu3 %vm600_vm1, %v1346_v19 }
 0x14f   : > { %v6639_v53 = vpop.f32.mrf.mxu2  ;;  %v1731_v34 = vsel %vm1579_vm3, %v1721_v36, %v1730_v59 }
 0x150   : > { %v855_v30 = vpop.f32.mrf.mxu1  ;;  %v1869_v12 = vpop.f32.mrf.mxu0 }
 0x151   : > { %v1470_v26 = vpop.f32.mrf.mxu3  ;;  %v856_v7 = vadd.f32 %v855_v30, %v6382_v38  ;;  %v6650_v38 = vld [vmem:[%s6068_s13 + $0x90] sm:$0xff]  ;;  %v1566_v30 = vld [vmem:[%s6068_s13 + $0x98] sm:$0x3] }
 0x152   : > { %v1542_v10 = vadd.f32 %v1470_v26, %v1153_v58  ;;  %v6673_v26 = vld [vmem:[%s6068_s13 + $0x18] sm:$0xff] }
 0x153   : > { %v1154_v9 = vadd.f32 %v1083_v20, %v856_v7  ;;  %v963_v20 = vsel %vm926_vm2, %v960_v49, %v962_v55  ;;  %v1736_v49 = vshll.u32 %v6650_v38, 16  ;;  %v1577_v7 = vunpack.c.l.b16 %v1566_v30  ;;  %v6709_v30 = vld [vmem:[%s6068_s13 + $0x20] sm:$0xff] }
 0x154   : > { %v6642_v35 = vadd.f32 %v1867_v11, %v1542_v10  ;;  %v6677_v10 = vpack.c.b16 %v2311_v61, %v2310_v47 }
 0x156   : > { %v2366_v55 = vrot.slane %v6677_v10, 2 }
 0x157   : > { %v6646_v24 = vpop.f32.mrf.mxu2 }
 0x158   : > { %v858_v27 = vpop.f32.mrf.mxu1  ;;  %v1872_v22 = vpop.f32.mrf.mxu0 }
 0x159   : > { %v1472_v48 = vpop.f32.mrf.mxu3  ;;  %v859_v5 = vadd.f32 %v858_v27, %v6391_v52  ;;  %v1733_v52 = vshrl.u32 %v6650_v38, 16 }
 0x15a   : > { %v1543_v50 = vadd.f32 %v1472_v48, %v1154_v9  ;;  %v1349_v9 = vrot.slane %v6650_v38, 1 }
 0x15b   : > { %5048 = vmatmul.msk.bf16.gmra.mxu1 %vm600_vm1, %v5969_v17  ;;  %5242 = vmatmul.msk.bf16.gmra.mxu0 %vm600_vm1, %v1731_v34  ;;  %v1155_v36 = vadd.f32 %v1086_v41, %v859_v5  ;;  %v1735_v51 = vrot.slane %v1733_v52, 1  ;;  %v1738_v41 = vrot.slane %v1736_v49, 2  ;;  %v5970_v17 = vld [vmem:[%s6068_s13 + $0x80] sm:$0xff]  ;;  %v1296_v52 = vunpack.c.l.b16 %v1213_v54 }
 0x15c   : > { %v6659_v11 = vadd.f32 %v1869_v12, %v1543_v50  ;;  %5092 = vmatmul.msk.bf16.gmra.mxu2 %vm600_vm1, %v963_v20 }
 0x15d   : > { %v1739_v31 = vor.u32 %v1738_v41, %v1735_v51 }
 0x15e   : > { %5200 = vmatmul.msk.bf16.gmra.mxu3 %vm600_vm1, %v1348_v8  ;;  %v1350_v8 = vsel %vm926_vm2, %v1347_v3, %v1349_v9 }
 0x15f   : > { %v6669_v23 = vpop.f32.mrf.mxu2  ;;  %v1740_v5 = vsel %vm1579_vm3, %v1730_v59, %v1739_v31 }
 0x160   : > { %v860_v63 = vpop.f32.mrf.mxu1  ;;  %v1874_v58 = vpop.f32.mrf.mxu0 }
 0x161   : > { %v1475_v28 = vpop.f32.mrf.mxu3  ;;  %v861_v21 = vadd.f32 %v860_v63, %v6408_v33  ;;  %v2367_v33 = vrot.slane %v6673_v26, 2 }
 0x162   : > { %v1544_v19 = vadd.f32 %v1475_v28, %v1155_v36 }
 0x163   : > { %v1156_v29 = vadd.f32 %v6621_v13, %v861_v21  ;;  %v6689_v13 = vpack.c.b16 %v1577_v7, %v1577_v7  ;;  %v2368_v38 = vsel %vm1976_vm4, %v2366_v55, %v2367_v33  ;;  %v1315_v21 = vpack.c.b16 %v1296_v52, %v1296_v52 }
 0x164   : > { %v6680_v12 = vadd.f32 %v1872_v22, %v1544_v19  ;;  %v2639_v52 = vshrl.u32 %v6673_v26, 16 }
 0x165   : > { %v1742_v59 = vshrl.u32 %v6689_v13, 16  ;;  %v1351_v55 = vrot.slane %v1315_v21, 1 }
 0x167   : > { %v6686_v48 = vpop.f32.mrf.mxu2  ;;  %v1744_v51 = vrot.slane %v1742_v59, 1  ;;  %v5971_v59 = vld [vmem:[%s6068_s13 + $0x88] sm:$0xff] }
 0x168   : > { %v863_v34 = vpop.f32.mrf.mxu1  ;;  %v1877_v22 = vpop.f32.mrf.mxu0 }
 0x169   : > { %v1477_v50 = vpop.f32.mrf.mxu3  ;;  %v864_v20 = vadd.f32 %v863_v34, %v6417_v16  ;;  %v1745_v16 = vshll.u32 %v6689_v13, 16 }
 0x16a   : > { %v1545_v27 = vadd.f32 %v1477_v50, %v1156_v29  ;;  %v2369_v50 = vrot.slane %v6709_v30, 2 }
 0x16b   : > { %5049 = vmatmul.msk.bf16.gmra.mxu1 %vm600_vm1, %v5970_v17  ;;  %5243 = vmatmul.msk.bf16.gmra.mxu0 %vm600_vm1, %v1740_v5  ;;  %v1157_v36 = vadd.f32 %v6639_v53, %v864_v20  ;;  %v1747_v53 = vrot.slane %v1745_v16, 2  ;;  %v3013_v17 = vld [vmem:[%s6068_s13 + $0x10] sm:$0x8] }
 0x16c   : > { %5379 = vmatmul.msk.bf16.vlgmr.msra.gmra.mxu2 %vm600_vm1, %v2368_v38  ;;  %v6703_v3 = vadd.f32 %v1874_v58, %v1545_v27  ;;  %v2370_v54 = vsel %vm1976_vm4, %v2367_v33, %v2369_v50  ;;  %v2634_v33 = vshll.u32 %v6677_v10, 16 }
 0x16d   : > { %v1748_v7 = vor.u32 %v1747_v53, %v1744_v51  ;;  %v9270_v53 = vunpack.c.l.b16 %v6280_v42 }
 0x16e   : > { %5201 = vmatmul.msk.bf16.gmra.mxu3 %vm600_vm1, %v1350_v8 }
 0x16f   : > { %v6705_v49 = vpop.f32.mrf.mxu2  ;;  %v1749_v8 = vsel %vm1579_vm3, %v1739_v31, %v1748_v7  ;;  %v2631_v31 = vshrl.u32 %v6677_v10, 16  ;;  %v6743_v7 = vld [vmem:[%s6068_s13 + $0x28] sm:$0xff] }
 0x170   : > { %v865_v19 = vpop.f32.mrf.mxu1  ;;  %v1879_v63 = vpop.f32.mrf.mxu0  ;;  %v2371_v37 = vrot.slane %v6743_v7, 2 }
 0x171   : > { %v1480_v47 = vpop.f32.mrf.mxu3  ;;  %v866_v41 = vadd.f32 %v865_v19, %v6432_v6  ;;  %v2633_v21 = vrot.slane %v2631_v31, 2 }
 0x172   : > { %v1546_v28 = vadd.f32 %v1480_v47, %v1157_v36  ;;  %v2642_v47 = vshll.u32 %v6673_v26, 16 }
 0x173   : > { %v1158_v58 = vadd.f32 %v6646_v24, %v866_v41  ;;  %v1963_v24 = vld [vmem:[%s6068_s13 + $0x8] sm:$0xc] }
 0x174   : > { %v6711_v29 = vadd.f32 %v1877_v22, %v1546_v28  ;;  %v1352_v22 = vsel %vm926_vm2, %v1349_v9, %v1351_v55  ;;  %v3024_v9 = vunpack.c.l.b16 %v3013_v17  ;;  %v2636_v55 = vrot.slane %v2634_v33, 3 }
 0x175   : > { %v2372_v33 = vsel %vm1976_vm4, %v2369_v50, %v2371_v37  ;;  %v2651_v50 = vshll.u32 %v6709_v30, 16 }
 0x177   : > { %v6715_v27 = vpop.f32.mrf.mxu2 }
 0x178   : > { %v868_v20 = vpop.f32.mrf.mxu1  ;;  %v1882_v6 = vpop.f32.mrf.mxu0 }
 0x179   : > { %v1482_v34 = vpop.f32.mrf.mxu3  ;;  %v869_v38 = vadd.f32 %v868_v20, %v6439_v56  ;;  %v1974_v56 = vunpack.c.l.b16 %v1963_v24  ;;  %v3028_v24 = vrot.slane %v6673_v26, 3 }
 0x17a   : > { %v1547_v5 = vadd.f32 %v1482_v34, %v1158_v58  ;;  %v3025_v58 = vpack.c.b16 %v2311_v61, %v3024_v9  ;;  %v2641_v34 = vrot.slane %v2639_v52, 2  ;;  %v2637_v61 = vor.u32 %v2636_v55, %v2633_v21  ;;  %v6769_v21 = vld [vmem:[%s6068_s13 + $0x30] sm:$0xff] }
 0x17b   : > { %5050 = vmatmul.msk.bf16.gmra.mxu1 %vm600_vm1, %v5971_v59  ;;  %5244 = vmatmul.msk.bf16.gmra.mxu0 %vm600_vm1, %v1749_v8  ;;  %v1159_v16 = vadd.f32 %v6669_v23, %v869_v38  ;;  %v1975_v41 = vpack.c.b16 %v9270_v53, %v1974_v56 }
 0x17c   : > { %v6723_v36 = vadd.f32 %v1879_v63, %v1547_v5  ;;  %5380 = vmatmul.msk.bf16.gmra.mxu2 %vm600_vm1, %v2370_v54  ;;  %v2644_v5 = vrot.slane %v2642_v47, 3  ;;  %v3027_v42 = vrot.slane %v3025_v58, 3  ;;  %v2653_v58 = vrot.slane %v2651_v50, 3 }
 0x17d   : > { %v1977_v38 = vrot.slane %v1975_v41, 2 }
 0x17e   : > { %5202 = vmatmul.msk.bf16.gmra.mxu3 %vm600_vm1, %v1352_v22  ;;  %v5972_v22 = vld [vmem:[%s6068_s13 + $0x10] sm:$0xff]  ;;  %v2645_v17 = vor.u32 %v2644_v5, %v2641_v34  ;;  %v5973_v34 = vld [vmem:[%s6068_s13 + $0x18] sm:$0xff] }
 0x17f   : > { %v6735_v28 = vpop.f32.mrf.mxu2  ;;  %v1978_v54 = vrot.slane %v5972_v22, 2  ;;  %v1980_v5 = vrot.slane %v5973_v34, 2 }
 0x180   : > { %v870_v63 = vpop.f32.mrf.mxu1  ;;  %v1884_v51 = vpop.f32.mrf.mxu0  ;;  %v2646_v26 = vsel %vm2629_vm6, %v2637_v61, %v2645_v17 }
 0x181   : > { %v1485_v19 = vpop.f32.mrf.mxu3  ;;  %v871_v10 = vadd.f32 %v870_v63, %v6467_v43  ;;  %v1979_v31 = vsel %vm1976_vm4, %v1977_v38, %v1978_v54  ;;  %v2373_v38 = vrot.slane %v6769_v21, 2 }
 0x182   : > { %v1548_v23 = vadd.f32 %v1485_v19, %v1159_v16 }
 0x183   : > { %v1160_v8 = vadd.f32 %v6686_v48, %v871_v10  ;;  %v3029_v48 = vsel %vm3026_vm5, %v3027_v42, %v3028_v24 }
 0x184   : > { %v6745_v20 = vadd.f32 %v1882_v6, %v1548_v23 }
 0x187   : > { %v1108_v43 = vpop.f32.mrf.mxu2 }
 0x188   : > { %v873_v56 = vpop.f32.mrf.mxu1  ;;  %v1887_v6 = vpop.f32.mrf.mxu0 }
 0x189   : > { %v1487_v59 = vpop.f32.mrf.mxu3  ;;  %v874_v9 = vadd.f32 %v873_v56, %v6350_v2  ;;  %v2648_v2 = vshrl.u32 %v6709_v30, 16  ;;  %v1981_v56 = vsel %vm1976_vm4, %v1978_v54, %v1980_v5  ;;  %v2660_v54 = vshll.u32 %v6743_v7, 16 }
 0x18a   : > { %v1549_v16 = vadd.f32 %v1487_v59, %v1160_v8  ;;  %v3030_v8 = vrot.slane %v6709_v30, 3 }
 0x18b   : > { %5269 = vmatmul.msk.bf16.vlgmr.msra.gmra.mxu1 %vm600_vm1, %v1979_v31  ;;  %5463 = vmatmul.msk.bf16.vlgmr.msra.gmra.mxu0 %vm600_vm1, %v3029_v48  ;;  %v1161_v47 = vadd.f32 %v6705_v49, %v874_v9  ;;  %v2650_v49 = vrot.slane %v2648_v2, 2  ;;  %v6795_v2 = vld [vmem:[%s6068_s13 + $0x38] sm:$0xff]  ;;  %v2662_v50 = vrot.slane %v2660_v54, 3  ;;  %v6820_v54 = vld [vmem:[%s6068_s13 + $0x40] sm:$0xff] }
 0x18c   : > { %v6756_v52 = vadd.f32 %v1884_v51, %v1549_v16  ;;  %5381 = vmatmul.msk.bf16.gmra.mxu2 %vm600_vm1, %v2372_v33  ;;  %v3031_v31 = vsel %vm3026_vm5, %v3028_v24, %v3030_v8 }
 0x18d   : > { %v2654_v22 = vor.u32 %v2653_v58, %v2650_v49  ;;  %v2375_v49 = vrot.slane %v6795_v2, 2 }
 0x18e   : > { %5421 = vmatmul.msk.bf16.vlgmr.msra.gmra.mxu3 %vm600_vm1, %v2646_v26 }
 0x18f   : > { %v6765_v19 = vpop.f32.mrf.mxu2  ;;  %v2655_v48 = vsel %vm2629_vm6, %v2645_v17, %v2654_v22 }
 0x190   : > { %v875_v51 = vpop.f32.mrf.mxu1  ;;  %v1889_v53 = vpop.f32.mrf.mxu0 }
 0x191   : > { %v1490_v23 = vpop.f32.mrf.mxu3  ;;  %v876_v41 = vadd.f32 %v875_v51, %v6359_v18  ;;  %v5974_v51 = vld [vmem:[%s6068_s13 + $0x20] sm:$0xff] }
 0x192   : > { %v1550_v63 = vadd.f32 %v1490_v23, %v1161_v47 }
 0x193   : > { %v1162_v55 = vadd.f32 %v6715_v27, %v876_v41  ;;  %v2374_v27 = vsel %vm1976_vm4, %v2371_v37, %v2373_v38  ;;  %v3032_v41 = vrot.slane %v6743_v7, 3 }
 0x194   : > { %v6771_v10 = vadd.f32 %v1887_v6, %v1550_v63 }
 0x197   : > { %v1113_v42 = vpop.f32.mrf.mxu2 }
 0x198   : > { %v878_v16 = vpop.f32.mrf.mxu1  ;;  %v1892_v18 = vpop.f32.mrf.mxu0 }
 0x199   : > { %v1492_v61 = vpop.f32.mrf.mxu3  ;;  %v879_v6 = vadd.f32 %v878_v16, %v6376_v25  ;;  %v2657_v25 = vshrl.u32 %v6743_v7, 16 }
 0x19a   : > { %v1551_v59 = vadd.f32 %v1492_v61, %v1162_v55 }
 0x19b   : > { %5270 = vmatmul.msk.bf16.gmra.mxu1 %vm600_vm1, %v1981_v56  ;;  %5464 = vmatmul.msk.bf16.gmra.mxu0 %vm600_vm1, %v3031_v31  ;;  %v1163_v9 = vadd.f32 %v6735_v28, %v879_v6  ;;  %v2659_v28 = vrot.slane %v2657_v25, 2  ;;  %v3033_v56 = vsel %vm3026_vm5, %v3030_v8, %v3032_v41 }
 0x19c   : > { %v6782_v30 = vadd.f32 %v1889_v53, %v1551_v59  ;;  %5382 = vmatmul.msk.bf16.gmra.mxu2 %vm600_vm1, %v2374_v27  ;;  %v1982_v53 = vrot.slane %v5974_v51, 2 }
 0x19d   : > { %v2663_v58 = vor.u32 %v2662_v50, %v2659_v28  ;;  %v3034_v28 = vrot.slane %v6769_v21, 3  ;;  %v2377_v50 = vrot.slane %v6820_v54, 2 }
 0x19e   : > { %5422 = vmatmul.msk.bf16.gmra.mxu3 %vm600_vm1, %v2655_v48 }
 0x19f   : > { %v6791_v24 = vpop.f32.mrf.mxu2  ;;  %v2664_v31 = vsel %vm2629_vm6, %v2654_v22, %v2663_v58 }
 0x1a0   : > { %v880_v33 = vpop.f32.mrf.mxu1  ;;  %v1894_v26 = vpop.f32.mrf.mxu0 }
 0x1a1   : > { %v1495_v37 = vpop.f32.mrf.mxu3  ;;  %v881_v47 = vadd.f32 %v880_v33, %v6385_v4  ;;  %v1983_v4 = vsel %vm1976_vm4, %v1980_v5, %v1982_v53  ;;  %v2669_v5 = vshll.u32 %v6769_v21, 16 }
 0x1a2   : > { %v1552_v17 = vadd.f32 %v1495_v37, %v1163_v9  ;;  %v9271_v9 = vld [vmem:[#allocation7_spill] sm:$0xff] }
 0x1a3   : > { %v1164_v63 = vadd.f32 %v1108_v43, %v881_v47  ;;  %v2376_v43 = vsel %vm1976_vm4, %v2373_v38, %v2375_v49  ;;  %v2671_v37 = vrot.slane %v2669_v5, 3 }
 0x1a4   : > { %v6797_v23 = vadd.f32 %v1892_v18, %v1552_v17 }
 0x1a7   : > { %v1118_v55 = vpop.f32.mrf.mxu2 }
 0x1a8   : > { %v883_v59 = vpop.f32.mrf.mxu1  ;;  %v1897_v16 = vpop.f32.mrf.mxu0 }
 0x1a9   : > { %v1497_v34 = vpop.f32.mrf.mxu3  ;;  %v884_v18 = vadd.f32 %v883_v59, %v6402_v57  ;;  %v2666_v57 = vshrl.u32 %v6769_v21, 16 }
 0x1aa   : > { %v1553_v61 = vadd.f32 %v1497_v34, %v1164_v63 }
 0x1ab   : > { %5271 = vmatmul.msk.bf16.gmra.mxu1 %vm600_vm1, %v1983_v4  ;;  %5465 = vmatmul.msk.bf16.gmra.mxu0 %vm600_vm1, %v3033_v56  ;;  %v1165_v6 = vadd.f32 %v6765_v19, %v884_v18  ;;  %v2668_v19 = vrot.slane %v2666_v57, 2  ;;  %v3035_v18 = vsel %vm3026_vm5, %v3032_v41, %v3034_v28  ;;  %v2678_v41 = vshll.u32 %v6795_v2, 16 }
 0x1ac   : > { %v6807_v7 = vadd.f32 %v1894_v26, %v1553_v61  ;;  %5383 = vmatmul.msk.bf16.gmra.mxu2 %vm600_vm1, %v2376_v43  ;;  %v5975_v26 = vld [vmem:[%s6068_s13 + $0x28] sm:$0xff]  ;;  %v9272_v43 = vld [vmem:[#allocation2_spill] sm:$0xff] }
 0x1ad   : > { %v1984_v47 = vrot.slane %v5975_v26, 2  ;;  %v2672_v63 = vor.u32 %v2671_v37, %v2668_v19  ;;  %v5976_v37 = vld [vmem:[%s6068_s13 + $0x30] sm:$0xff]  ;;  %v3036_v26 = vrot.slane %v6795_v2, 3 }
 0x1ae   : > { %5423 = vmatmul.msk.bf16.gmra.mxu3 %vm600_vm1, %v2664_v31 }
 0x1af   : > { %v6816_v8 = vpop.f32.mrf.mxu2  ;;  %v1985_v56 = vsel %vm1976_vm4, %v1982_v53, %v1984_v47  ;;  %v2673_v31 = vsel %vm2629_vm6, %v2663_v58, %v2672_v63  ;;  %v2675_v53 = vshrl.u32 %v6795_v2, 16 }
 0x1b0   : > { %v885_v27 = vpop.f32.mrf.mxu1  ;;  %v1899_v48 = vpop.f32.mrf.mxu0 }
 0x1b1   : > { %v1500_v38 = vpop.f32.mrf.mxu3  ;;  %v886_v25 = vadd.f32 %v885_v27, %v9271_v9  ;;  %v2680_v9 = vrot.slane %v2678_v41, 3 }
 0x1b2   : > { %v1554_v22 = vadd.f32 %v1500_v38, %v1165_v6 }
 0x1b3   : > { %v1166_v33 = vadd.f32 %v1113_v42, %v886_v25  ;;  %v2378_v42 = vsel %vm1976_vm4, %v2375_v49, %v2377_v50 }
 0x1b4   : > { %v6822_v17 = vadd.f32 %v1897_v16, %v1554_v22  ;;  %v9273_v22 = vld [vmem:[#allocation3_spill] sm:$0xff] }
 0x1b7   : > { %v1123_v51 = vpop.f32.mrf.mxu2 }
 0x1b8   : > { %v888_v59 = vpop.f32.mrf.mxu1  ;;  %v1902_v4 = vpop.f32.mrf.mxu0 }
 0x1b9   : > { %v1502_v34 = vpop.f32.mrf.mxu3  ;;  %v889_v16 = vadd.f32 %v888_v59, %v9272_v43 }
 0x1ba   : > { %v1555_v61 = vadd.f32 %v1502_v34, %v1166_v33  ;;  %v1986_v33 = vrot.slane %v5976_v37, 2  ;;  %v5977_v37 = vld [vmem:[%s6068_s13 + $0x38] sm:$0xff] }
 0x1bb   : > { %5272 = vmatmul.msk.bf16.gmra.mxu1 %vm600_vm1, %v1985_v56  ;;  %5466 = vmatmul.msk.bf16.gmra.mxu0 %vm600_vm1, %v3035_v18  ;;  %v1167_v6 = vadd.f32 %v6791_v24, %v889_v16  ;;  %v2677_v24 = vrot.slane %v2675_v53, 2 }
 0x1bc   : > { %v6832_v21 = vadd.f32 %v1899_v48, %v1555_v61  ;;  %5384 = vmatmul.msk.bf16.gmra.mxu2 %vm600_vm1, %v2378_v42  ;;  %v6845_v48 = vld [vmem:[%s6068_s13 + $0x48] sm:$0xff]  ;;  %v1987_v42 = vsel %vm1976_vm4, %v1984_v47, %v1986_v33  ;;  %v2684_v47 = vshrl.u32 %v6820_v54, 16 }
 0x1bd   : > { %v2379_v34 = vrot.slane %v6845_v48, 2  ;;  %v2681_v61 = vor.u32 %v2680_v9, %v2677_v24 }
 0x1be   : > { %5424 = vmatmul.msk.bf16.gmra.mxu3 %vm600_vm1, %v2673_v31  ;;  %v3037_v31 = vsel %vm3026_vm5, %v3034_v28, %v3036_v26  ;;  %v2687_v28 = vshll.u32 %v6820_v54, 16 }
 0x1bf   : > { %v6841_v49 = vpop.f32.mrf.mxu2  ;;  %v2682_v53 = vsel %vm2629_vm6, %v2672_v63, %v2681_v61 }
 0x1c0   : > { %v890_v5 = vpop.f32.mrf.mxu1  ;;  %v1904_v38 = vpop.f32.mrf.mxu0  ;;  %v2689_v24 = vrot.slane %v2687_v28, 3 }
 0x1c1   : > { %v1505_v58 = vpop.f32.mrf.mxu3  ;;  %v891_v27 = vadd.f32 %v890_v5, %v9273_v22 }
 0x1c2   : > { %v1556_v57 = vadd.f32 %v1505_v58, %v1167_v6  ;;  %v9274_v6 = vld [vmem:[#allocation4_spill] sm:$0xff] }
 0x1c3   : > { %v1168_v19 = vadd.f32 %v1118_v55, %v891_v27  ;;  %v2380_v55 = vsel %vm1976_vm4, %v2377_v50, %v2379_v34  ;;  %v6870_v27 = vld [vmem:[%s6068_s13 + $0x50] sm:$0xff] }
 0x1c4   : > { %v6847_v25 = vadd.f32 %v1902_v4, %v1556_v57 }
 0x1c7   : > { %v1128_v59 = vpop.f32.mrf.mxu2 }
 0x1c8   : > { %v893_v43 = vpop.f32.mrf.mxu1  ;;  %v1907_v16 = vpop.f32.mrf.mxu0 }
 0x1c9   : > { %v1507_v56 = vpop.f32.mrf.mxu3  ;;  %v894_v4 = vadd.f32 %v893_v43, %v9274_v6  ;;  %v2381_v43 = vrot.slane %v6870_v27, 2 }
 0x1ca   : > { %v1557_v18 = vadd.f32 %v1507_v56, %v1168_v19  ;;  %v1988_v56 = vrot.slane %v5977_v37, 2 }
 0x1cb   : > { %5273 = vmatmul.msk.bf16.gmra.mxu1 %vm600_vm1, %v1987_v42  ;;  %5467 = vmatmul.msk.bf16.gmra.mxu0 %vm600_vm1, %v3037_v31  ;;  %v1169_v41 = vadd.f32 %v6816_v8, %v894_v4  ;;  %v2686_v8 = vrot.slane %v2684_v47, 2 }
 0x1cc   : > { %v6857_v2 = vadd.f32 %v1904_v38, %v1557_v18  ;;  %5385 = vmatmul.msk.bf16.gmra.mxu2 %vm600_vm1, %v2380_v55  ;;  %v9275_v38 = vld [vmem:[#allocation5_spill] sm:$0xff]  ;;  %v3038_v18 = vrot.slane %v6820_v54, 3 }
 0x1cd   : > { %v2690_v42 = vor.u32 %v2689_v24, %v2686_v8  ;;  %v6897_v24 = vld [vmem:[%s6068_s13 + $0x58] sm:$0xff] }
 0x1ce   : > { %5425 = vmatmul.msk.bf16.gmra.mxu3 %vm600_vm1, %v2682_v53  ;;  %v3039_v47 = vsel %vm3026_vm5, %v3036_v26, %v3038_v18  ;;  %v2696_v26 = vshll.u32 %v6845_v48, 16 }
 0x1cf   : > { %v6866_v50 = vpop.f32.mrf.mxu2  ;;  %v2691_v54 = vsel %vm2629_vm6, %v2681_v61, %v2690_v42 }
 0x1d0   : > { %v895_v57 = vpop.f32.mrf.mxu1  ;;  %v1909_v5 = vpop.f32.mrf.mxu0 }
 0x1d1   : > { %v1510_v63 = vpop.f32.mrf.mxu3  ;;  %v896_v22 = vadd.f32 %v895_v57, %v9275_v38 }
 0x1d2   : > { %v1558_v58 = vadd.f32 %v1510_v63, %v1169_v41  ;;  %v1989_v41 = vsel %vm1976_vm4, %v1986_v33, %v1988_v56  ;;  %v2693_v33 = vshrl.u32 %v6845_v48, 16 }
 0x1d3   : > { %v1170_v19 = vadd.f32 %v1123_v51, %v896_v22  ;;  %v2382_v51 = vsel %vm1976_vm4, %v2379_v34, %v2381_v43  ;;  %v9277_v22 = vld [vmem:[#allocation8_spill] sm:$0xff] }
 0x1d4   : > { %v6872_v9 = vadd.f32 %v1907_v16, %v1558_v58  ;;  %v9276_v16 = vld [vmem:[#allocation6_spill] sm:$0xff] }
 0x1d7   : > { %v6877_v31 = vpop.f32.mrf.mxu2 }
 0x1d8   : > { %v898_v55 = vpop.f32.mrf.mxu1  ;;  %v1912_v53 = vpop.f32.mrf.mxu0 }
 0x1d9   : > { %v1512_v6 = vpop.f32.mrf.mxu3  ;;  %v899_v28 = vadd.f32 %v898_v55, %v9276_v16 }
 0x1da   : > { %v1559_v4 = vadd.f32 %v1512_v6, %v1170_v19  ;;  %v2698_v19 = vrot.slane %v2696_v26, 3 }
 0x1db   : > { %5274 = vmatmul.msk.bf16.gmra.mxu1 %vm600_vm1, %v1989_v41  ;;  %5468 = vmatmul.msk.bf16.gmra.mxu0 %vm600_vm1, %v3039_v47  ;;  %v1171_v58 = vadd.f32 %v6841_v49, %v899_v28  ;;  %v2695_v49 = vrot.slane %v2693_v33, 2  ;;  %v3040_v41 = vrot.slane %v6845_v48, 3  ;;  %v2383_v47 = vrot.slane %v6897_v24, 2 }
 0x1dc   : > { %v6884_v63 = vadd.f32 %v1909_v5, %v1559_v4  ;;  %5386 = vmatmul.msk.bf16.gmra.mxu2 %vm600_vm1, %v2382_v51  ;;  %v5978_v4 = vld [vmem:[%s6068_s13 + $0x40] sm:$0xff] }
 0x1dd   : > { %v1990_v55 = vrot.slane %v5978_v4, 2  ;;  %v2699_v16 = vor.u32 %v2698_v19, %v2695_v49  ;;  %v3041_v33 = vsel %vm3026_vm5, %v3038_v18, %v3040_v41  ;;  %v2702_v18 = vshrl.u32 %v6870_v27, 16  ;;  %v9279_v19 = vld [vmem:[#allocation10_spill] sm:$0xff] }
 0x1de   : > { %5426 = vmatmul.msk.bf16.gmra.mxu3 %vm600_vm1, %v2691_v54  ;;  %v6927_v4 = vld [vmem:[%s6068_s13 + $0x60] sm:$0xff] }
 0x1df   : > { %v6893_v34 = vpop.f32.mrf.mxu2 }
 0x1e0   : > { %v900_v5 = vpop.f32.mrf.mxu1  ;;  %v1914_v38 = vpop.f32.mrf.mxu0 }
 0x1e1   : > { %v1515_v61 = vpop.f32.mrf.mxu3  ;;  %v901_v8 = vadd.f32 %v900_v5, %v9277_v22  ;;  %v1991_v5 = vsel %vm1976_vm4, %v1988_v56, %v1990_v55  ;;  %v3925_v56 = vld [vmem:[%s9228_s5 + $0x30] sm:$0xff] }
 0x1e2   : > { %v1560_v57 = vadd.f32 %v1515_v61, %v1171_v58  ;;  %3949 = vmatpush.msrb.mxu2 %v3925_v56 }
 0x1e3   : > { %v1172_v6 = vadd.f32 %v1128_v59, %v901_v8  ;;  %v2384_v59 = vsel %vm1976_vm4, %v2381_v43, %v2383_v47  ;;  %v2705_v43 = vshll.u32 %v6870_v27, 16 }
 0x1e4   : > { %v6899_v37 = vadd.f32 %v1912_v53, %v1560_v57  ;;  %v9278_v53 = vld [vmem:[#allocation9_spill] sm:$0xff]  ;;  %v2700_v57 = vsel %vm2629_vm6, %v2690_v42, %v2699_v16 }
 0x1e7   : > { %v6904_v28 = vpop.f32.mrf.mxu2 }
 0x1e8   : > { %v903_v58 = vpop.f32.mrf.mxu1  ;;  %v1917_v61 = vpop.f32.mrf.mxu0 }
 0x1e9   : > { %v1517_v51 = vpop.f32.mrf.mxu3  ;;  %v904_v26 = vadd.f32 %v903_v58, %v9278_v53 }
 0x1ea   : > { %v1561_v54 = vadd.f32 %v1517_v51, %v1172_v6  ;;  %v2704_v51 = vrot.slane %v2702_v18, 2 }
 0x1eb   : > { %5275 = vmatmul.msk.bf16.gmra.mxu1 %vm600_vm1, %v1991_v5  ;;  %5469 = vmatmul.msk.bf16.gmra.mxu0 %vm600_vm1, %v3041_v33  ;;  %v1173_v22 = vadd.f32 %v6866_v50, %v904_v26  ;;  %v5979_v33 = vld [vmem:[%s6068_s13 + $0x48] sm:$0xff]  ;;  %v3042_v26 = vrot.slane %v6870_v27, 3 }
 0x1ec   : > { %v6911_v48 = vadd.f32 %v1914_v38, %v1561_v54  ;;  %5387 = vmatmul.msk.bf16.gmra.mxu2 %vm600_vm1, %v2384_v59  ;;  %v2707_v54 = vrot.slane %v2705_v43, 3  ;;  %v1992_v53 = vrot.slane %v5979_v33, 2  ;;  %v2385_v59 = vrot.slane %v6927_v4, 2  ;;  %v9281_v43 = vld [vmem:[#allocation11_spill] sm:$0xff]  ;;  %v9283_v33 = vld [vmem:[#allocation12_spill] sm:$0xff] }
 0x1ee   : > { %5427 = vmatmul.msk.bf16.gmra.mxu3 %vm600_vm1, %v2700_v57  ;;  %v2708_v57 = vor.u32 %v2707_v54, %v2704_v51  ;;  %v1993_v18 = vsel %vm1976_vm4, %v1990_v55, %v1992_v53  ;;  %v2711_v55 = vshrl.u32 %v6897_v24, 16 }
 0x1ef   : > { %v6923_v38 = vpop.f32.mrf.mxu2 }
 0x1f0   : > { %v905_v49 = vpop.f32.mrf.mxu1  ;;  %v1919_v50 = vpop.f32.mrf.mxu0  ;;  %v2709_v27 = vsel %vm2629_vm6, %v2699_v16, %v2708_v57 }
 0x1f1   : > { %v1520_v42 = vpop.f32.mrf.mxu3  ;;  %v906_v6 = vadd.f32 %v905_v49, %v9279_v19 }
 0x1f2   : > { %v1562_v8 = vadd.f32 %v1520_v42, %v1173_v22 }
 0x1f3   : > { %v1174_v5 = vadd.f32 %v6877_v31, %v906_v6  ;;  %v2386_v31 = vsel %vm1976_vm4, %v2383_v47, %v2385_v59 }
 0x1f4   : > { %v6929_v58 = vadd.f32 %v1917_v61, %v1562_v8  ;;  %v3043_v61 = vsel %vm3026_vm5, %v3040_v41, %v3042_v26  ;;  %v2714_v41 = vshll.u32 %v6897_v24, 16 }
 0x1f6   : > { %9280 = vst [vmem:[#allocation7_spill] sm:$0xff] %v6929_v58 }
 0x1f7   : > { %v6935_v56 = vpop.f32.mrf.mxu2 }
 0x1f8   : > { %v908_v49 = vpop.f32.mrf.mxu1  ;;  %v1922_v19 = vpop.f32.mrf.mxu0 }
 0x1f9   : > { %v1522_v22 = vpop.f32.mrf.mxu3  ;;  %v909_v8 = vadd.f32 %v908_v49, %v9281_v43  ;;  %v2716_v49 = vrot.slane %v2714_v41, 3  ;;  %v5980_v43 = vld [vmem:[%s6068_s13 + $0x50] sm:$0xff] }
 0x1fa   : > { %v1563_v42 = vadd.f32 %v1522_v22, %v1174_v5 }
 0x1fb   : > { %5276 = vmatmul.msk.bf16.gmra.mxu1 %vm600_vm1, %v1993_v18  ;;  %5470 = vmatmul.msk.bf16.gmra.mxu0 %vm600_vm1, %v3043_v61  ;;  %v1175_v51 = vadd.f32 %v6893_v34, %v909_v8  ;;  %v2713_v34 = vrot.slane %v2711_v55, 2  ;;  %v1994_v8 = vrot.slane %v5980_v43, 2 }
 0x1fc   : > { %v6942_v6 = vadd.f32 %v1919_v50, %v1563_v42  ;;  %5388 = vmatmul.msk.bf16.gmra.mxu2 %vm600_vm1, %v2386_v31  ;;  %v6955_v42 = vld [vmem:[%s6068_s13 + $0x68] sm:$0xff]  ;;  %v3044_v31 = vrot.slane %v6897_v24, 3 }
 0x1fd   : > { %v1995_v55 = vsel %vm1976_vm4, %v1992_v53, %v1994_v8  ;;  %v2720_v53 = vshrl.u32 %v6927_v4, 16 }
 0x1fe   : > { %9282 = vst [vmem:[#allocation2_spill] sm:$0xff] %v6942_v6  ;;  %5428 = vmatmul.msk.bf16.gmra.mxu3 %vm600_vm1, %v2709_v27  ;;  %v2387_v27 = vrot.slane %v6955_v42, 2  ;;  %v2717_v6 = vor.u32 %v2716_v49, %v2713_v34  ;;  %v6984_v34 = vld [vmem:[%s9225_s2] ss:$0 sm:$0xff]  ;;  %v6987_v49 = vld [vmem:[%s6068_s13 + $0x70] sm:$0xff] }
 0x1ff   : > { %v6951_v54 = vpop.f32.mrf.mxu2 }
 0x200   : > { %v910_v50 = vpop.f32.mrf.mxu1  ;;  %v1924_v5 = vpop.f32.mrf.mxu0  ;;  %v2388_v41 = vsel %vm1976_vm4, %v2385_v59, %v2387_v27 }
 0x201   : > { %v1525_v47 = vpop.f32.mrf.mxu3  ;;  %v911_v22 = vadd.f32 %v910_v50, %v9283_v33 }
 0x202   : > { %v1564_v16 = vadd.f32 %v1525_v47, %v1175_v51 }
 0x203   : > { %v1176_v61 = vadd.f32 %v6904_v28, %v911_v22  ;;  %v2718_v28 = vsel %vm2629_vm6, %v2708_v57, %v2717_v6 }
 0x204   : > { %v6957_v18 = vadd.f32 %v1922_v19, %v1564_v16  ;;  %v3045_v19 = vsel %vm3026_vm5, %v3042_v26, %v3044_v31  ;;  %v2723_v26 = vshll.u32 %v6927_v4, 16 }
 0x206   : > { %v2725_v43 = vrot.slane %v2723_v26, 3 }
 0x207   : > { %v6963_v47 = vpop.f32.mrf.mxu2 }
 0x208   : > { %v2101_v50 = vpop.f32.mrf.mxu1  ;;  %v3151_v33 = vpop.f32.mrf.mxu0 }
 0x209   : > { %v1527_v51 = vpop.f32.mrf.mxu3  ;;  %v2191_v24 = vadd.f32 %v2101_v50, %v6491_v32 }
 0x20a   : > { %v1565_v58 = vadd.f32 %v1527_v51, %v1176_v61  ;;  %v2722_v61 = vrot.slane %v2720_v53, 2 }
 0x20b   : > { %5277 = vmatmul.msk.bf16.gmra.mxu1 %vm600_vm1, %v1995_v55  ;;  %5471 = vmatmul.msk.bf16.gmra.mxu0 %vm600_vm1, %v3045_v19  ;;  %v2580_v59 = vadd.f32 %v6923_v38, %v2191_v24  ;;  %v5981_v55 = vld [vmem:[%s6068_s13 + $0x58] sm:$0xff] }
 0x20c   : > { %v6970_v16 = vadd.f32 %v1924_v5, %v1565_v58  ;;  %5389 = vmatmul.msk.bf16.gmra.mxu2 %vm600_vm1, %v2388_v41  ;;  %v1996_v19 = vrot.slane %v5981_v55, 2  ;;  %v3046_v41 = vrot.slane %v6927_v4, 3  ;;  %v2726_v24 = vor.u32 %v2725_v43, %v2722_v61 }
 0x20e   : > { %9284 = vst [vmem:[#allocation3_spill] sm:$0xff] %v6970_v16  ;;  %5429 = vmatmul.msk.bf16.gmra.mxu3 %vm600_vm1, %v2718_v28  ;;  %v2389_v28 = vrot.slane %v6987_v49, 2  ;;  %v2727_v61 = vsel %vm2629_vm6, %v2717_v6, %v2726_v24  ;;  %v2732_v6 = vshll.u32 %v6955_v42, 16 }
 0x20f   : > { %v6979_v57 = vpop.f32.mrf.mxu2 }
 0x210   : > { %v2103_v5 = vpop.f32.mrf.mxu1  ;;  %v3153_v22 = vpop.f32.mrf.mxu0  ;;  %v2390_v4 = vsel %vm1976_vm4, %v2387_v27, %v2389_v28 }
 0x211   : > { %v2887_v32 = vpop.f32.mrf.mxu3  ;;  %v2192_v50 = vadd.f32 %v2103_v5, %v6502_v60  ;;  %v1997_v5 = vsel %vm1976_vm4, %v1994_v8, %v1996_v19 }
 0x212   : > { %v2977_v58 = vadd.f32 %v2887_v32, %v2580_v59 }
 0x213   : > { %v2581_v59 = vadd.f32 %v6935_v56, %v2192_v50 }
 0x214   : > { %v3241_v51 = vadd.f32 %v3151_v33, %v2977_v58 }
 0x216   : > { %v6991_v38 = vadd.f32 %v6984_v34, %v3241_v51  ;;  %v3047_v51 = vsel %vm3026_vm5, %v3044_v31, %v3046_v41  ;;  %v2729_v31 = vshrl.u32 %v6955_v42, 16 }
 0x217   : > { %v6999_v53 = vpop.f32.mrf.mxu2 }
 0x218   : > { %v3317_v32 = vmul.f32 %v6991_v38, %v6991_v38  ;;  %v2106_v60 = vpop.f32.mrf.mxu1  ;;  %v3156_v58 = vpop.f32.mrf.mxu0 }
 0x219   : > { %v2889_v33 = vpop.f32.mrf.mxu3  ;;  %v2193_v56 = vadd.f32 %v2106_v60, %v6512_v45  ;;  %v2734_v60 = vrot.slane %v2732_v6, 3 }
 0x21a   : > { %v2978_v26 = vadd.f32 %v2889_v33, %v2581_v59  ;;  %3353 = vadd.xlane.f32.xlu0 %v3317_v32  ;;  %v7021_v33 = vld [vmem:[%s6068_s13 + $0x78] sm:$0xff] }
 0x21b   : > { %5278 = vmatmul.msk.bf16.gmra.mxu1 %vm600_vm1, %v1997_v5  ;;  %5472 = vmatmul.msk.bf16.gmra.mxu0 %vm600_vm1, %v3047_v51  ;;  %v2582_v27 = vadd.f32 %v6951_v54, %v2193_v56  ;;  %v5982_v54 = vld [vmem:[%s6068_s13 + $0x60] sm:$0xff]  ;;  %v2391_v56 = vrot.slane %v7021_v33, 2 }
 0x21c   : > { %v3242_v43 = vadd.f32 %v3153_v22, %v2978_v26  ;;  %5390 = vmatmul.msk.bf16.gmra.mxu2 %vm600_vm1, %v2390_v4  ;;  %v2731_v26 = vrot.slane %v2729_v31, 2 }
 0x21e   : > { %5430 = vmatmul.msk.bf16.gmra.mxu3 %vm600_vm1, %v2727_v61  ;;  %v7011_v8 = vadd.f32 %v6984_v34, %v3242_v43  ;;  %v1998_v61 = vrot.slane %v5982_v54, 2  ;;  %v3048_v43 = vrot.slane %v6955_v42, 3  ;;  %v2392_v42 = vsel %vm1976_vm4, %v2389_v28, %v2391_v56 }
 0x21f   : > { %v7018_v22 = vpop.f32.mrf.mxu2  ;;  %v2741_v28 = vshll.u32 %v6987_v49, 16 }
 0x220   : > { %v3318_v45 = vmul.f32 %v7011_v8, %v7011_v8  ;;  %v2108_v59 = vpop.f32.mrf.mxu1  ;;  %v3158_v32 = vpop.f32.mrf.mxu0 }
 0x221   : > { %v2892_v50 = vpop.f32.mrf.mxu3  ;;  %v2194_v51 = vadd.f32 %v2108_v59, %v6523_v1  ;;  %v1999_v59 = vsel %vm1976_vm4, %v1996_v19, %v1998_v61 }
 0x222   : > { %v2979_v55 = vadd.f32 %v2892_v50, %v2582_v27  ;;  %3355 = vadd.xlane.f32.xlu0 %v3318_v45  ;;  %v2735_v27 = vor.u32 %v2734_v60, %v2731_v26 }
 0x223   : > { %v2583_v45 = vadd.f32 %v6963_v47, %v2194_v51 }
 0x224   : > { %v3243_v5 = vadd.f32 %v3156_v58, %v2979_v55  ;;  %v2736_v26 = vsel %vm2629_vm6, %v2726_v24, %v2735_v27 }
 0x226   : > { %v7025_v4 = vadd.f32 %v6984_v34, %v3243_v5  ;;  %v3049_v5 = vsel %vm3026_vm5, %v3046_v41, %v3048_v43  ;;  %v2738_v41 = vshrl.u32 %v6987_v49, 16 }
 0x227   : > { %v7033_v31 = vpop.f32.mrf.mxu2 }
 0x228   : > { %v3319_v50 = vmul.f32 %v7025_v4, %v7025_v4  ;;  %v2111_v1 = vpop.f32.mrf.mxu1  ;;  %v3161_v55 = vpop.f32.mrf.mxu0 }
 0x229   : > { %v2894_v58 = vpop.f32.mrf.mxu3  ;;  %v2195_v47 = vadd.f32 %v2111_v1, %v6535_v0  ;;  %v2743_v1 = vrot.slane %v2741_v28, 3 }
 0x22a   : > { %v2980_v6 = vadd.f32 %v2894_v58, %v2583_v45  ;;  %3357 = vadd.xlane.f32.xlu1 %v3319_v50  ;;  %v7055_v58 = vld [vmem:[%s6068_s13 + $0x80] sm:$0xff] }
 0x22b   : > { %5279 = vmatmul.msk.bf16.gmra.mxu1 %vm600_vm1, %v1999_v59  ;;  %5473 = vmatmul.msk.bf16.gmra.mxu0 %vm600_vm1, %v3049_v5  ;;  %v2584_v24 = vadd.f32 %v6979_v57, %v2195_v47  ;;  %v3923_v57 = vld [vmem:[%s9228_s5 + $0x20] sm:$0xff]  ;;  %v3050_v47 = vrot.slane %v6987_v49, 3 }
 0x22c   : > { %v3244_v60 = vadd.f32 %v3158_v32, %v2980_v6  ;;  %5391 = vmatmul.msk.bf16.gmra.mxu2 %vm600_vm1, %v2392_v42  ;;  %v2740_v6 = vrot.slane %v2738_v41, 2 }
 0x22d   : > { %3950 = vmatpush.msrb.mxu2 %v3923_v57  ;;  %v3051_v57 = vsel %vm3026_vm5, %v3048_v43, %v3050_v47  ;;  %v2747_v43 = vshrl.u32 %v7021_v33, 16 }
 0x22e   : > { %5431 = vmatmul.msk.bf16.gmra.mxu3 %vm600_vm1, %v2736_v26  ;;  %v7045_v19 = vadd.f32 %v6984_v34, %v3244_v60  ;;  %v5983_v26 = vld [vmem:[%s6068_s13 + $0x68] sm:$0xff] }
 0x22f   : > { %v7052_v32 = vpop.f32.mrf.mxu2  ;;  %v2000_v60 = vrot.slane %v5983_v26, 2 }
 0x230   : > { %v3320_v0 = vmul.f32 %v7045_v19, %v7045_v19  ;;  %v2113_v45 = vpop.f32.mrf.mxu1  ;;  %v3163_v50 = vpop.f32.mrf.mxu0 }
 0x231   : > { %v2897_v51 = vpop.f32.mrf.mxu3  ;;  %v2196_v5 = vadd.f32 %v2113_v45, %v6548_v44 }
 0x232   : > { %v2981_v54 = vadd.f32 %v2897_v51, %v2584_v24  ;;  %3359 = vadd.xlane.f32.xlu1 %v3320_v0  ;;  %v2393_v24 = vrot.slane %v7055_v58, 2  ;;  %v2744_v0 = vor.u32 %v2743_v1, %v2740_v6 }
 0x233   : > { %v2585_v41 = vadd.f32 %v6999_v53, %v2196_v5 }
 0x234   : > { %v3245_v59 = vadd.f32 %v3161_v55, %v2981_v54  ;;  %v2394_v49 = vsel %vm1976_vm4, %v2391_v56, %v2393_v24  ;;  %v2745_v6 = vsel %vm2629_vm6, %v2735_v27, %v2744_v0  ;;  %v2750_v56 = vshll.u32 %v7021_v33, 16 }
 0x236   : > { %v7062_v42 = vadd.f32 %v6984_v34, %v3245_v59  ;;  %v2001_v59 = vsel %vm1976_vm4, %v1998_v61, %v2000_v60 }
 0x237   : > { %v7070_v55 = vpop.f32.mrf.mxu2 }
 0x238   : > { %v3321_v44 = vmul.f32 %v7062_v42, %v7062_v42  ;;  %v2116_v54 = vpop.f32.mrf.mxu1  ;;  %v3166_v45 = vpop.f32.mrf.mxu0 }
 0x239   : > { %v2899_v28 = vpop.f32.mrf.mxu3  ;;  %v2197_v53 = vadd.f32 %v2116_v54, %v6569_v46  ;;  %v2752_v54 = vrot.slane %v2750_v56, 3 }
 0x23a   : > { %v2982_v51 = vadd.f32 %v2899_v28, %v2585_v41  ;;  %3361 = vadd.xlane.f32.xlu2 %v3321_v44  ;;  %v7092_v28 = vld [vmem:[%s6068_s13 + $0x88] sm:$0xff] }
 0x23b   : > { %5280 = vmatmul.msk.bf16.gmra.mxu1 %vm600_vm1, %v2001_v59  ;;  %5474 = vmatmul.msk.bf16.gmra.mxu0 %vm600_vm1, %v3051_v57  ;;  %v2586_v27 = vadd.f32 %v7018_v22, %v2197_v53  ;;  %v5984_v22 = vld [vmem:[%s6068_s13 + $0x70] sm:$0xff]  ;;  %v2395_v53 = vrot.slane %v7092_v28, 2 }
 0x23c   : > { %v3246_v1 = vadd.f32 %v3163_v50, %v2982_v51  ;;  %5392 = vmatmul.msk.bf16.gmra.mxu2 %vm600_vm1, %v2394_v49  ;;  %v2749_v51 = vrot.slane %v2747_v43, 2 }
 0x23e   : > { %5432 = vmatmul.msk.bf16.gmra.mxu3 %vm600_vm1, %v2745_v6  ;;  %v7082_v61 = vadd.f32 %v6984_v34, %v3246_v1  ;;  %v2002_v6 = vrot.slane %v5984_v22, 2  ;;  %v3052_v1 = vrot.slane %v7021_v33, 3  ;;  %v2396_v33 = vsel %vm1976_vm4, %v2393_v24, %v2395_v53 }
 0x23f   : > { %v7089_v50 = vpop.f32.mrf.mxu2  ;;  %v2759_v24 = vshll.u32 %v7055_v58, 16 }
 0x240   : > { %v3322_v46 = vmul.f32 %v7082_v61, %v7082_v61  ;;  %v2118_v41 = vpop.f32.mrf.mxu1  ;;  %v3168_v44 = vpop.f32.mrf.mxu0 }
 0x241   : > { %v2902_v5 = vpop.f32.mrf.mxu3  ;;  %v2198_v57 = vadd.f32 %v2118_v41, %v6580_v15  ;;  %v2003_v41 = vsel %vm1976_vm4, %v2000_v60, %v2002_v6 }
 0x242   : > { %v2983_v26 = vadd.f32 %v2902_v5, %v2586_v27  ;;  %3363 = vadd.xlane.f32.xlu2 %v3322_v46  ;;  %v2753_v27 = vor.u32 %v2752_v54, %v2749_v51 }
 0x243   : > { %v2587_v46 = vadd.f32 %v7033_v31, %v2198_v57 }
 0x244   : > { %v3247_v59 = vadd.f32 %v3166_v45, %v2983_v26  ;;  %v2754_v51 = vsel %vm2629_vm6, %v2744_v0, %v2753_v27 }
 0x246   : > { %v7096_v49 = vadd.f32 %v6984_v34, %v3247_v59  ;;  %v3053_v59 = vsel %vm3026_vm5, %v3050_v47, %v3052_v1  ;;  %v2756_v47 = vshrl.u32 %v7055_v58, 16 }
 0x247   : > { %v7104_v43 = vpop.f32.mrf.mxu2 }
 0x248   : > { %v3323_v5 = vmul.f32 %v7096_v49, %v7096_v49  ;;  %v2121_v15 = vpop.f32.mrf.mxu1  ;;  %v3171_v26 = vpop.f32.mrf.mxu0 }
 0x249   : > { %v2904_v45 = vpop.f32.mrf.mxu3  ;;  %v2199_v31 = vadd.f32 %v2121_v15, %v6594_v14  ;;  %v2761_v15 = vrot.slane %v2759_v24, 3 }
 0x24a   : > { %v2984_v56 = vadd.f32 %v2904_v45, %v2587_v46  ;;  %3365 = vadd.xlane.f32.xlu0 %v3323_v5  ;;  %v7126_v45 = vld [vmem:[%s6068_s13 + $0x90] sm:$0xff] }
 0x24b   : > { %5281 = vmatmul.msk.bf16.gmra.mxu1 %vm600_vm1, %v2003_v41  ;;  %5475 = vmatmul.msk.bf16.gmra.mxu0 %vm600_vm1, %v3053_v59  ;;  %v2588_v14 = vadd.f32 %v7052_v32, %v2199_v31  ;;  %v2397_v31 = vrot.slane %v7126_v45, 2 }
 0x24c   : > { %v3248_v54 = vadd.f32 %v3168_v44, %v2984_v56  ;;  %5393 = vmatmul.msk.bf16.gmra.mxu2 %vm600_vm1, %v2396_v33  ;;  %v2758_v56 = vrot.slane %v2756_v47, 2  ;;  %v5985_v33 = vld [vmem:[%s6068_s13 + $0x78] sm:$0xff] }
 0x24e   : > { %5433 = vmatmul.msk.bf16.gmra.mxu3 %vm600_vm1, %v2754_v51  ;;  %v7116_v60 = vadd.f32 %v6984_v34, %v3248_v54  ;;  %v2004_v51 = vrot.slane %v5985_v33, 2  ;;  %v3054_v54 = vrot.slane %v7055_v58, 3 }
 0x24f   : > { %v7123_v44 = vpop.f32.mrf.mxu2 }
 0x250   : > { %v3324_v0 = vmul.f32 %v7116_v60, %v7116_v60  ;;  %v2123_v46 = vpop.f32.mrf.mxu1  ;;  %v3173_v5 = vpop.f32.mrf.mxu0  ;;  %v3055_v58 = vsel %vm3026_vm5, %v3052_v1, %v3054_v54  ;;  %v2765_v1 = vshrl.u32 %v7092_v28, 16 }
 0x251   : > { %v2907_v57 = vpop.f32.mrf.mxu3  ;;  %v2200_v59 = vadd.f32 %v2123_v46, %v6606_v62 }
 0x252   : > { %v2985_v22 = vadd.f32 %v2907_v57, %v2588_v14  ;;  %3367 = vadd.xlane.f32.xlu1 %v3324_v0  ;;  %v2762_v14 = vor.u32 %v2761_v15, %v2758_v56  ;;  %v7139_v0 = vld [vmem:[%s3897_s11] sm:$0x1]  ;;  %v2398_v15 = vsel %vm1976_vm4, %v2395_v53, %v2397_v31  ;;  %v2768_v53 = vshll.u32 %v7092_v28, 16  ;;  %s8405_s11 = scalar_lea.vmem %s9230_s7, %s5736_s9 }
 0x253   : > { %v5481_v56 = vmul.f32 -1.442695, %v7139_v0 }
 0x254   : > { %v3249_v41 = vadd.f32 %v3171_v26, %v2985_v22  ;;  %v2589_v26 = vadd.f32 %v7070_v55, %v2200_v59  ;;  %v2763_v55 = vsel %vm2629_vm6, %v2753_v27, %v2762_v14 }
 0x255   : > { %5747 = vpow2.f32 %v5481_v56 }
 0x256   : > { %v7134_v32 = vadd.f32 %v6984_v34, %v3249_v41  ;;  %v2005_v41 = vsel %vm1976_vm4, %v2002_v6, %v2004_v51 }
 0x257   : > { %v7144_v47 = vpop.f32.mrf.mxu2 }
 0x258   : > { %v3325_v62 = vmul.f32 %v7134_v32, %v7134_v32  ;;  %v2126_v22 = vpop.f32.mrf.mxu1  ;;  %v3176_v46 = vpop.f32.mrf.mxu0 }
 0x259   : > { %v2909_v24 = vpop.f32.mrf.mxu3  ;;  %v2201_v33 = vadd.f32 %v2126_v22, %v6617_v39  ;;  %v7167_v22 = vld [vmem:[%s6068_s13 + $0x98] sm:$0xff] }
 0x25a   : > { %v2986_v57 = vadd.f32 %v2909_v24, %v2589_v26  ;;  %3369 = vadd.xlane.f32.xlu2 %v3325_v62 }
 0x25b   : > { %5282 = vmatmul.msk.bf16.gmra.mxu1 %vm600_vm1, %v2005_v41  ;;  %5476 = vmatmul.msk.bf16.gmra.mxu0 %vm600_vm1, %v3055_v58  ;;  %v2590_v39 = vadd.f32 %v7089_v50, %v2201_v33  ;;  %v2767_v41 = vrot.slane %v2765_v1, 2  ;;  %v2770_v58 = vrot.slane %v2768_v53, 3  ;;  %v5748_v56 = vpop.eup %5747 }
 0x25c   : > { %v3250_v59 = vadd.f32 %v3173_v5, %v2986_v57  ;;  %5394 = vmatmul.msk.bf16.gmra.mxu2 %vm600_vm1, %v2398_v15  ;;  %v7181_v16 = vadd.f32 1.0, %v5748_v56 }
 0x25e   : > { %5434 = vmatmul.msk.bf16.gmra.mxu3 %vm600_vm1, %v2763_v55  ;;  %v7157_v6 = vadd.f32 %v6984_v34, %v3250_v59  ;;  %v7174_v59 = vld [vmem:[%s6068_s13 + $0x80] sm:$0xff]  ;;  %5749 = vrcp.f32 %v7181_v16  ;;  %vm3908_vm7 = vweird.f32 %v7181_v16 }
 0x25f   : > { %v7164_v5 = vpop.f32.mrf.mxu2  ;;  %v9234_v33 = vrot.slane %v7174_v59, 2 }
 0x260   : > { %9285 = vst [vmem:[#allocation4_spill] sm:$0xff] %v7157_v6  ;;  %v3326_v27 = vmul.f32 %v7157_v6, %v7157_v6  ;;  %v2128_v24 = vpop.f32.mrf.mxu1  ;;  %v3178_v57 = vpop.f32.mrf.mxu0 }
 0x261   : > { %v2912_v26 = vpop.f32.mrf.mxu3  ;;  %v2202_v55 = vadd.f32 %v2128_v24, %v6630_v40 }
 0x262   : > { %v2987_v62 = vadd.f32 %v2912_v26, %v2590_v39  ;;  %3371 = vadd.xlane.f32.xlu0 %v3326_v27  ;;  %v9233_v39 = vrot.slane %v7092_v28, 3  ;;  %v9232_v27 = vrot.slane %v7167_v22, 2  ;;  %v7179_v26 = vor.u32 %v2770_v58, %v2767_v41 }
 0x263   : > { %v2007_v41 = vsel %vm1976_vm4, %v2004_v51, %v9234_v33  ;;  %v3921_v51 = vld [vmem:[%s9228_s5 + $0x10] sm:$0xff] }
 0x264   : > { %v3251_v15 = vadd.f32 %v3176_v46, %v2987_v62  ;;  %v2591_v46 = vadd.f32 %v7104_v43, %v2202_v55  ;;  %v3057_v58 = vsel %vm3026_vm5, %v3054_v54, %v9233_v39  ;;  %v2400_v43 = vsel %vm1976_vm4, %v2397_v31, %v9232_v27  ;;  %3951 = vmatpush.msrb.mxu2 %v3921_v51 }
 0x265   : > { %v2772_v56 = vsel %vm2629_vm6, %v2762_v14, %v7179_v26  ;;  %v2774_v14 = vshrl.u32 %v7126_v45, 16 }
 0x266   : > { %v7171_v50 = vadd.f32 %v6984_v34, %v3251_v15 }
 0x267   : > { %v7186_v1 = vpop.f32.mrf.mxu2  ;;  %v2776_v51 = vrot.slane %v2774_v14, 2 }
 0x268   : > { %v3327_v40 = vmul.f32 %v7171_v50, %v7171_v50  ;;  %v2131_v24 = vpop.f32.mrf.mxu1  ;;  %v3181_v15 = vpop.f32.mrf.mxu0 }
 0x269   : > { %v2914_v53 = vpop.f32.mrf.mxu3 }
 0x26a   : > { %v2988_v62 = vadd.f32 %v2914_v53, %v2591_v46  ;;  %3373 = vadd.xlane.f32.xlu1 %v3327_v40  ;;  %v2203_v46 = vadd.f32 %v2131_v24, %v6642_v35  ;;  %v2263_v40 = vld [vmem:[%s6068_s13 + $0xa0] sm:$0x3]  ;;  %v3926_v24 = vld [vmem:[%s9228_s5 + $0x38] sm:$0xff] }
 0x26b   : > { %5283 = vmatmul.msk.bf16.gmra.mxu1 %vm600_vm1, %v2007_v41  ;;  %5477 = vmatmul.msk.bf16.gmra.mxu0 %vm600_vm1, %v3057_v58  ;;  %v3919_v35 = vld [vmem:[%s9228_s5] sm:$0xff]  ;;  %v2346_v31 = vunpack.c.l.b16 %v2263_v40  ;;  %v7223_v41 = vpop.eup %5749 }
 0x26c   : > { %v3252_v55 = vadd.f32 %v3178_v57, %v2988_v62  ;;  %5395 = vmatmul.msk.bf16.gmra.mxu2 %vm600_vm1, %v2400_v43  ;;  %v2777_v57 = vshll.u32 %v7126_v45, 16  ;;  %v2592_v53 = vadd.f32 %v7123_v44, %v2203_v46  ;;  %v3924_v44 = vld [vmem:[%s9228_s5 + $0x28] sm:$0xff]  ;;  %v3904_v6 = vmul.f32 %v7223_v41, %v7181_v16 }
 0x26d   : > { %3952 = vmatpush.msrb.mxu2 %v3919_v35  ;;  %v2365_v46 = vpack.c.b16 %v2346_v31, %v2346_v31  ;;  %v3922_v35 = vld [vmem:[%s9228_s5 + $0x18] sm:$0xff]  ;;  %vm3909_vm8 = vweird.f32 %v7223_v41 }
 0x26e   : > { %5435 = vmatmul.msk.bf16.gmra.mxu3 %vm600_vm1, %v2772_v56  ;;  %v7210_v54 = vadd.f32 %v6984_v34, %v3252_v55  ;;  %v2779_v27 = vrot.slane %v2777_v57, 3  ;;  %vm7291_vm9 = vmor %vm3908_vm7, %vm3909_vm8 }
 0x26f   : > { %v7225_v58 = vpop.f32.mrf.mxu2  ;;  %3969 = vmatpush.msra.mxu2 %v3926_v24 }
 0x270   : > { %v3328_v62 = vmul.f32 %v7210_v54, %v7210_v54  ;;  %v2133_v55 = vpop.f32.mrf.mxu1  ;;  %v3183_v40 = vpop.f32.mrf.mxu0  ;;  %v7247_v57 = vor.u32 %v2779_v27, %v2776_v51  ;;  %v9290_v51 = vrot.slane %v7167_v22, 2 }
 0x271   : > { %v2917_v43 = vpop.f32.mrf.mxu3  ;;  %v2204_v33 = vadd.f32 %v2133_v55, %v6659_v11  ;;  %3970 = vmatpush.msra.mxu2 %v3924_v44  ;;  %v3920_v11 = vld [vmem:[%s9228_s5 + $0x8] sm:$0xff] }
 0x272   : > { %v2989_v56 = vadd.f32 %v2917_v43, %v2592_v53  ;;  %3375 = vadd.xlane.f32.xlu2 %v3328_v62  ;;  %v7240_v62 = vld [vmem:[%s6068_s13 + $0x88] sm:$0xff]  ;;  %v3905_v43 = vsub.f32 1.0, %v3904_v6 }
 0x273   : > { %v9236_v31 = vrot.slane %v7240_v62, 2  ;;  %3971 = vmatpush.msra.mxu2 %v3922_v35  ;;  %v2593_v24 = vadd.f32 %v7144_v47, %v2204_v33  ;;  %v9288_v47 = vrot.slane %v7126_v45, 3  ;;  %v9289_v33 = vrot.slane %v7092_v28, 3 }
 0x274   : > { %v3253_v39 = vadd.f32 %v3181_v15, %v2989_v56  ;;  %v2401_v15 = vrot.slane %v2365_v46, 2  ;;  %v9287_v46 = vrot.slane %v7174_v59, 2  ;;  %v3906_v59 = vmul.f32 %v7223_v41, %v3905_v43 }
 0x275   : > { %3972 = vmatpush.msra.mxu2 %v3920_v11  ;;  %v3059_v6 = vsel %vm3026_vm5, %v9289_v33, %v9288_v47 }
 0x276   : > { %v7237_v53 = vadd.f32 %v6984_v34, %v3253_v39  ;;  %v2009_v27 = vsel %vm1976_vm4, %v9287_v46, %v9236_v31  ;;  %v2402_v11 = vsel %vm1976_vm4, %v9290_v51, %v2401_v15 }
 0x277   : > { %v7252_v56 = vpop.f32.mrf.mxu2 }
 0x278   : > { %9286 = vst [vmem:[#allocation5_spill] sm:$0xff] %v7237_v53  ;;  %v3329_v39 = vmul.f32 %v7237_v53, %v7237_v53  ;;  %v2136_v35 = vpop.f32.mrf.mxu1  ;;  %v3186_v14 = vpop.f32.mrf.mxu0  ;;  %v5988_v53 = vld [vmem:[%s6068_s13 + $0x90] sm:$0xff] }
 0x279   : > { %v2919_v55 = vpop.f32.mrf.mxu3 }
 0x27a   : > { %v2990_v44 = vadd.f32 %v2919_v55, %v2593_v24  ;;  %3377 = vadd.xlane.f32.xlu0 %v3329_v39  ;;  %v2781_v24 = vsel %vm2629_vm6, %v7179_v26, %v7247_v57  ;;  %v2205_v55 = vadd.f32 %v2136_v35, %v6680_v12  ;;  %v2783_v26 = vshrl.u32 %v7167_v22, 16 }
 0x27b   : > { %5284 = vmatmul.msk.bf16.gmra.mxu1 %vm600_vm1, %v2009_v27  ;;  %5478 = vmatmul.msk.bf16.gmra.mxu0 %vm600_vm1, %v3059_v6  ;;  %v2786_v12 = vshll.u32 %v7167_v22, 16  ;;  %v3912_v35 = vand.u32 2147483647, %v7181_v16 }
 0x27c   : > { %v3254_v39 = vadd.f32 %v3183_v40, %v2990_v44  ;;  %5396 = vmatmul.msk.bf16.gmra.mxu2 %vm600_vm1, %v2402_v11  ;;  %v3914_v40 = vand.u32 2147483648, %v7181_v16  ;;  %v2594_v15 = vadd.f32 %v7164_v5, %v2205_v55  ;;  %v3907_v44 = vadd.f32 %v7223_v41, %v3906_v59  ;;  %v2616_v59 = vld [vmem:[%s6068_s13 + $0xa0] sm:$0x7] }
 0x27d   : > { %v2785_v51 = vrot.slane %v2783_v26, 2  ;;  %v2788_v11 = vrot.slane %v2786_v12, 3  ;;  %vm3913_vm10 = vcmp.eq.f32.partialorder %v3912_v35, 8.507059e+37  ;;  %v2627_v12 = vunpack.c.l.b16 %v2616_v59 }
 0x27e   : > { %5436 = vmatmul.msk.bf16.gmra.mxu3 %vm600_vm1, %v2781_v24  ;;  %v7277_v28 = vadd.f32 %v6984_v34, %v3254_v39  ;;  %v3915_v24 = vor.u32 1.1754944e-38, %v3914_v40  ;;  %v3911_v16 = vsel %vm7291_vm9, %v7223_v41, %v3907_v44 }
 0x27f   : > { %v7289_v46 = vpop.f32.mrf.mxu2 }
 0x280   : > { %v3330_v43 = vmul.f32 %v7277_v28, %v7277_v28  ;;  %v2138_v6 = vpop.f32.mrf.mxu1  ;;  %v3188_v5 = vpop.f32.mrf.mxu0  ;;  %v3916_v26 = vsel %vm3913_vm10, %v3915_v24, %v3911_v16 }
 0x281   : > { %v2922_v27 = vpop.f32.mrf.mxu3  ;;  %v2206_v55 = vadd.f32 %v2138_v6, %v6703_v3 }
 0x282   : > { %v2991_v33 = vadd.f32 %v2922_v27, %v2594_v15  ;;  %3379 = vadd.xlane.f32.xlu1 %v3330_v43  ;;  %v2010_v15 = vrot.slane %v5988_v53, 2  ;;  %v3060_v43 = vrot.slane %v7167_v22, 3  ;;  %v2789_v27 = vor.u32 %v2788_v11, %v2785_v51 }
 0x283   : > { %v9294_v22 = vrot.slane %v7126_v45, 3  ;;  %v2628_v11 = vpack.c.b16 %v2627_v12, %v2627_v12 }
 0x284   : > { %v3255_v39 = vadd.f32 %v3186_v14, %v2991_v33  ;;  %v2595_v14 = vadd.f32 %v7186_v1, %v2206_v55  ;;  %v9293_v33 = vrot.slane %v7240_v62, 2  ;;  %v3918_v1 = vmul.f32 %v3916_v26, %v7139_v0 }
 0x285   : > { %v3061_v6 = vsel %vm3026_vm5, %v9294_v22, %v3060_v43  ;;  %v2790_v51 = vsel %vm2629_vm6, %v7247_v57, %v2789_v27  ;;  %v2792_v0 = vshrl.u32 %v2628_v11, 16  ;;  %v2795_v62 = vshll.u32 %v2628_v11, 16 }
 0x286   : > { %v7301_v31 = vadd.f32 %v6984_v34, %v3255_v39  ;;  %v2011_v53 = vsel %vm1976_vm4, %v9293_v33, %v2010_v15 }
 0x287   : > { %v7308_v40 = vpop.f32.mrf.mxu2  ;;  %v2794_v12 = vrot.slane %v2792_v0, 2 }
 0x288   : > { %v3331_v3 = vmul.f32 %v7301_v31, %v7301_v31  ;;  %v2141_v35 = vpop.f32.mrf.mxu1  ;;  %v3191_v47 = vpop.f32.mrf.mxu0 }
 0x289   : > { %v2924_v41 = vpop.f32.mrf.mxu3  ;;  %v2207_v39 = vadd.f32 %v2141_v35, %v6711_v29  ;;  %v3062_v35 = vrot.slane %v2628_v11, 3 }
 0x28a   : > { %v2992_v44 = vadd.f32 %v2924_v41, %v2595_v14  ;;  %3381 = vadd.xlane.f32.xlu2 %v3331_v3  ;;  %v2797_v14 = vrot.slane %v2795_v62, 3 }
 0x28b   : > { %5285 = vmatmul.msk.bf16.gmra.mxu1 %vm600_vm1, %v2011_v53  ;;  %5479 = vmatmul.msk.bf16.gmra.mxu0 %vm600_vm1, %v3061_v6  ;;  %v2596_v57 = vadd.f32 %v7225_v58, %v2207_v39  ;;  %v2012_v58 = vrot.slane %v6689_v13, 2  ;;  %v3063_v39 = vsel %vm3026_vm5, %v3060_v43, %v3062_v35 }
 0x28c   : > { %v3256_v24 = vadd.f32 %v3188_v5, %v2992_v44  ;;  %5482 = vmatmul.msk.f32.vlgmr.msrb.gmra.mxu2 %vm3933_vm11, %v3918_v1  ;;  %v2798_v33 = vor.u32 %v2797_v14, %v2794_v12 }
 0x28e   : > { %5437 = vmatmul.msk.bf16.gmra.mxu3 %vm600_vm1, %v2790_v51  ;;  %v7325_v45 = vadd.f32 %v6984_v34, %v3256_v24  ;;  %v2799_v0 = vsel %vm2629_vm6, %v2789_v27, %v2798_v33 }
 0x28f   : > { %v2540_v55 = vpop.f32.mrf.mxu2 }
 0x290   : > { %v3332_v5 = vmul.f32 %v7325_v45, %v7325_v45  ;;  %v2143_v59 = vpop.f32.mrf.mxu1  ;;  %v3193_v26 = vpop.f32.mrf.mxu0 }
 0x291   : > { %v2927_v29 = vpop.f32.mrf.mxu3  ;;  %v2208_v41 = vadd.f32 %v2143_v59, %v6723_v36 }
 0x292   : > { %v2993_v16 = vadd.f32 %v2927_v29, %v2596_v57  ;;  %3383 = vadd.xlane.f32.xlu0 %v3332_v5 }
 0x293   : > { %v2597_v53 = vadd.f32 %v7252_v56, %v2208_v41 }
 0x294   : > { %v3257_v3 = vadd.f32 %v3191_v47, %v2993_v16  ;;  %5483 = vmatmul.msk.f32.vlgmr.msra.gmra.mxu2 %vm3933_vm11, %v3918_v1  ;;  %v2013_v1 = vsel %vm1976_vm4, %v2010_v15, %v2012_v58 }
 0x296   : > { %v7333_v44 = vadd.f32 %v6984_v34, %v3257_v3 }
 0x297   : > { %v2542_v6 = vpop.f32.mrf.mxu2 }
 0x298   : > { %v3333_v22 = vmul.f32 %v7333_v44, %v7333_v44  ;;  %v2146_v47 = vpop.f32.mrf.mxu1  ;;  %v3196_v36 = vpop.f32.mrf.mxu0 }
 0x299   : > { %v2929_v51 = vpop.f32.mrf.mxu3  ;;  %v2209_v11 = vadd.f32 %v2146_v47, %v6745_v20 }
 0x29a   : > { %v2994_v24 = vadd.f32 %v2929_v51, %v2597_v53  ;;  %3385 = vadd.xlane.f32.xlu1 %v3333_v22 }
 0x29b   : > { %5286 = vmatmul.msk.bf16.gmra.mxu1 %vm600_vm1, %v2013_v1  ;;  %5480 = vmatmul.msk.bf16.gmra.mxu0 %vm600_vm1, %v3063_v39  ;;  %v2598_v62 = vadd.f32 %v7289_v46, %v2209_v11 }
 0x29c   : > { %v3258_v13 = vadd.f32 %v3193_v26, %v2994_v24 }
 0x29e   : > { %5438 = vmatmul.msk.bf16.gmra.mxu3 %vm600_vm1, %v2799_v0  ;;  %v7347_v56 = vadd.f32 %v6984_v34, %v3258_v13 }
 0x29f   : > { %v2545_v43 = vpop.f32.mrf.mxu2 }
 0x2a0   : > { %v3334_v15 = vmul.f32 %v7347_v56, %v7347_v56  ;;  %v2148_v5 = vpop.f32.mrf.mxu1  ;;  %v3198_v20 = vpop.f32.mrf.mxu0 }
 0x2a1   : > { %v2932_v57 = vpop.f32.mrf.mxu3  ;;  %v2210_v16 = vadd.f32 %v2148_v5, %v6756_v52 }
 0x2a2   : > { %v2995_v27 = vadd.f32 %v2932_v57, %v2598_v62  ;;  %3387 = vadd.xlane.f32.xlu2 %v3334_v15 }
 0x2a3   : > { %v2599_v26 = vadd.f32 %v7308_v40, %v2210_v16 }
 0x2a4   : > { %v3259_v29 = vadd.f32 %v3196_v36, %v2995_v27 }
 0x2a6   : > { %v7354_v59 = vadd.f32 %v6984_v34, %v3259_v29 }
 0x2a7   : > { %v2547_v12 = vpop.f32.mrf.mxu2 }
 0x2a8   : > { %v3335_v46 = vmul.f32 %v7354_v59, %v7354_v59  ;;  %v2151_v41 = vpop.f32.mrf.mxu1  ;;  %v3201_v58 = vpop.f32.mrf.mxu0 }
 0x2a9   : > { %v2934_v14 = vpop.f32.mrf.mxu3  ;;  %v2211_v33 = vadd.f32 %v2151_v41, %v6771_v10 }
 0x2aa   : > { %v2996_v3 = vadd.f32 %v2934_v14, %v2599_v26  ;;  %3389 = vadd.xlane.f32.xlu0 %v3335_v46 }
 0x2ab   : > { %v2600_v52 = vadd.f32 %v2540_v55, %v2211_v33 }
 0x2ac   : > { %v3260_v35 = vadd.f32 %v3198_v20, %v2996_v3 }
 0x2ae   : > { %v7361_v53 = vadd.f32 %v6984_v34, %v3260_v35 }
 0x2af   : > { %v2550_v40 = vpop.f32.mrf.mxu2 }
 0x2b0   : > { %9295 = vst [vmem:[#allocation6_spill] sm:$0xff] %v7361_v53  ;;  %v3336_v22 = vmul.f32 %v7361_v53, %v7361_v53  ;;  %v2153_v47 = vpop.f32.mrf.mxu1  ;;  %v3203_v36 = vpop.f32.mrf.mxu0 }
 0x2b1   : > { %v2937_v51 = vpop.f32.mrf.mxu3  ;;  %v2212_v39 = vadd.f32 %v2153_v47, %v6782_v30 }
 0x2b2   : > { %v2997_v24 = vadd.f32 %v2937_v51, %v2600_v52  ;;  %3391 = vadd.xlane.f32.xlu1 %v3336_v22 }
 0x2b3   : > { %v2601_v10 = vadd.f32 %v2542_v6, %v2212_v39  ;;  %v3358_v39 = vpop.xlane.xlu1 %3357 }
 0x2b4   : > { %v3261_v1 = vadd.f32 %v3201_v58, %v2997_v24  ;;  %v3354_v58 = vpop.xlane.xlu0 %3353 }
 0x2b6   : > { %v7367_v0 = vadd.f32 %v6984_v34, %v3261_v1 }
 0x2b7   : > { %v2552_v55 = vpop.f32.mrf.mxu2 }
 0x2b8   : > { %9296 = vst [vmem:[#allocation8_spill] sm:$0xff] %v7367_v0  ;;  %v3337_v13 = vmul.f32 %v7367_v0, %v7367_v0  ;;  %v2156_v15 = vpop.f32.mrf.mxu1  ;;  %v3206_v57 = vpop.f32.mrf.mxu0 }
 0x2b9   : > { %v2939_v11 = vpop.f32.mrf.mxu3  ;;  %v2213_v5 = vadd.f32 %v2156_v15, %v6797_v23 }
 0x2ba   : > { %v2998_v62 = vadd.f32 %v2939_v11, %v2601_v10  ;;  %3393 = vadd.xlane.f32.xlu2 %v3337_v13 }
 0x2bb   : > { %v2602_v30 = vadd.f32 %v2545_v43, %v2213_v5 }
 0x2bc   : > { %v3262_v27 = vadd.f32 %v3203_v36, %v2998_v62  ;;  %v3356_v1 = vpop.xlane.xlu0 %3355  ;;  %v7393_v62 = vmax.f32 %v3354_v58, 1e-24  ;;  %v3360_v58 = vpop.xlane.xlu1 %3359 }
 0x2be   : > { %v7373_v20 = vadd.f32 %v6984_v34, %v3262_v27  ;;  %5751 = vrsqrt.f32 %v7393_v62  ;;  %vm3467_vm13 = vweird.f32 %v7393_v62 }
 0x2bf   : > { %v2555_v6 = vpop.f32.mrf.mxu2 }
 0x2c0   : > { %9297 = vst [vmem:[#allocation9_spill] sm:$0xff] %v7373_v20  ;;  %v3338_v29 = vmul.f32 %v7373_v20, %v7373_v20  ;;  %v2158_v46 = vpop.f32.mrf.mxu1  ;;  %v3208_v14 = vpop.f32.mrf.mxu0 }
 0x2c1   : > { %v2942_v16 = vpop.f32.mrf.mxu3  ;;  %v2214_v41 = vadd.f32 %v2158_v46, %v6807_v7 }
 0x2c2   : > { %v2999_v26 = vadd.f32 %v2942_v16, %v2602_v30  ;;  %3395 = vadd.xlane.f32.xlu0 %v3338_v29  ;;  %v7396_v30 = vmax.f32 %v3356_v1, 1e-24 }
 0x2c3   : > { %v2603_v23 = vadd.f32 %v2547_v12, %v2214_v41 }
 0x2c4   : > { %v3263_v3 = vadd.f32 %v3206_v57, %v2999_v26  ;;  %5753 = vrsqrt.f32 %v7396_v30  ;;  %vm3477_vm0 = vweird.f32 %v7396_v30 }
 0x2c6   : > { %v7379_v35 = vadd.f32 %v6984_v34, %v3263_v3 }
 0x2c7   : > { %v7383_v33 = vpop.f32.mrf.mxu2 }
 0x2c8   : > { %9298 = vst [vmem:[#allocation10_spill] sm:$0xff] %v7379_v35  ;;  %v3339_v43 = vmul.f32 %v7379_v35, %v7379_v35  ;;  %v2161_v51 = vpop.f32.mrf.mxu1  ;;  %v3211_v24 = vpop.f32.mrf.mxu0 }
 0x2c9   : > { %v2944_v52 = vpop.f32.mrf.mxu3  ;;  %v2215_v36 = vadd.f32 %v2161_v51, %v6822_v17 }
 0x2ca   : > { %v3000_v22 = vadd.f32 %v2944_v52, %v2603_v23  ;;  %3397 = vadd.xlane.f32.xlu1 %v3339_v43  ;;  %v7407_v23 = vpop.eup %5751 }
 0x2cb   : > { %v2604_v10 = vadd.f32 %v2550_v40, %v2215_v36  ;;  %v3362_v40 = vpop.xlane.xlu2 %3361  ;;  %vm3468_vm12 = vweird.f32 %v7407_v23 }
 0x2cc   : > { %v3264_v47 = vadd.f32 %v3208_v14, %v3000_v22  ;;  %v7410_v22 = vmax.f32 %v3358_v39, 1e-24  ;;  %vm7496_vm15 = vmor %vm3467_vm13, %vm3468_vm12 }
 0x2ce   : > { %v7387_v7 = vadd.f32 %v6984_v34, %v3264_v47  ;;  %v3462_v47 = vmul.f32 %v7407_v23, %v7393_v62  ;;  %5755 = vrsqrt.f32 %v7410_v22  ;;  %vm3487_vm2 = vweird.f32 %v7410_v22 }
 0x2cf   : > { %v7391_v13 = vpop.f32.mrf.mxu2 }
 0x2d0   : > { %9299 = vst [vmem:[#allocation11_spill] sm:$0xff] %v7387_v7  ;;  %v3340_v12 = vmul.f32 %v7387_v7, %v7387_v7  ;;  %v2163_v57 = vpop.f32.mrf.mxu1  ;;  %v3213_v27 = vpop.f32.mrf.mxu0 }
 0x2d1   : > { %v2947_v11 = vpop.f32.mrf.mxu3  ;;  %v2216_v17 = vadd.f32 %v2163_v57, %v6832_v21 }
 0x2d2   : > { %v3001_v15 = vadd.f32 %v2947_v11, %v2604_v10  ;;  %3399 = vadd.xlane.f32.xlu2 %v3340_v12 }
 0x2d3   : > { %v2605_v16 = vadd.f32 %v2552_v55, %v2216_v17  ;;  %v7412_v55 = vmax.f32 %v3360_v58, 1e-24  ;;  %v3364_v36 = vpop.xlane.xlu2 %3363 }
 0x2d4   : > { %v3265_v5 = vadd.f32 %v3211_v24, %v3001_v15  ;;  %v7417_v24 = vpop.eup %5753 }
 0x2d5   : > { %v3472_v12 = vmul.f32 %v7417_v24, %v7396_v30  ;;  %5757 = vrsqrt.f32 %v7412_v55  ;;  %vm3478_vm14 = vweird.f32 %v7417_v24  ;;  %vm3497_vm6 = vweird.f32 %v7412_v55 }
 0x2d6   : > { %v7400_v29 = vadd.f32 %v6984_v34, %v3265_v5  ;;  %v7432_v5 = vmax.f32 %v3364_v36, 1e-24  ;;  %vm7508_vm1 = vmor %vm3477_vm0, %vm3478_vm14 }
 0x2d7   : > { %v7405_v46 = vpop.f32.mrf.mxu2 }
 0x2d8   : > { %9300 = vst [vmem:[#allocation12_spill] sm:$0xff] %v7400_v29  ;;  %v3341_v26 = vmul.f32 %v7400_v29, %v7400_v29  ;;  %v2166_v21 = vpop.f32.mrf.mxu1  ;;  %v3216_v41 = vpop.f32.mrf.mxu0  ;;  %vm3517_vm12 = vweird.f32 %v7432_v5 }
 0x2d9   : > { %v2949_v14 = vpop.f32.mrf.mxu3  ;;  %v2217_v52 = vadd.f32 %v2166_v21, %v6847_v25  ;;  %v7439_v21 = vpop.eup %5755 }
 0x2da   : > { %v3002_v3 = vadd.f32 %v2949_v14, %v2605_v16  ;;  %3401 = vadd.xlane.f32.xlu0 %v3341_v26  ;;  %v3366_v26 = vpop.xlane.xlu0 %3365  ;;  %v3473_v14 = vmul.f32 %v7417_v24, %v3472_v12  ;;  %vm3488_vm3 = vweird.f32 %v7439_v21 }
 0x2db   : > { %v2606_v1 = vadd.f32 %v2555_v6, %v2217_v52  ;;  %v7430_v6 = vmax.f32 %v3362_v40, 1e-24  ;;  %v7445_v40 = vmax.f32 %v3366_v26, 1e-24  ;;  %vm7564_vm5 = vmor %vm3487_vm2, %vm3488_vm3 }
 0x2dc   : > { %v3266_v43 = vadd.f32 %v3213_v27, %v3002_v3  ;;  %v3463_v27 = vmul.f32 %v7407_v23, %v3462_v47  ;;  %v3474_v36 = vmul.f32 0.5, %v3473_v14 }
 0x2dd   : > { %5759 = vrsqrt.f32 %v7430_v6  ;;  %vm3507_vm8 = vweird.f32 %v7430_v6 }
 0x2de   : > { %v7415_v51 = vadd.f32 %v6984_v34, %v3266_v43  ;;  %v3464_v58 = vmul.f32 0.5, %v3463_v27  ;;  %v7442_v43 = vpop.eup %5757  ;;  %5761 = vrsqrt.f32 %v7432_v5 }
 0x2df   : > { %v7424_v25 = vpop.f32.mrf.mxu2  ;;  %5763 = vrsqrt.f32 %v7445_v40  ;;  %vm3498_vm4 = vweird.f32 %v7442_v43 }
 0x2e0   : > { %9301 = vst [vmem:[#allocation13_spill] sm:$0xff] %v7415_v51  ;;  %v3342_v10 = vmul.f32 %v7415_v51, %v7415_v51  ;;  %v2168_v15 = vpop.f32.mrf.mxu1  ;;  %v3218_v57 = vpop.f32.mrf.mxu0  ;;  %v3465_v27 = vsub.f32 1.5, %v3464_v58  ;;  %v7470_v58 = vld [vmem:[%s9225_s2] ss:$0 sm:$0xff]  ;;  %vm7583_vm7 = vmor %vm3497_vm6, %vm3498_vm4 }
 0x2e1   : > { %v2952_v39 = vpop.f32.mrf.mxu3  ;;  %v2218_v16 = vadd.f32 %v2168_v15, %v6857_v2  ;;  %v3370_v15 = vpop.xlane.xlu2 %3369 }
 0x2e2   : > { %v3003_v11 = vadd.f32 %v2952_v39, %v2606_v1  ;;  %3403 = vadd.xlane.f32.xlu1 %v3342_v10  ;;  %v3482_v1 = vmul.f32 %v7439_v21, %v7410_v22  ;;  %v3372_v29 = vpop.xlane.xlu0 %3371 }
 0x2e3   : > { %v2607_v2 = vadd.f32 %v7383_v33, %v2218_v16  ;;  %v7458_v16 = vpop.eup %5759 }
 0x2e4   : > { %v3267_v17 = vadd.f32 %v3216_v41, %v3003_v11  ;;  %v3368_v41 = vpop.xlane.xlu1 %3367  ;;  %v3492_v11 = vmul.f32 %v7442_v43, %v7412_v55  ;;  %v7462_v14 = vpop.eup %5761  ;;  %vm3508_vm9 = vweird.f32 %v7458_v16 }
 0x2e5   : > { %v7460_v26 = vmax.f32 %v3368_v41, 1e-24  ;;  %v3466_v41 = vmul.f32 %v7407_v23, %v3465_v27  ;;  %v7490_v27 = vpop.eup %5763  ;;  %vm3518_vm10 = vweird.f32 %v7462_v14  ;;  %vm7616_vm11 = vmor %vm3507_vm8, %vm3508_vm9 }
 0x2e6   : > { %v7437_v3 = vadd.f32 %v6984_v34, %v3267_v17  ;;  %vm7628_vm13 = vmor %vm3517_vm12, %vm3518_vm10  ;;  %vm3528_vm14 = vweird.f32 %v7490_v27 }
 0x2e7   : > { %v7450_v47 = vpop.f32.mrf.mxu2  ;;  %5765 = vrsqrt.f32 %v7460_v26  ;;  %vm3537_vm3 = vweird.f32 %v7460_v26 }
 0x2e8   : > { %9302 = vst [vmem:[#allocation14_spill] sm:$0xff] %v7437_v3  ;;  %v3343_v52 = vmul.f32 %v7437_v3, %v7437_v3  ;;  %v2171_v39 = vpop.f32.mrf.mxu1  ;;  %v3221_v12 = vpop.f32.mrf.mxu0 }
 0x2e9   : > { %v2954_v34 = vpop.f32.mrf.mxu3  ;;  %v2219_v17 = vadd.f32 %v2171_v39, %v6872_v9  ;;  %v3493_v9 = vmul.f32 %v7442_v43, %v3492_v11  ;;  %v3512_v39 = vmul.f32 %v7462_v14, %v7432_v5  ;;  %v3376_v35 = vpop.xlane.xlu2 %3375 }
 0x2ea   : > { %v3004_v10 = vadd.f32 %v2954_v34, %v2607_v2  ;;  %3405 = vadd.xlane.f32.xlu2 %v3343_v52  ;;  %v3475_v2 = vsub.f32 1.5, %v3474_v36  ;;  %v3483_v52 = vmul.f32 %v7439_v21, %v3482_v1  ;;  %v7465_v34 = vmax.f32 %v3370_v15, 1e-24 }
 0x2eb   : > { %v3502_v36 = vmul.f32 %v7458_v16, %v7430_v6  ;;  %v2608_v1 = vadd.f32 %v7391_v13, %v2219_v17  ;;  %v3494_v51 = vmul.f32 0.5, %v3493_v9  ;;  %v3513_v30 = vmul.f32 %v7462_v14, %v3512_v39 }
 0x2ec   : > { %v3268_v33 = vadd.f32 %v3218_v57, %v3004_v10  ;;  %v3484_v13 = vmul.f32 0.5, %v3483_v52  ;;  %5767 = vrsqrt.f32 %v7465_v34  ;;  %v3374_v7 = vpop.xlane.xlu1 %3373  ;;  %v3522_v9 = vmul.f32 %v7490_v27, %v7445_v40 }
 0x2ed   : > { %v3503_v52 = vmul.f32 %v7458_v16, %v3502_v36  ;;  %v3495_v39 = vsub.f32 1.5, %v3494_v51 }
 0x2ee   : > { %v7473_v57 = vadd.f32 %v7470_v58, %v3268_v33  ;;  %v3476_v33 = vmul.f32 %v7417_v24, %v3475_v2  ;;  %v3470_v2 = vsel %vm7496_vm15, %v7407_v23, %v3466_v41  ;;  %v3485_v3 = vsub.f32 1.5, %v3484_v13  ;;  %v7523_v41 = vpop.eup %5765 }
 0x2ef   : > { %v7488_v11 = vpop.f32.mrf.mxu2  ;;  %v3821_v36 = vmul.f32 %v3470_v2, %v6991_v38  ;;  %v3504_v20 = vmul.f32 0.5, %v3503_v52  ;;  %v3523_v51 = vmul.f32 %v7490_v27, %v3522_v9  ;;  %v3532_v2 = vmul.f32 %v7523_v41, %v7460_v26 }
 0x2f0   : > { %9303 = vst [vmem:[#allocation15_spill] sm:$0xff] %v7473_v57  ;;  %v3344_v10 = vmul.f32 %v7473_v57, %v7473_v57  ;;  %v2173_v62 = vpop.f32.mrf.mxu1  ;;  %v3223_v57 = vpop.f32.mrf.mxu0  ;;  %v3480_v23 = vsel %vm7508_vm1, %v7417_v24, %v3476_v33  ;;  %v7539_v33 = vld [vmem:[%s9226_s3] ss:$0 sm:$0xff]  ;;  %vm3527_vm15 = vweird.f32 %v7445_v40  ;;  %vm3538_vm1 = vweird.f32 %v7523_v41 }
 0x2f1   : > { %v2957_v15 = vpop.f32.mrf.mxu3  ;;  %v3822_v38 = vmul.f32 %v3480_v23, %v7011_v8  ;;  %v3496_v8 = vmul.f32 %v7442_v43, %v3495_v39  ;;  %v3505_v9 = vsub.f32 1.5, %v3504_v20  ;;  %vm7665_vm0 = vmor %vm3527_vm15, %vm3528_vm14 }
 0x2f2   : > { %v3005_v17 = vadd.f32 %v2957_v15, %v2608_v1  ;;  %3407 = vadd.xlane.f32.xlu0 %v3344_v10  ;;  %v2220_v10 = vadd.f32 %v2173_v62, %v6884_v63  ;;  %v7529_v62 = vpop.eup %5767  ;;  %v7531_v15 = vmax.f32 %v3376_v35, 1e-24  ;;  %vm7693_vm4 = vmor %vm3537_vm3, %vm3538_vm1 }
 0x2f3   : > { %v7579_v22 = vmul.f32 %v7539_v33, %v3822_v38  ;;  %v3500_v38 = vsel %vm7583_vm7, %v7442_v43, %v3496_v8  ;;  %vm3548_vm2 = vweird.f32 %v7529_v62 }
 0x2f4   : > { %v3269_v1 = vadd.f32 %v3221_v12, %v3005_v17  ;;  %v7518_v12 = vmax.f32 %v3372_v29, 1e-24  ;;  %v7527_v17 = vmax.f32 %v3374_v7, 1e-24  ;;  %v2609_v29 = vadd.f32 %v7405_v46, %v2220_v10 }
 0x2f5   : > { %v3514_v7 = vmul.f32 0.5, %v3513_v30  ;;  %v3486_v46 = vmul.f32 %v7439_v21, %v3485_v3  ;;  %v3542_v10 = vmul.f32 %v7529_v62, %v7465_v34  ;;  %v3380_v30 = vpop.xlane.xlu1 %3379  ;;  %vm3577_vm10 = vweird.f32 %v7531_v15 }
 0x2f6   : > { %v7521_v63 = vadd.f32 %v7470_v58, %v3269_v1  ;;  %5769 = vrsqrt.f32 %v7518_v12  ;;  %vm3567_vm8 = vweird.f32 %v7527_v17 }
 0x2f7   : > { %v7544_v13 = vpop.f32.mrf.mxu2  ;;  %5771 = vrsqrt.f32 %v7527_v17  ;;  %v3515_v20 = vsub.f32 1.5, %v3514_v7 }
 0x2f8   : > { %9308 = vst [vmem:[#allocation16_spill] sm:$0xff] %v7521_v63  ;;  %v3345_v24 = vmul.f32 %v7521_v63, %v7521_v63  ;;  %v2176_v1 = vpop.f32.mrf.mxu1  ;;  %5773 = vrsqrt.f32 %v7531_v15  ;;  %v3226_v63 = vpop.f32.mrf.mxu0 }
 0x2f9   : > { %v2959_v35 = vpop.f32.mrf.mxu3  ;;  %v2221_v3 = vadd.f32 %v2176_v1, %v6899_v37  ;;  %v3490_v37 = vsel %vm7564_vm5, %v7439_v21, %v3486_v46  ;;  %v3543_v21 = vmul.f32 %v7529_v62, %v3542_v10  ;;  %v3506_v46 = vmul.f32 %v7458_v16, %v3505_v9  ;;  %v3378_v9 = vpop.xlane.xlu0 %3377 }
 0x2fa   : > { %v3006_v52 = vadd.f32 %v2959_v35, %v2609_v29  ;;  %3409 = vadd.xlane.f32.xlu1 %v3345_v24  ;;  %v7558_v29 = vmul.f32 %v7539_v33, %v3821_v36  ;;  %v3524_v24 = vmul.f32 0.5, %v3523_v51  ;;  %v7573_v36 = vmax.f32 %v3380_v30, 1e-24 }
 0x2fb   : > { %v3823_v30 = vmul.f32 %v3490_v37, %v7025_v4  ;;  %v3516_v10 = vmul.f32 %v7462_v14, %v3515_v20  ;;  %v3824_v4 = vmul.f32 %v3500_v38, %v7045_v19  ;;  %v7641_v38 = vmax.f32 %v3378_v9, 1e-24 }
 0x2fc   : > { %v3270_v23 = vadd.f32 %v3223_v57, %v3006_v52  ;;  %v3533_v57 = vmul.f32 %v7523_v41, %v3532_v2  ;;  %v7590_v51 = vpop.eup %5769  ;;  %v2610_v2 = vadd.f32 %v7424_v25, %v2221_v3  ;;  %5775 = vrsqrt.f32 %v7573_v36 }
 0x2fd   : > { %v3382_v7 = vpop.xlane.xlu2 %3381  ;;  %v7599_v1 = vpop.eup %5771  ;;  %v3552_v37 = vmul.f32 %v7590_v51, %v7518_v12  ;;  %v3520_v5 = vsel %vm7628_vm13, %v7462_v14, %v3516_v10  ;;  %v7652_v14 = vmul.f32 %v7539_v33, %v3824_v4  ;;  %vm3547_vm5 = vweird.f32 %v7465_v34 }
 0x2fe   : > { %v7576_v35 = vadd.f32 %v7470_v58, %v3270_v23  ;;  %v3525_v23 = vsub.f32 1.5, %v3524_v24  ;;  %v7606_v43 = vpop.eup %5773  ;;  %v3534_v8 = vmul.f32 0.5, %v3533_v57  ;;  %v7609_v25 = vmax.f32 %v3382_v7, 1e-24  ;;  %vm7709_vm6 = vmor %vm3547_vm5, %vm3548_vm2 }
 0x2ff   : > { %v7604_v39 = vpop.f32.mrf.mxu2  ;;  %v3544_v24 = vmul.f32 0.5, %v3543_v21  ;;  %v3510_v57 = vsel %vm7616_vm11, %v7458_v16, %v3506_v46  ;;  %v3562_v21 = vmul.f32 %v7599_v1, %v7527_v17  ;;  %v3572_v16 = vmul.f32 %v7606_v43, %v7531_v15 }
 0x300   : > { %9311 = vst [vmem:[#allocation17_spill] sm:$0xff] %v7576_v35  ;;  %v3346_v52 = vmul.f32 %v7576_v35, %v7576_v35  ;;  %v2178_v35 = vpop.f32.mrf.mxu1  ;;  %v3526_v46 = vmul.f32 %v7490_v27, %v3525_v23  ;;  %5777 = vrsqrt.f32 %v7609_v25  ;;  %v3553_v10 = vmul.f32 %v7590_v51, %v3552_v37 }
 0x301   : > { %v2962_v55 = vpop.f32.mrf.mxu3  ;;  %v2222_v7 = vadd.f32 %v2178_v35, %v6911_v48  ;;  %v7649_v35 = vmul.f32 %v7539_v33, %v3823_v30  ;;  %v3825_v23 = vmul.f32 %v3510_v57, %v7062_v42  ;;  %v3826_v30 = vmul.f32 %v3520_v5, %v7082_v61 }
 0x302   : > { %v3007_v3 = vadd.f32 %v2962_v55, %v2610_v2  ;;  %3411 = vadd.xlane.f32.xlu2 %v3346_v52  ;;  %v3535_v2 = vsub.f32 1.5, %v3534_v8  ;;  %v3545_v52 = vsub.f32 1.5, %v3544_v24  ;;  %v7655_v55 = vpop.eup %5775  ;;  %v3563_v4 = vmul.f32 %v7599_v1, %v3562_v21  ;;  %v9321_v21 = vld [vmem:[#allocation7_spill] sm:$0xff] }
 0x303   : > { %v2611_v8 = vadd.f32 %v7450_v47, %v2222_v7  ;;  %v3573_v20 = vmul.f32 %v7606_v43, %v3572_v16  ;;  %5779 = vrsqrt.f32 %v7641_v38  ;;  %v3530_v47 = vsel %vm7665_vm0, %v7490_v27, %v3526_v46 }
 0x304   : > { %v3271_v6 = vadd.f32 %v3226_v63, %v3007_v3  ;;  %v3228_v63 = vpop.f32.mrf.mxu0  ;;  %v3536_v61 = vmul.f32 %v7523_v41, %v3535_v2  ;;  %v3546_v57 = vmul.f32 %v7529_v62, %v3545_v52  ;;  %v3554_v19 = vmul.f32 0.5, %v3553_v10 }
 0x305   : > { %v7686_v5 = vmul.f32 %v7539_v33, %v3825_v23  ;;  %v7691_v46 = vmul.f32 %v7539_v33, %v3826_v30  ;;  %v3564_v52 = vmul.f32 0.5, %v3563_v4  ;;  %v3574_v10 = vmul.f32 0.5, %v3573_v20  ;;  %v7701_v23 = vld [vmem:[%s9229_s6] sm:$0x3] }
 0x306   : > { %v7646_v48 = vadd.f32 %v7470_v58, %v3271_v6  ;;  %v3592_v6 = vmul.f32 %v7655_v55, %v7573_v36  ;;  %v7683_v7 = vpop.eup %5777  ;;  %v3827_v26 = vmul.f32 %v3530_v47, %v7096_v49  ;;  %v3550_v49 = vsel %vm7709_vm6, %v7529_v62, %v3546_v57 }
 0x307   : > { %v7672_v42 = vpop.f32.mrf.mxu2  ;;  %v3555_v4 = vsub.f32 1.5, %v3554_v19  ;;  %v3602_v20 = vmul.f32 %v7683_v7, %v7609_v25  ;;  %vm3558_vm7 = vweird.f32 %v7590_v51  ;;  %v3565_v62 = vsub.f32 1.5, %v3564_v52 }
 0x308   : > { %9318 = vst [vmem:[#allocation18_spill] sm:$0xff] %v7646_v48  ;;  %v3347_v9 = vmul.f32 %v7646_v48, %v7646_v48  ;;  %v2181_v37 = vpop.f32.mrf.mxu1  ;;  %v3575_v57 = vsub.f32 1.5, %v3574_v10  ;;  %vm3568_vm9 = vweird.f32 %v7599_v1  ;;  %vm3578_vm11 = vweird.f32 %v7606_v43 }
 0x309   : > { %v2964_v40 = vpop.f32.mrf.mxu3  ;;  %v2223_v16 = vadd.f32 %v2181_v37, %v9321_v21  ;;  %v7718_v3 = vpop.eup %5779  ;;  %v3829_v21 = vmul.f32 %v3550_v49, %v7134_v32  ;;  %vm7765_vm12 = vmor %vm3567_vm8, %vm3568_vm9  ;;  %vm3557_vm13 = vweird.f32 %v7518_v12  ;;  %vm3598_vm0 = vweird.f32 %v7655_v55 }
 0x30a   : > { %v3008_v24 = vadd.f32 %v2964_v40, %v2611_v8  ;;  %3413 = vadd.xlane.f32.xlu0 %v3347_v9  ;;  %v3384_v40 = vpop.xlane.xlu0 %3383  ;;  %v9327_v9 = vld [vmem:[#allocation2_spill] sm:$0xff]  ;;  %vm7784_vm14 = vmor %vm3577_vm10, %vm3578_vm11  ;;  %vm3597_vm1 = vweird.f32 %v7573_v36  ;;  %vm3607_vm3 = vweird.f32 %v7609_v25 }
 0x30b   : > { %v7741_v52 = vmax.f32 %v3384_v40, 1e-24  ;;  %vm7791_vm15 = vmor %vm3557_vm13, %vm3558_vm7  ;;  %vm3588_vm13 = vweird.f32 %v7718_v3 }
 0x30c   : > { %v3272_v27 = vadd.f32 %v3228_v63, %v3008_v24  ;;  %v3540_v63 = vsel %vm7693_vm4, %v7523_v41, %v3536_v61  ;;  %v3593_v41 = vmul.f32 %v7655_v55, %v3592_v6  ;;  %v3231_v47 = vpop.f32.mrf.mxu0  ;;  %v2612_v61 = vadd.f32 %v7488_v11, %v2223_v16  ;;  %vm7824_vm2 = vmor %vm3597_vm1, %vm3598_vm0 }
 0x30d   : > { %v3386_v8 = vpop.xlane.xlu1 %3385  ;;  %v3929_v24 = vperm.slane %v7701_v23, 0  ;;  %v3582_v11 = vmul.f32 %v7718_v3, %v7641_v38  ;;  %vm3608_vm4 = vweird.f32 %v7683_v7 }
 0x30e   : > { %v7713_v34 = vmax.f32 %v3386_v8, 1e-24  ;;  %v7716_v30 = vadd.f32 %v7470_v58, %v3272_v27  ;;  %v3828_v27 = vmul.f32 %v3540_v63, %v7116_v60  ;;  %v7738_v8 = vmul.f32 %v7590_v51, %v3555_v4  ;;  %vm7850_vm5 = vmor %vm3607_vm3, %vm3608_vm4 }
 0x30f   : > { %v3954_v6 = vpop.f32.mrf.mxu2  ;;  %v3594_v60 = vmul.f32 0.5, %v3593_v41  ;;  %v3603_v63 = vmul.f32 %v7683_v7, %v3602_v20  ;;  %v3583_v20 = vmul.f32 %v7718_v3, %v3582_v11  ;;  %vm3617_vm4 = vweird.f32 %v7741_v52 }
 0x310   : > { %9326 = vst [vmem:[#allocation7_spill] sm:$0xff] %v7716_v30  ;;  %5781 = vrsqrt.f32 %v7713_v34  ;;  %v3348_v37 = vmul.f32 %v7716_v30, %v7716_v30  ;;  %v2183_v2 = vpop.f32.mrf.mxu1  ;;  %v3955_v32 = vadd.f32 %v3954_v6, %v3929_v24  ;;  %v3566_v30 = vmul.f32 %v7599_v1, %v3565_v62 }
 0x311   : > { %v2967_v19 = vpop.f32.mrf.mxu3  ;;  %v2224_v49 = vadd.f32 %v2183_v2, %v9327_v9  ;;  %v3604_v62 = vmul.f32 0.5, %v3603_v63  ;;  %5783 = vrsqrt.f32 %v7741_v52  ;;  %v3560_v9 = vsel %vm7791_vm15, %v7590_v51, %v7738_v8 }
 0x312   : > { %v3009_v16 = vadd.f32 %v2967_v19, %v2612_v61  ;;  %3415 = vadd.xlane.f32.xlu1 %v3348_v37  ;;  %v3576_v61 = vmul.f32 %v7606_v43, %v3575_v57  ;;  %v3595_v37 = vsub.f32 1.5, %v3594_v60  ;;  %v3977_v6 = vadd.f32 1.0, %v3955_v32 }
 0x313   : > { %v3570_v17 = vsel %vm7765_vm12, %v7599_v1, %v3566_v30  ;;  %v7800_v32 = vmul.f32 %v7539_v33, %v3829_v21  ;;  %vm3627_vm6 = vweird.f32 %v7713_v34 }
 0x314   : > { %v3273_v10 = vadd.f32 %v3231_v47, %v3009_v16  ;;  %v3930_v47 = vperm.slane %v7701_v23, 1  ;;  %v2613_v23 = vadd.f32 %v7544_v13, %v2224_v49  ;;  %v7774_v16 = vmul.f32 %v7539_v33, %v3827_v26 }
 0x315   : > { %v3388_v4 = vpop.xlane.xlu2 %3387  ;;  %v3580_v1 = vsel %vm7784_vm14, %v7606_v43, %v3576_v61  ;;  %v3584_v26 = vmul.f32 0.5, %v3583_v20  ;;  %v3605_v49 = vsub.f32 1.5, %v3604_v62  ;;  %v7808_v43 = vperm.slane %v3977_v6, 0 }
 0x316   : > { %v7749_v41 = vpop.eup %5781  ;;  %v7752_v40 = vmax.f32 %v3388_v4, 1e-24  ;;  %v7756_v24 = vadd.f32 %v7470_v58, %v3273_v10  ;;  %v3868_v10 = vmul.f32 %v7539_v33, %v3828_v27  ;;  %v3233_v4 = vpop.f32.mrf.mxu0  ;;  %v3831_v27 = vmul.f32 %v3570_v17, %v7171_v50 }
 0x317   : > { %v3622_v57 = vmul.f32 %v7749_v41, %v7713_v34  ;;  %v3974_v63 = vpop.f32.mrf.mxu2  ;;  %v7810_v20 = vpop.eup %5783  ;;  %v3832_v21 = vmul.f32 %v3580_v1, %v7210_v54  ;;  %v3585_v62 = vsub.f32 1.5, %v3584_v26  ;;  %v3606_v50 = vmul.f32 %v7683_v7, %v3605_v49 }
 0x318   : > { %9328 = vst [vmem:[#allocation2_spill] sm:$0xff] %v7756_v24  ;;  %5785 = vrsqrt.f32 %v7752_v40  ;;  %v3349_v11 = vmul.f32 %v7756_v24, %v7756_v24  ;;  %v3975_v30 = vadd.f32 %v3974_v63, %v3930_v47  ;;  %v3979_v17 = vmul.f32 %v7808_v43, %v7558_v29 }
 0x319   : > { %v3623_v13 = vmul.f32 %v7749_v41, %v3622_v57  ;;  %v2969_v60 = vpop.f32.mrf.mxu3  ;;  %v3596_v57 = vmul.f32 %v7655_v55, %v3595_v37  ;;  %v3612_v25 = vmul.f32 %v7810_v20, %v7741_v52  ;;  %v3980_v63 = vmul.f32 %v7808_v43, %v7579_v22 }
 0x31a   : > { %v3010_v15 = vadd.f32 %v2969_v60, %v2613_v23  ;;  %3417 = vadd.xlane.f32.xlu2 %v3349_v11  ;;  %v7817_v11 = vperm.slane %v3975_v30, 0  ;;  %v3871_v1 = vmul.f32 %v7539_v33, %v3831_v27  ;;  %v3981_v29 = vmul.f32 %v7808_v43, %v7649_v35 }
 0x31b   : > { %v3624_v47 = vmul.f32 0.5, %v3623_v13  ;;  %v3600_v36 = vsel %vm7824_vm2, %v7655_v55, %v3596_v57  ;;  %v7848_v55 = vmul.f32 %v7539_v33, %v3832_v21  ;;  %v7860_v30 = vmul.f32 %v7718_v3, %v3585_v62 }
 0x31c   : > { %v3274_v61 = vadd.f32 %v3233_v4, %v3010_v15  ;;  %v7857_v15 = vadd.f32 %v7817_v11, %v3979_v17  ;;  %v3610_v22 = vsel %vm7850_vm5, %v7683_v7, %v3606_v50  ;;  %v7866_v4 = vadd.f32 %v7817_v11, %v3980_v63 }
 0x31d   : > { %v3390_v19 = vpop.xlane.xlu0 %3389  ;;  %v3625_v13 = vsub.f32 1.5, %v3624_v47  ;;  %v3834_v57 = vmul.f32 %v3600_v36, %v7277_v28  ;;  %v3982_v35 = vmul.f32 %v7808_v43, %v7652_v14  ;;  %v3613_v27 = vmul.f32 %v7810_v20, %v3612_v25 }
 0x31e   : > { %v7815_v23 = vpop.eup %5785  ;;  %v7819_v37 = vmax.f32 %v3390_v19, 1e-24  ;;  %v7822_v6 = vadd.f32 %v7470_v58, %v3274_v61  ;;  %v7873_v61 = vadd.f32 %v7817_v11, %v3981_v29  ;;  %vm3628_vm7 = vweird.f32 %v7749_v41  ;;  %v2186_v29 = vpop.f32.mrf.mxu1 }
 0x31f   : > { %v3632_v54 = vmul.f32 %v7815_v23, %v7752_v40  ;;  %v3626_v21 = vmul.f32 %v7749_v41, %v3625_v13  ;;  %v3835_v19 = vmul.f32 %v3610_v22, %v7301_v31  ;;  %v3983_v28 = vmul.f32 %v7808_v43, %v7686_v5  ;;  %vm7892_vm9 = vmor %vm3627_vm6, %vm3628_vm7 }
 0x320   : > { %9335 = vst [vmem:[#allocation19_spill] sm:$0xff] %v7822_v6  ;;  %5787 = vrsqrt.f32 %v7819_v37  ;;  %v3350_v58 = vmul.f32 %v7822_v6, %v7822_v6  ;;  %v7882_v62 = vadd.f32 %v7817_v11, %v3982_v35  ;;  %v5484_v14 = vmul.f32 -1.442695, %v7857_v15 }
 0x321   : > { %v3633_v60 = vmul.f32 %v7815_v23, %v3632_v54  ;;  %vm3637_vm8 = vweird.f32 %v7752_v40  ;;  %v3984_v50 = vmul.f32 %v7808_v43, %v7691_v46  ;;  %v5485_v54 = vmul.f32 -1.442695, %v7866_v4 }
 0x322   : > { %3419 = vadd.xlane.f32.xlu0 %v3350_v58  ;;  %v3985_v5 = vmul.f32 %v7808_v43, %v7774_v16  ;;  %v3986_v36 = vmul.f32 %v7808_v43, %v3868_v10  ;;  %v7900_v58 = vadd.f32 %v7817_v11, %v3983_v28  ;;  %v5486_v17 = vmul.f32 -1.442695, %v7873_v61 }
 0x323   : > { %v3634_v49 = vmul.f32 0.5, %v3633_v60  ;;  %v3630_v46 = vsel %vm7892_vm9, %v7749_v41, %v3626_v21  ;;  %vm3638_vm10 = vweird.f32 %v7815_v23  ;;  %v3987_v13 = vmul.f32 %v7808_v43, %v7800_v32 }
 0x324   : > { %v7911_v16 = vadd.f32 %v7817_v11, %v3984_v50  ;;  %5789 = vpow2.f32 %v5484_v14  ;;  %v5487_v10 = vmul.f32 -1.442695, %v7882_v62  ;;  %v3989_v63 = vmul.f32 %v7808_v43, %v3871_v1  ;;  %vm7921_vm11 = vmor %vm3637_vm8, %vm3638_vm10 }
 0x325   : > { %v3635_v7 = vsub.f32 1.5, %v3634_v49  ;;  %v7916_v26 = vadd.f32 %v7817_v11, %v3985_v5  ;;  %5791 = vpow2.f32 %v5485_v54  ;;  %v3837_v41 = vmul.f32 %v3630_v46, %v7333_v44 }
 0x326   : > { %v5788_v47 = vpop.eup %5787  ;;  %v7926_v32 = vadd.f32 %v7817_v11, %v3986_v36  ;;  %5793 = vpow2.f32 %v5486_v17  ;;  %v5488_v22 = vmul.f32 -1.442695, %v7900_v58  ;;  %v7933_v44 = vadd.f32 %v7817_v11, %v3987_v13  ;;  %v2188_v51 = vpop.f32.mrf.mxu1 }
 0x327   : > { %v3642_v2 = vmul.f32 %v5788_v47, %v7819_v37  ;;  %v3636_v34 = vmul.f32 %v7815_v23, %v3635_v7  ;;  %vm3648_vm12 = vweird.f32 %v5788_v47  ;;  %v3874_v40 = vmul.f32 %v7539_v33, %v3834_v57 }
 0x328   : > { %9344 = vst [vmem:[#allocation20_spill] sm:$0xff] %v7933_v44  ;;  %v7938_v35 = vadd.f32 %v7817_v11, %v3989_v63  ;;  %5795 = vpow2.f32 %v5487_v10  ;;  %v5489_v21 = vmul.f32 -1.442695, %v7911_v16  ;;  %v3614_v7 = vmul.f32 0.5, %v3613_v27 }
 0x329   : > { %v3643_v25 = vmul.f32 %v5788_v47, %v3642_v2  ;;  %v3640_v1 = vsel %vm7921_vm11, %v7815_v23, %v3636_v34  ;;  %vm3618_vm14 = vweird.f32 %v7810_v20  ;;  %vm3647_vm0 = vweird.f32 %v7819_v37 }
 0x32a   : > { %v5490_v23 = vmul.f32 -1.442695, %v7916_v26  ;;  %v5790_v14 = vpop.eup %5789  ;;  %v3838_v2 = vmul.f32 %v3640_v1, %v7347_v56  ;;  %vm3649_vm1 = vmor %vm3647_vm0, %vm3648_vm12  ;;  %v3990_v57 = vmul.f32 %v7808_v43, %v7848_v55  ;;  %5797 = vpow2.f32 %v5488_v22 }
 0x32b   : > { %v3644_v60 = vmul.f32 0.5, %v3643_v25  ;;  %v5491_v50 = vmul.f32 -1.442695, %v7926_v32  ;;  %v5792_v54 = vpop.eup %5791  ;;  %v3875_v27 = vmul.f32 %v7539_v33, %v3835_v19  ;;  %v3877_v31 = vmul.f32 %v7539_v33, %v3837_v41  ;;  %vm7998_vm5 = vmor %vm3617_vm4, %vm3618_vm14 }
 0x32c   : > { %v5492_v37 = vmul.f32 -1.442695, %v7933_v44  ;;  %v5794_v36 = vpop.eup %5793  ;;  %v7953_v56 = vadd.f32 %v7817_v11, %v3990_v57  ;;  %5799 = vpow2.f32 %v5489_v21  ;;  %v5494_v55 = vmul.f32 -1.442695, %v7938_v35 }
 0x32d   : > { %v3645_v49 = vsub.f32 1.5, %v3644_v60  ;;  %v3615_v46 = vsub.f32 1.5, %v3614_v7  ;;  %v3992_v34 = vmul.f32 %v7808_v43, %v3874_v40  ;;  %5801 = vpow2.f32 %v5490_v23 }
 0x32e   : > { %v7957_v25 = vadd.f32 1.0, %v5790_v14  ;;  %v5796_v19 = vpop.eup %5795  ;;  %5803 = vpow2.f32 %v5491_v50  ;;  %v7961_v10 = vadd.f32 1.0, %v5792_v54  ;;  %v3995_v60 = vmul.f32 %v7808_v43, %v3877_v31 }
 0x32f   : > { %v3646_v28 = vmul.f32 %v5788_v47, %v3645_v49  ;;  %5805 = vpow2.f32 %v5492_v37  ;;  %v7965_v63 = vadd.f32 1.0, %v5794_v36  ;;  %v7969_v1 = vadd.f32 %v7817_v11, %v3992_v34 }
 0x330   : > { %v5798_v41 = vpop.eup %5797  ;;  %5807 = vpow2.f32 %v5494_v55  ;;  %v5495_v49 = vmul.f32 -1.442695, %v7953_v56  ;;  %v3616_v40 = vmul.f32 %v7810_v20, %v3615_v46  ;;  %v7976_v7 = vadd.f32 1.0, %v5796_v19  ;;  %v2972_v46 = vpop.f32.mrf.mxu3 }
 0x331   : > { %v3650_v5 = vsel %vm3649_vm1, %v5788_v47, %v3646_v28  ;;  %v3878_v47 = vmul.f32 %v7539_v33, %v3838_v2  ;;  %9345 = vst [vmem:[#allocation21_spill] sm:$0xff] %v7969_v1  ;;  %5809 = vrcp.f32 %v7957_v25  ;;  %vm3587_vm2 = vweird.f32 %v7641_v38 }
 0x332   : > { %v3839_v17 = vmul.f32 %v3650_v5, %v7354_v59  ;;  %v3993_v59 = vmul.f32 %v7808_v43, %v3875_v27  ;;  %v5800_v28 = vpop.eup %5799  ;;  %5811 = vrcp.f32 %v7961_v10  ;;  %vm7987_vm3 = vmor %vm3587_vm2, %vm3588_vm13  ;;  %v2225_v50 = vadd.f32 %v2186_v29, %v6957_v18  ;;  %v3236_v27 = vpop.f32.mrf.mxu0 }
 0x333   : > { %v3996_v23 = vmul.f32 %v7808_v43, %v3878_v47  ;;  %v5802_v2 = vpop.eup %5801  ;;  %v7993_v54 = vadd.f32 1.0, %v5798_v41  ;;  %5813 = vrcp.f32 %v7965_v63  ;;  %v8004_v5 = vadd.f32 %v7817_v11, %v3995_v60 }
 0x334   : > { %v3879_v13 = vmul.f32 %v7539_v33, %v3839_v17  ;;  %v7974_v21 = vadd.f32 %v7817_v11, %v3993_v59  ;;  %v5804_v38 = vpop.eup %5803  ;;  %5815 = vpow2.f32 %v5495_v49  ;;  %v5497_v52 = vmul.f32 -1.442695, %v7969_v1  ;;  %v9355_v59 = vld [vmem:[#allocation5_spill] sm:$0xff] }
 0x335   : > { %9352 = vst [vmem:[#allocation24_spill] sm:$0xff] %v8004_v5  ;;  %v5806_v18 = vpop.eup %5805  ;;  %v3590_v37 = vsel %vm7987_vm3, %v7718_v3, %v7860_v30  ;;  %v3620_v36 = vsel %vm7998_vm5, %v7810_v20, %v3616_v40  ;;  %5817 = vrcp.f32 %v7976_v7  ;;  %v8017_v34 = vadd.f32 %v7817_v11, %v3996_v23 }
 0x336   : > { %v3997_v22 = vmul.f32 %v7808_v43, %v3879_v13  ;;  %9346 = vst [vmem:[#allocation22_spill] sm:$0xff] %v7974_v21  ;;  %v5498_v17 = vmul.f32 -1.442695, %v7974_v21  ;;  %v5808_v55 = vpop.eup %5807  ;;  %v8019_v19 = vadd.f32 1.0, %v5800_v28  ;;  %v9354_v13 = vld [vmem:[#allocation4_spill] sm:$0xff]  ;;  %v2614_v20 = vadd.f32 %v7604_v39, %v2225_v50 }
 0x337   : > { %9353 = vst [vmem:[#allocation25_spill] sm:$0xff] %v8017_v34  ;;  %v8021_v47 = vpop.eup %5809  ;;  %v3830_v3 = vmul.f32 %v3560_v9, %v9354_v13  ;;  %v3833_v60 = vmul.f32 %v3590_v37, %v9355_v59  ;;  %v3836_v41 = vmul.f32 %v3620_v36, %v7325_v45  ;;  %v5500_v29 = vmul.f32 -1.442695, %v8004_v5  ;;  %v9356_v36 = vld [vmem:[#allocation3_spill] sm:$0xff] }
 0x338   : > { %v7982_v14 = vadd.f32 %v7817_v11, %v3997_v22  ;;  %v8031_v30 = vpop.eup %5811  ;;  %v3011_v12 = vadd.f32 %v2972_v46, %v2614_v20  ;;  %v5501_v8 = vmul.f32 -1.442695, %v8017_v34  ;;  %v4207_v39 = vand.u32 2147483648, %v7957_v25 }
 0x339   : > { %v8036_v22 = vpop.eup %5813  ;;  %v8044_v40 = vmul.f32 %v7539_v33, %v3830_v3  ;;  %v4197_v45 = vmul.f32 %v8021_v47, %v7957_v25  ;;  %v4212_v28 = vmul.f32 %v8031_v30, %v7961_v10  ;;  %v8051_v57 = vmul.f32 %v7539_v33, %v3833_v60 }
 0x33a   : > { %9347 = vst [vmem:[#allocation23_spill] sm:$0xff] %v7982_v14  ;;  %v5502_v31 = vmul.f32 -1.442695, %v7982_v14  ;;  %v5816_v49 = vpop.eup %5815  ;;  %v8054_v50 = vmul.f32 %v7539_v33, %v3836_v41  ;;  %v8060_v37 = vadd.f32 %v3236_v27, %v3011_v12  ;;  %v4205_v46 = vand.u32 2147483647, %v7957_v25 }
 0x33b   : > { %v8041_v9 = vpop.eup %5817  ;;  %v4222_v13 = vand.u32 2147483648, %v7961_v10  ;;  %v8067_v33 = vadd.f32 1.0, %v5802_v2  ;;  %v8069_v20 = vor.u32 1.1754944e-38, %v4207_v39  ;;  %v4198_v12 = vsub.f32 1.0, %v4197_v45 }
 0x33c   : > { %5819 = vpow2.f32 %v5502_v31  ;;  %v4227_v31 = vmul.f32 %v8036_v22, %v7965_v63  ;;  %v4242_v59 = vmul.f32 %v8041_v9, %v7976_v7  ;;  %vm4201_vm15 = vweird.f32 %v7957_v25 }
 0x33d   : > { %5821 = vrcp.f32 %v7993_v54  ;;  %v4220_v2 = vand.u32 2147483647, %v7961_v10  ;;  %v8085_v6 = vadd.f32 1.0, %v5808_v55  ;;  %vm4216_vm6 = vweird.f32 %v7961_v10 }
 0x33e   : > { %5823 = vpow2.f32 %v5497_v52  ;;  %v4235_v45 = vand.u32 2147483647, %v7965_v63  ;;  %vm4231_vm7 = vweird.f32 %v7965_v63  ;;  %v4243_v48 = vsub.f32 1.0, %v4242_v59 }
 0x33f   : > { %5825 = vpow2.f32 %v5498_v17  ;;  %v8063_v17 = vadd.f32 %v2188_v51, %v9356_v36  ;;  %v4213_v51 = vsub.f32 1.0, %v4212_v28  ;;  %v8079_v36 = vadd.f32 1.0, %v5806_v18 }
 0x340   : > { %5827 = vrcp.f32 %v8019_v19  ;;  %v4199_v55 = vmul.f32 %v8021_v47, %v4198_v12  ;;  %vm4246_vm8 = vweird.f32 %v7976_v7  ;;  %vm4202_vm9 = vweird.f32 %v8021_v47 }
 0x341   : > { %5829 = vpow2.f32 %v5500_v29  ;;  %v8075_v29 = vadd.f32 1.0, %v5804_v38  ;;  %v8090_v38 = vor.u32 1.1754944e-38, %v4222_v13  ;;  %vm8110_vm10 = vcmp.eq.f32.partialorder %v4205_v46, 8.507059e+37  ;;  %vm8142_vm0 = vmor %vm4201_vm15, %vm4202_vm9 }
 0x342   : > { %v5820_v23 = vpop.eup %5819  ;;  %5831 = vpow2.f32 %v5501_v8  ;;  %v4228_v8 = vsub.f32 1.0, %v4227_v31  ;;  %v4237_v31 = vand.u32 2147483648, %v7965_v63  ;;  %vm8114_vm11 = vcmp.eq.f32.partialorder %v4220_v2, 8.507059e+37 }
 0x343   : > { %v8058_v52 = vpop.eup %5821  ;;  %v8073_v41 = vadd.f32 1.0, %v5820_v23  ;;  %v8087_v23 = vadd.f32 1.0, %v5816_v49  ;;  %v4214_v49 = vmul.f32 %v8031_v30, %v4213_v51  ;;  %v4252_v51 = vand.u32 2147483648, %v7976_v7 }
 0x344   : > { %v5824_v3 = vpop.eup %5823  ;;  %v4257_v39 = vmul.f32 %v8058_v52, %v7993_v54  ;;  %vm4217_vm12 = vweird.f32 %v8031_v30  ;;  %vm8121_vm13 = vcmp.eq.f32.partialorder %v4235_v45, 8.507059e+37  ;;  %v4265_v46 = vand.u32 2147483647, %v7993_v54 }
 0x345   : > { %v5826_v60 = vpop.eup %5825  ;;  %v8093_v28 = vadd.f32 1.0, %v5824_v3  ;;  %5833 = vrcp.f32 %v8073_v41  ;;  %v4229_v3 = vmul.f32 %v8036_v22, %v4228_v8  ;;  %v4200_v2 = vadd.f32 %v8021_v47, %v4199_v55  ;;  %vm8155_vm3 = vmor %vm4216_vm6, %vm4217_vm12 }
 0x346   : > { %v8077_v27 = vpop.eup %5827  ;;  %v8095_v24 = vadd.f32 1.0, %v5826_v60  ;;  %v4250_v60 = vand.u32 2147483647, %v7976_v7  ;;  %v4258_v0 = vsub.f32 1.0, %v4257_v39  ;;  %5835 = vrcp.f32 %v8067_v33 }
 0x347   : > { %v5830_v18 = vpop.eup %5829  ;;  %v4272_v13 = vmul.f32 %v8077_v27, %v8019_v19  ;;  %v4244_v39 = vmul.f32 %v8041_v9, %v4243_v48  ;;  %v4215_v21 = vadd.f32 %v8031_v30, %v4214_v49  ;;  %5837 = vrcp.f32 %v8075_v29 }
 0x348   : > { %v5832_v14 = vpop.eup %5831  ;;  %v8107_v53 = vadd.f32 1.0, %v5830_v18  ;;  %v4267_v18 = vand.u32 2147483648, %v7993_v54  ;;  %v4230_v44 = vadd.f32 %v8036_v22, %v4229_v3  ;;  %vm4232_vm14 = vweird.f32 %v8036_v22 }
 0x349   : > { %v4273_v1 = vsub.f32 1.0, %v4272_v13  ;;  %v4238_v45 = vor.u32 1.1754944e-38, %v4237_v31  ;;  %v4259_v34 = vmul.f32 %v8058_v52, %v4258_v0  ;;  %v8136_v48 = vadd.f32 1.0, %v5832_v14  ;;  %vm8178_vm15 = vmor %vm4231_vm7, %vm4232_vm14 }
 0x34a   : > { %vm8146_vm1 = vcmp.eq.f32.partialorder %v4250_v60, 8.507059e+37  ;;  %v4253_v13 = vor.u32 1.1754944e-38, %v4252_v51  ;;  %vm4261_vm2 = vweird.f32 %v7993_v54  ;;  %v4245_v25 = vadd.f32 %v8041_v9, %v4244_v39 }
 0x34b   : > { %v8134_v5 = vpop.eup %5833  ;;  %vm4247_vm4 = vweird.f32 %v8041_v9  ;;  %vm8161_vm5 = vcmp.eq.f32.partialorder %v4265_v46, 8.507059e+37  ;;  %v4268_v31 = vor.u32 1.1754944e-38, %v4267_v18  ;;  %v4280_v3 = vand.u32 2147483647, %v8019_v19 }
 0x34c   : > { %v8166_v60 = vpop.eup %5835  ;;  %v4204_v10 = vsel %vm8142_vm0, %v8021_v47, %v4200_v2  ;;  %v4219_v51 = vsel %vm8155_vm3, %v8031_v30, %v4215_v21  ;;  %v4274_v46 = vmul.f32 %v8077_v27, %v4273_v1  ;;  %5839 = vrcp.f32 %v8079_v36  ;;  %vm8197_vm7 = vmor %vm4246_vm8, %vm4247_vm4 }
 0x34d   : > { %v4467_v18 = vmul.f32 %v8134_v5, %v8073_v41  ;;  %v4234_v47 = vsel %vm8178_vm15, %v8036_v22, %v4230_v44  ;;  %v4260_v21 = vadd.f32 %v8058_v52, %v4259_v34  ;;  %vm4262_vm6 = vweird.f32 %v8058_v52  ;;  %v8191_v63 = vpop.eup %5837 }
 0x34e   : > { %vm4276_vm9 = vweird.f32 %v8019_v19  ;;  %v4282_v30 = vand.u32 2147483648, %v8019_v19  ;;  %v4287_v44 = vmul.f32 %v8166_v60, %v8067_v33  ;;  %5841 = vrcp.f32 %v8085_v6  ;;  %vm8227_vm8 = vmor %vm4261_vm2, %vm4262_vm6 }
 0x34f   : > { %v8209_v34 = vsel %vm8110_vm10, %v8069_v20, %v4204_v10  ;;  %v8214_v7 = vsel %vm8114_vm11, %v8090_v38, %v4219_v51  ;;  %v4249_v22 = vsel %vm8197_vm7, %v8041_v9, %v4245_v25  ;;  %v4302_v2 = vmul.f32 %v8191_v63, %v8075_v29 }
 0x350   : > { %v8223_v55 = vsel %vm8121_vm13, %v4238_v45, %v4234_v47  ;;  %v4275_v38 = vadd.f32 %v8077_v27, %v4274_v46  ;;  %vm4277_vm10 = vweird.f32 %v8077_v27  ;;  %5843 = vrcp.f32 %v8087_v23 }
 0x351   : > { %v4468_v9 = vsub.f32 1.0, %v4467_v18  ;;  %v4264_v59 = vsel %vm8227_vm8, %v8058_v52, %v4260_v21  ;;  %vm8237_vm11 = vcmp.eq.f32.partialorder %v4280_v3, 8.507059e+37  ;;  %v4297_v54 = vand.u32 2147483648, %v8067_v33  ;;  %vm8250_vm12 = vmor %vm4276_vm9, %vm4277_vm10 }
 0x352   : > { %v8242_v8 = vpop.eup %5839  ;;  %v8246_v45 = vsel %vm8146_vm1, %v4253_v13, %v4249_v22  ;;  %v4283_v0 = vor.u32 1.1754944e-38, %v4282_v30  ;;  %v4288_v25 = vsub.f32 1.0, %v4287_v44  ;;  %v4303_v10 = vsub.f32 1.0, %v4302_v2 }
 0x353   : > { %vm4291_vm13 = vweird.f32 %v8067_v33  ;;  %v4295_v52 = vand.u32 2147483647, %v8067_v33  ;;  %vm4306_vm14 = vweird.f32 %v8075_v29  ;;  %v4312_v3 = vand.u32 2147483648, %v8075_v29 }
 0x354   : > { %v8258_v49 = vpop.eup %5841  ;;  %v8262_v13 = vsel %vm8161_vm5, %v4268_v31, %v4264_v59  ;;  %v4279_v19 = vsel %vm8250_vm12, %v8077_v27, %v4275_v38  ;;  %v4310_v39 = vand.u32 2147483647, %v8075_v29  ;;  %5845 = vrcp.f32 %v8093_v28 }
 0x355   : > { %v8270_v46 = vmul.f32 %v8134_v5, %v4468_v9  ;;  %v4298_v18 = vor.u32 1.1754944e-38, %v4297_v54  ;;  %v4317_v47 = vmul.f32 %v8242_v8, %v8079_v36  ;;  %v4347_v14 = vmul.f32 %v8258_v49, %v8085_v6 }
 0x356   : > { %v5844_v31 = vpop.eup %5843  ;;  %v4289_v21 = vmul.f32 %v8166_v60, %v4288_v25  ;;  %v4304_v1 = vmul.f32 %v8191_v63, %v4303_v10  ;;  %v4325_v27 = vand.u32 2147483647, %v8079_v36  ;;  %v4355_v30 = vand.u32 2147483647, %v8085_v6 }
 0x357   : > { %v8282_v44 = vsel %vm8237_vm11, %v4283_v0, %v4279_v19  ;;  %v4313_v22 = vor.u32 1.1754944e-38, %v4312_v3  ;;  %v4348_v2 = vsub.f32 1.0, %v4347_v14  ;;  %v4362_v20 = vmul.f32 %v5844_v31, %v8087_v23 }
 0x358   : > { %vm4292_vm0 = vweird.f32 %v8166_v60  ;;  %vm8286_vm1 = vcmp.eq.f32.partialorder %v4295_v52, 8.507059e+37  ;;  %vm4307_vm2 = vweird.f32 %v8191_v63  ;;  %vm8291_vm3 = vcmp.eq.f32.partialorder %v4310_v39, 8.507059e+37 }
 0x359   : > { %v4327_v59 = vand.u32 2147483648, %v8079_v36  ;;  %vm4351_vm4 = vweird.f32 %v8085_v6  ;;  %v4318_v12 = vsub.f32 1.0, %v4317_v47  ;;  %v4349_v54 = vmul.f32 %v8258_v49, %v4348_v2  ;;  %vm8312_vm6 = vmor %vm4291_vm13, %vm4292_vm0 }
 0x35a   : > { %v4363_v0 = vsub.f32 1.0, %v4362_v20  ;;  %5847 = vrcp.f32 %v8095_v24  ;;  %v8299_v25 = vpop.eup %5845  ;;  %v4290_v10 = vadd.f32 %v8166_v60, %v4289_v21  ;;  %v4305_v51 = vadd.f32 %v8191_v63, %v4304_v1  ;;  %vm8323_vm9 = vmor %vm4306_vm14, %vm4307_vm2 }
 0x35b   : > { %vm4352_vm5 = vweird.f32 %v8258_v49  ;;  %vm8304_vm15 = vcmp.eq.f32.partialorder %v4355_v30, 8.507059e+37  ;;  %v4350_v19 = vadd.f32 %v8258_v49, %v4349_v54  ;;  %vm4367_vm7 = vweird.f32 %v5844_v31 }
 0x35c   : > { %v4364_v39 = vmul.f32 %v5844_v31, %v4363_v0  ;;  %v4392_v47 = vmul.f32 %v8299_v25, %v8093_v28  ;;  %v4357_v33 = vand.u32 2147483648, %v8085_v6  ;;  %v4370_v21 = vand.u32 2147483647, %v8087_v23  ;;  %vm8334_vm8 = vmor %vm4351_vm4, %vm4352_vm5 }
 0x35d   : > { %v4372_v1 = vand.u32 2147483648, %v8087_v23  ;;  %5849 = vrcp.f32 %v8107_v53  ;;  %v4319_v30 = vmul.f32 %v8242_v8, %v4318_v12  ;;  %vm4366_vm10 = vweird.f32 %v8087_v23 }
 0x35e   : > { %v4365_v29 = vadd.f32 %v5844_v31, %v4364_v39  ;;  %v4393_v20 = vsub.f32 1.0, %v4392_v47  ;;  %v4294_v54 = vsel %vm8312_vm6, %v8166_v60, %v4290_v10  ;;  %v4309_v0 = vsel %vm8323_vm9, %v8191_v63, %v4305_v51  ;;  %vm8349_vm11 = vmor %vm4366_vm10, %vm4367_vm7 }
 0x35f   : > { %v4354_v6 = vsel %vm8334_vm8, %v8258_v49, %v4350_v19  ;;  %5851 = vrcp.f32 %v8136_v48  ;;  %v4445_v63 = vand.u32 2147483647, %v8107_v53  ;;  %v4447_v51 = vand.u32 2147483648, %v8107_v53 }
 0x360   : > { %v8354_v23 = vpop.eup %5847  ;;  %v4369_v60 = vsel %vm8349_vm11, %v5844_v31, %v4365_v29  ;;  %v4394_v10 = vmul.f32 %v8299_v25, %v4393_v20  ;;  %v4358_v49 = vor.u32 1.1754944e-38, %v4357_v33  ;;  %vm4371_vm12 = vcmp.eq.f32.partialorder %v4370_v21, 8.507059e+37 }
 0x361   : > { %v4373_v3 = vor.u32 1.1754944e-38, %v4372_v1  ;;  %v4400_v19 = vand.u32 2147483647, %v8093_v28  ;;  %v4299_v39 = vsel %vm8286_vm1, %v4298_v18, %v4294_v54  ;;  %v4314_v47 = vsel %vm8291_vm3, %v4313_v22, %v4309_v0 }
 0x362   : > { %v8367_v31 = vadd.f32 %v8242_v8, %v4319_v30  ;;  %v4402_v14 = vand.u32 2147483648, %v8093_v28  ;;  %v4359_v29 = vsel %vm8304_vm15, %v4358_v49, %v4354_v6  ;;  %v4407_v21 = vmul.f32 %v8354_v23, %v8095_v24 }
 0x363   : > { %v5850_v2 = vpop.eup %5849  ;;  %v4374_v33 = vsel %vm4371_vm12, %v4373_v3, %v4369_v60  ;;  %vm4441_vm13 = vweird.f32 %v8107_v53  ;;  %v8377_v18 = vadd.f32 %v8299_v25, %v4394_v10  ;;  %vm8380_vm14 = vcmp.eq.f32.partialorder %v4445_v63, 8.507059e+37 }
 0x364   : > { %v4437_v22 = vmul.f32 %v5850_v2, %v8107_v53  ;;  %v4448_v9 = vor.u32 1.1754944e-38, %v4447_v51  ;;  %vm4456_vm0 = vweird.f32 %v8136_v48  ;;  %v4460_v52 = vand.u32 2147483647, %v8136_v48 }
 0x365   : > { %v5852_v1 = vpop.eup %5851  ;;  %v4736_v30 = vmul.f32 %v8209_v34, %v7857_v15  ;;  %v4737_v20 = vmul.f32 %v8214_v7, %v7866_v4  ;;  %v4738_v54 = vmul.f32 %v8223_v55, %v7873_v61  ;;  %v4739_v0 = vmul.f32 %v8246_v45, %v7882_v62 }
 0x366   : > { %v4438_v6 = vsub.f32 1.0, %v4437_v22  ;;  %v4452_v12 = vmul.f32 %v5852_v1, %v8136_v48  ;;  %v4740_v60 = vmul.f32 %v8262_v13, %v7900_v58  ;;  %v4741_v10 = vmul.f32 %v8282_v44, %v7911_v16  ;;  %v3392_v16 = vpop.xlane.xlu1 %3391  ;;  %v2974_v22 = vpop.f32.mrf.mxu3 }
 0x367   : > { %v4408_v63 = vsub.f32 1.0, %v4407_v21  ;;  %v4742_v15 = vmul.f32 %v4299_v39, %v7916_v26  ;;  %v4743_v4 = vmul.f32 %v4314_v47, %v7926_v32  ;;  %v4746_v34 = vmul.f32 %v4359_v29, %v7938_v35 }
 0x368   : > { %vm4322_vm1 = vweird.f32 %v8242_v8  ;;  %v4439_v61 = vmul.f32 %v5850_v2, %v4438_v6  ;;  %vm4442_vm2 = vweird.f32 %v5850_v2  ;;  %v4453_v62 = vsub.f32 1.0, %v4452_v12  ;;  %v9402_v6 = vld [vmem:[#allocation25_spill] sm:$0xff] }
 0x369   : > { %v4747_v58 = vmul.f32 %v4374_v33, %v7953_v56  ;;  %vm4397_vm3 = vweird.f32 %v8299_v25  ;;  %vm8410_vm4 = vcmp.eq.f32.partialorder %v4460_v52, 8.507059e+37  ;;  %v4462_v32 = vand.u32 2147483648, %v8136_v48  ;;  %vm4443_vm9 = vmor %vm4441_vm13, %vm4442_vm2  ;;  %v3394_v48 = vpop.xlane.xlu2 %3393 }
 0x36a   : > { %v5616_v35 = vpack.c.bf16 %v4737_v20, %v4736_v30  ;;  %v5621_v7 = vpack.c.bf16 %v4739_v0, %v4738_v54  ;;  %vm4321_vm5 = vweird.f32 %v8079_v36  ;;  %vm4412_vm15 = vweird.f32 %v8354_v23  ;;  %v5990_v30 = vld [vmem:[%s9225_s2] ss:$0 sm:$0xff]  ;;  %v9401_v54 = vld [vmem:[#allocation24_spill] sm:$0xff] }
 0x36b   : > { %v4440_v55 = vadd.f32 %v5850_v2, %v4439_v61  ;;  %v4454_v45 = vmul.f32 %v5852_v1, %v4453_v62  ;;  %vm4457_vm6 = vweird.f32 %v5852_v1  ;;  %v5626_v56 = vpack.c.bf16 %v4741_v10, %v4740_v60  ;;  %vm8484_vm11 = vmor %vm4321_vm5, %vm4322_vm1 }
 0x36c   : > { %vm4396_vm7 = vweird.f32 %v8093_v28  ;;  %5617 = vst [vmem:[%s8405_s11] sm:$0xff] %v5616_v35   ;;  %v5631_v13 = vpack.c.bf16 %v4743_v4, %v4742_v15  ;;  %v5641_v44 = vpack.c.bf16 %v4747_v58, %v4746_v34  ;;  %v8422_v51 = vmax.f32 %v3392_v16, 1e-24  ;;  %vm4458_vm8 = vmor %vm4456_vm0, %vm4457_vm6  ;;  %v3238_v4 = vpop.f32.mrf.mxu0 }
 0x36d   : > { %v3988_v49 = vmul.f32 %v7808_v43, %v8044_v40  ;;  %v4444_v3 = vsel %vm4443_vm9, %v5850_v2, %v4440_v55  ;;  %v4455_v39 = vadd.f32 %v5852_v1, %v4454_v45  ;;  %5706 = vst [vmem:[%s8405_s11 + $0x8] sm:$0xff] %v5621_v7   ;;  %v3991_v47 = vmul.f32 %v7808_v43, %v8051_v57  ;;  %vm8497_vm12 = vmor %vm4396_vm7, %vm4397_vm3  ;;  %v8605_v7 = vld [vmem:[%s9226_s3] ss:$0 sm:$0xff] }
 0x36e   : > { %v3994_v29 = vmul.f32 %v7808_v43, %v8054_v50  ;;  %v4449_v53 = vsel %vm8380_vm14, %v4448_v9, %v4444_v3  ;;  %v4463_v33 = vor.u32 1.1754944e-38, %v4462_v32  ;;  %5707 = vst [vmem:[%s8405_s11 + $0x10] sm:$0xff] %v5626_v56   ;;  %5853 = vrsqrt.f32 %v8422_v51  ;;  %v3398_v15 = vpop.xlane.xlu1 %3397 }
 0x36f   : > { %v8439_v40 = vadd.f32 %v7817_v11, %v3988_v49  ;;  %v4409_v57 = vmul.f32 %v8354_v23, %v4408_v63  ;;  %v4459_v2 = vsel %vm4458_vm8, %v5852_v1, %v4455_v39  ;;  %5708 = vst [vmem:[%s8405_s11 + $0x18] sm:$0xff] %v5631_v13   ;;  %v8444_v50 = vadd.f32 %v7817_v11, %v3991_v47 }
 0x370   : > { %v8447_v21 = vadd.f32 %v7817_v11, %v3994_v29  ;;  %vm8451_vm10 = vcmp.eq.f32.partialorder %v4325_v27, 8.507059e+37  ;;  %v4464_v9 = vsel %vm8410_vm4, %v4463_v33, %v4459_v2  ;;  %5710 = vst [vmem:[%s8405_s11 + $0x28] sm:$0xff] %v5641_v44   ;;  %v2615_v1 = vadd.f32 %v7672_v42, %v8063_v17  ;;  %v3396_v27 = vpop.xlane.xlu0 %3395 }
 0x371   : > { %v5493_v52 = vmul.f32 -1.442695, %v8439_v40  ;;  %v8465_v20 = vadd.f32 %v5990_v30, %v8060_v37  ;;  %v4752_v0 = vmul.f32 %v4449_v53, %v9401_v54  ;;  %v4753_v12 = vmul.f32 %v4464_v9, %v9402_v6 }
 0x372   : > { %v5496_v60 = vmul.f32 -1.442695, %v8444_v50  ;;  %v5499_v10 = vmul.f32 -1.442695, %v8447_v21  ;;  %v3012_v63 = vadd.f32 %v2974_v22, %v2615_v1  ;;  %v8473_v17 = vmax.f32 %v3394_v48, 1e-24 }
 0x373   : > { %5855 = vpow2.f32 %v5493_v52  ;;  %v3351_v42 = vmul.f32 %v8465_v20, %v8465_v20  ;;  %v4410_v37 = vadd.f32 %v8354_v23, %v4409_v57  ;;  %v5656_v34 = vpack.c.bf16 %v4753_v12, %v4752_v0  ;;  %v9411_v48 = vld [vmem:[#allocation20_spill] sm:$0xff]  ;;  %v9413_v0 = vld [vmem:[#allocation22_spill] sm:$0xff] }
 0x374   : > { %5857 = vpow2.f32 %v5496_v60  ;;  %v8476_v61 = vmax.f32 %v3396_v27, 1e-24  ;;  %v8478_v62 = vpop.eup %5853  ;;  %v4417_v16 = vand.u32 2147483648, %v8095_v24  ;;  %v3276_v26 = vadd.f32 %v3238_v4, %v3012_v63 }
 0x375   : > { %5859 = vpow2.f32 %v5499_v10  ;;  %3421 = vadd.xlane.f32.xlu1 %v3351_v42  ;;  %v8489_v32 = vmax.f32 %v3398_v15, 1e-24  ;;  %v4328_v35 = vor.u32 1.1754944e-38, %v4327_v59  ;;  %vm4411_vm13 = vweird.f32 %v8095_v24  ;;  %5713 = vst [vmem:[%s8405_s11 + $0x40] sm:$0xff] %v5656_v34   ;;  %v9414_v42 = vld [vmem:[#allocation6_spill] sm:$0xff] }
 0x376   : > { %v4415_v55 = vand.u32 2147483647, %v8095_v24  ;;  %v3652_v45 = vmul.f32 %v8478_v62, %v8422_v51  ;;  %v4324_v36 = vsel %vm8484_vm11, %v8242_v8, %v8367_v31  ;;  %vm8512_vm14 = vcmp.eq.f32.partialorder %v4400_v19, 8.507059e+37  ;;  %vm8518_vm0 = vmor %vm4411_vm13, %vm4412_vm15 }
 0x377   : > { %5861 = vrsqrt.f32 %v8473_v17  ;;  %v8523_v24 = vadd.f32 %v5990_v30, %v3276_v26  ;;  %v4399_v8 = vsel %vm8497_vm12, %v8299_v25, %v8377_v18  ;;  %v4414_v19 = vsel %vm8518_vm0, %v8354_v23, %v4410_v37 }
 0x378   : > { %v3653_v31 = vmul.f32 %v8478_v62, %v3652_v45  ;;  %5863 = vrsqrt.f32 %v8476_v61  ;;  %v4403_v44 = vor.u32 1.1754944e-38, %v4402_v14  ;;  %v4418_v49 = vor.u32 1.1754944e-38, %v4417_v16 }
 0x379   : > { %v5856_v13 = vpop.eup %5855  ;;  %v3352_v3 = vmul.f32 %v8523_v24, %v8523_v24  ;;  %5865 = vrsqrt.f32 %v8489_v32  ;;  %v4329_v25 = vsel %vm8451_vm10, %v4328_v35, %v4324_v36  ;;  %vm4416_vm1 = vcmp.eq.f32.partialorder %v4415_v55, 8.507059e+37 }
 0x37a   : > { %v5858_v39 = vpop.eup %5857  ;;  %v3654_v23 = vmul.f32 0.5, %v3653_v31  ;;  %v8541_v18 = vadd.f32 1.0, %v5856_v13  ;;  %v4475_v29 = vand.u32 2147483647, %v8073_v41  ;;  %v4404_v28 = vsel %vm8512_vm14, %v4403_v44, %v4399_v8 }
 0x37b   : > { %v5860_v47 = vpop.eup %5859  ;;  %v4419_v14 = vsel %vm4416_vm1, %v4418_v49, %v4414_v19  ;;  %v8546_v53 = vadd.f32 1.0, %v5858_v39  ;;  %3423 = vadd.xlane.f32.xlu2 %v3352_v3  ;;  %vm3658_vm2 = vweird.f32 %v8478_v62  ;;  %v8556_v22 = vadd.f32 %v8134_v5, %v8270_v46  ;;  %v9412_v46 = vld [vmem:[#allocation21_spill] sm:$0xff] }
 0x37c   : > { %v3655_v33 = vsub.f32 1.5, %v3654_v23  ;;  %v8549_v57 = vadd.f32 1.0, %v5860_v47  ;;  %5867 = vrcp.f32 %v8541_v18  ;;  %v8559_v38 = vmul.f32 %v4329_v25, %v9411_v48 }
 0x37d   : > { %v8552_v2 = vpop.eup %5861  ;;  %v4342_v9 = vand.u32 2147483648, %v8541_v18  ;;  %5869 = vrcp.f32 %v8546_v53  ;;  %vm3657_vm3 = vweird.f32 %v8422_v51  ;;  %v4387_v30 = vand.u32 2147483648, %v8546_v53 }
 0x37e   : > { %v8563_v52 = vpop.eup %5863  ;;  %v3656_v1 = vmul.f32 %v8478_v62, %v3655_v33  ;;  %5871 = vrcp.f32 %v8549_v57  ;;  %v8572_v54 = vmul.f32 %v4404_v28, %v9412_v46  ;;  %v8575_v6 = vmul.f32 %v4419_v14, %v9413_v0  ;;  %vm3659_vm4 = vmor %vm3657_vm3, %vm3658_vm2 }
 0x37f   : > { %v8569_v27 = vpop.eup %5865  ;;  %v4340_v12 = vand.u32 2147483647, %v8541_v18  ;;  %vm3667_vm5 = vweird.f32 %v8473_v17  ;;  %v8582_v60 = vor.u32 1.1754944e-38, %v4342_v9  ;;  %v4385_v10 = vand.u32 2147483647, %v8546_v53 }
 0x380   : > { %v3660_v51 = vsel %vm3659_vm4, %v8478_v62, %v3656_v1  ;;  %v4432_v63 = vand.u32 2147483648, %v8549_v57  ;;  %vm3677_vm15 = vweird.f32 %v8476_v61  ;;  %vm4336_vm6 = vweird.f32 %v8541_v18 }
 0x381   : > { %v3840_v15 = vmul.f32 %v3660_v51, %v9414_v42  ;;  %v8589_v4 = vor.u32 1.1754944e-38, %v4387_v30  ;;  %v4430_v37 = vand.u32 2147483647, %v8549_v57  ;;  %v3662_v34 = vmul.f32 %v8552_v2, %v8473_v17 }
 0x382   : > { %v5868_v62 = vpop.eup %5867  ;;  %vm4381_vm7 = vweird.f32 %v8546_v53  ;;  %v8595_v58 = vor.u32 1.1754944e-38, %v4432_v63  ;;  %vm3668_vm9 = vweird.f32 %v8552_v2  ;;  %v3672_v16 = vmul.f32 %v8563_v52, %v8476_v61 }
 0x383   : > { %v3682_v26 = vmul.f32 %v8569_v27, %v8489_v32  ;;  %v5870_v35 = vpop.eup %5869  ;;  %v3880_v55 = vmul.f32 %v8605_v7, %v3840_v15  ;;  %v4332_v45 = vmul.f32 %v5868_v62, %v8541_v18  ;;  %vm8609_vm8 = vcmp.eq.f32.partialorder %v4340_v12, 8.507059e+37  ;;  %vm8637_vm3 = vmor %vm3667_vm5, %vm3668_vm9  ;;  %v3400_v12 = vpop.xlane.xlu2 %3399 }
 0x384   : > { %vm4426_vm10 = vweird.f32 %v8549_v57  ;;  %v3663_v59 = vmul.f32 %v8552_v2, %v3662_v34  ;;  %vm3678_vm11 = vweird.f32 %v8563_v52  ;;  %v5872_v56 = vpop.eup %5871  ;;  %vm4337_vm12 = vweird.f32 %v5868_v62 }
 0x385   : > { %v4377_v8 = vmul.f32 %v5870_v35, %v8546_v53  ;;  %vm8617_vm13 = vcmp.eq.f32.partialorder %v4385_v10, 8.507059e+37  ;;  %v3673_v31 = vmul.f32 %v8563_v52, %v3672_v16  ;;  %v3683_v13 = vmul.f32 %v8569_v27, %v3682_v26  ;;  %vm8647_vm14 = vmor %vm3677_vm15, %vm3678_vm11 }
 0x386   : > { %v3998_v44 = vmul.f32 %v7808_v43, %v3880_v55  ;;  %v4333_v49 = vsub.f32 1.0, %v4332_v45  ;;  %vm4382_vm0 = vweird.f32 %v5870_v35  ;;  %v4422_v3 = vmul.f32 %v5872_v56, %v8549_v57  ;;  %vm4338_vm9 = vmor %vm4336_vm6, %vm4337_vm12  ;;  %v3402_v57 = vpop.xlane.xlu0 %3401 }
 0x387   : > { %vm8626_vm1 = vcmp.eq.f32.partialorder %v4430_v37, 8.507059e+37  ;;  %v4378_v25 = vsub.f32 1.0, %v4377_v8  ;;  %v3664_v23 = vmul.f32 0.5, %v3663_v59  ;;  %v3674_v47 = vmul.f32 0.5, %v3673_v31  ;;  %vm4383_vm15 = vmor %vm4381_vm7, %vm4382_vm0  ;;  %v9427_v8 = vld [vmem:[#allocation9_spill] sm:$0xff] }
 0x388   : > { %v3684_v28 = vmul.f32 0.5, %v3683_v13  ;;  %v8631_v14 = vadd.f32 %v7817_v11, %v3998_v44  ;;  %v4334_v33 = vmul.f32 %v5868_v62, %v4333_v49  ;;  %v4423_v48 = vsub.f32 1.0, %v4422_v3  ;;  %v9428_v13 = vld [vmem:[#allocation10_spill] sm:$0xff] }
 0x389   : > { %vm4427_vm2 = vweird.f32 %v5872_v56  ;;  %v4379_v9 = vmul.f32 %v5870_v35, %v4378_v25  ;;  %v3665_v1 = vsub.f32 1.5, %v3664_v23  ;;  %v3675_v46 = vsub.f32 1.5, %v3674_v47 }
 0x38a   : > { %v3685_v0 = vsub.f32 1.5, %v3684_v28  ;;  %vm4472_vm4 = vweird.f32 %v8134_v5  ;;  %v5503_v51 = vmul.f32 -1.442695, %v8631_v14  ;;  %v4335_v10 = vadd.f32 %v5868_v62, %v4334_v33  ;;  %vm4428_vm6 = vmor %vm4426_vm10, %vm4427_vm2 }
 0x38b   : > { %v4424_v63 = vmul.f32 %v5872_v56, %v4423_v48  ;;  %vm3688_vm5 = vweird.f32 %v8569_v27  ;;  %v4380_v17 = vadd.f32 %v5870_v35, %v4379_v9  ;;  %v3666_v15 = vmul.f32 %v8552_v2, %v3665_v1  ;;  %v3406_v30 = vpop.xlane.xlu2 %3405 }
 0x38c   : > { %v3676_v37 = vmul.f32 %v8563_v52, %v3675_v46  ;;  %v3686_v34 = vmul.f32 %v8569_v27, %v3685_v0  ;;  %5873 = vpow2.f32 %v5503_v51  ;;  %v4339_v16 = vsel %vm4338_vm9, %v5868_v62, %v4335_v10 }
 0x38d   : > { %v4425_v61 = vadd.f32 %v5872_v56, %v4424_v63  ;;  %v8661_v26 = vmax.f32 %v3400_v12, 1e-24  ;;  %v4344_v18 = vsel %vm8609_vm8, %v8582_v60, %v4339_v16  ;;  %v4384_v55 = vsel %vm4383_vm15, %v5870_v35, %v4380_v17  ;;  %v9425_v35 = vld [vmem:[#allocation8_spill] sm:$0xff] }
 0x38e   : > { %v3670_v62 = vsel %vm8637_vm3, %v8552_v2, %v3666_v15  ;;  %v3680_v53 = vsel %vm8647_vm14, %v8563_v52, %v3676_v37  ;;  %v4389_v45 = vsel %vm8617_vm13, %v8589_v4, %v4384_v55  ;;  %v4745_v60 = vmul.f32 %v4344_v18, %v8439_v40  ;;  %v3404_v40 = vpop.xlane.xlu1 %3403  ;;  %v9431_v37 = vld [vmem:[#allocation23_spill] sm:$0xff]  ;;  %v3408_v55 = vpop.xlane.xlu0 %3407 }
 0x38f   : > { %v4429_v59 = vsel %vm4428_vm6, %v5872_v56, %v4425_v61  ;;  %v3841_v36 = vmul.f32 %v3670_v62, %v9425_v35  ;;  %vm9426_vm7 = vweird.f32 %v8489_v32  ;;  %v4748_v52 = vmul.f32 %v4389_v45, %v8444_v50 }
 0x390   : > { %vm3689_vm8 = vmor %vm9426_vm7, %vm3688_vm5  ;;  %v4434_v2 = vsel %vm8626_vm1, %v8595_v58, %v4429_v59  ;;  %v3842_v4 = vmul.f32 %v3680_v53, %v9427_v8  ;;  %v5636_v31 = vpack.c.bf16 %v4745_v60, %v8559_v38  ;;  %5875 = vrsqrt.f32 %v8661_v26 }
 0x391   : > { %v3690_v56 = vsel %vm3689_vm8, %v8569_v27, %v3686_v34  ;;  %v4751_v19 = vmul.f32 %v4434_v2, %v8447_v21  ;;  %v3881_v32 = vmul.f32 %v8605_v7, %v3841_v36  ;;  %v5646_v49 = vpack.c.bf16 %v8572_v54, %v4748_v52 }
 0x392   : > { %v3843_v44 = vmul.f32 %v3690_v56, %v9428_v13  ;;  %v3882_v58 = vmul.f32 %v8605_v7, %v3842_v4  ;;  %v8697_v50 = vmax.f32 %v3402_v57, 1e-24  ;;  %v5874_v27 = vpop.eup %5873  ;;  %5709 = vst [vmem:[%s8405_s11 + $0x20] sm:$0xff] %v5636_v31   ;;  %v8703_v39 = vmax.f32 %v3404_v40, 1e-24 }
 0x393   : > { %v5651_v21 = vpack.c.bf16 %v4751_v19, %v8575_v6  ;;  %v3999_v3 = vmul.f32 %v7808_v43, %v3881_v32  ;;  %v4477_v25 = vand.u32 2147483648, %v8073_v41  ;;  %v8706_v54 = vadd.f32 1.0, %v5874_v27  ;;  %5711 = vst [vmem:[%s8405_s11 + $0x30] sm:$0xff] %v5646_v49  }
 0x394   : > { %v3883_v38 = vmul.f32 %v8605_v7, %v3843_v44  ;;  %v4000_v23 = vmul.f32 %v7808_v43, %v3882_v58  ;;  %5877 = vrsqrt.f32 %v8697_v50  ;;  %vm4471_vm10 = vweird.f32 %v8073_v41  ;;  %v9434_v58 = vld [vmem:[#allocation11_spill] sm:$0xff] }
 0x395   : > { %5712 = vst [vmem:[%s8405_s11 + $0x38] sm:$0xff] %v5651_v21   ;;  %v8714_v6 = vadd.f32 %v7817_v11, %v3999_v3  ;;  %5879 = vrsqrt.f32 %v8703_v39  ;;  %vm8720_vm11 = vmor %vm4471_vm10, %vm4472_vm4  ;;  %vm4476_vm12 = vcmp.eq.f32.partialorder %v4475_v29, 8.507059e+37  ;;  %v4478_v0 = vor.u32 1.1754944e-38, %v4477_v25 }
 0x396   : > { %v4001_v47 = vmul.f32 %v7808_v43, %v3883_v38  ;;  %5881 = vrcp.f32 %v8706_v54  ;;  %v4474_v33 = vsel %vm8720_vm11, %v8134_v5, %v8556_v22  ;;  %v8731_v9 = vadd.f32 %v7817_v11, %v4000_v23  ;;  %v5876_v46 = vpop.eup %5875 }
 0x397   : > { %v5504_v48 = vmul.f32 -1.442695, %v8714_v6  ;;  %v3692_v5 = vmul.f32 %v5876_v46, %v8661_v26  ;;  %v4479_v10 = vsel %vm4476_vm12, %v4478_v0, %v4474_v33  ;;  %v8743_v63 = vmax.f32 %v3406_v30, 1e-24 }
 0x398   : > { %v8734_v1 = vadd.f32 %v7817_v11, %v4001_v47  ;;  %v5505_v12 = vmul.f32 -1.442695, %v8731_v9  ;;  %v8752_v34 = vmul.f32 %v4479_v10, %v9431_v37  ;;  %v4490_v62 = vand.u32 2147483647, %v8706_v54 }
 0x399   : > { %5883 = vpow2.f32 %v5504_v48  ;;  %v3693_v17 = vmul.f32 %v5876_v46, %v3692_v5  ;;  %v4492_v53 = vand.u32 2147483648, %v8706_v54  ;;  %v8759_v45 = vmax.f32 %v3408_v55, 1e-24 }
 0x39a   : > { %v5506_v51 = vmul.f32 -1.442695, %v8734_v1  ;;  %v8741_v22 = vpop.eup %5877  ;;  %5885 = vpow2.f32 %v5505_v12  ;;  %vm3698_vm13 = vweird.f32 %v5876_v46  ;;  %vm3697_vm0 = vweird.f32 %v8661_v26 }
 0x39b   : > { %v8745_v42 = vpop.eup %5879  ;;  %v3702_v41 = vmul.f32 %v8741_v22, %v8697_v50  ;;  %v3694_v61 = vmul.f32 0.5, %v3693_v17  ;;  %vm4486_vm1 = vweird.f32 %v8706_v54  ;;  %vm8767_vm2 = vcmp.eq.f32.partialorder %v4490_v62, 8.507059e+37  ;;  %vm3699_vm3 = vmor %vm3697_vm0, %vm3698_vm13 }
 0x39c   : > { %v5882_v29 = vpop.eup %5881  ;;  %5887 = vpow2.f32 %v5506_v51  ;;  %v3712_v15 = vmul.f32 %v8745_v42, %v8703_v39  ;;  %v4493_v31 = vor.u32 1.1754944e-38, %v4492_v53  ;;  %vm3708_vm5 = vweird.f32 %v8741_v22 }
 0x39d   : > { %v4482_v16 = vmul.f32 %v5882_v29, %v8706_v54  ;;  %v3703_v18 = vmul.f32 %v8741_v22, %v3702_v41  ;;  %5889 = vrsqrt.f32 %v8743_v63  ;;  %v3695_v35 = vsub.f32 1.5, %v3694_v61 }
 0x39e   : > { %vm4487_vm14 = vweird.f32 %v5882_v29  ;;  %v3713_v2 = vmul.f32 %v8745_v42, %v3712_v15  ;;  %5891 = vrsqrt.f32 %v8759_v45  ;;  %vm3707_vm9 = vweird.f32 %v8697_v50  ;;  %v9439_v15 = vld [vmem:[#allocation12_spill] sm:$0xff] }
 0x39f   : > { %v5884_v59 = vpop.eup %5883  ;;  %v4483_v60 = vsub.f32 1.0, %v4482_v16  ;;  %v3704_v36 = vmul.f32 0.5, %v3703_v18  ;;  %v3696_v4 = vmul.f32 %v5876_v46, %v3695_v35  ;;  %vm4488_vm4 = vmor %vm4486_vm1, %vm4487_vm14  ;;  %vm3717_vm15 = vweird.f32 %v8703_v39 }
 0x3a0   : > { %v8761_v57 = vadd.f32 1.0, %v5884_v59  ;;  %v5886_v52 = vpop.eup %5885  ;;  %v3714_v3 = vmul.f32 0.5, %v3713_v2  ;;  %vm8795_vm7 = vmor %vm3707_vm9, %vm3708_vm5  ;;  %vm3718_vm8 = vweird.f32 %v8745_v42  ;;  %vm3727_vm13 = vweird.f32 %v8743_v63 }
 0x3a1   : > { %v4484_v8 = vmul.f32 %v5882_v29, %v4483_v60  ;;  %v3705_v56 = vsub.f32 1.5, %v3704_v36  ;;  %v8773_v32 = vadd.f32 1.0, %v5886_v52  ;;  %v3700_v44 = vsel %vm3699_vm3, %v5876_v46, %v3696_v4  ;;  %vm3719_vm0 = vmor %vm3717_vm15, %vm3718_vm8 }
 0x3a2   : > { %v5888_v40 = vpop.eup %5887  ;;  %5893 = vrcp.f32 %v8761_v57  ;;  %v3844_v27 = vmul.f32 %v3700_v44, %v9434_v58  ;;  %v4505_v25 = vand.u32 2147483647, %v8761_v57  ;;  %v4507_v54 = vand.u32 2147483648, %v8761_v57 }
 0x3a3   : > { %v4485_v26 = vadd.f32 %v5882_v29, %v4484_v8  ;;  %v8775_v13 = vadd.f32 1.0, %v5888_v40  ;;  %v8777_v49 = vpop.eup %5889  ;;  %v3706_v21 = vmul.f32 %v8741_v22, %v3705_v56  ;;  %5895 = vrcp.f32 %v8773_v32  ;;  %v9442_v56 = vld [vmem:[#allocation13_spill] sm:$0xff] }
 0x3a4   : > { %v8791_v47 = vpop.eup %5891  ;;  %vm4501_vm6 = vweird.f32 %v8761_v57  ;;  %v3722_v48 = vmul.f32 %v8777_v49, %v8743_v63  ;;  %v4520_v50 = vand.u32 2147483647, %v8773_v32  ;;  %v3884_v46 = vmul.f32 %v8605_v7, %v3844_v27 }
 0x3a5   : > { %v4489_v38 = vsel %vm4488_vm4, %v5882_v29, %v4485_v26  ;;  %5897 = vrcp.f32 %v8775_v13  ;;  %v3715_v0 = vsub.f32 1.5, %v3714_v3  ;;  %vm8809_vm10 = vcmp.eq.f32.partialorder %v4505_v25, 8.507059e+37 }
 0x3a6   : > { %v4494_v23 = vsel %vm8767_vm2, %v4493_v31, %v4489_v38  ;;  %v4508_v10 = vor.u32 1.1754944e-38, %v4507_v54  ;;  %v4522_v17 = vand.u32 2147483648, %v8773_v32  ;;  %vm4516_vm11 = vweird.f32 %v8773_v32 }
 0x3a7   : > { %v4755_v28 = vmul.f32 %v4494_v23, %v8631_v14  ;;  %v3710_v14 = vsel %vm8795_vm7, %v8741_v22, %v3706_v21  ;;  %v4535_v41 = vand.u32 2147483647, %v8775_v13  ;;  %v4002_v29 = vmul.f32 %v7808_v43, %v3884_v46 }
 0x3a8   : > { %v5894_v30 = vpop.eup %5893  ;;  %v3845_v22 = vmul.f32 %v3710_v14, %v9439_v15  ;;  %v3716_v37 = vmul.f32 %v8745_v42, %v3715_v0  ;;  %v3723_v61 = vmul.f32 %v8777_v49, %v3722_v48  ;;  %v3732_v18 = vmul.f32 %v8791_v47, %v8759_v45 }
 0x3a9   : > { %v5661_v12 = vpack.c.bf16 %v4755_v28, %v8752_v34  ;;  %v4497_v51 = vmul.f32 %v5894_v30, %v8761_v57  ;;  %v5896_v34 = vpop.eup %5895  ;;  %vm4502_vm12 = vweird.f32 %v5894_v30  ;;  %vm8827_vm14 = vcmp.eq.f32.partialorder %v4520_v50, 8.507059e+37 }
 0x3aa   : > { %v4512_v62 = vmul.f32 %v5896_v34, %v8773_v32  ;;  %v8832_v59 = vadd.f32 %v7817_v11, %v4002_v29  ;;  %v3885_v60 = vmul.f32 %v8605_v7, %v3845_v22  ;;  %vm3728_vm1 = vweird.f32 %v8777_v49  ;;  %vm4503_vm4 = vmor %vm4501_vm6, %vm4502_vm12  ;;  %v3410_v32 = vpop.xlane.xlu1 %3409 }
 0x3ab   : > { %5714 = vst [vmem:[%s8405_s11 + $0x48] sm:$0xff] %v5661_v12   ;;  %v4498_v16 = vsub.f32 1.0, %v4497_v51  ;;  %v8824_v55 = vpop.eup %5897  ;;  %vm4517_vm2 = vweird.f32 %v5896_v34  ;;  %v3720_v2 = vsel %vm3719_vm0, %v8745_v42, %v3716_v37  ;;  %vm3737_vm3 = vweird.f32 %v8759_v45  ;;  %vm3729_vm6 = vmor %vm3727_vm13, %vm3728_vm1 }
 0x3ac   : > { %v4527_v36 = vmul.f32 %v8824_v55, %v8775_v13  ;;  %v4513_v52 = vsub.f32 1.0, %v4512_v62  ;;  %v5507_v8 = vmul.f32 -1.442695, %v8832_v59  ;;  %v4003_v4 = vmul.f32 %v7808_v43, %v3885_v60  ;;  %vm4518_vm9 = vmor %vm4516_vm11, %vm4517_vm2 }
 0x3ad   : > { %v4499_v35 = vmul.f32 %v5894_v30, %v4498_v16  ;;  %v3846_v40 = vmul.f32 %v3720_v2, %v9442_v56  ;;  %v3724_v31 = vmul.f32 0.5, %v3723_v61  ;;  %v3733_v26 = vmul.f32 %v8791_v47, %v3732_v18  ;;  %v3412_v61 = vpop.xlane.xlu2 %3411 }
 0x3ae   : > { %v4528_v19 = vsub.f32 1.0, %v4527_v36  ;;  %v4514_v44 = vmul.f32 %v5896_v34, %v4513_v52  ;;  %vm4531_vm5 = vweird.f32 %v8775_v13  ;;  %5899 = vpow2.f32 %v5507_v8 }
 0x3af   : > { %v4500_v39 = vadd.f32 %v5894_v30, %v4499_v35  ;;  %v8853_v42 = vadd.f32 %v7817_v11, %v4003_v4  ;;  %v3886_v58 = vmul.f32 %v8605_v7, %v3846_v40  ;;  %v3725_v3 = vsub.f32 1.5, %v3724_v31 }
 0x3b0   : > { %v4529_v21 = vmul.f32 %v8824_v55, %v4528_v19  ;;  %v3734_v38 = vmul.f32 0.5, %v3733_v26  ;;  %v4515_v54 = vadd.f32 %v5896_v34, %v4514_v44  ;;  %v4523_v28 = vor.u32 1.1754944e-38, %v4522_v17  ;;  %v9443_v17 = vld [vmem:[#allocation14_spill] sm:$0xff] }
 0x3b1   : > { %v4504_v27 = vsel %vm4503_vm4, %v5894_v30, %v4500_v39  ;;  %v5508_v57 = vmul.f32 -1.442695, %v8853_v42  ;;  %v4004_v23 = vmul.f32 %v7808_v43, %v3886_v58  ;;  %vm4532_vm15 = vweird.f32 %v8824_v55 }
 0x3b2   : > { %v4509_v25 = vsel %vm8809_vm10, %v4508_v10, %v4504_v27  ;;  %v3726_v33 = vmul.f32 %v8777_v49, %v3725_v3  ;;  %v3735_v48 = vsub.f32 1.5, %v3734_v38  ;;  %v4519_v30 = vsel %vm4518_vm9, %v5896_v34, %v4515_v54  ;;  %v9444_v34 = vld [vmem:[#allocation15_spill] sm:$0xff]  ;;  %vm8897_vm10 = vmor %vm4531_vm5, %vm4532_vm15 }
 0x3b3   : > { %5901 = vpow2.f32 %v5508_v57  ;;  %v8867_v50 = vadd.f32 %v7817_v11, %v4004_v23  ;;  %vm3738_vm7 = vweird.f32 %v8791_v47  ;;  %v4756_v46 = vmul.f32 %v4509_v25, %v8714_v6 }
 0x3b4   : > { %v4524_v14 = vsel %vm8827_vm14, %v4523_v28, %v4519_v30  ;;  %v3730_v0 = vsel %vm3729_vm6, %v8777_v49, %v3726_v33  ;;  %v3736_v12 = vmul.f32 %v8791_v47, %v3735_v48  ;;  %v5900_v51 = vpop.eup %5899  ;;  %v4530_v10 = vadd.f32 %v8824_v55, %v4529_v21  ;;  %vm3739_vm8 = vmor %vm3737_vm3, %vm3738_vm7  ;;  %v3416_v21 = vpop.xlane.xlu1 %3415 }
 0x3b5   : > { %v4757_v5 = vmul.f32 %v4524_v14, %v8731_v9  ;;  %v5509_v63 = vmul.f32 -1.442695, %v8867_v50  ;;  %v3847_v29 = vmul.f32 %v3730_v0, %v9443_v17  ;;  %v4537_v6 = vand.u32 2147483648, %v8775_v13 }
 0x3b6   : > { %v8886_v15 = vadd.f32 1.0, %v5900_v51  ;;  %v3740_v49 = vsel %vm3739_vm8, %v8791_v47, %v3736_v12  ;;  %v8889_v22 = vmax.f32 %v3410_v32, 1e-24  ;;  %v3414_v47 = vpop.xlane.xlu0 %3413  ;;  %v4534_v62 = vsel %vm8897_vm10, %v8824_v55, %v4530_v10 }
 0x3b7   : > { %v5666_v37 = vpack.c.bf16 %v4757_v5, %v4756_v46  ;;  %5903 = vpow2.f32 %v5509_v63  ;;  %v3887_v9 = vmul.f32 %v8605_v7, %v3847_v29  ;;  %v3848_v16 = vmul.f32 %v3740_v49, %v9444_v34 }
 0x3b8   : > { %5905 = vrcp.f32 %v8886_v15  ;;  %v4538_v35 = vor.u32 1.1754944e-38, %v4537_v6  ;;  %v8911_v2 = vmax.f32 %v3412_v61, 1e-24  ;;  %vm4536_vm11 = vcmp.eq.f32.partialorder %v4535_v41, 8.507059e+37 }
 0x3b9   : > { %v5902_v18 = vpop.eup %5901  ;;  %5715 = vst [vmem:[%s8405_s11 + $0x50] sm:$0xff] %v5666_v37   ;;  %v4005_v53 = vmul.f32 %v7808_v43, %v3887_v9  ;;  %v3888_v60 = vmul.f32 %v8605_v7, %v3848_v16  ;;  %5907 = vrsqrt.f32 %v8889_v22  ;;  %v8919_v55 = vmax.f32 %v3414_v47, 1e-24 }
 0x3ba   : > { %v8909_v36 = vadd.f32 1.0, %v5902_v18  ;;  %v4539_v4 = vsel %vm4536_vm11, %v4538_v35, %v4534_v62  ;;  %v4550_v40 = vand.u32 2147483647, %v8886_v15  ;;  %v4552_v41 = vand.u32 2147483648, %v8886_v15 }
 0x3bb   : > { %v8916_v52 = vadd.f32 %v7817_v11, %v4005_v53  ;;  %v4006_v8 = vmul.f32 %v7808_v43, %v3888_v60  ;;  %v8935_v44 = vmul.f32 %v4539_v4, %v8734_v1  ;;  %vm4546_vm12 = vweird.f32 %v8886_v15 }
 0x3bc   : > { %5909 = vrcp.f32 %v8909_v36  ;;  %v4565_v3 = vand.u32 2147483647, %v8909_v36  ;;  %v4567_v38 = vand.u32 2147483648, %v8909_v36  ;;  %vm8943_vm13 = vcmp.eq.f32.partialorder %v4550_v40, 8.507059e+37 }
 0x3bd   : > { %v5904_v56 = vpop.eup %5903  ;;  %v5510_v39 = vmul.f32 -1.442695, %v8916_v52  ;;  %v8925_v19 = vadd.f32 %v7817_v11, %v4006_v8  ;;  %5911 = vrsqrt.f32 %v8911_v2  ;;  %v4553_v23 = vor.u32 1.1754944e-38, %v4552_v41  ;;  %v3418_v8 = vpop.xlane.xlu2 %3417 }
 0x3be   : > { %v5906_v13 = vpop.eup %5905  ;;  %v8929_v31 = vadd.f32 1.0, %v5904_v56  ;;  %5913 = vrsqrt.f32 %v8919_v55  ;;  %v8950_v33 = vmax.f32 %v3416_v21, 1e-24  ;;  %vm4561_vm0 = vweird.f32 %v8909_v36 }
 0x3bf   : > { %v8932_v26 = vpop.eup %5907  ;;  %v4542_v58 = vmul.f32 %v5906_v13, %v8886_v15  ;;  %5915 = vpow2.f32 %v5510_v39  ;;  %v5511_v27 = vmul.f32 -1.442695, %v8925_v19  ;;  %vm4547_vm14 = vweird.f32 %v5906_v13 }
 0x3c0   : > { %5917 = vrcp.f32 %v8929_v31  ;;  %v3742_v1 = vmul.f32 %v8932_v26, %v8889_v22  ;;  %v4582_v28 = vand.u32 2147483648, %v8929_v31  ;;  %v4580_v46 = vand.u32 2147483647, %v8929_v31  ;;  %vm4548_vm4 = vmor %vm4546_vm12, %vm4547_vm14 }
 0x3c1   : > { %v4543_v25 = vsub.f32 1.0, %v4542_v58  ;;  %5919 = vpow2.f32 %v5511_v27  ;;  %vm8960_vm1 = vcmp.eq.f32.partialorder %v4565_v3, 8.507059e+37  ;;  %v4568_v51 = vor.u32 1.1754944e-38, %v4567_v38 }
 0x3c2   : > { %v5910_v57 = vpop.eup %5909  ;;  %v3743_v14 = vmul.f32 %v8932_v26, %v3742_v1  ;;  %vm4576_vm2 = vweird.f32 %v8929_v31  ;;  %vm3748_vm3 = vweird.f32 %v8932_v26  ;;  %5921 = vrsqrt.f32 %v8950_v33 }
 0x3c3   : > { %v8952_v48 = vpop.eup %5911  ;;  %v4544_v30 = vmul.f32 %v5906_v13, %v4543_v25  ;;  %v4557_v32 = vmul.f32 %v5910_v57, %v8909_v36  ;;  %v4583_v6 = vor.u32 1.1754944e-38, %v4582_v28  ;;  %vm3747_vm5 = vweird.f32 %v8889_v22  ;;  %v9455_v22 = vld [vmem:[#allocation16_spill] sm:$0xff] }
 0x3c4   : > { %v8957_v0 = vpop.eup %5913  ;;  %v3752_v5 = vmul.f32 %v8952_v48, %v8911_v2  ;;  %v3744_v37 = vmul.f32 0.5, %v3743_v14  ;;  %vm4562_vm9 = vweird.f32 %v5910_v57  ;;  %vm8977_vm15 = vcmp.eq.f32.partialorder %v4580_v46, 8.507059e+37 }
 0x3c5   : > { %v5916_v10 = vpop.eup %5915  ;;  %v4545_v63 = vadd.f32 %v5906_v13, %v4544_v30  ;;  %v4558_v17 = vsub.f32 1.0, %v4557_v32  ;;  %vm3757_vm6 = vweird.f32 %v8911_v2  ;;  %vm3758_vm7 = vweird.f32 %v8952_v48  ;;  %vm4563_vm8 = vmor %vm4561_vm0, %vm4562_vm9 }
 0x3c6   : > { %v5918_v29 = vpop.eup %5917  ;;  %v8972_v49 = vadd.f32 1.0, %v5916_v10  ;;  %v3753_v9 = vmul.f32 %v8952_v48, %v3752_v5  ;;  %v3762_v18 = vmul.f32 %v8957_v0, %v8919_v55  ;;  %v3745_v56 = vsub.f32 1.5, %v3744_v37  ;;  %vm3749_vm0 = vmor %vm3747_vm5, %vm3748_vm3 }
 0x3c7   : > { %v5920_v34 = vpop.eup %5919  ;;  %v4549_v16 = vsel %vm4548_vm4, %v5906_v13, %v4545_v63  ;;  %v4559_v61 = vmul.f32 %v5910_v57, %v4558_v17  ;;  %v4572_v45 = vmul.f32 %v5918_v29, %v8929_v31  ;;  %vm3768_vm10 = vweird.f32 %v8957_v0  ;;  %vm3759_vm3 = vmor %vm3757_vm6, %vm3758_vm7 }
 0x3c8   : > { %v4554_v15 = vsel %vm8943_vm13, %v4553_v23, %v4549_v16  ;;  %5923 = vrcp.f32 %v8972_v49  ;;  %v4597_v35 = vand.u32 2147483648, %v8972_v49  ;;  %v8992_v4 = vadd.f32 1.0, %v5920_v34  ;;  %v8995_v39 = vpop.eup %5921  ;;  %v9456_v34 = vld [vmem:[#allocation17_spill] sm:$0xff] }
 0x3c9   : > { %v4759_v62 = vmul.f32 %v4554_v15, %v8832_v59  ;;  %v4560_v53 = vadd.f32 %v5910_v57, %v4559_v61  ;;  %v4573_v60 = vsub.f32 1.0, %v4572_v45  ;;  %v3754_v40 = vmul.f32 0.5, %v3753_v9 }
 0x3ca   : > { %vm4577_vm11 = vweird.f32 %v5918_v29  ;;  %v4595_v36 = vand.u32 2147483647, %v8972_v49  ;;  %5925 = vrcp.f32 %v8992_v4  ;;  %vm3767_vm12 = vweird.f32 %v8919_v55 }
 0x3cb   : > { %v5671_v13 = vpack.c.bf16 %v4759_v62, %v8935_v44  ;;  %v4564_v59 = vsel %vm4563_vm8, %v5910_v57, %v4560_v53  ;;  %v4574_v41 = vmul.f32 %v5918_v29, %v4573_v60  ;;  %v9003_v27 = vmax.f32 %v3418_v8, 1e-24  ;;  %vm4578_vm14 = vmor %vm4576_vm2, %vm4577_vm11 }
 0x3cc   : > { %v4569_v58 = vsel %vm8960_vm1, %v4568_v51, %v4564_v59  ;;  %vm4591_vm13 = vweird.f32 %v8972_v49  ;;  %v4598_v3 = vor.u32 1.1754944e-38, %v4597_v35  ;;  %v3746_v44 = vmul.f32 %v8932_v26, %v3745_v56  ;;  %vm3769_vm6 = vmor %vm3767_vm12, %vm3768_vm10  ;;  %v9457_v56 = vld [vmem:[#allocation18_spill] sm:$0xff] }
 0x3cd   : > { %5716 = vst [vmem:[%s8405_s11 + $0x58] sm:$0xff] %v5671_v13   ;;  %v4575_v21 = vadd.f32 %v5918_v29, %v4574_v41  ;;  %v4610_v25 = vand.u32 2147483647, %v8992_v4  ;;  %v3755_v54 = vsub.f32 1.5, %v3754_v40  ;;  %v3763_v1 = vmul.f32 %v8957_v0, %v3762_v18 }
 0x3ce   : > { %v5924_v38 = vpop.eup %5923  ;;  %v3772_v57 = vmul.f32 %v8995_v39, %v8950_v33  ;;  %v4760_v23 = vmul.f32 %v4569_v58, %v8853_v42  ;;  %v4612_v32 = vand.u32 2147483648, %v8992_v4  ;;  %vm9023_vm1 = vcmp.eq.f32.partialorder %v4595_v36, 8.507059e+37 }
 0x3cf   : > { %v4579_v28 = vsel %vm4578_vm14, %v5918_v29, %v4575_v21  ;;  %v4587_v30 = vmul.f32 %v5924_v38, %v8972_v49  ;;  %v3750_v14 = vsel %vm3749_vm0, %v8932_v26, %v3746_v44  ;;  %v3756_v42 = vmul.f32 %v8952_v48, %v3755_v54 }
 0x3d0   : > { %v4584_v31 = vsel %vm8977_vm15, %v4583_v6, %v4579_v28  ;;  %v3764_v12 = vmul.f32 0.5, %v3763_v1  ;;  %vm3777_vm2 = vweird.f32 %v8950_v33  ;;  %vm4606_vm4 = vweird.f32 %v8992_v4  ;;  %v5926_v63 = vpop.eup %5925 }
 0x3d1   : > { %v4761_v51 = vmul.f32 %v4584_v31, %v8867_v50  ;;  %v4588_v5 = vsub.f32 1.0, %v4587_v30  ;;  %v3849_v10 = vmul.f32 %v3750_v14, %v9455_v22  ;;  %v3773_v26 = vmul.f32 %v8995_v39, %v3772_v57  ;;  %v3420_v50 = vpop.xlane.xlu0 %3419  ;;  %v9460_v57 = vld [vmem:[#allocation7_spill] sm:$0xff] }
 0x3d2   : > { %vm4592_vm5 = vweird.f32 %v5924_v38  ;;  %v3760_v17 = vsel %vm3759_vm3, %v8952_v48, %v3756_v42  ;;  %v3765_v29 = vsub.f32 1.5, %v3764_v12  ;;  %5927 = vrsqrt.f32 %v9003_v27 }
 0x3d3   : > { %v5676_v6 = vpack.c.bf16 %v4761_v51, %v4760_v23  ;;  %v4589_v37 = vmul.f32 %v5924_v38, %v4588_v5  ;;  %v4602_v9 = vmul.f32 %v5926_v63, %v8992_v4  ;;  %vm3778_vm9 = vweird.f32 %v8995_v39  ;;  %vm4593_vm7 = vmor %vm4591_vm13, %vm4592_vm5 }
 0x3d4   : > { %v3889_v2 = vmul.f32 %v8605_v7, %v3849_v10  ;;  %v3850_v16 = vmul.f32 %v3760_v17, %v9456_v34  ;;  %v3766_v61 = vmul.f32 %v8957_v0, %v3765_v29  ;;  %v3774_v45 = vmul.f32 0.5, %v3773_v26  ;;  %vm3779_vm10 = vmor %vm3777_vm2, %vm3778_vm9 }
 0x3d5   : > { %5717 = vst [vmem:[%s8405_s11 + $0x60] sm:$0xff] %v5676_v6   ;;  %v4590_v47 = vadd.f32 %v5924_v38, %v4589_v37  ;;  %v4603_v48 = vsub.f32 1.0, %v4602_v9  ;;  %vm4607_vm15 = vweird.f32 %v5926_v63  ;;  %v9050_v15 = vmax.f32 %v3420_v50, 1e-24  ;;  %v9461_v37 = vld [vmem:[#allocation2_spill] sm:$0xff] }
 0x3d6   : > { %v4007_v18 = vmul.f32 %v7808_v43, %v3889_v2  ;;  %v3890_v62 = vmul.f32 %v8605_v7, %v3850_v16  ;;  %v3770_v53 = vsel %vm3769_vm6, %v8957_v0, %v3766_v61  ;;  %v3775_v60 = vsub.f32 1.5, %v3774_v45  ;;  %vm4608_vm11 = vmor %vm4606_vm4, %vm4607_vm15 }
 0x3d7   : > { %v4594_v35 = vsel %vm4593_vm7, %v5924_v38, %v4590_v47  ;;  %v4604_v8 = vmul.f32 %v5926_v63, %v4603_v48  ;;  %v3851_v40 = vmul.f32 %v3770_v53, %v9457_v56  ;;  %5929 = vrsqrt.f32 %v9050_v15 }
 0x3d8   : > { %v5928_v55 = vpop.eup %5927  ;;  %vm9060_vm8 = vcmp.eq.f32.partialorder %v4610_v25, 8.507059e+37  ;;  %v9065_v49 = vadd.f32 %v7817_v11, %v4007_v18  ;;  %v4008_v59 = vmul.f32 %v7808_v43, %v3890_v62  ;;  %v3776_v41 = vmul.f32 %v8995_v39, %v3775_v60  ;;  %v9462_v62 = vld [vmem:[#allocation19_spill] sm:$0xff] }
 0x3d9   : > { %v4599_v0 = vsel %vm9023_vm1, %v4598_v3, %v4594_v35  ;;  %v4605_v58 = vadd.f32 %v5926_v63, %v4604_v8  ;;  %v3891_v36 = vmul.f32 %v8605_v7, %v3851_v40  ;;  %v3782_v21 = vmul.f32 %v5928_v55, %v9003_v27 }
 0x3da   : > { %v4613_v44 = vor.u32 1.1754944e-38, %v4612_v32  ;;  %v5512_v38 = vmul.f32 -1.442695, %v9065_v49  ;;  %v9082_v25 = vadd.f32 %v7817_v11, %v4008_v59  ;;  %v3780_v3 = vsel %vm3779_vm10, %v8995_v39, %v3776_v41 }
 0x3db   : > { %v4609_v54 = vsel %vm4608_vm11, %v5926_v63, %v4605_v58  ;;  %v4009_v1 = vmul.f32 %v7808_v43, %v3891_v36  ;;  %v3852_v33 = vmul.f32 %v3780_v3, %v9460_v57  ;;  %v3783_v23 = vmul.f32 %v5928_v55, %v3782_v21 }
 0x3dc   : > { %v4762_v28 = vmul.f32 %v4599_v0, %v8916_v52  ;;  %v4614_v4 = vsel %vm9060_vm8, %v4613_v44, %v4609_v54  ;;  %5931 = vpow2.f32 %v5512_v38  ;;  %v5513_v30 = vmul.f32 -1.442695, %v9082_v25 }
 0x3dd   : > { %v5930_v32 = vpop.eup %5929  ;;  %v4763_v31 = vmul.f32 %v4614_v4, %v8925_v19  ;;  %v9093_v39 = vadd.f32 %v7817_v11, %v4009_v1  ;;  %v3892_v46 = vmul.f32 %v8605_v7, %v3852_v33  ;;  %v3784_v14 = vmul.f32 0.5, %v3783_v23 }
 0x3de   : > { %5933 = vpow2.f32 %v5513_v30  ;;  %vm3788_vm12 = vweird.f32 %v5928_v55  ;;  %v3792_v52 = vmul.f32 %v5930_v32, %v9050_v15  ;;  %vm3787_vm13 = vweird.f32 %v9003_v27 }
 0x3df   : > { %v5681_v42 = vpack.c.bf16 %v4763_v31, %v4762_v28  ;;  %v5514_v12 = vmul.f32 -1.442695, %v9093_v39  ;;  %v4010_v51 = vmul.f32 %v7808_v43, %v3892_v46  ;;  %v3785_v5 = vsub.f32 1.5, %v3784_v14  ;;  %vm3789_vm14 = vmor %vm3787_vm13, %vm3788_vm12 }
 0x3e0   : > { %v3793_v22 = vmul.f32 %v5930_v32, %v3792_v52  ;;  %vm3798_vm0 = vweird.f32 %v5930_v32  ;;  %vm3797_vm1 = vweird.f32 %v9050_v15 }
 0x3e1   : > { %5718 = vst [vmem:[%s8405_s11 + $0x68] sm:$0xff] %v5681_v42   ;;  %5935 = vpow2.f32 %v5514_v12  ;;  %v9101_v19 = vadd.f32 %v7817_v11, %v4010_v51  ;;  %v3786_v10 = vmul.f32 %v5928_v55, %v3785_v5  ;;  %vm3799_vm2 = vmor %vm3797_vm1, %vm3798_vm0 }
 0x3e2   : > { %v5932_v26 = vpop.eup %5931  ;;  %v3794_v63 = vmul.f32 0.5, %v3793_v22 }
 0x3e3   : > { %v4188_v17 = vadd.f32 1.0, %v5932_v26  ;;  %v5515_v29 = vmul.f32 -1.442695, %v9101_v19  ;;  %v3790_v50 = vsel %vm3789_vm14, %v5928_v55, %v3786_v10 }
 0x3e4   : > { %v5934_v6 = vpop.eup %5933  ;;  %v3853_v9 = vmul.f32 %v3790_v50, %v9461_v37  ;;  %v3795_v2 = vsub.f32 1.5, %v3794_v63 }
 0x3e5   : > { %5937 = vrcp.f32 %v4188_v17  ;;  %v9106_v34 = vadd.f32 1.0, %v5934_v6  ;;  %v4625_v8 = vand.u32 2147483647, %v4188_v17  ;;  %v4627_v13 = vand.u32 2147483648, %v4188_v17 }
 0x3e6   : > { %5939 = vpow2.f32 %v5515_v29  ;;  %v3893_v16 = vmul.f32 %v8605_v7, %v3853_v9  ;;  %v3796_v61 = vmul.f32 %v5930_v32, %v3795_v2  ;;  %vm4621_vm4 = vweird.f32 %v4188_v17 }
 0x3e7   : > { %v5936_v27 = vpop.eup %5935  ;;  %5941 = vrcp.f32 %v9106_v34  ;;  %v4640_v58 = vand.u32 2147483647, %v9106_v34  ;;  %vm9128_vm3 = vcmp.eq.f32.partialorder %v4625_v8, 8.507059e+37  ;;  %v4642_v54 = vand.u32 2147483648, %v9106_v34 }
 0x3e8   : > { %v9111_v45 = vadd.f32 1.0, %v5936_v27  ;;  %v4011_v47 = vmul.f32 %v7808_v43, %v3893_v16  ;;  %v3800_v48 = vsel %vm3799_vm2, %v5930_v32, %v3796_v61  ;;  %v3422_v18 = vpop.xlane.xlu1 %3421  ;;  %v4628_v57 = vor.u32 1.1754944e-38, %v4627_v13 }
 0x3e9   : > { %v3854_v53 = vmul.f32 %v3800_v48, %v9462_v62  ;;  %v9115_v60 = vmax.f32 %v3422_v18, 1e-24  ;;  %vm4636_vm9 = vweird.f32 %v9106_v34  ;;  %vm9141_vm15 = vcmp.eq.f32.partialorder %v4640_v58, 8.507059e+37 }
 0x3ea   : > { %5943 = vrcp.f32 %v9111_v45  ;;  %v9119_v15 = vadd.f32 %v7817_v11, %v4011_v47  ;;  %v4643_v12 = vor.u32 1.1754944e-38, %v4642_v54  ;;  %vm4651_vm8 = vweird.f32 %v9111_v45 }
 0x3eb   : > { %v5938_v35 = vpop.eup %5937  ;;  %v3894_v55 = vmul.f32 %v8605_v7, %v3854_v53  ;;  %5945 = vrsqrt.f32 %v9115_v60  ;;  %v4655_v26 = vand.u32 2147483647, %v9111_v45  ;;  %v4657_v37 = vand.u32 2147483648, %v9111_v45 }
 0x3ec   : > { %v5940_v56 = vpop.eup %5939  ;;  %v4617_v40 = vmul.f32 %v5938_v35, %v4188_v17  ;;  %v5516_v36 = vmul.f32 -1.442695, %v9119_v15  ;;  %vm4622_vm5 = vweird.f32 %v5938_v35 }
 0x3ed   : > { %v9122_v59 = vadd.f32 1.0, %v5940_v56  ;;  %v5942_v41 = vpop.eup %5941  ;;  %v4012_v21 = vmul.f32 %v7808_v43, %v3894_v55  ;;  %vm9149_vm6 = vmor %vm4621_vm4, %vm4622_vm5  ;;  %vm4656_vm14 = vcmp.eq.f32.partialorder %v4655_v26, 8.507059e+37 }
 0x3ee   : > { %v4618_v0 = vsub.f32 1.0, %v4617_v40  ;;  %v4632_v7 = vmul.f32 %v5942_v41, %v9106_v34  ;;  %v3424_v38 = vpop.xlane.xlu2 %3423  ;;  %vm4637_vm7 = vweird.f32 %v5942_v41 }
 0x3ef   : > { %5947 = vrcp.f32 %v9122_v59  ;;  %v9136_v23 = vadd.f32 %v7817_v11, %v4012_v21  ;;  %v9138_v28 = vmax.f32 %v3424_v38, 1e-24  ;;  %vm4638_vm10 = vmor %vm4636_vm9, %vm4637_vm7  ;;  %v4672_v47 = vand.u32 2147483648, %v9122_v59 }
 0x3f0   : > { %v4619_v3 = vmul.f32 %v5938_v35, %v4618_v0  ;;  %5949 = vpow2.f32 %v5516_v36  ;;  %v5944_v1 = vpop.eup %5943  ;;  %v4633_v33 = vsub.f32 1.0, %v4632_v7  ;;  %v4670_v53 = vand.u32 2147483647, %v9122_v59 }
 0x3f1   : > { %v4647_v32 = vmul.f32 %v5944_v1, %v9111_v45  ;;  %v9146_v31 = vpop.eup %5945  ;;  %v5517_v52 = vmul.f32 -1.442695, %v9136_v23  ;;  %5951 = vrsqrt.f32 %v9138_v28  ;;  %vm4652_vm11 = vweird.f32 %v5944_v1 }
 0x3f2   : > { %v4620_v4 = vadd.f32 %v5938_v35, %v4619_v3  ;;  %v4634_v14 = vmul.f32 %v5942_v41, %v4633_v33  ;;  %v3802_v5 = vmul.f32 %v9146_v31, %v9115_v60  ;;  %vm9177_vm12 = vmor %vm4651_vm8, %vm4652_vm11  ;;  %vm4666_vm0 = vweird.f32 %v9122_v59 }
 0x3f3   : > { %v4648_v51 = vsub.f32 1.0, %v4647_v32  ;;  %5953 = vpow2.f32 %v5517_v52  ;;  %v4673_v13 = vor.u32 1.1754944e-38, %v4672_v47  ;;  %vm3808_vm2 = vweird.f32 %v9146_v31 }
 0x3f4   : > { %v4624_v42 = vsel %vm9149_vm6, %v5938_v35, %v4620_v4  ;;  %v4635_v10 = vadd.f32 %v5942_v41, %v4634_v14  ;;  %v3803_v2 = vmul.f32 %v9146_v31, %v3802_v5  ;;  %vm4671_vm4 = vcmp.eq.f32.partialorder %v4670_v53, 8.507059e+37 }
 0x3f5   : > { %v5948_v22 = vpop.eup %5947  ;;  %v4629_v17 = vsel %vm9128_vm3, %v4628_v57, %v4624_v42  ;;  %v4649_v29 = vmul.f32 %v5944_v1, %v4648_v51  ;;  %vm3807_vm3 = vweird.f32 %v9115_v60 }
 0x3f6   : > { %v5950_v63 = vpop.eup %5949  ;;  %v4662_v50 = vmul.f32 %v5948_v22, %v9122_v59  ;;  %v4639_v6 = vsel %vm4638_vm10, %v5942_v41, %v4635_v10  ;;  %v4764_v48 = vmul.f32 %v4629_v17, %v9065_v49  ;;  %vm4667_vm13 = vweird.f32 %v5948_v22  ;;  %vm3809_vm5 = vmor %vm3807_vm3, %vm3808_vm2 }
 0x3f7   : > { %v9167_v9 = vadd.f32 1.0, %v5950_v63  ;;  %v4644_v16 = vsel %vm9141_vm15, %v4643_v12, %v4639_v6  ;;  %v4650_v61 = vadd.f32 %v5944_v1, %v4649_v29  ;;  %v5952_v34 = vpop.eup %5951  ;;  %v3804_v56 = vmul.f32 0.5, %v3803_v2  ;;  %vm4668_vm1 = vmor %vm4666_vm0, %vm4667_vm13 }
 0x3f8   : > { %v4663_v27 = vsub.f32 1.0, %v4662_v50  ;;  %v4765_v18 = vmul.f32 %v4644_v16, %v9082_v25  ;;  %v4658_v25 = vor.u32 1.1754944e-38, %v4657_v37  ;;  %v3812_v45 = vmul.f32 %v5952_v34, %v9138_v28 }
 0x3f9   : > { %5955 = vrcp.f32 %v9167_v9  ;;  %v4654_v35 = vsel %vm9177_vm12, %v5944_v1, %v4650_v61  ;;  %v5954_v49 = vpop.eup %5953  ;;  %v3805_v58 = vsub.f32 1.5, %v3804_v56  ;;  %vm3818_vm9 = vweird.f32 %v5952_v34 }
 0x3fa   : > { %v4664_v8 = vmul.f32 %v5948_v22, %v4663_v27  ;;  %v5686_v40 = vpack.c.bf16 %v4765_v18, %v4764_v48  ;;  %v9187_v41 = vadd.f32 1.0, %v5954_v49  ;;  %v4659_v0 = vsel %vm4656_vm14, %v4658_v25, %v4654_v35 }
 0x3fb   : > { %v3813_v36 = vmul.f32 %v5952_v34, %v3812_v45  ;;  %v3806_v38 = vmul.f32 %v9146_v31, %v3805_v58  ;;  %v4766_v3 = vmul.f32 %v4659_v0, %v9093_v39  ;;  %vm3817_vm15 = vweird.f32 %v9138_v28  ;;  %v5992_v39 = vld [vmem:[%s9226_s3] ss:$0 sm:$0xff] }
 0x3fc   : > { %v4665_v55 = vadd.f32 %v5948_v22, %v4664_v8  ;;  %5719 = vst [vmem:[%s8405_s11 + $0x70] sm:$0xff] %v5686_v40   ;;  %5957 = vrcp.f32 %v9187_v41  ;;  %vm3819_vm6 = vmor %vm3817_vm15, %vm3818_vm9  ;;  %v4687_v12 = vand.u32 2147483648, %v9167_v9  ;;  %vm4681_vm8 = vweird.f32 %v9167_v9 }
 0x3fd   : > { %v3814_v59 = vmul.f32 0.5, %v3813_v36  ;;  %v3810_v57 = vsel %vm3809_vm5, %v9146_v31, %v3806_v38  ;;  %v4685_v51 = vand.u32 2147483647, %v9167_v9  ;;  %v4700_v29 = vand.u32 2147483647, %v9187_v41 }
 0x3fe   : > { %v4669_v21 = vsel %vm4668_vm1, %v5948_v22, %v4665_v55  ;;  %v3855_v32 = vmul.f32 %v3810_v57, %v8465_v20  ;;  %v4702_v22 = vand.u32 2147483648, %v9187_v41  ;;  %v4688_v50 = vor.u32 1.1754944e-38, %v4687_v12 }
 0x3ff   : > { %v5956_v44 = vpop.eup %5955  ;;  %v4674_v7 = vsel %vm4671_vm4, %v4673_v13, %v4669_v21  ;;  %v3815_v33 = vsub.f32 1.5, %v3814_v59  ;;  %vm4686_vm12 = vcmp.eq.f32.partialorder %v4685_v51, 8.507059e+37  ;;  %vm4696_vm13 = vweird.f32 %v9187_v41 }
 0x400   : > { %v4767_v54 = vmul.f32 %v4674_v7, %v9101_v19  ;;  %v4677_v1 = vmul.f32 %v5956_v44, %v9167_v9  ;;  %v3895_v19 = vmul.f32 %v5992_v39, %v3855_v32  ;;  %vm4682_vm7 = vweird.f32 %v5956_v44 }
 0x401   : > { %v3816_v46 = vmul.f32 %v5952_v34, %v3815_v33  ;;  %vm4683_vm10 = vmor %vm4681_vm8, %vm4682_vm7  ;;  %v4703_v2 = vor.u32 1.1754944e-38, %v4702_v22  ;;  %vm4701_vm0 = vcmp.eq.f32.partialorder %v4700_v29, 8.507059e+37 }
 0x402   : > { %v5691_v4 = vpack.c.bf16 %v4767_v54, %v4766_v3  ;;  %v4678_v30 = vsub.f32 1.0, %v4677_v1  ;;  %v5958_v60 = vpop.eup %5957  ;;  %v4013_v20 = vmul.f32 %v7808_v43, %v3895_v19 }
 0x403   : > { %v4692_v31 = vmul.f32 %v5958_v60, %v9187_v41  ;;  %v3820_v52 = vsel %vm3819_vm6, %v5952_v34, %v3816_v46  ;;  %vm4697_vm11 = vweird.f32 %v5958_v60 }
 0x404   : > { %5720 = vst [vmem:[%s8405_s11 + $0x78] sm:$0xff] %v5691_v4   ;;  %v4679_v14 = vmul.f32 %v5956_v44, %v4678_v30  ;;  %v3856_v28 = vmul.f32 %v3820_v52, %v8523_v24  ;;  %v4050_v10 = vadd.f32 %v7817_v11, %v4013_v20  ;;  %vm4698_vm14 = vmor %vm4696_vm13, %vm4697_vm11 }
 0x405   : > { %v4693_v5 = vsub.f32 1.0, %v4692_v31 }
 0x406   : > { %v4680_v42 = vadd.f32 %v5956_v44, %v4679_v14  ;;  %v3896_v26 = vmul.f32 %v5992_v39, %v3856_v28  ;;  %v5518_v6 = vmul.f32 -1.442695, %v4050_v10 }
 0x407   : > { %v4694_v17 = vmul.f32 %v5958_v60, %v4693_v5 }
 0x408   : > { %v4684_v63 = vsel %vm4683_vm10, %v5956_v44, %v4680_v42  ;;  %v4014_v24 = vmul.f32 %v7808_v43, %v3896_v26  ;;  %5959 = vpow2.f32 %v5518_v6 }
 0x409   : > { %v4695_v37 = vadd.f32 %v5958_v60, %v4694_v17  ;;  %v4689_v9 = vsel %vm4686_vm12, %v4688_v50, %v4684_v63 }
 0x40a   : > { %v4051_v16 = vadd.f32 %v7817_v11, %v4014_v24  ;;  %v4768_v34 = vmul.f32 %v4689_v9, %v9119_v15 }
 0x40b   : > { %v4699_v61 = vsel %vm4698_vm14, %v5958_v60, %v4695_v37 }
 0x40c   : > { %v4704_v27 = vsel %vm4701_vm0, %v4703_v2, %v4699_v61  ;;  %v5519_v47 = vmul.f32 -1.442695, %v4051_v16 }
 0x40d   : > { %v4769_v48 = vmul.f32 %v4704_v27, %v9136_v23 }
 0x40e   : > { %5961 = vpow2.f32 %v5519_v47  ;;  %v5960_v18 = vpop.eup %5959 }
 0x40f   : > { %v5696_v43 = vpack.c.bf16 %v4769_v48, %v4768_v34  ;;  %v4194_v62 = vadd.f32 1.0, %v5960_v18 }
 0x411   : > { %5721 = vst [vmem:[%s8405_s11 + $0x80] sm:$0xff] %v5696_v43   ;;  %5963 = vrcp.f32 %v4194_v62  ;;  %v4717_v45 = vand.u32 2147483648, %v4194_v62  ;;  %vm4711_vm2 = vweird.f32 %v4194_v62  ;;  %v4715_v23 = vand.u32 2147483647, %v4194_v62 }
 0x413   : > { %v4718_v36 = vor.u32 1.1754944e-38, %v4717_v45  ;;  %vm4716_vm5 = vcmp.eq.f32.partialorder %v4715_v23, 8.507059e+37 }
 0x414   : > { %v5962_v53 = vpop.eup %5961 }
 0x415   : > { %v4195_v35 = vadd.f32 1.0, %v5962_v53 }
 0x417   : > { %5965 = vrcp.f32 %v4195_v35  ;;  %v5964_v8 = vpop.eup %5963  ;;  %v4732_v13 = vand.u32 2147483648, %v4195_v35  ;;  %v4730_v58 = vand.u32 2147483647, %v4195_v35  ;;  %vm4726_vm9 = vweird.f32 %v4195_v35 }
 0x418   : > { %v4707_v56 = vmul.f32 %v5964_v8, %v4194_v62  ;;  %vm4712_vm1 = vweird.f32 %v5964_v8 }
 0x419   : > { %vm4713_vm4 = vmor %vm4711_vm2, %vm4712_vm1  ;;  %v4733_v7 = vor.u32 1.1754944e-38, %v4732_v13  ;;  %vm4731_vm6 = vcmp.eq.f32.partialorder %v4730_v58, 8.507059e+37 }
 0x41a   : > { %v4708_v11 = vsub.f32 1.0, %v4707_v56 }
 0x41c   : > { %v4709_v40 = vmul.f32 %v5964_v8, %v4708_v11 }
 0x41d   : > { %v5966_v49 = vpop.eup %5965 }
 0x41e   : > { %v4722_v25 = vmul.f32 %v5966_v49, %v4195_v35  ;;  %v4710_v15 = vadd.f32 %v5964_v8, %v4709_v40  ;;  %vm4727_vm3 = vweird.f32 %v5966_v49 }
 0x41f   : > { %vm4728_vm15 = vmor %vm4726_vm9, %vm4727_vm3 }
 0x420   : > { %v4723_v55 = vsub.f32 1.0, %v4722_v25  ;;  %v4714_v41 = vsel %vm4713_vm4, %v5964_v8, %v4710_v15 }
 0x421   : > { %v4719_v44 = vsel %vm4716_vm5, %v4718_v36, %v4714_v41 }
 0x422   : > { %v4724_v0 = vmul.f32 %v5966_v49, %v4723_v55  ;;  %v4770_v3 = vmul.f32 %v4719_v44, %v4050_v10 }
 0x424   : > { %v4725_v21 = vadd.f32 %v5966_v49, %v4724_v0 }
 0x426   : > { %v4729_v38 = vsel %vm4728_vm15, %v5966_v49, %v4725_v21 }
 0x427   : > { %v4734_v59 = vsel %vm4731_vm6, %v4733_v7, %v4729_v38 }
 0x428   : > { %v4771_v54 = vmul.f32 %v4734_v59, %v4051_v16 }
 0x42a   : > { %v5701_v1 = vpack.c.bf16 %v4771_v54, %v4770_v3 }
 0x42c   : > { %5722 = vst [vmem:[%s8405_s11 + $0x88] sm:$0xff] %v5701_v1  }
 0x42d PF: > { %s17_s24 = sadd.s32 1, %s5999_s24  }
 0x42e   : > { %p14_p4 = scmp.ge.s32.totalorder %s17_s24, 4  }
 0x430   :  { %16 = sbr.rel (!%p14_p4) target bundleno = 1 (0x1), region = 87 }

// kernel: resnet_block_forward.3
= control target key start
LH: loop header
LB: loop body
LE: loop exit
PB: predicated region body
PF: predicated region fallthrough
CT: control target
= control target key end

     0   :  { %s6479_s24 = smov 0   ;;  %s9333_s0 = inlined_call_operand.vmem [shape: bf16[2,328,128], index: 0, kind: input, shape index: {}]   ;;  %s9334_s1 = inlined_call_operand.vmem [shape: bf16[9,128,128], index: 1, kind: input, shape index: {}]   ;;  %s9335_s2 = inlined_call_operand.vmem [shape: f32[1,128], index: 2, kind: input, shape index: {}]   ;;  %s9336_s3 = inlined_call_operand.vmem [shape: f32[1,128], index: 3, kind: input, shape index: {}]   ;;  %s9337_s4 = inlined_call_operand.vmem [shape: bf16[2,328,64], index: 4, kind: input, shape index: {}]   ;;  %s9338_s5 = inlined_call_operand.vmem [shape: bf16[64,128], index: 5, kind: input, shape index: {}]   ;;  %s9339_s6 = inlined_call_operand.vmem [shape: f32[1,128], index: 6, kind: input, shape index: {}]   ;;  %s9340_s7 = inlined_call_operand.vmem [shape: f32[2,288,128], index: 7, kind: output, shape index: {}]  }
   0x1 LB: > { %s5247_s25 = sadd.s32 4294967295, %s6437_s24   ;;  %p5251_p0 = scmp.ge.s32.totalorder %s6437_s24, 1  ;;  %s6437_s24 = sphi %s6479_s24, %s17_s24  }
   0x2   : > { %p247_p1 = scmp.lt.s32.totalorder %s6437_s24, 3 }
   0x4   : > { %p248_p2 = pnand %p5251_p0, %p247_p1 }
   0x6   : > { %251 = sbr.rel (%p248_p2) target bundleno = 1089 (0x441), region = 48 }
   0xb   : > { %v6051_v0 = vld [vmem:[%s9334_s1 + $0x78] sm:$0xff]  ;;  %p284_p3 = scmp.lt.s32.totalorder %s5247_s25, 1  ;;  %v6050_v2 = vld [vmem:[%s9334_s1 + $0x70] sm:$0xff]  ;;  %v6049_v4 = vld [vmem:[%s9334_s1 + $0x68] sm:$0xff]  ;;  %vm463_vm0 = vsmask.f32 7424 }
   0xc   : > { %v6043_v1 = vld [vmem:[%s9334_s1 + $0x38] sm:$0xff]  ;;  %6171 = vmatpush.bf16.msra.mxu2 %v6051_v0  ;;  %v6042_v3 = vld [vmem:[%s9334_s1 + $0x30] sm:$0xff]  ;;  %678 = vmatpush.bf16.msra.mxu0 %v6051_v0  ;;  %v6041_v5 = vld [vmem:[%s9334_s1 + $0x28] sm:$0xff]  ;;  %vm963_vm1 = vcmask 1046528   ;;  %vm1608_vm2 = vsmask.f32 6400 }
   0xd   : > { %6179 = vmatpush.bf16.msra.mxu3 %v6043_v1  ;;  %843 = vmatpush.bf16.msra.mxu1 %v6043_v1  ;;  %s9479_s25 = smov (!%p284_p3, %s5247_s25), 1  ;;  %v6048_v6 = vld [vmem:[%s9334_s1 + $0x60] sm:$0xff]  ;;  %v6047_v8 = vld [vmem:[%s9334_s1 + $0x58] sm:$0xff]  ;;  %v6046_v12 = vld [vmem:[%s9334_s1 + $0x50] sm:$0xff]  ;;  %vm2001_vm3 = vcmask 1045504   ;;  %vm3039_vm5 = vcmask 1044480  }
   0xe   : > { %s6187_s15 = smul.u32 164, %s9479_s25  ;;  %v6040_v7 = vld [vmem:[%s9334_s1 + $0x20] sm:$0xff]  ;;  %v6039_v9 = vld [vmem:[%s9334_s1 + $0x18] sm:$0xff]  ;;  %v6038_v13 = vld [vmem:[%s9334_s1 + $0x10] sm:$0xff]  ;;  %vm2646_vm4 = vsmask.f32 5376 }
   0xf   : > { %v6045_v18 = vld [vmem:[%s9334_s1 + $0x48] sm:$0xff]  ;;  %v6044_v26 = vld [vmem:[%s9334_s1 + $0x40] sm:$0xff]  ;;  %v6059_v32 = vld [vmem:[%s9334_s1 + $0xb8] sm:$0xff]  ;;  %vm4954_vm6 = vcmask 523264   ;;  %s6188_s14 = smul.u32 288, %s9479_s25 }
  0x10   : > { %6172 = vmatpush.bf16.msra.mxu2 %v6050_v2  ;;  %679 = vmatpush.bf16.msra.mxu0 %v6050_v2  ;;  %s6519_s22 = scalar_lea.vmem %s9333_s0, %s6187_s15  ;;  %v6037_v19 = vld [vmem:[%s9334_s1 + $0x8] sm:$0xff]  ;;  %v6036_v27 = vld [vmem:[%s9334_s1] sm:$0xff]  ;;  %v6084_v33 = vld [vmem:[%s9334_s1 + $0xf8] sm:$0xff]  ;;  %s7329_s30 = scalar_lea.vmem %s9337_s4, %s6187_s15 }
  0x11   : > { %6180 = vmatpush.bf16.msra.mxu3 %v6042_v3  ;;  %844 = vmatpush.bf16.msra.mxu1 %v6042_v3  ;;  %v6027_v10 = vld [vmem:[%s6519_s22 + $0x48] sm:$0xff]  ;;  %v6165_v11 = vld [vmem:[%s6519_s22] sm:$0xff]   ;;  %v6536_v14 = vld [vmem:[%s6519_s22 + $0x50] sm:$0xff]  ;;  %s7734_s17 = scalar_lea.vmem %s9340_s7, %s6188_s14 }
  0x12   : > { %v536_v15 = vshll.u32 %v6027_v10, 16  ;;  %v6539_v16 = vld [vmem:[%s6519_s22 + $0x8] sm:$0xff]  ;;  %v467_v17 = vshll.u32 %v6165_v11, 16  ;;  %v540_v21 = vshrl.u32 %v6027_v10, 16  ;;  %v544_v22 = vshll.u32 %v6536_v14, 16  ;;  %v6092_v36 = vld [vmem:[%s9334_s1 + $0x138] sm:$0xff] }
  0x13   : > { %v465_v23 = vshrl.u32 %v6165_v11, 16  ;;  %v472_v25 = vshll.u32 %v6539_v16, 16  ;;  %v6058_v37 = vld [vmem:[%s9334_s1 + $0xb0] sm:$0xff]  ;;  %v6029_v39 = vld [vmem:[%s6519_s22 + $0x58] sm:$0xff]  ;;  %v6057_v42 = vld [vmem:[%s9334_s1 + $0xa8] sm:$0xff]  ;;  %v548_v44 = vshrl.u32 %v6536_v14, 16 }
  0x14   : > { %6173 = vmatpush.bf16.msra.mxu2 %v6049_v4  ;;  %680 = vmatpush.bf16.msra.mxu0 %v6049_v4  ;;  %v6547_v20 = vrot.slane %v536_v15, 1  ;;  %v469_v24 = vrot.slane %v467_v17, 1  ;;  %v546_v29 = vrot.slane %v544_v22, 1  ;;  %v6083_v38 = vld [vmem:[%s9334_s1 + $0xf0] sm:$0xff]  ;;  %v6082_v43 = vld [vmem:[%s9334_s1 + $0xe8] sm:$0xff]  ;;  %v552_v45 = vshll.u32 %v6029_v39, 16 }
  0x15   : > { %6181 = vmatpush.bf16.msra.mxu3 %v6041_v5  ;;  %845 = vmatpush.bf16.msra.mxu1 %v6041_v5  ;;  %v474_v31 = vrot.slane %v472_v25, 1  ;;  %v6577_v40 = vld [vmem:[%s6519_s22 + $0x10] sm:$0xff]  ;;  %v476_v46 = vshrl.u32 %v6539_v16, 16  ;;  %v6090_v48 = vld [vmem:[%s9334_s1 + $0x128] sm:$0xff]  ;;  %v6030_v55 = vld [vmem:[%s6519_s22 + $0x60] sm:$0xff]  ;;  %v556_v59 = vshrl.u32 %v6029_v39, 16 }
  0x16   : > { %v542_v28 = vor.u32 %v540_v21, %v6547_v20  ;;  %v470_v30 = vor.u32 %v469_v24, %v465_v23  ;;  %v6091_v41 = vld [vmem:[%s9334_s1 + $0x130] sm:$0xff]  ;;  %v480_v47 = vshll.u32 %v6577_v40, 16  ;;  %v550_v49 = vor.u32 %v548_v44, %v546_v29  ;;  %v6056_v56 = vld [vmem:[%s9334_s1 + $0xa0] sm:$0xff]  ;;  %v6606_v58 = vld [vmem:[%s6519_s22 + $0x18] sm:$0xff] }
  0x17   : > { %v554_v50 = vrot.slane %v552_v45, 1  ;;  %v478_v51 = vor.u32 %v476_v46, %v474_v31  ;;  %v6081_v57 = vld [vmem:[%s9334_s1 + $0xe0] sm:$0xff]  ;;  %v560_v60 = vshll.u32 %v6030_v55, 16  ;;  %v484_v61 = vshrl.u32 %v6577_v40, 16  ;;  %v6032_v22 = vld [vmem:[%s6519_s22 + $0x70] sm:$0xff]  ;;  %v6088_v23 = vld [vmem:[%s9334_s1 + $0x118] sm:$0xff] }
  0x18   : > { %6174 = vmatpush.bf16.msra.mxu2 %v6048_v6  ;;  %681 = vmatpush.bf16.msra.mxu0 %v6048_v6  ;;  %v547_v34 = vsel %vm463_vm0, %v542_v28, %v546_v29  ;;  %v475_v35 = vsel %vm463_vm0, %v470_v30, %v474_v31  ;;  %v482_v52 = vrot.slane %v480_v47, 1  ;;  %v488_v62 = vshll.u32 %v6606_v58, 16  ;;  %v6089_v5 = vld [vmem:[%s9334_s1 + $0x120] sm:$0xff]  ;;  %v6031_v6 = vld [vmem:[%s6519_s22 + $0x68] sm:$0xff]  ;;  %v6054_v24 = vld [vmem:[%s9334_s1 + $0x90] sm:$0xff] }
  0x19   : > { %6182 = vmatpush.bf16.msra.mxu3 %v6040_v7  ;;  %846 = vmatpush.bf16.msra.mxu1 %v6040_v7  ;;  %v555_v53 = vsel %vm463_vm0, %v550_v49, %v554_v50  ;;  %v558_v63 = vor.u32 %v556_v59, %v554_v50  ;;  %v562_v0 = vrot.slane %v560_v60, 1  ;;  %v6055_v7 = vld [vmem:[%s9334_s1 + $0x98] sm:$0xff]  ;;  %v6079_v25 = vld [vmem:[%s9334_s1 + $0xd0] sm:$0xff]  ;;  %v576_v28 = vshll.u32 %v6032_v22, 16 }
  0x1a   : > { %v483_v54 = vsel %vm463_vm0, %v478_v51, %v482_v52  ;;  %v486_v1 = vor.u32 %v484_v61, %v482_v52  ;;  %v490_v2 = vrot.slane %v488_v62, 1 }
  0x1b   : > { %v563_v3 = vsel %vm463_vm0, %v558_v63, %v562_v0 }
  0x1c   : > { %6175 = vmatpush.bf16.msra.mxu2 %v6047_v8  ;;  %682 = vmatpush.bf16.msra.mxu0 %v6047_v8  ;;  %v491_v4 = vsel %vm463_vm0, %v486_v1, %v490_v2  ;;  %v6080_v8 = vld [vmem:[%s9334_s1 + $0xd8] sm:$0xff] }
  0x1d   : > { %6183 = vmatpush.bf16.msra.mxu3 %v6039_v9  ;;  %847 = vmatpush.bf16.msra.mxu1 %v6039_v9  ;;  %v6624_v9 = vld [vmem:[%s6519_s22 + $0x20] sm:$0xff] }
  0x1e   : > { %v500_v29 = vshrl.u32 %v6624_v9, 16 }
  0x20   : > { %6176 = vmatpush.bf16.msra.mxu2 %v6046_v12  ;;  %683 = vmatpush.bf16.msra.mxu0 %v6046_v12  ;;  %v492_v12 = vshrl.u32 %v6606_v58, 16 }
  0x21   : > { %6184 = vmatpush.bf16.msra.mxu3 %v6038_v13  ;;  %848 = vmatpush.bf16.msra.mxu1 %v6038_v13  ;;  %v496_v13 = vshll.u32 %v6624_v9, 16 }
  0x22   : > { %v494_v17 = vor.u32 %v492_v12, %v490_v2 }
  0x24   : > { %6177 = vmatpush.bf16.msra.mxu2 %v6045_v18  ;;  %684 = vmatpush.bf16.msra.mxu0 %v6045_v18  ;;  %v498_v18 = vrot.slane %v496_v13, 1 }
  0x25   : > { %6185 = vmatpush.bf16.msra.mxu3 %v6037_v19  ;;  %849 = vmatpush.bf16.msra.mxu1 %v6037_v19 }
  0x26   : > { %v499_v21 = vsel %vm463_vm0, %v494_v17, %v498_v18  ;;  %v6097_v17 = vld [vmem:[%s9334_s1 + $0x160] sm:$0xff] }
  0x28   : > { %6178 = vmatpush.bf16.msra.mxu2 %v6044_v26  ;;  %685 = vmatpush.bf16.msra.mxu0 %v6044_v26  ;;  %v6642_v26 = vld [vmem:[%s6519_s22 + $0x28] sm:$0xff] }
  0x29   : > { %6186 = vmatpush.bf16.msra.mxu3 %v6036_v27  ;;  %850 = vmatpush.bf16.msra.mxu1 %v6036_v27  ;;  %v572_v27 = vshrl.u32 %v6031_v6, 16  ;;  %v504_v30 = vshll.u32 %v6642_v26, 16  ;;  %v508_v45 = vshrl.u32 %v6642_v26, 16 }
  0x2b   : > { %731 = vmatmul.bf16.vlgmr.msra.gmra.mxu2 %v547_v34  ;;  %686 = vmatmul.bf16.vlgmr.msra.gmra.mxu0 %v475_v35  ;;  %v506_v34 = vrot.slane %v504_v30, 1  ;;  %v6125_v30 = vld [vmem:[%s9334_s1 + $0x1b8] sm:$0xff] }
  0x2c   : > { %1067 = vmatpush.bf16.msrb.mxu2 %v6059_v32  ;;  %896 = vmatmul.bf16.vlgmr.msra.gmra.mxu3 %v6027_v10  ;;  %v564_v10 = vshrl.u32 %v6030_v55, 16  ;;  %v578_v32 = vrot.slane %v576_v28, 1 }
  0x2d   : > { %1452 = vmatpush.bf16.msrb.mxu3 %v6084_v33  ;;  %851 = vmatmul.bf16.vlgmr.msra.gmra.mxu1 %v6165_v11  ;;  %v568_v11 = vshll.u32 %v6031_v6, 16  ;;  %v502_v33 = vor.u32 %v500_v29, %v498_v18  ;;  %v510_v49 = vor.u32 %v508_v45, %v506_v34  ;;  %v6095_v29 = vld [vmem:[%s9334_s1 + $0x150] sm:$0xff] }
  0x2e   : > { %1845 = vmatpush.bf16.msrb.mxu0 %v6092_v36 }
  0x2f   : > { %v570_v15 = vrot.slane %v568_v11, 1  ;;  %v507_v36 = vsel %vm463_vm0, %v502_v33, %v506_v34  ;;  %v6094_v33 = vld [vmem:[%s9334_s1 + $0x148] sm:$0xff] }
  0x30   : > { %1068 = vmatpush.bf16.msrb.mxu2 %v6058_v37  ;;  %v6033_v37 = vld [vmem:[%s6519_s22 + $0x78] sm:$0xff] }
  0x31   : > { %1453 = vmatpush.bf16.msrb.mxu3 %v6083_v38  ;;  %v574_v31 = vor.u32 %v572_v27, %v570_v15  ;;  %v6087_v38 = vld [vmem:[%s9334_s1 + $0x110] sm:$0xff]  ;;  %v584_v44 = vshll.u32 %v6033_v37, 16  ;;  %v588_v59 = vshrl.u32 %v6033_v37, 16 }
  0x32   : > { %1846 = vmatpush.bf16.msrb.mxu0 %v6091_v41  ;;  %v6078_v41 = vld [vmem:[%s9334_s1 + $0xc8] sm:$0xff] }
  0x33   : > { %v579_v35 = vsel %vm463_vm0, %v574_v31, %v578_v32 }
  0x34   : > { %1069 = vmatpush.bf16.msrb.mxu2 %v6057_v42  ;;  %v6660_v42 = vld [vmem:[%s6519_s22 + $0x30] sm:$0xff] }
  0x35   : > { %1454 = vmatpush.bf16.msrb.mxu3 %v6082_v43  ;;  %v580_v43 = vshrl.u32 %v6032_v22, 16  ;;  %v512_v46 = vshll.u32 %v6660_v42, 16  ;;  %v516_v61 = vshrl.u32 %v6660_v42, 16 }
  0x36   : > { %1847 = vmatpush.bf16.msrb.mxu0 %v6090_v48  ;;  %v586_v48 = vrot.slane %v584_v44, 1 }
  0x37   : > { %v582_v47 = vor.u32 %v580_v43, %v578_v32  ;;  %v514_v50 = vrot.slane %v512_v46, 1  ;;  %v6133_v32 = vld [vmem:[%s9334_s1 + $0x1f8] sm:$0xff] }
  0x38   : > { %1070 = vmatpush.bf16.msrb.mxu2 %v6056_v56  ;;  %v6052_v56 = vld [vmem:[%s9334_s1 + $0x80] sm:$0xff]  ;;  %v590_v63 = vor.u32 %v588_v59, %v586_v48 }
  0x39   : > { %1455 = vmatpush.bf16.msrb.mxu3 %v6081_v57  ;;  %v587_v51 = vsel %vm463_vm0, %v582_v47, %v586_v48  ;;  %v515_v52 = vsel %vm463_vm0, %v510_v49, %v514_v50  ;;  %v6678_v57 = vld [vmem:[%s6519_s22 + $0x38] sm:$0xff]  ;;  %v518_v1 = vor.u32 %v516_v61, %v514_v50  ;;  %v6169_v59 = vld [vmem:[%s6519_s22] sm:$0xe] }
  0x3a   : > { %1848 = vmatpush.bf16.msrb.mxu0 %v6089_v5  ;;  %v520_v62 = vshll.u32 %v6678_v57, 16  ;;  %v6099_v5 = vld [vmem:[%s9334_s1 + $0x170] sm:$0xff]  ;;  %v524_v13 = vshrl.u32 %v6678_v57, 16 }
  0x3b   : > { %736 = vmatmul.bf16.gmra.mxu2 %v555_v53  ;;  %691 = vmatmul.bf16.gmra.mxu0 %v483_v54  ;;  %v6034_v53 = vld [vmem:[%s6519_s22 + $0x80] sm:$0xff]  ;;  %v6086_v54 = vld [vmem:[%s9334_s1 + $0x108] sm:$0xff] }
  0x3c   : > { %901 = vmatmul.bf16.gmra.mxu3 %v6536_v14  ;;  %1071 = vmatpush.bf16.msrb.mxu2 %v6055_v7  ;;  %v566_v14 = vor.u32 %v564_v10, %v562_v0  ;;  %v592_v60 = vshll.u32 %v6034_v53, 16  ;;  %v522_v2 = vrot.slane %v520_v62, 1  ;;  %v6035_v7 = vld [vmem:[%s6519_s22 + $0x88] sm:$0xff]  ;;  %v596_v11 = vshrl.u32 %v6034_v53, 16 }
  0x3d   : > { %856 = vmatmul.bf16.gmra.mxu1 %v6539_v16  ;;  %1456 = vmatpush.bf16.msrb.mxu3 %v6080_v8  ;;  %v6693_v8 = vld [vmem:[%s6519_s22 + $0x40] sm:$0xff]  ;;  %v6098_v10 = vld [vmem:[%s9334_s1 + $0x168] sm:$0xff]  ;;  %v600_v12 = vshll.u32 %v6035_v7, 16  ;;  %v604_v34 = vshrl.u32 %v6035_v7, 16 }
  0x3e   : > { %v571_v19 = vsel %vm463_vm0, %v566_v14, %v570_v15  ;;  %1849 = vmatpush.bf16.msrb.mxu0 %v6088_v23  ;;  %v594_v0 = vrot.slane %v592_v60, 1  ;;  %v528_v14 = vshll.u32 %v6693_v8, 16  ;;  %v6085_v15 = vld [vmem:[%s9334_s1 + $0x100] sm:$0xff]  ;;  %v352_v23 = vld [vmem:[%s6519_s22 + $0x90] sm:$0x1] }
  0x3f   : > { %v443_v27 = vunpack.c.l.b16 %v352_v23 }
  0x40   : > { %1072 = vmatpush.bf16.msrb.mxu2 %v6054_v24  ;;  %v598_v18 = vor.u32 %v596_v11, %v594_v0  ;;  %v6096_v24 = vld [vmem:[%s9334_s1 + $0x158] sm:$0xff] }
  0x41   : > { %1457 = vmatpush.bf16.msrb.mxu3 %v6079_v25  ;;  %v6719_v31 = vpack.c.b16 %v443_v27, %v443_v27 }
  0x42   : > { %1850 = vmatpush.bf16.msrb.mxu0 %v6087_v38  ;;  %v1203_v38 = vld [vmem:[%s6519_s22 + $0xc] sm:$0xf] }
  0x43   : > { %v1294_v46 = vunpack.c.l.b16 %v1203_v38 }
  0x45   : > { %1458 = vmatpush.bf16.msrb.mxu3 %v6078_v41  ;;  %v6141_v41 = vld [vmem:[%s9334_s1 + $0x238] sm:$0xff] }
  0x46   : > { %1851 = vmatpush.bf16.msrb.mxu0 %v6086_v54 }
  0x4a   : > { %1852 = vmatpush.bf16.msrb.mxu0 %v6085_v15  ;;  %v965_v15 = vrot.slane %v6539_v16, 1 }
  0x4b   : > { %741 = vmatmul.bf16.gmra.mxu2 %v563_v3  ;;  %696 = vmatmul.bf16.gmra.mxu0 %v491_v4  ;;  %v595_v3 = vsel %vm463_vm0, %v590_v63, %v594_v0  ;;  %v523_v4 = vsel %vm463_vm0, %v518_v1, %v522_v2 }
  0x4c   : > { %906 = vmatmul.bf16.gmra.mxu3 %v6029_v39  ;;  %v6053_v39 = vld [vmem:[%s9334_s1 + $0x88] sm:$0xff] }
  0x4d   : > { %861 = vmatmul.bf16.gmra.mxu1 %v6577_v40  ;;  %1073 = vmatpush.bf16.msrb.mxu2 %v6053_v39  ;;  %v6093_v39 = vld [vmem:[%s9334_s1 + $0x140] sm:$0xff] }
  0x4e   : > { %3143 = vmatpush.bf16.msra.mxu0 %v6141_v41 }
  0x51   : > { %1074 = vmatpush.bf16.msrb.mxu2 %v6052_v56  ;;  %v6168_v56 = vld [vmem:[%s6519_s22] sm:$0xf0] }
  0x55   : > { %2490 = vmatpush.bf16.msra.mxu2 %v6125_v30 }
  0x5b   : > { %746 = vmatmul.bf16.gmra.mxu2 %v571_v19  ;;  %701 = vmatmul.bf16.gmra.mxu0 %v499_v21  ;;  %v602_v19 = vrot.slane %v600_v12, 1  ;;  %v526_v21 = vor.u32 %v524_v13, %v522_v2 }
  0x5c   : > { %911 = vmatmul.bf16.gmra.mxu3 %v6030_v55  ;;  %v6100_v55 = vld [vmem:[%s9334_s1 + $0x178] sm:$0xff] }
  0x5d   : > { %866 = vmatmul.bf16.gmra.mxu1 %v6606_v58  ;;  %v603_v25 = vsel %vm463_vm0, %v598_v18, %v602_v19  ;;  %v606_v43 = vor.u32 %v604_v34, %v602_v19  ;;  %v6765_v34 = vld [vmem:[%s6519_s22 + $0x18] sm:$0xff] }
  0x5e   : > { %2105 = vmatpush.bf16.msrb.mxu1 %v6100_v55  ;;  %v1980_v55 = vld [vmem:[%s6519_s22 + $0x8] sm:$0xc] }
  0x5f   : > { %v1999_v0 = vunpack.c.l.b16 %v1980_v55 }
  0x61   : > { %v2000_v12 = vpack.c.b16 %v1294_v46, %v1999_v0 }
  0x62   : > { %2106 = vmatpush.bf16.msrb.mxu1 %v6099_v5 }
  0x66   : > { %2107 = vmatpush.bf16.msrb.mxu1 %v6098_v10 }
  0x6a   : > { %2108 = vmatpush.bf16.msrb.mxu1 %v6097_v17 }
  0x6b   : > { %751 = vmatmul.bf16.gmra.mxu2 %v579_v35  ;;  %706 = vmatmul.bf16.gmra.mxu0 %v507_v36  ;;  %v608_v35 = vshll.u32 %v6719_v31, 16  ;;  %v532_v36 = vshrl.u32 %v6693_v8, 16 }
  0x6c   : > { %916 = vmatmul.bf16.gmra.mxu3 %v6031_v6  ;;  %v6077_v6 = vld [vmem:[%s9334_s1 + $0xc0] sm:$0xff] }
  0x6d   : > { %871 = vmatmul.bf16.gmra.mxu1 %v6624_v9  ;;  %1459 = vmatpush.bf16.msrb.mxu3 %v6077_v6  ;;  %v610_v44 = vrot.slane %v608_v35, 1 }
  0x6e   : > { %2109 = vmatpush.bf16.msrb.mxu1 %v6096_v24 }
  0x6f   : > { %v611_v48 = vsel %vm463_vm0, %v606_v43, %v610_v44  ;;  %v6124_v43 = vld [vmem:[%s9334_s1 + $0x1b0] sm:$0xff] }
  0x70   : > { %v6132_v44 = vld [vmem:[%s9334_s1 + $0x1f0] sm:$0xff]  ;;  %2491 = vmatpush.bf16.msra.mxu2 %v6124_v43 }
  0x71   : > { %2883 = vmatpush.bf16.msra.mxu3 %v6133_v32 }
  0x72   : > { %2110 = vmatpush.bf16.msrb.mxu1 %v6095_v29 }
  0x75   : > { %2884 = vmatpush.bf16.msra.mxu3 %v6132_v44 }
  0x76   : > { %2111 = vmatpush.bf16.msrb.mxu1 %v6094_v33 }
  0x7a   : > { %2112 = vmatpush.bf16.msrb.mxu1 %v6093_v39 }
  0x7b   : > { %756 = vmatmul.bf16.gmra.mxu2 %v587_v51  ;;  %711 = vmatmul.bf16.gmra.mxu0 %v515_v52 }
  0x7c   : > { %921 = vmatmul.bf16.gmra.mxu3 %v6032_v22  ;;  %v530_v22 = vrot.slane %v528_v14, 1 }
  0x7d   : > { %876 = vmatmul.bf16.gmra.mxu1 %v6642_v26 }
  0x7e   : > { %v531_v28 = vsel %vm463_vm0, %v526_v21, %v530_v22  ;;  %v534_v47 = vor.u32 %v532_v36, %v530_v22  ;;  %v2002_v22 = vrot.slane %v2000_v12, 2  ;;  %v1627_v36 = vshrl.u32 %v6765_v34, 16 }
  0x80   : > { %v539_v52 = vsel %vm463_vm0, %v534_v47, %v6547_v20  ;;  %v1629_v47 = vrot.slane %v1627_v36, 1 }
  0x8b   : > { %761 = vmatmul.bf16.gmra.mxu2 %v595_v3  ;;  %716 = vmatmul.bf16.gmra.mxu0 %v523_v4  ;;  %v6170_v3 = vor.u32 %v6169_v59, %v6168_v56 }
  0x8c   : > { %926 = vmatmul.bf16.gmra.mxu3 %v6033_v37  ;;  %v1202_v37 = vld [vmem:[%s6519_s22 + $0x8] sm:$0xe] }
  0x8d   : > { %881 = vmatmul.bf16.gmra.mxu1 %v6660_v42  ;;  %v1293_v45 = vunpack.c.l.b16 %v1202_v37  ;;  %v964_v14 = vrot.slane %v6170_v3, 1  ;;  %v1630_v37 = vshll.u32 %v6765_v34, 16 }
  0x8f   : > { %v1330_v49 = vpack.c.b16 %v1294_v46, %v1293_v45 }
  0x91   : > { %v1610_v60 = vshrl.u32 %v1330_v49, 16  ;;  %v1613_v61 = vshll.u32 %v1330_v49, 16  ;;  %v1349_v17 = vrot.slane %v1330_v49, 1 }
  0x93   : > { %v1612_v4 = vrot.slane %v1610_v60, 1  ;;  %v6140_v60 = vld [vmem:[%s9334_s1 + $0x230] sm:$0xff] }
  0x94   : > { %3144 = vmatpush.bf16.msra.mxu0 %v6140_v60 }
  0x9b   : > { %766 = vmatmul.bf16.gmra.mxu2 %v603_v25  ;;  %721 = vmatmul.bf16.gmra.mxu0 %v531_v28  ;;  %v966_v28 = vsel %vm963_vm1, %v964_v14, %v965_v15 }
  0x9c   : > { %931 = vmatmul.bf16.gmra.mxu3 %v6034_v53  ;;  %v6741_v53 = vld [vmem:[%s6519_s22 + $0x10] sm:$0xff] }
  0x9d   : > { %886 = vmatmul.bf16.gmra.mxu1 %v6678_v57  ;;  %v1618_v62 = vshrl.u32 %v6741_v53, 16  ;;  %v1621_v63 = vshll.u32 %v6741_v53, 16  ;;  %v1350_v18 = vrot.slane %v6741_v53, 1  ;;  %v2003_v23 = vrot.slane %v6741_v53, 2 }
  0x9e   : > { %v2005_v53 = vrot.slane %v6765_v34, 2 }
  0x9f   : > { %v1620_v10 = vrot.slane %v1618_v62, 1  ;;  %v1623_v11 = vrot.slane %v1621_v63, 2  ;;  %v1351_v29 = vsel %vm963_vm1, %v1349_v17, %v1350_v18  ;;  %v2004_v33 = vsel %vm2001_vm3, %v2002_v22, %v2003_v23 }
  0xa1   : > { %v1624_v21 = vor.u32 %v1623_v11, %v1620_v10 }
  0xa8   : > { %v687_v50 = vpop.f32.mrf.mxu0 }
  0xaa   : > { %v852_v51 = vpop.f32.mrf.mxu1 }
  0xab   : > { %v6743_v54 = vadd.f32 %v852_v51, %v687_v50  ;;  %771 = vmatmul.bf16.gmra.mxu2 %v611_v48  ;;  %726 = vmatmul.bf16.gmra.mxu0 %v539_v52  ;;  %v1632_v48 = vrot.slane %v1630_v37, 2  ;;  %v967_v50 = vrot.slane %v6577_v40, 1  ;;  %v1352_v51 = vrot.slane %v6765_v34, 1 }
  0xac   : > { %936 = vmatmul.bf16.gmra.mxu3 %v6035_v7  ;;  %v1615_v7 = vrot.slane %v1613_v61, 2 }
  0xad   : > { %891 = vmatmul.bf16.gmra.mxu1 %v6693_v8  ;;  %v1633_v52 = vor.u32 %v1632_v48, %v1629_v47  ;;  %v968_v61 = vsel %vm963_vm1, %v965_v15, %v967_v50  ;;  %v1353_v62 = vsel %vm963_vm1, %v1350_v18, %v1352_v51  ;;  %v969_v18 = vrot.slane %v6606_v58, 1  ;;  %v6814_v58 = vld [vmem:[%s6519_s22 + $0x28] sm:$0xff] }
  0xae   : > { %v732_v20 = vpop.f32.mrf.mxu2  ;;  %v1616_v19 = vor.u32 %v1615_v7, %v1612_v4  ;;  %v1645_v36 = vshrl.u32 %v6814_v58, 16  ;;  %v1648_v37 = vshll.u32 %v6814_v58, 16 }
  0xaf   : > { %v897_v1 = vpop.f32.mrf.mxu3  ;;  %v1634_v40 = vsel %vm1608_vm2, %v1624_v21, %v1633_v52 }
  0xb0   : > { %v6751_v2 = vadd.f32 %v897_v1, %v732_v20  ;;  %v689_v5 = vpop.f32.mrf.mxu0  ;;  %v1625_v32 = vsel %vm1608_vm2, %v1616_v19, %v1624_v21  ;;  %v2006_v20 = vsel %vm2001_vm3, %v2003_v23, %v2005_v53  ;;  %v6794_v1 = vld [vmem:[%s6519_s22 + $0x20] sm:$0xff]  ;;  %v1650_v47 = vrot.slane %v1648_v37, 2 }
  0xb1   : > { %v1636_v4 = vshrl.u32 %v6794_v1, 16  ;;  %v1354_v19 = vrot.slane %v6794_v1, 1  ;;  %v2007_v22 = vrot.slane %v6794_v1, 2 }
  0xb2   : > { %v854_v6 = vpop.f32.mrf.mxu1 }
  0xb3   : > { %v6753_v13 = vadd.f32 %v854_v6, %v689_v5  ;;  %v1639_v5 = vshll.u32 %v6794_v1, 16  ;;  %v1638_v14 = vrot.slane %v1636_v4, 1  ;;  %v6840_v4 = vld [vmem:[%s6519_s22 + $0x30] sm:$0xff] }
  0xb5   : > { %v1641_v15 = vrot.slane %v1639_v5, 2 }
  0xb6   : > { %v734_v24 = vpop.f32.mrf.mxu2 }
  0xb7   : > { %v899_v25 = vpop.f32.mrf.mxu3  ;;  %v1642_v21 = vor.u32 %v1641_v15, %v1638_v14 }
  0xb8   : > { %v6758_v27 = vadd.f32 %v899_v25, %v734_v24  ;;  %v692_v16 = vpop.f32.mrf.mxu0 }
  0xba   : > { %v857_v30 = vpop.f32.mrf.mxu1 }
  0xbb   : > { %v6767_v35 = vadd.f32 %v857_v30, %v692_v16  ;;  %1075 = vmatmul.bf16.vlgmr.msrb.gmra.mxu2 %v966_v28  ;;  %1853 = vmatmul.bf16.vlgmr.msrb.gmra.mxu0 %v1625_v32  ;;  %v970_v28 = vsel %vm963_vm1, %v967_v50, %v969_v18  ;;  %v1643_v32 = vsel %vm1608_vm2, %v1633_v52, %v1642_v21  ;;  %v6123_v50 = vld [vmem:[%s9334_s1 + $0x1a8] sm:$0xff]  ;;  %v971_v52 = vrot.slane %v6624_v9, 1 }
  0xbc   : > { %1460 = vmatmul.bf16.vlgmr.msrb.gmra.mxu3 %v1351_v29  ;;  %v1355_v29 = vsel %vm963_vm1, %v1352_v51, %v1354_v19  ;;  %v6131_v51 = vld [vmem:[%s9334_s1 + $0x1e8] sm:$0xff]  ;;  %2492 = vmatpush.bf16.msra.mxu2 %v6123_v50 }
  0xbd   : > { %2113 = vmatmul.bf16.vlgmr.msrb.gmra.mxu1 %v2004_v33  ;;  %v2008_v33 = vsel %vm2001_vm3, %v2005_v53, %v2007_v22  ;;  %v1356_v53 = vrot.slane %v6814_v58, 1  ;;  %2885 = vmatpush.bf16.msra.mxu3 %v6131_v51 }
  0xbe   : > { %v737_v38 = vpop.f32.mrf.mxu2 }
  0xbf   : > { %v902_v39 = vpop.f32.mrf.mxu3 }
  0xc0   : > { %v6771_v41 = vadd.f32 %v902_v39, %v737_v38  ;;  %v694_v45 = vpop.f32.mrf.mxu0 }
  0xc2   : > { %v859_v46 = vpop.f32.mrf.mxu1 }
  0xc3   : > { %v6779_v49 = vadd.f32 %v859_v46, %v694_v45  ;;  %v1647_v46 = vrot.slane %v1645_v36, 1 }
  0xc6   : > { %v739_v55 = vpop.f32.mrf.mxu2 }
  0xc7   : > { %v904_v56 = vpop.f32.mrf.mxu3 }
  0xc8   : > { %v6784_v59 = vadd.f32 %v904_v56, %v739_v55  ;;  %v697_v63 = vpop.f32.mrf.mxu0  ;;  %v1651_v55 = vor.u32 %v1650_v47, %v1647_v46  ;;  %v2009_v56 = vrot.slane %v6814_v58, 2 }
  0xca   : > { %v862_v0 = vpop.f32.mrf.mxu1  ;;  %v1652_v1 = vsel %vm1608_vm2, %v1642_v21, %v1651_v55  ;;  %v2010_v9 = vsel %vm2001_vm3, %v2007_v22, %v2009_v56 }
  0xcb   : > { %v6796_v3 = vadd.f32 %v862_v0, %v697_v63  ;;  %1080 = vmatmul.bf16.gmra.mxu2 %v968_v61  ;;  %1858 = vmatmul.bf16.gmra.mxu0 %v1634_v40  ;;  %v972_v63 = vsel %vm963_vm1, %v969_v18, %v971_v52  ;;  %v1357_v0 = vsel %vm963_vm1, %v1354_v19, %v1356_v53 }
  0xcc   : > { %1465 = vmatmul.bf16.gmra.mxu3 %v1353_v62 }
  0xcd   : > { %2118 = vmatmul.bf16.gmra.mxu1 %v2006_v20 }
  0xce   : > { %v742_v6 = vpop.f32.mrf.mxu2 }
  0xcf   : > { %v907_v7 = vpop.f32.mrf.mxu3 }
  0xd0   : > { %v6800_v10 = vadd.f32 %v907_v7, %v742_v6  ;;  %v699_v11 = vpop.f32.mrf.mxu0  ;;  %v6139_v6 = vld [vmem:[%s9334_s1 + $0x228] sm:$0xff]  ;;  %v1654_v7 = vshrl.u32 %v6840_v4, 16 }
  0xd1   : > { %3145 = vmatpush.bf16.msra.mxu0 %v6139_v6  ;;  %v6122_v6 = vld [vmem:[%s9334_s1 + $0x1a0] sm:$0xff] }
  0xd2   : > { %v864_v12 = vpop.f32.mrf.mxu1  ;;  %v1656_v21 = vrot.slane %v1654_v7, 1  ;;  %v6130_v7 = vld [vmem:[%s9334_s1 + $0x1e0] sm:$0xff]  ;;  %2493 = vmatpush.bf16.msra.mxu2 %v6122_v6 }
  0xd3   : > { %v6802_v17 = vadd.f32 %v864_v12, %v699_v11  ;;  %v1657_v11 = vshll.u32 %v6840_v4, 16  ;;  %2886 = vmatpush.bf16.msra.mxu3 %v6130_v7 }
  0xd5   : > { %v1659_v22 = vrot.slane %v1657_v11, 2 }
  0xd6   : > { %v744_v23 = vpop.f32.mrf.mxu2 }
  0xd7   : > { %v909_v24 = vpop.f32.mrf.mxu3 }
  0xd8   : > { %v6807_v25 = vadd.f32 %v909_v24, %v744_v23  ;;  %v702_v16 = vpop.f32.mrf.mxu0  ;;  %v973_v24 = vrot.slane %v6642_v26, 1  ;;  %v6863_v26 = vld [vmem:[%s6519_s22 + $0x38] sm:$0xff] }
  0xd9   : > { %v1663_v46 = vshrl.u32 %v6863_v26, 16  ;;  %v1666_v47 = vshll.u32 %v6863_v26, 16 }
  0xda   : > { %v867_v30 = vpop.f32.mrf.mxu1  ;;  %v974_v58 = vsel %vm963_vm1, %v971_v52, %v973_v24 }
  0xdb   : > { %v6816_v34 = vadd.f32 %v867_v30, %v702_v16  ;;  %1085 = vmatmul.bf16.gmra.mxu2 %v970_v28  ;;  %1863 = vmatmul.bf16.gmra.mxu0 %v1643_v32  ;;  %v1358_v28 = vrot.slane %v6840_v4, 1  ;;  %v2011_v16 = vrot.slane %v6840_v4, 2 }
  0xdc   : > { %1470 = vmatmul.bf16.gmra.mxu3 %v1355_v29  ;;  %v1660_v29 = vor.u32 %v1659_v22, %v1656_v21  ;;  %v6889_v21 = vld [vmem:[%s6519_s22 + $0x40] sm:$0xff] }
  0xdd   : > { %2123 = vmatmul.bf16.gmra.mxu1 %v2008_v33  ;;  %v1359_v36 = vsel %vm963_vm1, %v1356_v53, %v1358_v28 }
  0xde   : > { %v747_v38 = vpop.f32.mrf.mxu2 }
  0xdf   : > { %v912_v39 = vpop.f32.mrf.mxu3 }
  0xe0   : > { %v6820_v43 = vadd.f32 %v912_v39, %v747_v38  ;;  %v704_v44 = vpop.f32.mrf.mxu0  ;;  %v1661_v39 = vsel %vm1608_vm2, %v1651_v55, %v1660_v29 }
  0xe2   : > { %v869_v45 = vpop.f32.mrf.mxu1 }
  0xe3   : > { %v6822_v48 = vadd.f32 %v869_v45, %v704_v44  ;;  %v2012_v44 = vsel %vm2001_vm3, %v2009_v56, %v2011_v16  ;;  %v1668_v56 = vrot.slane %v1666_v47, 2  ;;  %v2015_v47 = vrot.slane %v6889_v21, 2 }
  0xe6   : > { %v749_v60 = vpop.f32.mrf.mxu2 }
  0xe7   : > { %v914_v61 = vpop.f32.mrf.mxu3 }
  0xe8   : > { %v6833_v62 = vadd.f32 %v914_v61, %v749_v60  ;;  %v707_v40 = vpop.f32.mrf.mxu0  ;;  %v1665_v60 = vrot.slane %v1663_v46, 1 }
  0xea   : > { %v872_v20 = vpop.f32.mrf.mxu1 }
  0xeb   : > { %v6842_v5 = vadd.f32 %v872_v20, %v707_v40  ;;  %1090 = vmatmul.bf16.gmra.mxu2 %v972_v63  ;;  %1868 = vmatmul.bf16.gmra.mxu0 %v1652_v1  ;;  %v975_v63 = vrot.slane %v6660_v42, 1  ;;  %v1669_v40 = vor.u32 %v1668_v56, %v1665_v60  ;;  %v2013_v20 = vrot.slane %v6863_v26, 2 }
  0xec   : > { %1475 = vmatmul.bf16.gmra.mxu3 %v1357_v0  ;;  %v1360_v0 = vrot.slane %v6863_v26, 1  ;;  %v1362_v26 = vrot.slane %v6889_v21, 1 }
  0xed   : > { %2128 = vmatmul.bf16.gmra.mxu1 %v2010_v9  ;;  %v976_v11 = vsel %vm963_vm1, %v973_v24, %v975_v63  ;;  %v1672_v24 = vshrl.u32 %v6889_v21, 16  ;;  %v2016_v6 = vsel %vm2001_vm3, %v2013_v20, %v2015_v47 }
  0xee   : > { %v752_v12 = vpop.f32.mrf.mxu2  ;;  %v1361_v42 = vsel %vm963_vm1, %v1358_v28, %v1360_v0  ;;  %v1675_v28 = vshll.u32 %v6889_v21, 16  ;;  %v1363_v60 = vsel %vm963_vm1, %v1360_v0, %v1362_v26  ;;  %v979_v21 = vrot.slane %v6693_v8, 1  ;;  %v6932_v8 = vld [vmem:[%s6519_s22 + $0x50] sm:$0xff] }
  0xef   : > { %v917_v14 = vpop.f32.mrf.mxu3 }
  0xf0   : > { %v6849_v15 = vadd.f32 %v917_v14, %v752_v12  ;;  %v709_v18 = vpop.f32.mrf.mxu0 }
  0xf2   : > { %v874_v19 = vpop.f32.mrf.mxu1 }
  0xf3   : > { %v6851_v23 = vadd.f32 %v874_v19, %v709_v18  ;;  %v1670_v18 = vsel %vm1608_vm2, %v1660_v29, %v1669_v40  ;;  %v2014_v19 = vsel %vm2001_vm3, %v2011_v16, %v2013_v20  ;;  %v6138_v29 = vld [vmem:[%s9334_s1 + $0x220] sm:$0xff] }
  0xf4   : > { %3146 = vmatpush.bf16.msra.mxu0 %v6138_v29 }
  0xf6   : > { %v754_v30 = vpop.f32.mrf.mxu2 }
  0xf7   : > { %v919_v32 = vpop.f32.mrf.mxu3 }
  0xf8   : > { %v6856_v33 = vadd.f32 %v919_v32, %v754_v30  ;;  %v712_v37 = vpop.f32.mrf.mxu0 }
  0xfa   : > { %v877_v38 = vpop.f32.mrf.mxu1 }
  0xfb   : > { %v6865_v45 = vadd.f32 %v877_v38, %v712_v37  ;;  %1095 = vmatmul.bf16.gmra.mxu2 %v974_v58  ;;  %1873 = vmatmul.bf16.gmra.mxu0 %v1661_v39  ;;  %v1674_v37 = vrot.slane %v1672_v24, 1  ;;  %v1677_v38 = vrot.slane %v1675_v28, 2 }
  0xfc   : > { %1480 = vmatmul.bf16.gmra.mxu3 %v1359_v36 }
  0xfd   : > { %2133 = vmatmul.bf16.gmra.mxu1 %v2012_v44  ;;  %v977_v44 = vrot.slane %v6678_v57, 1  ;;  %v1678_v46 = vor.u32 %v1677_v38, %v1674_v37  ;;  %v6912_v57 = vld [vmem:[%s6519_s22 + $0x48] sm:$0xff] }
  0xfe   : > { %v757_v50 = vpop.f32.mrf.mxu2  ;;  %v1364_v24 = vrot.slane %v6912_v57, 1 }
  0xff   : > { %v922_v51 = vpop.f32.mrf.mxu3 }
 0x100   : > { %v6869_v52 = vadd.f32 %v922_v51, %v757_v50  ;;  %v714_v53 = vpop.f32.mrf.mxu0  ;;  %v1365_v37 = vsel %vm963_vm1, %v1362_v26, %v1364_v24  ;;  %v1693_v26 = vshll.u32 %v6932_v8, 16 }
 0x102   : > { %v879_v55 = vpop.f32.mrf.mxu1 }
 0x103   : > { %v6871_v61 = vadd.f32 %v879_v55, %v714_v53  ;;  %v978_v55 = vsel %vm963_vm1, %v975_v63, %v977_v44  ;;  %v1684_v63 = vshll.u32 %v6912_v57, 16 }
 0x105   : > { %v1686_v20 = vrot.slane %v1684_v63, 2  ;;  %v1695_v63 = vrot.slane %v1693_v26, 2 }
 0x106   : > { %v759_v1 = vpop.f32.mrf.mxu2 }
 0x107   : > { %v924_v9 = vpop.f32.mrf.mxu3 }
 0x108   : > { %v6876_v4 = vadd.f32 %v924_v9, %v759_v1  ;;  %v717_v12 = vpop.f32.mrf.mxu0  ;;  %v1679_v9 = vsel %vm1608_vm2, %v1669_v40, %v1678_v46 }
 0x10a   : > { %v882_v14 = vpop.f32.mrf.mxu1 }
 0x10b   : > { %v6891_v22 = vadd.f32 %v882_v14, %v717_v12  ;;  %1100 = vmatmul.bf16.gmra.mxu2 %v976_v11  ;;  %1878 = vmatmul.bf16.gmra.mxu0 %v1670_v18  ;;  %v1681_v11 = vshrl.u32 %v6912_v57, 16 }
 0x10c   : > { %1485 = vmatmul.bf16.gmra.mxu3 %v1361_v42 }
 0x10d   : > { %2138 = vmatmul.bf16.gmra.mxu1 %v2014_v19  ;;  %v1683_v18 = vrot.slane %v1681_v11, 1 }
 0x10e   : > { %v762_v30 = vpop.f32.mrf.mxu2 }
 0x10f   : > { %v927_v32 = vpop.f32.mrf.mxu3  ;;  %v1687_v28 = vor.u32 %v1686_v20, %v1683_v18  ;;  %v2019_v20 = vrot.slane %v6932_v8, 2 }
 0x110   : > { %v6895_v58 = vadd.f32 %v927_v32, %v762_v30  ;;  %v719_v16 = vpop.f32.mrf.mxu0  ;;  %v2017_v30 = vrot.slane %v6912_v57, 2 }
 0x112   : > { %v884_v36 = vpop.f32.mrf.mxu1 }
 0x113   : > { %v6900_v39 = vadd.f32 %v884_v36, %v719_v16  ;;  %v980_v36 = vsel %vm963_vm1, %v977_v44, %v979_v21  ;;  %v1690_v44 = vshrl.u32 %v6932_v8, 16 }
 0x115   : > { %v1692_v11 = vrot.slane %v1690_v44, 1  ;;  %v2020_v44 = vsel %vm2001_vm3, %v2017_v30, %v2019_v20 }
 0x116   : > { %v764_v50 = vpop.f32.mrf.mxu2 }
 0x117   : > { %v929_v51 = vpop.f32.mrf.mxu3  ;;  %v1696_v18 = vor.u32 %v1695_v63, %v1692_v11  ;;  %v6417_v63 = vld [vmem:[%s6519_s22 + $0x50] sm:$0xff] }
 0x118   : > { %v6905_v53 = vadd.f32 %v929_v51, %v764_v50  ;;  %v722_v56 = vpop.f32.mrf.mxu0  ;;  %v1688_v51 = vsel %vm1608_vm2, %v1678_v46, %v1687_v28  ;;  %v6129_v46 = vld [vmem:[%s9334_s1 + $0x1d8] sm:$0xff] }
 0x119   : > { %2887 = vmatpush.bf16.msra.mxu3 %v6129_v46 }
 0x11a   : > { %v887_v1 = vpop.f32.mrf.mxu1 }
 0x11b   : > { %v6914_v7 = vadd.f32 %v887_v1, %v722_v56  ;;  %1105 = vmatmul.bf16.gmra.mxu2 %v978_v55  ;;  %1883 = vmatmul.bf16.gmra.mxu0 %v1679_v9  ;;  %v2018_v55 = vsel %vm2001_vm3, %v2015_v47, %v2017_v30  ;;  %v6121_v56 = vld [vmem:[%s9334_s1 + $0x198] sm:$0xff] }
 0x11c   : > { %1490 = vmatmul.bf16.gmra.mxu3 %v1363_v60  ;;  %2494 = vmatpush.bf16.msra.mxu2 %v6121_v56 }
 0x11d   : > { %2143 = vmatmul.bf16.gmra.mxu1 %v2016_v6 }
 0x11e   : > { %v767_v42 = vpop.f32.mrf.mxu2 }
 0x11f   : > { %v932_v0 = vpop.f32.mrf.mxu3 }
 0x120   : > { %v6918_v12 = vadd.f32 %v932_v0, %v767_v42  ;;  %v724_v14 = vpop.f32.mrf.mxu0  ;;  %v6416_v0 = vld [vmem:[%s6519_s22 + $0x48] sm:$0xff] }
 0x122   : > { %v889_v40 = vpop.f32.mrf.mxu1 }
 0x123   : > { %v6920_v19 = vadd.f32 %v889_v40, %v724_v14  ;;  %v981_v14 = vrot.slane %v6416_v0, 1  ;;  %v1366_v40 = vrot.slane %v6932_v8, 1  ;;  %v6961_v8 = vld [vmem:[%s6519_s22 + $0x58] sm:$0xff]  ;;  %v983_v0 = vrot.slane %v6417_v63, 1 }
 0x124   : > { %v1699_v26 = vshrl.u32 %v6961_v8, 16  ;;  %v1702_v46 = vshll.u32 %v6961_v8, 16 }
 0x126   : > { %v769_v32 = vpop.f32.mrf.mxu2  ;;  %v1704_v30 = vrot.slane %v1702_v46, 2 }
 0x127   : > { %v934_v29 = vpop.f32.mrf.mxu3 }
 0x128   : > { %v6925_v16 = vadd.f32 %v934_v29, %v769_v32  ;;  %v727_v38 = vpop.f32.mrf.mxu0  ;;  %v6137_v32 = vld [vmem:[%s9334_s1 + $0x218] sm:$0xff] }
 0x129   : > { %3147 = vmatpush.bf16.msra.mxu0 %v6137_v32  ;;  %v1368_v32 = vrot.slane %v6961_v8, 1 }
 0x12a   : > { %v892_v50 = vpop.f32.mrf.mxu1 }
 0x12b   : > { %v6934_v60 = vadd.f32 %v892_v50, %v727_v38  ;;  %1110 = vmatmul.bf16.gmra.mxu2 %v980_v36  ;;  %1888 = vmatmul.bf16.gmra.mxu0 %v1688_v51  ;;  %v982_v38 = vsel %vm963_vm1, %v979_v21, %v981_v14  ;;  %v1367_v50 = vsel %vm963_vm1, %v1364_v24, %v1366_v40 }
 0x12c   : > { %1495 = vmatmul.bf16.gmra.mxu3 %v1365_v37 }
 0x12d   : > { %2148 = vmatmul.bf16.gmra.mxu1 %v2018_v55  ;;  %v1697_v55 = vsel %vm1608_vm2, %v1687_v28, %v1696_v18 }
 0x12e   : > { %v772_v47 = vpop.f32.mrf.mxu2 }
 0x12f   : > { %v937_v1 = vpop.f32.mrf.mxu3 }
 0x130   : > { %v6944_v9 = vadd.f32 %v937_v1, %v772_v47  ;;  %v729_v6 = vpop.f32.mrf.mxu0 }
 0x132   : > { %v894_v57 = vpop.f32.mrf.mxu1 }
 0x133   : > { %v6946_v42 = vadd.f32 %v894_v57, %v729_v6  ;;  %v1701_v57 = vrot.slane %v1699_v26, 1  ;;  %v1369_v26 = vsel %vm963_vm1, %v1366_v40, %v1368_v32 }
 0x136   : > { %v774_v29 = vpop.f32.mrf.mxu2 }
 0x137   : > { %v939_v36 = vpop.f32.mrf.mxu3 }
 0x138   : > { %v6954_v37 = vadd.f32 %v939_v36, %v774_v29  ;;  %v1854_v51 = vpop.f32.mrf.mxu0  ;;  %v1705_v36 = vor.u32 %v1704_v30, %v1701_v57 }
 0x13a   : > { %v2114_v56 = vpop.f32.mrf.mxu1 }
 0x13b   : > { %1115 = vmatmul.bf16.gmra.mxu2 %v982_v38  ;;  %1893 = vmatmul.bf16.gmra.mxu0 %v1697_v55  ;;  %v2021_v38 = vrot.slane %v6961_v8, 2 }
 0x13c   : > { %1500 = vmatmul.bf16.gmra.mxu3 %v1367_v50 }
 0x13d   : > { %2153 = vmatmul.bf16.gmra.mxu1 %v2020_v44  ;;  %v984_v44 = vsel %vm963_vm1, %v981_v14, %v983_v0 }
 0x13e   : > { %v1076_v21 = vpop.f32.mrf.mxu2 }
 0x13f   : > { %v1461_v47 = vpop.f32.mrf.mxu3  ;;  %v1166_v24 = vadd.f32 %v1076_v21, %v6743_v54  ;;  %v1706_v21 = vsel %vm1608_vm2, %v1696_v18, %v1705_v36 }
 0x140   : > { %v1856_v28 = vpop.f32.mrf.mxu0 }
 0x141   : > { %v1551_v1 = vadd.f32 %v1461_v47, %v1166_v24  ;;  %v2022_v24 = vsel %vm2001_vm3, %v2019_v20, %v2021_v38 }
 0x142   : > { %v2116_v6 = vpop.f32.mrf.mxu1 }
 0x143   : > { %v1944_v11 = vadd.f32 %v1854_v51, %v1551_v1 }
 0x145   : > { %v6968_v29 = vadd.f32 %v2114_v56, %v1944_v11  ;;  %v6977_v56 = vld [vmem:[%s6519_s22 + $0x60] sm:$0xff] }
 0x146   : > { %v1078_v50 = vpop.f32.mrf.mxu2  ;;  %v1711_v14 = vshll.u32 %v6977_v56, 16 }
 0x147   : > { %v1463_v55 = vpop.f32.mrf.mxu3  ;;  %v1167_v54 = vadd.f32 %v1078_v50, %v6753_v13  ;;  %v1708_v13 = vshrl.u32 %v6977_v56, 16 }
 0x148   : > { %v1859_v51 = vpop.f32.mrf.mxu0  ;;  %v1713_v50 = vrot.slane %v1711_v14, 2 }
 0x149   : > { %v1552_v46 = vadd.f32 %v1463_v55, %v1167_v54  ;;  %v1710_v63 = vrot.slane %v1708_v13, 1  ;;  %v6163_v55 = vld [vmem:[%s9338_s5 + $0x18] sm:$0xff] }
 0x14a   : > { %v2119_v47 = vpop.f32.mrf.mxu1  ;;  %5013 = vmatpush.bf16.msra.mxu1 %v6163_v55 }
 0x14b   : > { %1120 = vmatmul.bf16.gmra.mxu2 %v984_v44  ;;  %v1945_v8 = vadd.f32 %v1856_v28, %v1552_v46  ;;  %1898 = vmatmul.bf16.gmra.mxu0 %v1706_v21  ;;  %v6120_v28 = vld [vmem:[%s9334_s1 + $0x190] sm:$0xff]  ;;  %v1714_v21 = vor.u32 %v1713_v50, %v1710_v63 }
 0x14c   : > { %1505 = vmatmul.bf16.gmra.mxu3 %v1369_v26  ;;  %2495 = vmatpush.bf16.msra.mxu2 %v6120_v28  ;;  %v1370_v26 = vrot.slane %v6977_v56, 1 }
 0x14d   : > { %2158 = vmatmul.bf16.gmra.mxu1 %v2022_v24  ;;  %v6979_v1 = vadd.f32 %v2116_v6, %v1945_v8  ;;  %v6128_v6 = vld [vmem:[%s9334_s1 + $0x1d0] sm:$0xff]  ;;  %v2023_v24 = vrot.slane %v6977_v56, 2 }
 0x14e   : > { %v1081_v40 = vpop.f32.mrf.mxu2  ;;  %2888 = vmatpush.bf16.msra.mxu3 %v6128_v6  ;;  %v6136_v56 = vld [vmem:[%s9334_s1 + $0x210] sm:$0xff] }
 0x14f   : > { %v1466_v57 = vpop.f32.mrf.mxu3  ;;  %v1168_v18 = vadd.f32 %v1081_v40, %v6767_v35  ;;  %v6418_v35 = vld [vmem:[%s6519_s22 + $0x58] sm:$0xff]  ;;  %v2024_v6 = vsel %vm2001_vm3, %v2021_v38, %v2023_v24  ;;  %3148 = vmatpush.bf16.msra.mxu0 %v6136_v56 }
 0x150   : > { %v1861_v20 = vpop.f32.mrf.mxu0  ;;  %v985_v44 = vrot.slane %v6418_v35, 1 }
 0x151   : > { %v1553_v30 = vadd.f32 %v1466_v57, %v1168_v18 }
 0x152   : > { %v2121_v11 = vpop.f32.mrf.mxu1  ;;  %v986_v40 = vsel %vm963_vm1, %v983_v0, %v985_v44 }
 0x153   : > { %v1946_v54 = vadd.f32 %v1859_v51, %v1553_v30  ;;  %v1371_v51 = vsel %vm963_vm1, %v1368_v32, %v1370_v26  ;;  %v1715_v30 = vsel %vm1608_vm2, %v1705_v36, %v1714_v21 }
 0x155   : > { %v6995_v46 = vadd.f32 %v2119_v47, %v1946_v54  ;;  %v7004_v47 = vld [vmem:[%s6519_s22 + $0x68] sm:$0xff] }
 0x156   : > { %v1083_v8 = vpop.f32.mrf.mxu2  ;;  %v1717_v32 = vshrl.u32 %v7004_v47, 16  ;;  %v1720_v36 = vshll.u32 %v7004_v47, 16 }
 0x157   : > { %v1468_v13 = vpop.f32.mrf.mxu3  ;;  %v1169_v14 = vadd.f32 %v1083_v8, %v6779_v49 }
 0x158   : > { %v1864_v18 = vpop.f32.mrf.mxu0  ;;  %v1719_v8 = vrot.slane %v1717_v32, 1 }
 0x159   : > { %v1554_v57 = vadd.f32 %v1468_v13, %v1169_v14  ;;  %v1722_v13 = vrot.slane %v1720_v36, 2  ;;  %v6419_v14 = vld [vmem:[%s6519_s22 + $0x60] sm:$0xff] }
 0x15a   : > { %v2124_v28 = vpop.f32.mrf.mxu1 }
 0x15b   : > { %1125 = vmatmul.bf16.gmra.mxu2 %v986_v40  ;;  %v1947_v49 = vadd.f32 %v1861_v20, %v1554_v57  ;;  %1903 = vmatmul.bf16.gmra.mxu0 %v1715_v30  ;;  %v987_v40 = vrot.slane %v6419_v14, 1  ;;  %v1723_v57 = vor.u32 %v1722_v13, %v1719_v8  ;;  %v2025_v30 = vrot.slane %v7004_v47, 2 }
 0x15c   : > { %1510 = vmatmul.bf16.gmra.mxu3 %v1371_v51 }
 0x15d   : > { %2163 = vmatmul.bf16.gmra.mxu1 %v2024_v6  ;;  %v7009_v0 = vadd.f32 %v2121_v11, %v1947_v49  ;;  %v1372_v11 = vrot.slane %v7004_v47, 1  ;;  %v988_v49 = vsel %vm963_vm1, %v985_v44, %v987_v40 }
 0x15e   : > { %v1086_v38 = vpop.f32.mrf.mxu2 }
 0x15f   : > { %v1471_v63 = vpop.f32.mrf.mxu3  ;;  %v1170_v50 = vadd.f32 %v1086_v38, %v6796_v3  ;;  %v1373_v32 = vsel %vm963_vm1, %v1370_v26, %v1372_v11  ;;  %v1724_v38 = vsel %vm1608_vm2, %v1714_v21, %v1723_v57 }
 0x160   : > { %v1866_v54 = vpop.f32.mrf.mxu0 }
 0x161   : > { %v1555_v55 = vadd.f32 %v1471_v63, %v1170_v50  ;;  %v2026_v50 = vsel %vm2001_vm3, %v2023_v24, %v2025_v30 }
 0x162   : > { %v2126_v35 = vpop.f32.mrf.mxu1 }
 0x163   : > { %v1948_v20 = vadd.f32 %v1864_v18, %v1555_v55 }
 0x165   : > { %v7016_v51 = vadd.f32 %v2124_v28, %v1948_v20  ;;  %v7025_v28 = vld [vmem:[%s6519_s22 + $0x70] sm:$0xff] }
 0x166   : > { %v1088_v6 = vpop.f32.mrf.mxu2  ;;  %v1726_v44 = vshrl.u32 %v7025_v28, 16  ;;  %v1729_v26 = vshll.u32 %v7025_v28, 16 }
 0x167   : > { %v1473_v56 = vpop.f32.mrf.mxu3  ;;  %v1171_v3 = vadd.f32 %v1088_v6, %v6802_v17 }
 0x168   : > { %v1869_v18 = vpop.f32.mrf.mxu0  ;;  %v1728_v14 = vrot.slane %v1726_v44, 1  ;;  %v1731_v6 = vrot.slane %v1729_v26, 2 }
 0x169   : > { %v1556_v36 = vadd.f32 %v1473_v56, %v1171_v3 }
 0x16a   : > { %v2129_v63 = vpop.f32.mrf.mxu1 }
 0x16b   : > { %1130 = vmatmul.bf16.gmra.mxu2 %v988_v49  ;;  %v1949_v47 = vadd.f32 %v1866_v54, %v1556_v36  ;;  %1908 = vmatmul.bf16.gmra.mxu0 %v1724_v38  ;;  %v6119_v54 = vld [vmem:[%s9334_s1 + $0x188] sm:$0xff]  ;;  %v1374_v49 = vrot.slane %v7025_v28, 1  ;;  %v1732_v36 = vor.u32 %v1731_v6, %v1728_v14 }
 0x16c   : > { %1515 = vmatmul.bf16.gmra.mxu3 %v1373_v32  ;;  %2496 = vmatpush.bf16.msra.mxu2 %v6119_v54  ;;  %v6127_v38 = vld [vmem:[%s9334_s1 + $0x1c8] sm:$0xff] }
 0x16d   : > { %2168 = vmatmul.bf16.gmra.mxu1 %v2026_v50  ;;  %v7027_v17 = vadd.f32 %v2126_v35, %v1949_v47  ;;  %v6420_v35 = vld [vmem:[%s6519_s22 + $0x68] sm:$0xff]  ;;  %2889 = vmatpush.bf16.msra.mxu3 %v6127_v38  ;;  %v1375_v26 = vsel %vm963_vm1, %v1372_v11, %v1374_v49 }
 0x16e   : > { %v1091_v55 = vpop.f32.mrf.mxu2  ;;  %v989_v3 = vrot.slane %v6420_v35, 1 }
 0x16f   : > { %v1476_v8 = vpop.f32.mrf.mxu3  ;;  %v1172_v21 = vadd.f32 %v1091_v55, %v6816_v34  ;;  %v2027_v34 = vrot.slane %v7025_v28, 2 }
 0x170   : > { %v1871_v24 = vpop.f32.mrf.mxu0 }
 0x171   : > { %v1557_v13 = vadd.f32 %v1476_v8, %v1172_v21  ;;  %v2028_v28 = vsel %vm2001_vm3, %v2025_v30, %v2027_v34 }
 0x172   : > { %v2131_v20 = vpop.f32.mrf.mxu1 }
 0x173   : > { %v1950_v56 = vadd.f32 %v1869_v18, %v1557_v13  ;;  %v990_v18 = vsel %vm963_vm1, %v987_v40, %v989_v3  ;;  %v7049_v13 = vld [vmem:[%s6519_s22 + $0x78] sm:$0xff] }
 0x174   : > { %v1735_v40 = vshrl.u32 %v7049_v13, 16  ;;  %v1738_v11 = vshll.u32 %v7049_v13, 16 }
 0x175   : > { %v7037_v32 = vadd.f32 %v2129_v63, %v1950_v56  ;;  %v1733_v63 = vsel %vm1608_vm2, %v1723_v57, %v1732_v36  ;;  %v6135_v57 = vld [vmem:[%s9334_s1 + $0x208] sm:$0xff] }
 0x176   : > { %v1093_v50 = vpop.f32.mrf.mxu2  ;;  %3149 = vmatpush.bf16.msra.mxu0 %v6135_v57  ;;  %v1737_v38 = vrot.slane %v1735_v40, 1 }
 0x177   : > { %v1478_v47 = vpop.f32.mrf.mxu3  ;;  %v1173_v44 = vadd.f32 %v1093_v50, %v6822_v48  ;;  %v1740_v50 = vrot.slane %v1738_v11, 2 }
 0x178   : > { %v1874_v8 = vpop.f32.mrf.mxu0 }
 0x179   : > { %v1558_v55 = vadd.f32 %v1478_v47, %v1173_v44  ;;  %v6421_v47 = vld [vmem:[%s6519_s22 + $0x70] sm:$0xff] }
 0x17a   : > { %v2134_v21 = vpop.f32.mrf.mxu1  ;;  %v991_v44 = vrot.slane %v6421_v47, 1 }
 0x17b   : > { %1135 = vmatmul.bf16.gmra.mxu2 %v990_v18  ;;  %v1951_v14 = vadd.f32 %v1871_v24, %v1558_v55  ;;  %1913 = vmatmul.bf16.gmra.mxu0 %v1733_v63  ;;  %v1376_v18 = vrot.slane %v7049_v13, 1  ;;  %v1741_v55 = vor.u32 %v1740_v50, %v1737_v38  ;;  %v2029_v63 = vrot.slane %v7049_v13, 2 }
 0x17c   : > { %1520 = vmatmul.bf16.gmra.mxu3 %v1375_v26  ;;  %v992_v57 = vsel %vm963_vm1, %v989_v3, %v991_v44 }
 0x17d   : > { %2173 = vmatmul.bf16.gmra.mxu1 %v2028_v28  ;;  %v7051_v48 = vadd.f32 %v2131_v20, %v1951_v14  ;;  %v1377_v40 = vsel %vm963_vm1, %v1374_v49, %v1376_v18 }
 0x17e   : > { %v1096_v6 = vpop.f32.mrf.mxu2 }
 0x17f   : > { %v1481_v30 = vpop.f32.mrf.mxu3  ;;  %v1174_v54 = vadd.f32 %v1096_v6, %v6842_v5  ;;  %v1742_v6 = vsel %vm1608_vm2, %v1732_v36, %v1741_v55 }
 0x180   : > { %v1876_v24 = vpop.f32.mrf.mxu0 }
 0x181   : > { %v1559_v56 = vadd.f32 %v1481_v30, %v1174_v54  ;;  %v2030_v54 = vsel %vm2001_vm3, %v2027_v34, %v2029_v63 }
 0x182   : > { %v2136_v35 = vpop.f32.mrf.mxu1 }
 0x183   : > { %v1952_v20 = vadd.f32 %v1874_v8, %v1559_v56 }
 0x185   : > { %v7061_v26 = vadd.f32 %v2134_v21, %v1952_v20  ;;  %v7070_v21 = vld [vmem:[%s6519_s22 + $0x80] sm:$0xff] }
 0x186   : > { %v1098_v28 = vpop.f32.mrf.mxu2  ;;  %v1744_v3 = vshrl.u32 %v7070_v21, 16  ;;  %v1747_v49 = vshll.u32 %v7070_v21, 16 }
 0x187   : > { %v1483_v14 = vpop.f32.mrf.mxu3  ;;  %v1175_v5 = vadd.f32 %v1098_v28, %v6851_v23 }
 0x188   : > { %v1879_v8 = vpop.f32.mrf.mxu0  ;;  %v1746_v47 = vrot.slane %v1744_v3, 1  ;;  %v1749_v28 = vrot.slane %v1747_v49, 2 }
 0x189   : > { %v1560_v11 = vadd.f32 %v1483_v14, %v1175_v5  ;;  %v6422_v5 = vld [vmem:[%s6519_s22 + $0x78] sm:$0xff] }
 0x18a   : > { %v2139_v30 = vpop.f32.mrf.mxu1 }
 0x18b   : > { %1140 = vmatmul.bf16.gmra.mxu2 %v992_v57  ;;  %v1953_v13 = vadd.f32 %v1876_v24, %v1560_v11  ;;  %1918 = vmatmul.bf16.gmra.mxu0 %v1742_v6  ;;  %v993_v24 = vrot.slane %v6422_v5, 1  ;;  %v2031_v11 = vrot.slane %v7070_v21, 2 }
 0x18c   : > { %1525 = vmatmul.bf16.gmra.mxu3 %v1377_v40  ;;  %v1750_v40 = vor.u32 %v1749_v28, %v1746_v47 }
 0x18d   : > { %2178 = vmatmul.bf16.gmra.mxu1 %v2030_v54  ;;  %v7072_v23 = vadd.f32 %v2136_v35, %v1953_v13  ;;  %v1378_v35 = vrot.slane %v7070_v21, 1  ;;  %v994_v13 = vsel %vm963_vm1, %v991_v44, %v993_v24  ;;  %v6118_v21 = vld [vmem:[%s9334_s1 + $0x180] sm:$0xff] }
 0x18e   : > { %v1101_v56 = vpop.f32.mrf.mxu2  ;;  %2497 = vmatpush.bf16.msra.mxu2 %v6118_v21 }
 0x18f   : > { %v1486_v38 = vpop.f32.mrf.mxu3  ;;  %v1176_v36 = vadd.f32 %v1101_v56, %v6865_v45  ;;  %v1379_v3 = vsel %vm963_vm1, %v1376_v18, %v1378_v35  ;;  %v1751_v56 = vsel %vm1608_vm2, %v1741_v55, %v1750_v40  ;;  %v6162_v18 = vld [vmem:[%s9338_s5 + $0x10] sm:$0xff] }
 0x190   : > { %v1881_v34 = vpop.f32.mrf.mxu0  ;;  %5014 = vmatpush.bf16.msra.mxu1 %v6162_v18 }
 0x191   : > { %v1561_v50 = vadd.f32 %v1486_v38, %v1176_v36  ;;  %v2032_v36 = vsel %vm2001_vm3, %v2029_v63, %v2031_v11 }
 0x192   : > { %v2141_v20 = vpop.f32.mrf.mxu1 }
 0x193   : > { %v1954_v14 = vadd.f32 %v1879_v8, %v1561_v50 }
 0x195   : > { %v7079_v57 = vadd.f32 %v2139_v30, %v1954_v14  ;;  %v7088_v30 = vld [vmem:[%s6519_s22 + $0x88] sm:$0xff] }
 0x196   : > { %v1103_v6 = vpop.f32.mrf.mxu2  ;;  %v1753_v63 = vshrl.u32 %v7088_v30, 16  ;;  %v1756_v50 = vshll.u32 %v7088_v30, 16  ;;  %v2033_v21 = vrot.slane %v7088_v30, 2 }
 0x197   : > { %v1488_v54 = vpop.f32.mrf.mxu3  ;;  %v1177_v45 = vadd.f32 %v1103_v6, %v6871_v61  ;;  %v6126_v61 = vld [vmem:[%s9334_s1 + $0x1c0] sm:$0xff] }
 0x198   : > { %v1884_v8 = vpop.f32.mrf.mxu0  ;;  %2890 = vmatpush.bf16.msra.mxu3 %v6126_v61 }
 0x199   : > { %v1562_v49 = vadd.f32 %v1488_v54, %v1177_v45  ;;  %v1755_v54 = vrot.slane %v1753_v63, 1  ;;  %v1758_v45 = vrot.slane %v1756_v50, 2 }
 0x19a   : > { %v2144_v38 = vpop.f32.mrf.mxu1 }
 0x19b   : > { %1145 = vmatmul.bf16.gmra.mxu2 %v994_v13  ;;  %v1955_v44 = vadd.f32 %v1881_v34, %v1562_v49  ;;  %1923 = vmatmul.bf16.gmra.mxu0 %v1751_v56  ;;  %v1380_v56 = vrot.slane %v7088_v30, 1 }
 0x19c   : > { %1530 = vmatmul.bf16.gmra.mxu3 %v1379_v3  ;;  %v6423_v3 = vld [vmem:[%s6519_s22 + $0x80] sm:$0xff] }
 0x19d   : > { %2183 = vmatmul.bf16.gmra.mxu1 %v2032_v36  ;;  %v7099_v55 = vadd.f32 %v2141_v20, %v1955_v44  ;;  %v6134_v20 = vld [vmem:[%s9334_s1 + $0x200] sm:$0xff]  ;;  %v995_v49 = vrot.slane %v6423_v3, 1  ;;  %v1381_v50 = vsel %vm963_vm1, %v1378_v35, %v1380_v56 }
 0x19e   : > { %v1106_v47 = vpop.f32.mrf.mxu2  ;;  %3150 = vmatpush.bf16.msra.mxu0 %v6134_v20 }
 0x19f   : > { %v1491_v28 = vpop.f32.mrf.mxu3  ;;  %v1178_v34 = vadd.f32 %v1106_v47, %v6891_v22  ;;  %v1759_v22 = vor.u32 %v1758_v45, %v1755_v54  ;;  %v996_v63 = vsel %vm963_vm1, %v993_v24, %v995_v49 }
 0x1a0   : > { %v1886_v5 = vpop.f32.mrf.mxu0 }
 0x1a1   : > { %v1563_v14 = vadd.f32 %v1491_v28, %v1178_v34  ;;  %v1760_v28 = vsel %vm1608_vm2, %v1750_v40, %v1759_v22 }
 0x1a2   : > { %v7104_v6 = vpop.f32.mrf.mxu1 }
 0x1a3   : > { %v1956_v13 = vadd.f32 %v1884_v8, %v1563_v14  ;;  %v2034_v14 = vsel %vm2001_vm3, %v2031_v11, %v2033_v21 }
 0x1a5   : > { %v7111_v36 = vadd.f32 %v2144_v38, %v1956_v13  ;;  %v7120_v38 = vld [vmem:[%s6519_s22 + $0x90] sm:$0xff] }
 0x1a6   : > { %v1108_v61 = vpop.f32.mrf.mxu2  ;;  %v1765_v24 = vshll.u32 %v7120_v38, 16 }
 0x1a7   : > { %v1493_v44 = vpop.f32.mrf.mxu3  ;;  %v1179_v18 = vadd.f32 %v1108_v61, %v6900_v39  ;;  %v1762_v39 = vshrl.u32 %v7120_v38, 16  ;;  %v1587_v61 = vld [vmem:[%s6519_s22 + $0x98] sm:$0x3] }
 0x1a8   : > { %v1889_v47 = vpop.f32.mrf.mxu0  ;;  %v1767_v3 = vrot.slane %v1765_v24, 2 }
 0x1a9   : > { %v1564_v8 = vadd.f32 %v1493_v44, %v1179_v18  ;;  %v1764_v13 = vrot.slane %v1762_v39, 1 }
 0x1aa   : > { %v2149_v34 = vpop.f32.mrf.mxu1 }
 0x1ab   : > { %1150 = vmatmul.bf16.gmra.mxu2 %v996_v63  ;;  %v7122_v30 = vadd.f32 %v1886_v5, %v1564_v8  ;;  %1928 = vmatmul.bf16.gmra.mxu0 %v1760_v28  ;;  %v6424_v5 = vld [vmem:[%s6519_s22 + $0x88] sm:$0xff]  ;;  %v1382_v63 = vrot.slane %v7120_v38, 1  ;;  %v1768_v8 = vor.u32 %v1767_v3, %v1764_v13  ;;  %v2035_v28 = vrot.slane %v7120_v38, 2 }
 0x1ac   : > { %1535 = vmatmul.bf16.gmra.mxu3 %v1381_v50  ;;  %v997_v18 = vrot.slane %v6424_v5, 1 }
 0x1ad   : > { %2188 = vmatmul.bf16.gmra.mxu1 %v2034_v14  ;;  %v1606_v14 = vunpack.c.l.b16 %v1587_v61  ;;  %v1383_v24 = vsel %vm963_vm1, %v1380_v56, %v1382_v63 }
 0x1ae   : > { %v1111_v35 = vpop.f32.mrf.mxu2  ;;  %v998_v39 = vsel %vm963_vm1, %v995_v49, %v997_v18 }
 0x1af   : > { %v1496_v54 = vpop.f32.mrf.mxu3  ;;  %v1180_v40 = vadd.f32 %v1111_v35, %v6914_v7  ;;  %v1607_v13 = vpack.c.b16 %v1606_v14, %v1606_v14 }
 0x1b0   : > { %v1891_v11 = vpop.f32.mrf.mxu0 }
 0x1b1   : > { %v1565_v45 = vadd.f32 %v1496_v54, %v1180_v40  ;;  %v1771_v49 = vshrl.u32 %v1607_v13, 16  ;;  %v1774_v56 = vshll.u32 %v1607_v13, 16 }
 0x1b2   : > { %v7127_v20 = vpop.f32.mrf.mxu1 }
 0x1b3   : > { %9350 = vst [vmem:[#allocation2_spill] sm:$0xff] %v7127_v20  ;;  %v1958_v44 = vadd.f32 %v1889_v47, %v1565_v45  ;;  %v1769_v45 = vsel %vm1608_vm2, %v1759_v22, %v1768_v8  ;;  %v1773_v14 = vrot.slane %v1771_v49, 1 }
 0x1b5   : > { %v7132_v50 = vadd.f32 %v2149_v34, %v1958_v44  ;;  %v2036_v34 = vsel %vm2001_vm3, %v2033_v21, %v2035_v28  ;;  %v1238_v44 = vld [vmem:[%s6519_s22 + $0x98] sm:$0x1] }
 0x1b6   : > { %v1113_v7 = vpop.f32.mrf.mxu2 }
 0x1b7   : > { %v1498_v35 = vpop.f32.mrf.mxu3  ;;  %v1181_v54 = vadd.f32 %v1113_v7, %v6920_v19  ;;  %v1329_v19 = vunpack.c.l.b16 %v1238_v44 }
 0x1b8   : > { %v1894_v40 = vpop.f32.mrf.mxu0 }
 0x1b9   : > { %v1566_v47 = vadd.f32 %v1498_v35, %v1181_v54  ;;  %v1348_v7 = vpack.c.b16 %v1329_v19, %v1329_v19  ;;  %v2037_v19 = vrot.slane %v1607_v13, 2 }
 0x1ba   : > { %v2154_v5 = vpop.f32.mrf.mxu1 }
 0x1bb   : > { %1155 = vmatmul.bf16.gmra.mxu2 %v998_v39  ;;  %v7141_v38 = vadd.f32 %v1891_v11, %v1566_v47  ;;  %1933 = vmatmul.bf16.gmra.mxu0 %v1769_v45  ;;  %v1776_v39 = vrot.slane %v1774_v56, 2  ;;  %v2240_v11 = vld [vmem:[%s6519_s22 + $0x10] sm:$0xc]  ;;  %v999_v45 = vrot.slane %v6719_v31, 1 }
 0x1bc   : > { %1540 = vmatmul.bf16.gmra.mxu3 %v1383_v24  ;;  %v2241_v24 = vld [vmem:[%s6519_s22 + $0x14] sm:$0xf]  ;;  %v2331_v44 = vunpack.c.l.b16 %v2240_v11 }
 0x1bd   : > { %9351 = vst [vmem:[#allocation3_spill] sm:$0xff] %v7141_v38  ;;  %2193 = vmatmul.bf16.gmra.mxu1 %v2036_v34  ;;  %v1384_v34 = vrot.slane %v1348_v7, 1  ;;  %v2332_v20 = vunpack.c.l.b16 %v2241_v24  ;;  %v1000_v49 = vsel %vm963_vm1, %v997_v18, %v999_v45 }
 0x1be   : > { %v1116_v3 = vpop.f32.mrf.mxu2 }
 0x1bf   : > { %v1501_v61 = vpop.f32.mrf.mxu3  ;;  %v1182_v22 = vadd.f32 %v1116_v3, %v6934_v60  ;;  %v1777_v60 = vor.u32 %v1776_v39, %v1773_v14  ;;  %v1385_v56 = vsel %vm963_vm1, %v1382_v63, %v1384_v34  ;;  %v3018_v14 = vld [vmem:[%s6519_s22 + $0x10] sm:$0x8] }
 0x1c0   : > { %v1896_v21 = vpop.f32.mrf.mxu0  ;;  %v3037_v24 = vunpack.c.l.b16 %v3018_v14 }
 0x1c1   : > { %v1567_v35 = vadd.f32 %v1501_v61, %v1182_v22 }
 0x1c2   : > { %v7144_v54 = vpop.f32.mrf.mxu1 }
 0x1c3   : > { %9352 = vst [vmem:[#allocation4_spill] sm:$0xff] %v7144_v54  ;;  %v1960_v47 = vadd.f32 %v1894_v40, %v1567_v35  ;;  %v7155_v54 = vld [vmem:[%s6519_s22 + $0x18] sm:$0xff]  ;;  %v2368_v40 = vpack.c.b16 %v2332_v20, %v2331_v44  ;;  %v1778_v35 = vsel %vm1608_vm2, %v1768_v8, %v1777_v60 }
 0x1c4   : > { %v2656_v63 = vshrl.u32 %v7155_v54, 16  ;;  %v2659_v39 = vshll.u32 %v7155_v54, 16  ;;  %v3041_v14 = vrot.slane %v7155_v54, 3 }
 0x1c5   : > { %v7149_v38 = vadd.f32 %v2154_v5, %v1960_v47  ;;  %v2038_v5 = vsel %vm2001_vm3, %v2035_v28, %v2037_v19  ;;  %v2651_v18 = vshll.u32 %v2368_v40, 16 }
 0x1c6   : > { %v1118_v3 = vpop.f32.mrf.mxu2  ;;  %v2658_v44 = vrot.slane %v2656_v63, 2  ;;  %v2661_v60 = vrot.slane %v2659_v39, 3 }
 0x1c7   : > { %v1503_v61 = vpop.f32.mrf.mxu3  ;;  %v1183_v22 = vadd.f32 %v1118_v3, %v6946_v42  ;;  %v2648_v42 = vshrl.u32 %v2368_v40, 16  ;;  %v2653_v28 = vrot.slane %v2651_v18, 3 }
 0x1c8   : > { %v1899_v7 = vpop.f32.mrf.mxu0 }
 0x1c9   : > { %v1568_v31 = vadd.f32 %v1503_v61, %v1183_v22  ;;  %v2650_v34 = vrot.slane %v2648_v42, 2  ;;  %v3038_v61 = vpack.c.b16 %v2332_v20, %v3037_v24 }
 0x1ca   : > { %v2159_v11 = vpop.f32.mrf.mxu1 }
 0x1cb   : > { %1160 = vmatmul.bf16.gmra.mxu2 %v1000_v49  ;;  %v7160_v13 = vadd.f32 %v1896_v21, %v1568_v31  ;;  %1938 = vmatmul.bf16.gmra.mxu0 %v1778_v35  ;;  %v2387_v49 = vrot.slane %v2368_v40, 2  ;;  %v2654_v31 = vor.u32 %v2653_v28, %v2650_v34  ;;  %v2662_v35 = vor.u32 %v2661_v60, %v2658_v44  ;;  %v7175_v40 = vld [vmem:[%s6519_s22 + $0x20] sm:$0xff] }
 0x1cc   : > { %1545 = vmatmul.bf16.gmra.mxu3 %v1385_v56  ;;  %v2388_v56 = vrot.slane %v7155_v54, 2  ;;  %v2665_v54 = vshrl.u32 %v7175_v40, 16 }
 0x1cd   : > { %2198 = vmatmul.bf16.gmra.mxu1 %v2038_v5 }
 0x1ce   : > { %v1121_v47 = vpop.f32.mrf.mxu2  ;;  %v2389_v20 = vsel %vm2001_vm3, %v2387_v49, %v2388_v56  ;;  %v2667_v44 = vrot.slane %v2665_v54, 2 }
 0x1cf   : > { %v1506_v45 = vpop.f32.mrf.mxu3  ;;  %v1184_v8 = vadd.f32 %v1121_v47, %v6751_v2  ;;  %v3040_v2 = vrot.slane %v3038_v61, 3 }
 0x1d0   : > { %v1901_v21 = vpop.f32.mrf.mxu0 }
 0x1d1   : > { %v1569_v19 = vadd.f32 %v1506_v45, %v1184_v8 }
 0x1d2   : > { %v7165_v3 = vpop.f32.mrf.mxu1 }
 0x1d3   : > { %v1962_v22 = vadd.f32 %v1899_v7, %v1569_v19  ;;  %v2663_v7 = vsel %vm2646_vm4, %v2654_v31, %v2662_v35  ;;  %v2390_v31 = vrot.slane %v7175_v40, 2 }
 0x1d5   : > { %v7168_v5 = vadd.f32 %v2159_v11, %v1962_v22  ;;  %v3042_v11 = vsel %vm3039_vm5, %v3040_v2, %v3041_v14 }
 0x1d6   : > { %v1123_v42 = vpop.f32.mrf.mxu2 }
 0x1d7   : > { %v1508_v18 = vpop.f32.mrf.mxu3  ;;  %v1185_v63 = vadd.f32 %v1123_v42, %v6758_v27  ;;  %v2668_v27 = vshll.u32 %v7175_v40, 16 }
 0x1d8   : > { %v1904_v24 = vpop.f32.mrf.mxu0 }
 0x1d9   : > { %v1570_v39 = vadd.f32 %v1508_v18, %v1185_v63  ;;  %v2670_v60 = vrot.slane %v2668_v27, 3 }
 0x1da   : > { %v2164_v47 = vpop.f32.mrf.mxu1 }
 0x1db   : > { %2498 = vmatmul.bf16.vlgmr.msra.gmra.mxu2 %v2389_v20  ;;  %v7178_v45 = vadd.f32 %v1901_v21, %v1570_v39  ;;  %3151 = vmatmul.bf16.vlgmr.msra.gmra.mxu0 %v3042_v11  ;;  %v6161_v21 = vld [vmem:[%s9338_s5 + $0x8] sm:$0xff]  ;;  %v2671_v2 = vor.u32 %v2670_v60, %v2667_v44 }
 0x1dc   : > { %2891 = vmatmul.bf16.vlgmr.msra.gmra.mxu3 %v2663_v7  ;;  %5015 = vmatpush.bf16.msra.mxu1 %v6161_v21  ;;  %v2391_v7 = vsel %vm2001_vm3, %v2388_v56, %v2390_v31  ;;  %v7196_v11 = vld [vmem:[%s6519_s22 + $0x28] sm:$0xff] }
 0x1dd   : > { %v2672_v39 = vsel %vm2646_vm4, %v2662_v35, %v2671_v2 }
 0x1de   : > { %v1126_v8 = vpop.f32.mrf.mxu2 }
 0x1df   : > { %v1511_v34 = vpop.f32.mrf.mxu3  ;;  %v1186_v28 = vadd.f32 %v1126_v8, %v6771_v41  ;;  %v3043_v41 = vrot.slane %v7175_v40, 3  ;;  %v2674_v40 = vshrl.u32 %v7196_v11, 16 }
 0x1e0   : > { %v1906_v61 = vpop.f32.mrf.mxu0 }
 0x1e1   : > { %v1571_v19 = vadd.f32 %v1511_v34, %v1186_v28  ;;  %v3044_v27 = vsel %vm3039_vm5, %v3041_v14, %v3043_v41  ;;  %v2676_v28 = vrot.slane %v2674_v40, 2 }
 0x1e2   : > { %v7183_v22 = vpop.f32.mrf.mxu1 }
 0x1e3   : > { %v1964_v49 = vadd.f32 %v1904_v24, %v1571_v19 }
 0x1e5   : > { %v7189_v42 = vadd.f32 %v2164_v47, %v1964_v49 }
 0x1e6   : > { %v1128_v18 = vpop.f32.mrf.mxu2 }
 0x1e7   : > { %v1513_v63 = vpop.f32.mrf.mxu3  ;;  %v1187_v20 = vadd.f32 %v1128_v18, %v6784_v59  ;;  %v2677_v59 = vshll.u32 %v7196_v11, 16 }
 0x1e8   : > { %v1909_v24 = vpop.f32.mrf.mxu0 }
 0x1e9   : > { %v1572_v54 = vadd.f32 %v1513_v63, %v1187_v20  ;;  %v2679_v44 = vrot.slane %v2677_v59, 3  ;;  %v3045_v63 = vrot.slane %v7196_v11, 3 }
 0x1ea   : > { %v2169_v8 = vpop.f32.mrf.mxu1 }
 0x1eb   : > { %2503 = vmatmul.bf16.gmra.mxu2 %v2391_v7  ;;  %v7199_v47 = vadd.f32 %v1906_v61, %v1572_v54  ;;  %3156 = vmatmul.bf16.gmra.mxu0 %v3044_v27  ;;  %v2392_v61 = vrot.slane %v7196_v11, 2  ;;  %v2680_v49 = vor.u32 %v2679_v44, %v2676_v28  ;;  %v7214_v27 = vld [vmem:[%s6519_s22 + $0x30] sm:$0xff] }
 0x1ec   : > { %2896 = vmatmul.bf16.gmra.mxu3 %v2672_v39  ;;  %v2683_v11 = vshrl.u32 %v7214_v27, 16 }
 0x1ed   : > { %v2681_v54 = vsel %vm2646_vm4, %v2671_v2, %v2680_v49 }
 0x1ee   : > { %v1131_v34 = vpop.f32.mrf.mxu2 }
 0x1ef   : > { %v1516_v56 = vpop.f32.mrf.mxu3  ;;  %v1188_v35 = vadd.f32 %v1131_v34, %v6800_v10  ;;  %v2393_v10 = vsel %vm2001_vm3, %v2390_v31, %v2392_v61 }
 0x1f0   : > { %v1911_v19 = vpop.f32.mrf.mxu0 }
 0x1f1   : > { %v1573_v60 = vadd.f32 %v1516_v56, %v1188_v35  ;;  %v2685_v35 = vrot.slane %v2683_v11, 2  ;;  %v7232_v11 = vld [vmem:[%s6519_s22 + $0x38] sm:$0xff] }
 0x1f2   : > { %v7204_v14 = vpop.f32.mrf.mxu1 }
 0x1f3   : > { %v1966_v21 = vadd.f32 %v1909_v24, %v1573_v60  ;;  %v3046_v24 = vsel %vm3039_vm5, %v3043_v41, %v3045_v63 }
 0x1f5   : > { %v7207_v18 = vadd.f32 %v2169_v8, %v1966_v21 }
 0x1f6   : > { %v1133_v20 = vpop.f32.mrf.mxu2 }
 0x1f7   : > { %v1518_v7 = vpop.f32.mrf.mxu3  ;;  %v1189_v39 = vadd.f32 %v1133_v20, %v6807_v25  ;;  %v2686_v25 = vshll.u32 %v7214_v27, 16 }
 0x1f8   : > { %v1914_v59 = vpop.f32.mrf.mxu0 }
 0x1f9   : > { %v1574_v40 = vadd.f32 %v1518_v7, %v1189_v39  ;;  %v2688_v28 = vrot.slane %v2686_v25, 3  ;;  %v3047_v39 = vrot.slane %v7214_v27, 3 }
 0x1fa   : > { %v2174_v34 = vpop.f32.mrf.mxu1 }
 0x1fb   : > { %2508 = vmatmul.bf16.gmra.mxu2 %v2393_v10  ;;  %v7217_v8 = vadd.f32 %v1911_v19, %v1574_v40  ;;  %3161 = vmatmul.bf16.gmra.mxu0 %v3046_v24  ;;  %v2394_v19 = vrot.slane %v7214_v27, 2  ;;  %v2689_v20 = vor.u32 %v2688_v28, %v2685_v35  ;;  %v2692_v27 = vshrl.u32 %v7232_v11, 16 }
 0x1fc   : > { %2901 = vmatmul.bf16.gmra.mxu3 %v2681_v54 }
 0x1fd   : > { %v2690_v24 = vsel %vm2646_vm4, %v2680_v49, %v2689_v20  ;;  %v2694_v35 = vrot.slane %v2692_v27, 2 }
 0x1fe   : > { %v1136_v56 = vpop.f32.mrf.mxu2 }
 0x1ff   : > { %v1521_v31 = vpop.f32.mrf.mxu3  ;;  %v1190_v2 = vadd.f32 %v1136_v56, %v6820_v43  ;;  %v2395_v43 = vsel %vm2001_vm3, %v2392_v61, %v2394_v19 }
 0x200   : > { %v1916_v60 = vpop.f32.mrf.mxu0 }
 0x201   : > { %v1575_v44 = vadd.f32 %v1521_v31, %v1190_v2 }
 0x202   : > { %v7222_v41 = vpop.f32.mrf.mxu1 }
 0x203   : > { %v1968_v21 = vadd.f32 %v1914_v59, %v1575_v44  ;;  %v3048_v59 = vsel %vm3039_vm5, %v3045_v63, %v3047_v39 }
 0x205   : > { %v7225_v7 = vadd.f32 %v2174_v34, %v1968_v21 }
 0x206   : > { %v1138_v10 = vpop.f32.mrf.mxu2 }
 0x207   : > { %v1523_v54 = vpop.f32.mrf.mxu3  ;;  %v1191_v40 = vadd.f32 %v1138_v10, %v6833_v62  ;;  %v2695_v62 = vshll.u32 %v7232_v11, 16 }
 0x208   : > { %v1919_v56 = vpop.f32.mrf.mxu0 }
 0x209   : > { %v1576_v25 = vadd.f32 %v1523_v54, %v1191_v40  ;;  %v2697_v28 = vrot.slane %v2695_v62, 3  ;;  %v7250_v62 = vld [vmem:[%s6519_s22 + $0x40] sm:$0xff] }
 0x20a   : > { %v2179_v31 = vpop.f32.mrf.mxu1 }
 0x20b   : > { %2513 = vmatmul.bf16.gmra.mxu2 %v2395_v43  ;;  %v7235_v34 = vadd.f32 %v1916_v60, %v1576_v25  ;;  %3166 = vmatmul.bf16.gmra.mxu0 %v3048_v59  ;;  %v2396_v60 = vrot.slane %v7232_v11, 2  ;;  %v2698_v54 = vor.u32 %v2697_v28, %v2694_v35  ;;  %v3049_v43 = vrot.slane %v7232_v11, 3 }
 0x20c   : > { %2906 = vmatmul.bf16.gmra.mxu3 %v2690_v24  ;;  %v2701_v11 = vshrl.u32 %v7250_v62, 16 }
 0x20d   : > { %v2699_v27 = vsel %vm2646_vm4, %v2689_v20, %v2698_v54 }
 0x20e   : > { %v1141_v2 = vpop.f32.mrf.mxu2  ;;  %v2703_v28 = vrot.slane %v2701_v11, 2 }
 0x20f   : > { %v1526_v61 = vpop.f32.mrf.mxu3  ;;  %v1192_v49 = vadd.f32 %v1141_v2, %v6849_v15  ;;  %v2397_v15 = vsel %vm2001_vm3, %v2394_v19, %v2396_v60 }
 0x210   : > { %v1921_v21 = vpop.f32.mrf.mxu0 }
 0x211   : > { %v1577_v44 = vadd.f32 %v1526_v61, %v1192_v49 }
 0x212   : > { %v7240_v63 = vpop.f32.mrf.mxu1 }
 0x213   : > { %9353 = vst [vmem:[#allocation5_spill] sm:$0xff] %v7240_v63  ;;  %v1970_v10 = vadd.f32 %v1919_v56, %v1577_v44  ;;  %v3050_v56 = vsel %vm3039_vm5, %v3047_v39, %v3049_v43 }
 0x215   : > { %v7243_v40 = vadd.f32 %v2179_v31, %v1970_v10 }
 0x216   : > { %v1143_v24 = vpop.f32.mrf.mxu2 }
 0x217   : > { %v1528_v25 = vpop.f32.mrf.mxu3  ;;  %v1193_v59 = vadd.f32 %v1143_v24, %v6856_v33  ;;  %v2704_v33 = vshll.u32 %v7250_v62, 16 }
 0x218   : > { %v1924_v61 = vpop.f32.mrf.mxu0 }
 0x219   : > { %v1578_v2 = vadd.f32 %v1528_v25, %v1193_v59  ;;  %v2706_v44 = vrot.slane %v2704_v33, 3  ;;  %v7268_v33 = vld [vmem:[%s6519_s22 + $0x48] sm:$0xff] }
 0x21a   : > { %v2184_v49 = vpop.f32.mrf.mxu1 }
 0x21b   : > { %2518 = vmatmul.bf16.gmra.mxu2 %v2397_v15  ;;  %v7253_v31 = vadd.f32 %v1921_v21, %v1578_v2  ;;  %3171 = vmatmul.bf16.gmra.mxu0 %v3050_v56  ;;  %v2398_v21 = vrot.slane %v7250_v62, 2  ;;  %v2707_v59 = vor.u32 %v2706_v44, %v2703_v28 }
 0x21c   : > { %2911 = vmatmul.bf16.gmra.mxu3 %v2699_v27  ;;  %v3051_v27 = vrot.slane %v7250_v62, 3  ;;  %v6160_v62 = vld [vmem:[%s9338_s5] sm:$0xff] }
 0x21d   : > { %v2708_v11 = vsel %vm2646_vm4, %v2698_v54, %v2707_v59  ;;  %5016 = vmatpush.bf16.msra.mxu1 %v6160_v62 }
 0x21e   : > { %v1146_v35 = vpop.f32.mrf.mxu2 }
 0x21f   : > { %v1531_v19 = vpop.f32.mrf.mxu3  ;;  %v1194_v20 = vadd.f32 %v1146_v35, %v6869_v52  ;;  %v2399_v52 = vsel %vm2001_vm3, %v2396_v60, %v2398_v21  ;;  %v2713_v60 = vshll.u32 %v7268_v33, 16 }
 0x220   : > { %v1926_v24 = vpop.f32.mrf.mxu0 }
 0x221   : > { %v1579_v10 = vadd.f32 %v1531_v19, %v1194_v20  ;;  %v2715_v44 = vrot.slane %v2713_v60, 3  ;;  %v6108_v60 = vld [vmem:[%s6519_s22 + $0x50] sm:$0xff] }
 0x222   : > { %v7258_v39 = vpop.f32.mrf.mxu1 }
 0x223   : > { %v1972_v25 = vadd.f32 %v1924_v61, %v1579_v10  ;;  %v3052_v61 = vsel %vm3039_vm5, %v3049_v43, %v3051_v27 }
 0x225   : > { %v7261_v15 = vadd.f32 %v2184_v49, %v1972_v25 }
 0x226   : > { %v1148_v2 = vpop.f32.mrf.mxu2 }
 0x227   : > { %9354 = vst [vmem:[#allocation6_spill] sm:$0xff] %v7261_v15  ;;  %v1533_v56 = vpop.f32.mrf.mxu3  ;;  %v1195_v63 = vadd.f32 %v1148_v2, %v6876_v4  ;;  %v2710_v4 = vshrl.u32 %v7268_v33, 16 }
 0x228   : > { %v1929_v19 = vpop.f32.mrf.mxu0 }
 0x229   : > { %v1580_v35 = vadd.f32 %v1533_v56, %v1195_v63  ;;  %v2712_v43 = vrot.slane %v2710_v4, 2  ;;  %v2400_v56 = vrot.slane %v7268_v33, 2 }
 0x22a   : > { %v2189_v20 = vpop.f32.mrf.mxu1 }
 0x22b   : > { %2523 = vmatmul.bf16.gmra.mxu2 %v2399_v52  ;;  %v7271_v49 = vadd.f32 %v1926_v24, %v1580_v35  ;;  %3176 = vmatmul.bf16.gmra.mxu0 %v3052_v61  ;;  %v2716_v52 = vor.u32 %v2715_v44, %v2712_v43  ;;  %v3053_v35 = vrot.slane %v7268_v33, 3  ;;  %v2722_v33 = vshll.u32 %v6108_v60, 16 }
 0x22c   : > { %2916 = vmatmul.bf16.gmra.mxu3 %v2708_v11 }
 0x22d   : > { %v2717_v4 = vsel %vm2646_vm4, %v2707_v59, %v2716_v52  ;;  %v2724_v59 = vrot.slane %v2722_v33, 3 }
 0x22e   : > { %v1151_v54 = vpop.f32.mrf.mxu2 }
 0x22f   : > { %v1536_v63 = vpop.f32.mrf.mxu3  ;;  %v1196_v28 = vadd.f32 %v1151_v54, %v6895_v58  ;;  %v2401_v58 = vsel %vm2001_vm3, %v2398_v21, %v2400_v56 }
 0x230   : > { %v1931_v24 = vpop.f32.mrf.mxu0 }
 0x231   : > { %v1581_v10 = vadd.f32 %v1536_v63, %v1196_v28  ;;  %v3054_v63 = vsel %vm3039_vm5, %v3051_v27, %v3053_v35 }
 0x232   : > { %v7279_v2 = vpop.f32.mrf.mxu1 }
 0x233   : > { %v1974_v25 = vadd.f32 %v1929_v19, %v1581_v10  ;;  %9355 = vst [vmem:[#allocation7_spill] sm:$0xff] %v7279_v2 }
 0x235   : > { %v7282_v11 = vadd.f32 %v2189_v20, %v1974_v25  ;;  %v2719_v20 = vshrl.u32 %v6108_v60, 16 }
 0x236   : > { %v1153_v61 = vpop.f32.mrf.mxu2 }
 0x237   : > { %v1538_v62 = vpop.f32.mrf.mxu3  ;;  %v1197_v15 = vadd.f32 %v1153_v61, %v6905_v53  ;;  %v2721_v21 = vrot.slane %v2719_v20, 2  ;;  %v7301_v20 = vld [vmem:[%s6519_s22 + $0x58] sm:$0xff] }
 0x238   : > { %v1934_v19 = vpop.f32.mrf.mxu0 }
 0x239   : > { %v1582_v54 = vadd.f32 %v1538_v62, %v1197_v15  ;;  %v2402_v62 = vrot.slane %v6108_v60, 2  ;;  %v2725_v27 = vor.u32 %v2724_v59, %v2721_v21 }
 0x23a   : > { %v2194_v43 = vpop.f32.mrf.mxu1 }
 0x23b   : > { %2528 = vmatmul.bf16.gmra.mxu2 %v2401_v58  ;;  %v7290_v28 = vadd.f32 %v1931_v24, %v1582_v54  ;;  %3181 = vmatmul.bf16.gmra.mxu0 %v3054_v63  ;;  %v3055_v24 = vrot.slane %v6108_v60, 3  ;;  %v2403_v2 = vsel %vm2001_vm3, %v2400_v56, %v2402_v62  ;;  %v2728_v60 = vshrl.u32 %v7301_v20, 16 }
 0x23c   : > { %2921 = vmatmul.bf16.gmra.mxu3 %v2717_v4 }
 0x23d   : > { %9356 = vst [vmem:[#allocation8_spill] sm:$0xff] %v7290_v28  ;;  %v2726_v28 = vsel %vm2646_vm4, %v2716_v52, %v2725_v27 }
 0x23e   : > { %v1156_v44 = vpop.f32.mrf.mxu2 }
 0x23f   : > { %v1541_v10 = vpop.f32.mrf.mxu3  ;;  %v1198_v53 = vadd.f32 %v1156_v44, %v6918_v12 }
 0x240   : > { %v1936_v15 = vpop.f32.mrf.mxu0 }
 0x241   : > { %v1583_v25 = vadd.f32 %v1541_v10, %v1198_v53  ;;  %v2730_v53 = vrot.slane %v2728_v60, 2  ;;  %v7317_v60 = vld [vmem:[%s6519_s22 + $0x60] sm:$0xff] }
 0x242   : > { %v7298_v12 = vpop.f32.mrf.mxu1 }
 0x243   : > { %v1976_v61 = vadd.f32 %v1934_v19, %v1583_v25  ;;  %v3056_v19 = vsel %vm3039_vm5, %v3053_v35, %v3055_v24 }
 0x245   : > { %v7293_v58 = vadd.f32 %v2194_v43, %v1976_v61 }
 0x246   : > { %v1158_v4 = vpop.f32.mrf.mxu2 }
 0x247   : > { %9357 = vst [vmem:[#allocation9_spill] sm:$0xff] %v7293_v58  ;;  %v1543_v54 = vpop.f32.mrf.mxu3  ;;  %v1199_v63 = vadd.f32 %v1158_v4, %v6925_v16  ;;  %v2731_v16 = vshll.u32 %v7301_v20, 16  ;;  %v3057_v4 = vrot.slane %v7301_v20, 3 }
 0x248   : > { %v1939_v44 = vpop.f32.mrf.mxu0 }
 0x249   : > { %v1584_v33 = vadd.f32 %v1543_v54, %v1199_v63  ;;  %v2733_v21 = vrot.slane %v2731_v16, 3 }
 0x24a   : > { %v2199_v61 = vpop.f32.mrf.mxu1 }
 0x24b   : > { %2533 = vmatmul.bf16.gmra.mxu2 %v2403_v2  ;;  %v7304_v43 = vadd.f32 %v1936_v15, %v1584_v33  ;;  %3186 = vmatmul.bf16.gmra.mxu0 %v3056_v19  ;;  %v2404_v2 = vrot.slane %v7301_v20, 2  ;;  %v2737_v20 = vshrl.u32 %v7317_v60, 16 }
 0x24c   : > { %2926 = vmatmul.bf16.gmra.mxu3 %v2726_v28  ;;  %v2734_v28 = vor.u32 %v2733_v21, %v2730_v53 }
 0x24e   : > { %v1161_v56 = vpop.f32.mrf.mxu2  ;;  %v2735_v19 = vsel %vm2646_vm4, %v2725_v27, %v2734_v28  ;;  %v2739_v27 = vrot.slane %v2737_v20, 2  ;;  %v3059_v20 = vrot.slane %v7317_v60, 3 }
 0x24f   : > { %v1546_v10 = vpop.f32.mrf.mxu3  ;;  %v1200_v52 = vadd.f32 %v1161_v56, %v6944_v9  ;;  %v2405_v9 = vsel %vm2001_vm3, %v2402_v62, %v2404_v2  ;;  %v3058_v56 = vsel %vm3039_vm5, %v3055_v24, %v3057_v4 }
 0x250   : > { %v1941_v25 = vpop.f32.mrf.mxu0 }
 0x251   : > { %v1585_v59 = vadd.f32 %v1546_v10, %v1200_v52  ;;  %v2740_v52 = vshll.u32 %v7317_v60, 16 }
 0x253   : > { %v1978_v35 = vadd.f32 %v1939_v44, %v1585_v59  ;;  %v2742_v24 = vrot.slane %v2740_v52, 3 }
 0x255   : > { %v7310_v15 = vadd.f32 %v2199_v61, %v1978_v35  ;;  %v5913_v61 = vld [vmem:[%s7329_s30 + $0x8] sm:$0xe]  ;;  %v6142_v35 = vld [vmem:[%s7329_s30 + $0x8] sm:$0xf0] }
 0x256   : > { %v1163_v54 = vpop.f32.mrf.mxu2 }
 0x257   : > { %9358 = vst [vmem:[#allocation10_spill] sm:$0xff] %v7310_v15  ;;  %v1548_v63 = vpop.f32.mrf.mxu3  ;;  %v1201_v33 = vadd.f32 %v1163_v54, %v6954_v37  ;;  %v6143_v54 = vld [vmem:[%s7329_s30 + $0x10] sm:$0xff] }
 0x258   : > { %v3152_v44 = vpop.f32.mrf.mxu0  ;;  %v4769_v52 = vshrl.u32 %v6143_v54, 16 }
 0x259   : > { %v1586_v16 = vadd.f32 %v1548_v63, %v1201_v33  ;;  %v5914_v63 = vor.u32 %v6142_v35, %v5913_v61 }
 0x25b   : > { %2538 = vmatmul.bf16.gmra.mxu2 %v2405_v9  ;;  %v7320_v10 = vadd.f32 %v1941_v25, %v1586_v16  ;;  %3191 = vmatmul.bf16.gmra.mxu0 %v3058_v56  ;;  %v7335_v25 = vld [vmem:[%s9335_s2] ss:$0 sm:$0xff]  ;;  %v2406_v9 = vrot.slane %v7317_v60, 2  ;;  %v4761_v16 = vshrl.u32 %v5914_v63, 16 }
 0x25c   : > { %2931 = vmatmul.bf16.gmra.mxu3 %v2735_v19  ;;  %v2743_v19 = vor.u32 %v2742_v24, %v2739_v27  ;;  %v4771_v27 = vrot.slane %v4769_v52, 1 }
 0x25d   : > { %v4763_v15 = vrot.slane %v4761_v16, 1  ;;  %v3060_v16 = vsel %vm3039_vm5, %v3057_v4, %v3059_v20 }
 0x25e   : > { %v2499_v37 = vpop.f32.mrf.mxu2  ;;  %v2744_v35 = vsel %vm2646_vm4, %v2734_v28, %v2743_v19 }
 0x25f   : > { %v2892_v53 = vpop.f32.mrf.mxu3  ;;  %v2589_v62 = vadd.f32 %v2499_v37, %v6968_v29  ;;  %v4764_v29 = vshll.u32 %v5914_v63, 16  ;;  %v4772_v37 = vshll.u32 %v6143_v54, 16  ;;  %v7351_v63 = vld [vmem:[%s6519_s22 + $0x68] sm:$0xff] }
 0x260   : > { %v3154_v59 = vpop.f32.mrf.mxu0  ;;  %v2749_v28 = vshll.u32 %v7351_v63, 16 }
 0x261   : > { %v2982_v21 = vadd.f32 %v2892_v53, %v2589_v62  ;;  %v4766_v58 = vrot.slane %v4764_v29, 2  ;;  %v4774_v24 = vrot.slane %v4772_v37, 2 }
 0x263   : > { %v3242_v33 = vadd.f32 %v3152_v44, %v2982_v21  ;;  %v2407_v21 = vsel %vm2001_vm3, %v2404_v2, %v2406_v9  ;;  %v4767_v60 = vor.u32 %v4766_v58, %v4763_v15  ;;  %v4775_v29 = vor.u32 %v4774_v24, %v4771_v27  ;;  %v6144_v27 = vld [vmem:[%s7329_s30 + $0x18] sm:$0xff] }
 0x264   : > { %v2746_v2 = vshrl.u32 %v7351_v63, 16 }
 0x265   : > { %v7342_v56 = vadd.f32 %v7335_v25, %v3242_v33  ;;  %v4776_v52 = vsel %vm1608_vm2, %v4767_v60, %v4775_v29  ;;  %v4778_v60 = vshrl.u32 %v6144_v27, 16 }
 0x266   : > { %v2501_v53 = vpop.f32.mrf.mxu2  ;;  %5999 = vmatmul.msk.bf16.vlgmr.msra.gmra.mxu1 %vm4954_vm6, %v4776_v52 }
 0x267   : > { %v2894_v62 = vpop.f32.mrf.mxu3  ;;  %v2590_v61 = vadd.f32 %v2501_v53, %v6979_v1  ;;  %v3318_v44 = vmul.f32 %v7342_v56, %v7342_v56  ;;  %v2748_v53 = vrot.slane %v2746_v2, 2  ;;  %v4780_v2 = vrot.slane %v4778_v60, 1 }
 0x268   : > { %v3157_v54 = vpop.f32.mrf.mxu0 }
 0x269   : > { %v2983_v33 = vadd.f32 %v2894_v62, %v2590_v61  ;;  %3354 = vadd.xlane.f32.xlu0 %v3318_v44  ;;  %v2751_v62 = vrot.slane %v2749_v28, 3 }
 0x26b   : > { %v3243_v1 = vadd.f32 %v3154_v59, %v2983_v33  ;;  %2543 = vmatmul.bf16.gmra.mxu2 %v2407_v21  ;;  %3196 = vmatmul.bf16.gmra.mxu0 %v3060_v16  ;;  %v2408_v21 = vrot.slane %v7351_v63, 2  ;;  %v4781_v33 = vshll.u32 %v6144_v27, 16 }
 0x26c   : > { %2936 = vmatmul.bf16.gmra.mxu3 %v2744_v35  ;;  %v2752_v35 = vor.u32 %v2751_v62, %v2748_v53 }
 0x26d   : > { %v7359_v58 = vadd.f32 %v7335_v25, %v3243_v1  ;;  %v4783_v28 = vrot.slane %v4781_v33, 2 }
 0x26e   : > { %v2504_v15 = vpop.f32.mrf.mxu2 }
 0x26f   : > { %v2897_v4 = vpop.f32.mrf.mxu3  ;;  %v2591_v37 = vadd.f32 %v2504_v15, %v6995_v46  ;;  %v3319_v59 = vmul.f32 %v7359_v58, %v7359_v58  ;;  %v3061_v46 = vrot.slane %v7351_v63, 3  ;;  %v4784_v53 = vor.u32 %v4783_v28, %v4780_v2  ;;  %v6145_v28 = vld [vmem:[%s7329_s30 + $0x20] sm:$0xff] }
 0x270   : > { %v3159_v44 = vpop.f32.mrf.mxu0 }
 0x271   : > { %v2984_v61 = vadd.f32 %v2897_v4, %v2591_v37  ;;  %3356 = vadd.xlane.f32.xlu0 %v3319_v59  ;;  %v2753_v37 = vsel %vm2646_vm4, %v2743_v19, %v2752_v35  ;;  %v7376_v59 = vld [vmem:[%s6519_s22 + $0x70] sm:$0xff]  ;;  %v3062_v63 = vsel %vm3039_vm5, %v3059_v20, %v3061_v46  ;;  %v4785_v27 = vsel %vm1608_vm2, %v4775_v29, %v4784_v53 }
 0x273   : > { %v3244_v24 = vadd.f32 %v3157_v54, %v2984_v61  ;;  %v2409_v54 = vsel %vm2001_vm3, %v2406_v9, %v2408_v21  ;;  %v2758_v9 = vshll.u32 %v7376_v59, 16 }
 0x275   : > { %v7367_v16 = vadd.f32 %v7335_v25, %v3244_v24 }
 0x276   : > { %v2506_v1 = vpop.f32.mrf.mxu2  ;;  %6000 = vmatmul.msk.bf16.gmra.mxu1 %vm4954_vm6, %v4785_v27 }
 0x277   : > { %v2899_v52 = vpop.f32.mrf.mxu3  ;;  %v2592_v15 = vadd.f32 %v2506_v1, %v7009_v0  ;;  %v3320_v4 = vmul.f32 %v7367_v16, %v7367_v16  ;;  %v2755_v0 = vshrl.u32 %v7376_v59, 16  ;;  %v2760_v1 = vrot.slane %v2758_v9, 3 }
 0x278   : > { %v3162_v61 = vpop.f32.mrf.mxu0 }
 0x279   : > { %v2985_v62 = vadd.f32 %v2899_v52, %v2592_v15  ;;  %3358 = vadd.xlane.f32.xlu1 %v3320_v4  ;;  %v2410_v4 = vrot.slane %v7376_v59, 2 }
 0x27b   : > { %v3245_v24 = vadd.f32 %v3159_v44, %v2985_v62  ;;  %2548 = vmatmul.bf16.gmra.mxu2 %v2409_v54  ;;  %3201 = vmatmul.bf16.gmra.mxu0 %v3062_v63  ;;  %v2757_v44 = vrot.slane %v2755_v0, 2  ;;  %v4790_v62 = vshll.u32 %v6145_v28, 16 }
 0x27c   : > { %2941 = vmatmul.bf16.gmra.mxu3 %v2753_v37  ;;  %v4787_v37 = vshrl.u32 %v6145_v28, 16 }
 0x27d   : > { %v7384_v19 = vadd.f32 %v7335_v25, %v3245_v24  ;;  %v2761_v54 = vor.u32 %v2760_v1, %v2757_v44  ;;  %v4792_v9 = vrot.slane %v4790_v62, 2 }
 0x27e   : > { %v2509_v60 = vpop.f32.mrf.mxu2  ;;  %v4789_v0 = vrot.slane %v4787_v37, 1 }
 0x27f   : > { %v2902_v33 = vpop.f32.mrf.mxu3  ;;  %v2593_v20 = vadd.f32 %v2509_v60, %v7016_v51  ;;  %v3321_v29 = vmul.f32 %v7384_v19, %v7384_v19  ;;  %v3063_v51 = vrot.slane %v7376_v59, 3 }
 0x280   : > { %v3164_v2 = vpop.f32.mrf.mxu0  ;;  %v4793_v44 = vor.u32 %v4792_v9, %v4789_v0  ;;  %v6146_v9 = vld [vmem:[%s7329_s30 + $0x28] sm:$0xff] }
 0x281   : > { %v2986_v52 = vadd.f32 %v2902_v33, %v2593_v20  ;;  %3360 = vadd.xlane.f32.xlu1 %v3321_v29  ;;  %v2762_v20 = vsel %vm2646_vm4, %v2752_v35, %v2761_v54  ;;  %v7401_v29 = vld [vmem:[%s6519_s22 + $0x78] sm:$0xff]  ;;  %v3064_v59 = vsel %vm3039_vm5, %v3061_v46, %v3063_v51 }
 0x282   : > { %v4794_v28 = vsel %vm1608_vm2, %v4784_v53, %v4793_v44 }
 0x283   : > { %v3246_v15 = vadd.f32 %v3162_v61, %v2986_v52  ;;  %v2411_v61 = vsel %vm2001_vm3, %v2408_v21, %v2410_v4  ;;  %v2767_v21 = vshll.u32 %v7401_v29, 16 }
 0x285   : > { %v7392_v63 = vadd.f32 %v7335_v25, %v3246_v15 }
 0x286   : > { %v2511_v27 = vpop.f32.mrf.mxu2  ;;  %6001 = vmatmul.msk.bf16.gmra.mxu1 %vm4954_vm6, %v4794_v28 }
 0x287   : > { %v2904_v24 = vpop.f32.mrf.mxu3  ;;  %v2594_v60 = vadd.f32 %v2511_v27, %v7027_v17  ;;  %v3322_v33 = vmul.f32 %v7392_v63, %v7392_v63  ;;  %v2764_v17 = vshrl.u32 %v7401_v29, 16  ;;  %v2769_v27 = vrot.slane %v2767_v21, 3 }
 0x288   : > { %v3167_v52 = vpop.f32.mrf.mxu0 }
 0x289   : > { %v2987_v1 = vadd.f32 %v2904_v24, %v2594_v60  ;;  %3362 = vadd.xlane.f32.xlu2 %v3322_v33  ;;  %v2412_v33 = vrot.slane %v7401_v29, 2 }
 0x28b   : > { %v3247_v15 = vadd.f32 %v3164_v2, %v2987_v1  ;;  %2553 = vmatmul.bf16.gmra.mxu2 %v2411_v61  ;;  %3206 = vmatmul.bf16.gmra.mxu0 %v3064_v59  ;;  %v2766_v2 = vrot.slane %v2764_v17, 2  ;;  %v4799_v1 = vshll.u32 %v6146_v9, 16 }
 0x28c   : > { %2946 = vmatmul.bf16.gmra.mxu3 %v2762_v20  ;;  %v4796_v20 = vshrl.u32 %v6146_v9, 16 }
 0x28d   : > { %v7409_v35 = vadd.f32 %v7335_v25, %v3247_v15  ;;  %v2770_v61 = vor.u32 %v2769_v27, %v2766_v2  ;;  %v4801_v21 = vrot.slane %v4799_v1, 2 }
 0x28e   : > { %v2514_v37 = vpop.f32.mrf.mxu2  ;;  %v4798_v17 = vrot.slane %v4796_v20, 1 }
 0x28f   : > { %v2907_v62 = vpop.f32.mrf.mxu3  ;;  %v2595_v46 = vadd.f32 %v2514_v37, %v7037_v32  ;;  %v3323_v53 = vmul.f32 %v7409_v35, %v7409_v35  ;;  %v3065_v32 = vrot.slane %v7401_v29, 3 }
 0x290   : > { %v3169_v0 = vpop.f32.mrf.mxu0  ;;  %v4802_v2 = vor.u32 %v4801_v21, %v4798_v17  ;;  %v6147_v21 = vld [vmem:[%s7329_s30 + $0x30] sm:$0xff] }
 0x291   : > { %v2988_v24 = vadd.f32 %v2907_v62, %v2595_v46  ;;  %3364 = vadd.xlane.f32.xlu2 %v3323_v53  ;;  %v2771_v46 = vsel %vm2646_vm4, %v2761_v54, %v2770_v61  ;;  %v7426_v53 = vld [vmem:[%s6519_s22 + $0x80] sm:$0xff]  ;;  %v3066_v29 = vsel %vm3039_vm5, %v3063_v51, %v3065_v32 }
 0x292   : > { %v4803_v9 = vsel %vm1608_vm2, %v4793_v44, %v4802_v2 }
 0x293   : > { %v3248_v60 = vadd.f32 %v3167_v52, %v2988_v24  ;;  %v2413_v52 = vsel %vm2001_vm3, %v2410_v4, %v2412_v33  ;;  %v2776_v4 = vshll.u32 %v7426_v53, 16 }
 0x295   : > { %v7417_v59 = vadd.f32 %v7335_v25, %v3248_v60 }
 0x296   : > { %v2516_v28 = vpop.f32.mrf.mxu2  ;;  %6002 = vmatmul.msk.bf16.gmra.mxu1 %vm4954_vm6, %v4803_v9 }
 0x297   : > { %v2909_v15 = vpop.f32.mrf.mxu3  ;;  %v2596_v37 = vadd.f32 %v2516_v28, %v7051_v48  ;;  %v3324_v62 = vmul.f32 %v7417_v59, %v7417_v59  ;;  %v2773_v48 = vshrl.u32 %v7426_v53, 16  ;;  %v2778_v28 = vrot.slane %v2776_v4, 3 }
 0x298   : > { %v3172_v24 = vpop.f32.mrf.mxu0 }
 0x299   : > { %v2989_v27 = vadd.f32 %v2909_v15, %v2596_v37  ;;  %3366 = vadd.xlane.f32.xlu0 %v3324_v62  ;;  %v2414_v62 = vrot.slane %v7426_v53, 2 }
 0x29b   : > { %v3249_v60 = vadd.f32 %v3169_v0, %v2989_v27  ;;  %2558 = vmatmul.bf16.gmra.mxu2 %v2413_v52  ;;  %3211 = vmatmul.bf16.gmra.mxu0 %v3066_v29  ;;  %v2775_v0 = vrot.slane %v2773_v48, 2  ;;  %v4808_v27 = vshll.u32 %v6147_v21, 16 }
 0x29c   : > { %2951 = vmatmul.bf16.gmra.mxu3 %v2771_v46  ;;  %v4805_v46 = vshrl.u32 %v6147_v21, 16 }
 0x29d   : > { %v7434_v54 = vadd.f32 %v7335_v25, %v3249_v60  ;;  %v2779_v52 = vor.u32 %v2778_v28, %v2775_v0  ;;  %v4810_v4 = vrot.slane %v4808_v27, 2 }
 0x29e   : > { %v2519_v20 = vpop.f32.mrf.mxu2  ;;  %v4807_v48 = vrot.slane %v4805_v46, 1 }
 0x29f   : > { %v2912_v1 = vpop.f32.mrf.mxu3  ;;  %v2597_v51 = vadd.f32 %v2519_v20, %v7061_v26  ;;  %v3325_v44 = vmul.f32 %v7434_v54, %v7434_v54  ;;  %v3067_v26 = vrot.slane %v7426_v53, 3 }
 0x2a0   : > { %v3174_v17 = vpop.f32.mrf.mxu0  ;;  %v4811_v0 = vor.u32 %v4810_v4, %v4807_v48  ;;  %v6148_v4 = vld [vmem:[%s7329_s30 + $0x38] sm:$0xff] }
 0x2a1   : > { %v2990_v15 = vadd.f32 %v2912_v1, %v2597_v51  ;;  %3368 = vadd.xlane.f32.xlu1 %v3325_v44  ;;  %v2780_v51 = vsel %vm2646_vm4, %v2770_v61, %v2779_v52  ;;  %v7451_v44 = vld [vmem:[%s6519_s22 + $0x88] sm:$0xff]  ;;  %v3068_v53 = vsel %vm3039_vm5, %v3065_v32, %v3067_v26 }
 0x2a2   : > { %v4812_v21 = vsel %vm1608_vm2, %v4802_v2, %v4811_v0 }
 0x2a3   : > { %v3250_v37 = vadd.f32 %v3172_v24, %v2990_v15  ;;  %v2415_v24 = vsel %vm2001_vm3, %v2412_v33, %v2414_v62  ;;  %v2785_v33 = vshll.u32 %v7451_v44, 16 }
 0x2a5   : > { %v7442_v29 = vadd.f32 %v7335_v25, %v3250_v37 }
 0x2a6   : > { %v2521_v9 = vpop.f32.mrf.mxu2  ;;  %6003 = vmatmul.msk.bf16.gmra.mxu1 %vm4954_vm6, %v4812_v21 }
 0x2a7   : > { %v2914_v60 = vpop.f32.mrf.mxu3  ;;  %v2598_v20 = vadd.f32 %v2521_v9, %v7072_v23  ;;  %v3326_v1 = vmul.f32 %v7442_v29, %v7442_v29  ;;  %v2782_v23 = vshrl.u32 %v7451_v44, 16  ;;  %v2787_v9 = vrot.slane %v2785_v33, 3 }
 0x2a8   : > { %v3177_v15 = vpop.f32.mrf.mxu0 }
 0x2a9   : > { %v2991_v28 = vadd.f32 %v2914_v60, %v2598_v20  ;;  %3370 = vadd.xlane.f32.xlu2 %v3326_v1  ;;  %v2416_v1 = vrot.slane %v7451_v44, 2 }
 0x2ab   : > { %v3251_v37 = vadd.f32 %v3174_v17, %v2991_v28  ;;  %2563 = vmatmul.bf16.gmra.mxu2 %v2415_v24  ;;  %3216 = vmatmul.bf16.gmra.mxu0 %v3068_v53  ;;  %v2784_v17 = vrot.slane %v2782_v23, 2  ;;  %v4817_v28 = vshll.u32 %v6148_v4, 16 }
 0x2ac   : > { %2956 = vmatmul.bf16.gmra.mxu3 %v2780_v51  ;;  %v4814_v51 = vshrl.u32 %v6148_v4, 16 }
 0x2ad   : > { %v7459_v61 = vadd.f32 %v7335_v25, %v3251_v37  ;;  %v2788_v24 = vor.u32 %v2787_v9, %v2784_v17  ;;  %v4819_v33 = vrot.slane %v4817_v28, 2 }
 0x2ae   : > { %v2524_v46 = vpop.f32.mrf.mxu2  ;;  %v4816_v23 = vrot.slane %v4814_v51, 1 }
 0x2af   : > { %v2917_v27 = vpop.f32.mrf.mxu3  ;;  %v2599_v32 = vadd.f32 %v2524_v46, %v7079_v57  ;;  %v3327_v2 = vmul.f32 %v7459_v61, %v7459_v61  ;;  %v3069_v57 = vrot.slane %v7451_v44, 3 }
 0x2b0   : > { %v3179_v48 = vpop.f32.mrf.mxu0  ;;  %v4820_v17 = vor.u32 %v4819_v33, %v4816_v23  ;;  %v6149_v33 = vld [vmem:[%s7329_s30 + $0x40] sm:$0xff] }
 0x2b1   : > { %v2992_v60 = vadd.f32 %v2917_v27, %v2599_v32  ;;  %3372 = vadd.xlane.f32.xlu0 %v3327_v2  ;;  %v2789_v32 = vsel %vm2646_vm4, %v2779_v52, %v2788_v24  ;;  %v7476_v2 = vld [vmem:[%s6519_s22 + $0x90] sm:$0xff]  ;;  %v3070_v44 = vsel %vm3039_vm5, %v3067_v26, %v3069_v57 }
 0x2b2   : > { %v4821_v4 = vsel %vm1608_vm2, %v4811_v0, %v4820_v17 }
 0x2b3   : > { %v3252_v20 = vadd.f32 %v3177_v15, %v2992_v60  ;;  %v2417_v15 = vsel %vm2001_vm3, %v2414_v62, %v2416_v1  ;;  %v2794_v62 = vshll.u32 %v7476_v2, 16 }
 0x2b5   : > { %v7467_v53 = vadd.f32 %v7335_v25, %v3252_v20 }
 0x2b6   : > { %v2526_v21 = vpop.f32.mrf.mxu2  ;;  %6004 = vmatmul.msk.bf16.gmra.mxu1 %vm4954_vm6, %v4821_v4  ;;  %v4826_v4 = vshll.u32 %v6149_v33, 16 }
 0x2b7   : > { %v2919_v37 = vpop.f32.mrf.mxu3  ;;  %v2600_v46 = vadd.f32 %v2526_v21, %v7099_v55  ;;  %v3328_v27 = vmul.f32 %v7467_v53, %v7467_v53  ;;  %v2791_v55 = vshrl.u32 %v7476_v2, 16  ;;  %v2796_v21 = vrot.slane %v2794_v62, 3 }
 0x2b8   : > { %v3182_v60 = vpop.f32.mrf.mxu0 }
 0x2b9   : > { %v2993_v9 = vadd.f32 %v2919_v37, %v2600_v46  ;;  %3374 = vadd.xlane.f32.xlu1 %v3328_v27  ;;  %v2418_v27 = vrot.slane %v7476_v2, 2 }
 0x2bb   : > { %v3253_v20 = vadd.f32 %v3179_v48, %v2993_v9  ;;  %2568 = vmatmul.bf16.gmra.mxu2 %v2417_v15  ;;  %3221 = vmatmul.bf16.gmra.mxu0 %v3070_v44  ;;  %v2793_v48 = vrot.slane %v2791_v55, 2  ;;  %v2217_v9 = vadd.f32 %v7104_v6, %v7122_v30  ;;  %v3071_v44 = vrot.slane %v7476_v2, 3 }
 0x2bc   : > { %2961 = vmatmul.bf16.gmra.mxu3 %v2789_v32  ;;  %v4823_v32 = vshrl.u32 %v6149_v33, 16 }
 0x2bd   : > { %v7484_v52 = vadd.f32 %v7335_v25, %v3253_v20  ;;  %v2797_v15 = vor.u32 %v2796_v21, %v2793_v48  ;;  %v7502_v48 = vld [vmem:[%s6519_s22 + $0x98] sm:$0xff]  ;;  %v3072_v2 = vsel %vm3039_vm5, %v3069_v57, %v3071_v44 }
 0x2be   : > { %v2529_v51 = vpop.f32.mrf.mxu2  ;;  %v4825_v62 = vrot.slane %v4823_v32, 1 }
 0x2bf   : > { %v2922_v28 = vpop.f32.mrf.mxu3  ;;  %v2601_v26 = vadd.f32 %v2529_v51, %v7111_v36  ;;  %v3329_v0 = vmul.f32 %v7484_v52, %v7484_v52 }
 0x2c0   : > { %v3184_v23 = vpop.f32.mrf.mxu0 }
 0x2c1   : > { %v2994_v37 = vadd.f32 %v2922_v28, %v2601_v26  ;;  %3376 = vadd.xlane.f32.xlu2 %v3329_v0  ;;  %v4828_v28 = vrot.slane %v4826_v4, 2  ;;  %v2419_v26 = vsel %vm2001_vm3, %v2416_v1, %v2418_v27  ;;  %v2798_v0 = vsel %vm2646_vm4, %v2788_v24, %v2797_v15 }
 0x2c2   : > { %v2800_v1 = vshrl.u32 %v7502_v48, 16  ;;  %v2803_v24 = vshll.u32 %v7502_v48, 16 }
 0x2c3   : > { %v3254_v46 = vadd.f32 %v3182_v60, %v2994_v37  ;;  %v4829_v21 = vor.u32 %v4828_v28, %v4825_v62  ;;  %v2625_v62 = vld [vmem:[%s6519_s22 + $0xa0] sm:$0x7]  ;;  %v9342_v28 = vrot.slane %v7502_v48, 2 }
 0x2c4   : > { %v2802_v4 = vrot.slane %v2800_v1, 2 }
 0x2c5   : > { %v7494_v36 = vadd.f32 %v7335_v25, %v3254_v46  ;;  %v4830_v33 = vsel %vm1608_vm2, %v4820_v17, %v4829_v21  ;;  %v2805_v17 = vrot.slane %v2803_v24, 3  ;;  %v9341_v24 = vrot.slane %v7502_v48, 3 }
 0x2c6   : > { %v2531_v20 = vpop.f32.mrf.mxu2  ;;  %6005 = vmatmul.msk.bf16.gmra.mxu1 %vm4954_vm6, %v4830_v33 }
 0x2c7   : > { %v2924_v55 = vpop.f32.mrf.mxu3  ;;  %v2602_v51 = vadd.f32 %v2531_v20, %v2217_v9  ;;  %v3330_v60 = vmul.f32 %v7494_v36, %v7494_v36 }
 0x2c8   : > { %v3187_v30 = vpop.f32.mrf.mxu0 }
 0x2c9   : > { %v2995_v6 = vadd.f32 %v2924_v55, %v2602_v51  ;;  %3378 = vadd.xlane.f32.xlu0 %v3330_v60  ;;  %v6150_v51 = vld [vmem:[%s7329_s30 + $0x48] sm:$0xff] }
 0x2cb   : > { %v3255_v37 = vadd.f32 %v3184_v23, %v2995_v6  ;;  %2573 = vmatmul.bf16.gmra.mxu2 %v2419_v26  ;;  %3226 = vmatmul.bf16.gmra.mxu0 %v3072_v2  ;;  %v7518_v26 = vor.u32 %v2805_v17, %v2802_v4  ;;  %v4832_v6 = vshrl.u32 %v6150_v51, 16  ;;  %v4835_v2 = vshll.u32 %v6150_v51, 16 }
 0x2cc   : > { %2966 = vmatmul.bf16.gmra.mxu3 %v2798_v0  ;;  %v2644_v0 = vunpack.c.l.b16 %v2625_v62  ;;  %v2421_v17 = vsel %vm2001_vm3, %v2418_v27, %v9342_v28  ;;  %v2276_v62 = vld [vmem:[%s6519_s22 + $0xa0] sm:$0x3] }
 0x2cd   : > { %v7510_v46 = vadd.f32 %v7335_v25, %v3255_v37  ;;  %v9361_v37 = vld [vmem:[#allocation2_spill] sm:$0xff]  ;;  %v2367_v27 = vunpack.c.l.b16 %v2276_v62 }
 0x2ce   : > { %v2534_v32 = vpop.f32.mrf.mxu2  ;;  %v2645_v51 = vpack.c.b16 %v2644_v0, %v2644_v0 }
 0x2cf   : > { %9359 = vst [vmem:[#allocation11_spill] sm:$0xff] %v7510_v46  ;;  %v2927_v57 = vpop.f32.mrf.mxu3  ;;  %v2603_v23 = vadd.f32 %v2534_v32, %v7132_v50  ;;  %v3331_v9 = vmul.f32 %v7510_v46, %v7510_v46  ;;  %v9360_v50 = vld [vmem:[#allocation3_spill] sm:$0xff] }
 0x2d0   : > { %v3189_v55 = vpop.f32.mrf.mxu0  ;;  %v2219_v33 = vadd.f32 %v9361_v37, %v9360_v50  ;;  %v2812_v0 = vshll.u32 %v2645_v51, 16 }
 0x2d1   : > { %v2996_v20 = vadd.f32 %v2927_v57, %v2603_v23  ;;  %3380 = vadd.xlane.f32.xlu1 %v3331_v9  ;;  %v4834_v23 = vrot.slane %v4832_v6, 1  ;;  %v3074_v6 = vsel %vm3039_vm5, %v3071_v44, %v9341_v24  ;;  %v9364_v24 = vld [vmem:[#allocation4_spill] sm:$0xff] }
 0x2d2   : > { %v2221_v28 = vadd.f32 %v9364_v24, %v7160_v13 }
 0x2d3   : > { %v3256_v60 = vadd.f32 %v3187_v30, %v2996_v20  ;;  %v4837_v30 = vrot.slane %v4835_v2, 2  ;;  %v2807_v20 = vsel %vm2646_vm4, %v2797_v15, %v7518_v26  ;;  %v2809_v15 = vshrl.u32 %v2645_v51, 16 }
 0x2d5   : > { %v7523_v1 = vadd.f32 %v7335_v25, %v3256_v60  ;;  %v7534_v60 = vor.u32 %v4837_v30, %v4834_v23 }
 0x2d6   : > { %v2536_v32 = vpop.f32.mrf.mxu2 }
 0x2d7   : > { %9362 = vst [vmem:[#allocation3_spill] sm:$0xff] %v7523_v1  ;;  %v2929_v57 = vpop.f32.mrf.mxu3  ;;  %v2604_v9 = vadd.f32 %v2536_v32, %v2219_v33  ;;  %v3332_v4 = vmul.f32 %v7523_v1, %v7523_v1  ;;  %v4839_v2 = vsel %vm1608_vm2, %v4829_v21, %v7534_v60 }
 0x2d8   : > { %v3192_v37 = vpop.f32.mrf.mxu0  ;;  %6006 = vmatmul.msk.bf16.gmra.mxu1 %vm4954_vm6, %v4839_v2 }
 0x2d9   : > { %v2997_v50 = vadd.f32 %v2929_v57, %v2604_v9  ;;  %3382 = vadd.xlane.f32.xlu2 %v3332_v4  ;;  %v2811_v4 = vrot.slane %v2809_v15, 2 }
 0x2db   : > { %v3257_v33 = vadd.f32 %v3189_v55, %v2997_v50  ;;  %2578 = vmatmul.bf16.gmra.mxu2 %v2421_v17  ;;  %3231 = vmatmul.bf16.gmra.mxu0 %v3074_v6  ;;  %v2386_v55 = vpack.c.b16 %v2367_v27, %v2367_v27  ;;  %v2814_v17 = vrot.slane %v2812_v0, 3  ;;  %v6151_v27 = vld [vmem:[%s7329_s30 + $0x50] sm:$0xff] }
 0x2dc   : > { %2971 = vmatmul.bf16.gmra.mxu3 %v2807_v20  ;;  %v3355_v32 = vpop.xlane.xlu0 %3354 }
 0x2dd   : > { %v3426_v57 = vmax.f32 %v3355_v32, 1e-24  ;;  %v7543_v23 = vadd.f32 %v7335_v25, %v3257_v33  ;;  %v2422_v6 = vrot.slane %v2386_v55, 2  ;;  %v2815_v33 = vor.u32 %v2814_v17, %v2811_v4 }
 0x2de   : > { %v2539_v30 = vpop.f32.mrf.mxu2  ;;  %v4841_v4 = vshrl.u32 %v6151_v27, 16 }
 0x2df   : > { %9363 = vst [vmem:[#allocation2_spill] sm:$0xff] %v7543_v23  ;;  %v2932_v9 = vpop.f32.mrf.mxu3  ;;  %6200 = vrsqrt.f32 %v3426_v57  ;;  %v2605_v44 = vadd.f32 %v2539_v30, %v7149_v38  ;;  %v3333_v21 = vmul.f32 %v7543_v23, %v7543_v23  ;;  %v3075_v30 = vrot.slane %v2645_v51, 3  ;;  %v7567_v23 = vpop.f32.mrf.mxu1 }
 0x2e0   : > { %v3194_v62 = vpop.f32.mrf.mxu0  ;;  %v2816_v55 = vsel %vm2646_vm4, %v7518_v26, %v2815_v33  ;;  %v4844_v51 = vshll.u32 %v6151_v27, 16  ;;  %vm3468_vm8 = vweird.f32 %v3426_v57 }
 0x2e1   : > { %v2998_v20 = vadd.f32 %v2932_v9, %v2605_v44  ;;  %3384 = vadd.xlane.f32.xlu0 %v3333_v21  ;;  %v9366_v21 = vrot.slane %v7502_v48, 2 }
 0x2e3   : > { %v3258_v50 = vadd.f32 %v3192_v37, %v2998_v20  ;;  %v2423_v13 = vsel %vm2001_vm3, %v9366_v21, %v2422_v6 }
 0x2e4   : > { %v3357_v2 = vpop.xlane.xlu0 %3356 }
 0x2e5   : > { %v6201_v32 = vpop.eup %6200  ;;  %v7550_v1 = vmax.f32 %v3357_v2, 1e-24  ;;  %v7553_v38 = vadd.f32 %v7335_v25, %v3258_v50  ;;  %v9367_v50 = vrot.slane %v7502_v48, 3 }
 0x2e6   : > { %v3463_v15 = vmul.f32 %v6201_v32, %v3426_v57  ;;  %v2541_v0 = vpop.f32.mrf.mxu2  ;;  %vm3469_vm7 = vweird.f32 %v6201_v32 }
 0x2e7   : > { %9365 = vst [vmem:[#allocation4_spill] sm:$0xff] %v7553_v38  ;;  %v2934_v9 = vpop.f32.mrf.mxu3  ;;  %6202 = vrsqrt.f32 %v7550_v1  ;;  %v2606_v37 = vadd.f32 %v2541_v0, %v2221_v28  ;;  %v3334_v44 = vmul.f32 %v7553_v38, %v7553_v38  ;;  %v3076_v28 = vsel %vm3039_vm5, %v9367_v50, %v3075_v30  ;;  %vm3470_vm9 = vmor %vm3468_vm8, %vm3469_vm7 }
 0x2e8   : > { %v3464_v24 = vmul.f32 %v6201_v32, %v3463_v15  ;;  %v3197_v20 = vpop.f32.mrf.mxu0  ;;  %v4843_v0 = vrot.slane %v4841_v4, 1  ;;  %v4846_v38 = vrot.slane %v4844_v51, 2  ;;  %vm3478_vm11 = vweird.f32 %v7550_v1 }
 0x2e9   : > { %v2999_v17 = vadd.f32 %v2934_v9, %v2606_v37  ;;  %3386 = vadd.xlane.f32.xlu1 %v3334_v44 }
 0x2ea   : > { %v3465_v2 = vmul.f32 0.5, %v3464_v24  ;;  %v7569_v33 = vor.u32 %v4846_v38, %v4843_v0 }
 0x2eb   : > { %v3259_v46 = vadd.f32 %v3194_v62, %v2999_v17  ;;  %2583 = vmatmul.bf16.gmra.mxu2 %v2423_v13  ;;  %3236 = vmatmul.bf16.gmra.mxu0 %v3076_v28  ;;  %v7594_v17 = vpop.f32.mrf.mxu1 }
 0x2ec   : > { %2976 = vmatmul.bf16.gmra.mxu3 %v2816_v55  ;;  %v3466_v6 = vsub.f32 1.5, %v3465_v2  ;;  %v3359_v26 = vpop.xlane.xlu1 %3358  ;;  %v4848_v44 = vsel %vm1608_vm2, %v7534_v60, %v7569_v33 }
 0x2ed   : > { %v6203_v27 = vpop.eup %6202  ;;  %v7571_v15 = vmax.f32 %v3359_v26, 1e-24  ;;  %v7574_v48 = vadd.f32 %v7335_v25, %v3259_v46  ;;  %v7587_v46 = vld [vmem:[%s9336_s3] ss:$0 sm:$0xff]  ;;  %6007 = vmatmul.msk.bf16.gmra.mxu1 %vm4954_vm6, %v4848_v44 }
 0x2ee   : > { %v3467_v30 = vmul.f32 %v6201_v32, %v3466_v6  ;;  %v3473_v9 = vmul.f32 %v6203_v27, %v7550_v1  ;;  %v2544_v37 = vpop.f32.mrf.mxu2  ;;  %vm3479_vm10 = vweird.f32 %v6203_v27 }
 0x2ef   : > { %v2937_v62 = vpop.f32.mrf.mxu3  ;;  %6204 = vrsqrt.f32 %v7571_v15  ;;  %v2607_v38 = vadd.f32 %v2544_v37, %v7168_v5  ;;  %v3335_v21 = vmul.f32 %v7574_v48, %v7574_v48  ;;  %v6152_v37 = vld [vmem:[%s7329_s30 + $0x58] sm:$0xff]  ;;  %vm3480_vm12 = vmor %vm3478_vm11, %vm3479_vm10  ;;  %vm3488_vm14 = vweird.f32 %v7571_v15 }
 0x2f0   : > { %v3471_v57 = vsel %vm3470_vm9, %v6201_v32, %v3467_v30  ;;  %v3474_v13 = vmul.f32 %v6203_v27, %v3473_v9  ;;  %v3199_v60 = vpop.f32.mrf.mxu0  ;;  %v2223_v32 = vadd.f32 %v7165_v3, %v7178_v45 }
 0x2f1   : > { %v3000_v24 = vadd.f32 %v2937_v62, %v2607_v38  ;;  %3388 = vadd.xlane.f32.xlu2 %v3335_v21  ;;  %v3822_v55 = vmul.f32 %v3471_v57, %v7342_v56  ;;  %v4850_v38 = vshrl.u32 %v6152_v37, 16 }
 0x2f2   : > { %v3475_v4 = vmul.f32 0.5, %v3474_v13  ;;  %v4853_v13 = vshll.u32 %v6152_v37, 16 }
 0x2f3   : > { %v3260_v51 = vadd.f32 %v3197_v20, %v3000_v24  ;;  %v7592_v5 = vmul.f32 %v7587_v46, %v3822_v55  ;;  %v4852_v55 = vrot.slane %v4850_v38, 1 }
 0x2f4   : > { %v3476_v50 = vsub.f32 1.5, %v3475_v4  ;;  %v3361_v28 = vpop.xlane.xlu1 %3360 }
 0x2f5   : > { %v6205_v2 = vpop.eup %6204  ;;  %v7598_v0 = vmax.f32 %v3361_v28, 1e-24  ;;  %v7601_v6 = vadd.f32 %v7335_v25, %v3260_v51  ;;  %v5875_v56 = vmul.f32 -1.442695, %v7592_v5 }
 0x2f6   : > { %v3477_v20 = vmul.f32 %v6203_v27, %v3476_v50  ;;  %v3483_v26 = vmul.f32 %v6205_v2, %v7571_v15  ;;  %v2546_v30 = vpop.f32.mrf.mxu2  ;;  %v4855_v50 = vrot.slane %v4853_v13, 2  ;;  %vm3489_vm13 = vweird.f32 %v6205_v2 }
 0x2f7   : > { %9368 = vst [vmem:[#allocation12_spill] sm:$0xff] %v7601_v6  ;;  %v2939_v9 = vpop.f32.mrf.mxu3  ;;  %6206 = vrsqrt.f32 %v7598_v0  ;;  %v2608_v62 = vadd.f32 %v2546_v30, %v2223_v32  ;;  %v3336_v3 = vmul.f32 %v7601_v6, %v7601_v6  ;;  %vm3490_vm15 = vmor %vm3488_vm14, %vm3489_vm13  ;;  %vm3498_vm1 = vweird.f32 %v7598_v0 }
 0x2f8   : > { %v3481_v45 = vsel %vm3480_vm12, %v6203_v27, %v3477_v20  ;;  %v3484_v44 = vmul.f32 %v6205_v2, %v3483_v26  ;;  %6208 = vpow2.f32 %v5875_v56  ;;  %v3202_v1 = vpop.f32.mrf.mxu0  ;;  %v7620_v26 = vpop.f32.mrf.mxu1  ;;  %v7622_v30 = vor.u32 %v4855_v50, %v4852_v55 }
 0x2f9   : > { %v3823_v21 = vmul.f32 %v3481_v45, %v7359_v58  ;;  %v3001_v57 = vadd.f32 %v2939_v9, %v2608_v62  ;;  %3390 = vadd.xlane.f32.xlu0 %v3336_v3 }
 0x2fa   : > { %v3485_v24 = vmul.f32 0.5, %v3484_v44  ;;  %v4857_v55 = vsel %vm1608_vm2, %v7569_v33, %v7622_v30 }
 0x2fb   : > { %v3261_v4 = vadd.f32 %v3199_v60, %v3001_v57  ;;  %v7612_v51 = vmul.f32 %v7587_v46, %v3823_v21 }
 0x2fc   : > { %v3486_v28 = vsub.f32 1.5, %v3485_v24  ;;  %v3363_v32 = vpop.xlane.xlu2 %3362 }
 0x2fd   : > { %v6207_v27 = vpop.eup %6206  ;;  %v7614_v20 = vmax.f32 %v3363_v32, 1e-24  ;;  %v7617_v56 = vadd.f32 %v7335_v25, %v3261_v4  ;;  %v5876_v58 = vmul.f32 -1.442695, %v7612_v51  ;;  %6008 = vmatmul.msk.bf16.gmra.mxu1 %vm4954_vm6, %v4857_v55 }
 0x2fe   : > { %v6209_v60 = vpop.eup %6208  ;;  %v3487_v9 = vmul.f32 %v6205_v2, %v3486_v28  ;;  %v3493_v37 = vmul.f32 %v6207_v27, %v7598_v0  ;;  %v2549_v62 = vpop.f32.mrf.mxu2  ;;  %vm3499_vm0 = vweird.f32 %v6207_v27 }
 0x2ff   : > { %9369 = vst [vmem:[#allocation13_spill] sm:$0xff] %v7617_v56  ;;  %v2942_v3 = vpop.f32.mrf.mxu3  ;;  %6210 = vrsqrt.f32 %v7614_v20  ;;  %v2609_v45 = vadd.f32 %v2549_v62, %v7189_v42  ;;  %v3337_v44 = vmul.f32 %v7617_v56, %v7617_v56  ;;  %v7630_v57 = vadd.f32 1.0, %v6209_v60  ;;  %vm3500_vm3 = vmor %vm3498_vm1, %vm3499_vm0 }
 0x300   : > { %v3491_v38 = vsel %vm3490_vm15, %v6205_v2, %v3487_v9  ;;  %v3494_v21 = vmul.f32 %v6207_v27, %v3493_v37  ;;  %6212 = vpow2.f32 %v5876_v58  ;;  %v3204_v15 = vpop.f32.mrf.mxu0  ;;  %vm3508_vm4 = vweird.f32 %v7614_v20 }
 0x301   : > { %v3002_v13 = vadd.f32 %v2942_v3, %v2609_v45  ;;  %3392 = vadd.xlane.f32.xlu1 %v3337_v44  ;;  %v3824_v24 = vmul.f32 %v3491_v38, %v7367_v16  ;;  %6214 = vrcp.f32 %v7630_v57  ;;  %v2225_v16 = vadd.f32 %v7183_v22, %v7199_v47  ;;  %v7658_v47 = vld [vmem:[%s9339_s6] ss:$0 sm:$0xff]  ;;  %v7662_v45 = vpop.f32.mrf.mxu1 }
 0x302   : > { %v3495_v4 = vmul.f32 0.5, %v3494_v21  ;;  %vm4047_vm8 = vweird.f32 %v7630_v57  ;;  %v2227_v56 = vadd.f32 %v7204_v14, %v7217_v8 }
 0x303   : > { %v3262_v42 = vadd.f32 %v3202_v1, %v3002_v13  ;;  %v7639_v2 = vmul.f32 %v7587_v46, %v3824_v24 }
 0x304   : > { %v3496_v50 = vsub.f32 1.5, %v3495_v4  ;;  %v3365_v28 = vpop.xlane.xlu2 %3364 }
 0x305   : > { %v7641_v32 = vpop.eup %6210  ;;  %v7645_v58 = vmax.f32 %v3365_v28, 1e-24  ;;  %v7648_v33 = vadd.f32 %v7335_v25, %v3262_v42  ;;  %v5877_v60 = vmul.f32 -1.442695, %v7639_v2 }
 0x306   : > { %v6213_v9 = vpop.eup %6212  ;;  %v3497_v1 = vmul.f32 %v6207_v27, %v3496_v50  ;;  %v3503_v37 = vmul.f32 %v7641_v32, %v7614_v20  ;;  %v2551_v62 = vpop.f32.mrf.mxu2  ;;  %v4051_v50 = vand.u32 2147483647, %v7630_v57  ;;  %vm3509_vm5 = vweird.f32 %v7641_v32 }
 0x307   : > { %9370 = vst [vmem:[#allocation14_spill] sm:$0xff] %v7648_v33  ;;  %v2944_v3 = vpop.f32.mrf.mxu3  ;;  %6216 = vrsqrt.f32 %v7645_v58  ;;  %v2610_v22 = vadd.f32 %v2551_v62, %v2225_v16  ;;  %v3338_v25 = vmul.f32 %v7648_v33, %v7648_v33  ;;  %v6215_v0 = vpop.eup %6214  ;;  %v7665_v21 = vadd.f32 1.0, %v6213_v9  ;;  %vm7703_vm10 = vmor %vm3508_vm4, %vm3509_vm5 }
 0x308   : > { %v3501_v44 = vsel %vm3500_vm3, %v6207_v27, %v3497_v1  ;;  %v3504_v38 = vmul.f32 %v7641_v32, %v3503_v37  ;;  %6218 = vpow2.f32 %v5877_v60  ;;  %v4043_v55 = vmul.f32 %v6215_v0, %v7630_v57  ;;  %v3207_v4 = vpop.f32.mrf.mxu0 }
 0x309   : > { %v3825_v13 = vmul.f32 %v3501_v44, %v7384_v19  ;;  %v3003_v24 = vadd.f32 %v2944_v3, %v2610_v22  ;;  %3394 = vadd.xlane.f32.xlu2 %v3338_v25  ;;  %6220 = vrcp.f32 %v7665_v21  ;;  %v4053_v27 = vand.u32 2147483648, %v7630_v57  ;;  %v7686_v3 = vld [vmem:[%s9335_s2] ss:$0 sm:$0xff] }
 0x30a   : > { %v3505_v42 = vmul.f32 0.5, %v3504_v38  ;;  %v4044_v16 = vsub.f32 1.0, %v4043_v55  ;;  %v5019_v9 = vadd.f32 %v7658_v47, %v7594_v17  ;;  %vm4048_vm7 = vweird.f32 %v6215_v0 }
 0x30b   : > { %v3263_v28 = vadd.f32 %v3204_v15, %v3003_v24  ;;  %v7677_v1 = vmul.f32 %v7587_v46, %v3825_v13  ;;  %vm7695_vm9 = vcmp.eq.f32.partialorder %v4051_v50, 8.507059e+37  ;;  %vm4049_vm11 = vmor %vm4047_vm8, %vm4048_vm7  ;;  %vm3518_vm13 = vweird.f32 %v7645_v58 }
 0x30c   : > { %v3506_v60 = vsub.f32 1.5, %v3505_v42  ;;  %v3367_v19 = vpop.xlane.xlu0 %3366  ;;  %v4045_v62 = vmul.f32 %v6215_v0, %v4044_v16  ;;  %vm4062_vm14 = vweird.f32 %v7665_v21 }
 0x30d   : > { %v7679_v37 = vpop.eup %6216  ;;  %v7681_v15 = vmax.f32 %v3367_v19, 1e-24  ;;  %v7689_v17 = vadd.f32 %v7686_v3, %v3263_v28  ;;  %v4054_v28 = vor.u32 1.1754944e-38, %v4053_v27  ;;  %v5878_v19 = vmul.f32 -1.442695, %v7677_v1 }
 0x30e   : > { %v6219_v22 = vpop.eup %6218  ;;  %v3507_v25 = vmul.f32 %v7641_v32, %v3506_v60  ;;  %v3513_v44 = vmul.f32 %v7679_v37, %v7645_v58  ;;  %v2554_v13 = vpop.f32.mrf.mxu2  ;;  %v4046_v42 = vadd.f32 %v6215_v0, %v4045_v62  ;;  %vm3519_vm15 = vweird.f32 %v7679_v37 }
 0x30f   : > { %v2947_v24 = vpop.f32.mrf.mxu3  ;;  %6222 = vrsqrt.f32 %v7681_v15  ;;  %v2611_v57 = vadd.f32 %v2554_v13, %v7207_v18  ;;  %v6221_v50 = vpop.eup %6220  ;;  %v3339_v60 = vmul.f32 %v7689_v17, %v7689_v17  ;;  %v7714_v20 = vadd.f32 1.0, %v6219_v22  ;;  %vm7765_vm3 = vmor %vm3518_vm13, %vm3519_vm15 }
 0x310   : > { %v3514_v16 = vmul.f32 %v7679_v37, %v3513_v44  ;;  %v3511_v27 = vsel %vm7703_vm10, %v7641_v32, %v3507_v25  ;;  %v4050_v62 = vsel %vm4049_vm11, %v6215_v0, %v4046_v42  ;;  %v4058_v18 = vmul.f32 %v6221_v50, %v7665_v21  ;;  %v3209_v13 = vpop.f32.mrf.mxu0  ;;  %v7721_v44 = vpop.f32.mrf.mxu1 }
 0x311   : > { %v3004_v33 = vadd.f32 %v2947_v24, %v2611_v57  ;;  %v4055_v22 = vsel %vm7695_vm9, %v4054_v28, %v4050_v62  ;;  %3396 = vadd.xlane.f32.xlu0 %v3339_v60  ;;  %6224 = vrcp.f32 %v7714_v20  ;;  %v4066_v0 = vand.u32 2147483647, %v7665_v21 }
 0x312   : > { %v3515_v6 = vmul.f32 0.5, %v3514_v16  ;;  %v4582_v55 = vmul.f32 %v4055_v22, %v7592_v5  ;;  %v4059_v32 = vsub.f32 1.0, %v4058_v18  ;;  %v4068_v25 = vand.u32 2147483648, %v7665_v21 }
 0x313   : > { %v3264_v14 = vadd.f32 %v3207_v4, %v3004_v33  ;;  %6226 = vpow2.f32 %v5878_v19  ;;  %v3826_v38 = vmul.f32 %v3511_v27, %v7392_v63  ;;  %vm4063_vm12 = vweird.f32 %v6221_v50 }
 0x314   : > { %v3516_v24 = vsub.f32 1.5, %v3515_v6  ;;  %v3369_v8 = vpop.xlane.xlu1 %3368  ;;  %v5108_v5 = vadd.f32 %v5019_v9, %v4582_v55  ;;  %v4060_v28 = vmul.f32 %v6221_v50, %v4059_v32  ;;  %v5021_v33 = vadd.f32 %v7658_v47, %v7620_v26  ;;  %vm4064_vm0 = vmor %vm4062_vm14, %vm4063_vm12 }
 0x315   : > { %v7737_v42 = vpop.eup %6222  ;;  %v7739_v57 = vmax.f32 %v3369_v8, 1e-24  ;;  %v4069_v60 = vor.u32 1.1754944e-38, %v4068_v25  ;;  %v7753_v21 = vadd.f32 %v7686_v3, %v3264_v14  ;;  %v7756_v26 = vmul.f32 %v7587_v46, %v3826_v38 }
 0x316   : > { %v3523_v6 = vmul.f32 %v7737_v42, %v7681_v15  ;;  %v2556_v4 = vpop.f32.mrf.mxu2  ;;  %5144 = vst [vmem:[%s7734_s17] sm:$0xff] %v5108_v5  ;;  %v4061_v63 = vadd.f32 %v6221_v50, %v4060_v28  ;;  %v3517_v27 = vmul.f32 %v7679_v37, %v3516_v24  ;;  %vm4067_vm1 = vcmp.eq.f32.partialorder %v4066_v0, 8.507059e+37 }
 0x317   : > { %v2949_v16 = vpop.f32.mrf.mxu3  ;;  %6228 = vrsqrt.f32 %v7739_v57  ;;  %v2612_v9 = vadd.f32 %v2556_v4, %v2227_v56  ;;  %v6225_v19 = vpop.eup %6224  ;;  %v4081_v24 = vand.u32 2147483647, %v7714_v20  ;;  %v3340_v8 = vmul.f32 %v7753_v21, %v7753_v21 }
 0x318   : > { %v4065_v62 = vsel %vm4064_vm0, %v6221_v50, %v4061_v63  ;;  %v4073_v22 = vmul.f32 %v6225_v19, %v7714_v20  ;;  %v3212_v55 = vpop.f32.mrf.mxu0  ;;  %v3524_v32 = vmul.f32 %v7737_v42, %v3523_v6  ;;  %v4083_v38 = vand.u32 2147483648, %v7714_v20  ;;  %v7773_v28 = vpop.f32.mrf.mxu1 }
 0x319   : > { %v3005_v18 = vadd.f32 %v2949_v16, %v2612_v9  ;;  %v6227_v56 = vpop.eup %6226  ;;  %v4070_v25 = vsel %vm4067_vm1, %v4069_v60, %v4065_v62  ;;  %v3521_v6 = vsel %vm7765_vm3, %v7679_v37, %v3517_v27  ;;  %vm4078_vm4 = vweird.f32 %v6225_v19  ;;  %3398 = vadd.xlane.f32.xlu1 %v3340_v8 }
 0x31a   : > { %v4583_v50 = vmul.f32 %v4070_v25, %v7612_v51  ;;  %v4074_v0 = vsub.f32 1.0, %v4073_v22  ;;  %v7771_v5 = vadd.f32 1.0, %v6227_v56  ;;  %v5879_v16 = vmul.f32 -1.442695, %v7756_v26  ;;  %v6153_v25 = vld [vmem:[%s7329_s30 + $0x60] sm:$0xff] }
 0x31b   : > { %v3265_v4 = vadd.f32 %v3209_v13, %v3005_v18  ;;  %v3525_v62 = vmul.f32 0.5, %v3524_v32  ;;  %v5024_v13 = vadd.f32 %v7658_v47, %v7662_v45  ;;  %vm4077_vm5 = vweird.f32 %v7714_v20 }
 0x31c   : > { %v3371_v58 = vpop.xlane.xlu2 %3370  ;;  %v5109_v63 = vadd.f32 %v5021_v33, %v4583_v50  ;;  %v4075_v60 = vmul.f32 %v6225_v19, %v4074_v0  ;;  %6230 = vrcp.f32 %v7771_v5  ;;  %vm7790_vm7 = vcmp.eq.f32.partialorder %v4081_v24, 8.507059e+37  ;;  %vm4079_vm8 = vmor %vm4077_vm5, %vm4078_vm4 }
 0x31d   : > { %v7779_v51 = vpop.eup %6228  ;;  %v7781_v9 = vmax.f32 %v3371_v58, 1e-24  ;;  %v3827_v32 = vmul.f32 %v3521_v6, %v7409_v35  ;;  %v4084_v45 = vor.u32 1.1754944e-38, %v4083_v38  ;;  %v7801_v20 = vadd.f32 %v7686_v3, %v3265_v4 }
 0x31e   : > { %v3533_v37 = vmul.f32 %v7779_v51, %v7739_v57  ;;  %v2559_v27 = vpop.f32.mrf.mxu2  ;;  %5145 = vst [vmem:[%s7734_s17 + $0x8] sm:$0xff] %v5109_v63  ;;  %v4076_v22 = vadd.f32 %v6225_v19, %v4075_v60  ;;  %v3526_v0 = vsub.f32 1.5, %v3525_v62  ;;  %vm3528_vm9 = vweird.f32 %v7681_v15 }
 0x31f   : > { %v2952_v18 = vpop.f32.mrf.mxu3  ;;  %v2613_v56 = vadd.f32 %v2559_v27, %v7225_v7  ;;  %6232 = vrsqrt.f32 %v7781_v9  ;;  %v2229_v7 = vadd.f32 %v7222_v41, %v7235_v34  ;;  %v4859_v4 = vshrl.u32 %v6153_v25, 16 }
 0x320   : > { %v3534_v8 = vmul.f32 %v7779_v51, %v3533_v37  ;;  %v4080_v14 = vsel %vm4079_vm8, %v6225_v19, %v4076_v22  ;;  %v3214_v24 = vpop.f32.mrf.mxu0  ;;  %6234 = vpow2.f32 %v5879_v16  ;;  %v3341_v19 = vmul.f32 %v7801_v20, %v7801_v20 }
 0x321   : > { %v3006_v50 = vadd.f32 %v2952_v18, %v2613_v56  ;;  %v4085_v35 = vsel %vm7790_vm7, %v4084_v45, %v4080_v14  ;;  %vm3529_vm10 = vweird.f32 %v7737_v42  ;;  %v4862_v34 = vshll.u32 %v6153_v25, 16 }
 0x322   : > { %v6231_v6 = vpop.eup %6230  ;;  %v4584_v38 = vmul.f32 %v4085_v35, %v7639_v2  ;;  %v3535_v16 = vmul.f32 0.5, %v3534_v8  ;;  %3400 = vadd.xlane.f32.xlu2 %v3341_v19  ;;  %v7819_v2 = vmul.f32 %v7587_v46, %v3827_v32  ;;  %v3527_v18 = vmul.f32 %v7737_v42, %v3526_v0  ;;  %vm7840_vm13 = vmor %vm3528_vm9, %vm3529_vm10 }
 0x323   : > { %v3266_v58 = vadd.f32 %v3212_v55, %v3006_v50  ;;  %v4088_v63 = vmul.f32 %v6231_v6, %v7771_v5  ;;  %v7821_v55 = vpop.f32.mrf.mxu1  ;;  %v4096_v33 = vand.u32 2147483647, %v7771_v5  ;;  %v4861_v14 = vrot.slane %v4859_v4, 1 }
 0x324   : > { %v3373_v41 = vpop.xlane.xlu0 %3372  ;;  %v5110_v60 = vadd.f32 %v5024_v13, %v4584_v38  ;;  %v4098_v13 = vand.u32 2147483648, %v7771_v5  ;;  %v3536_v50 = vsub.f32 1.5, %v3535_v16  ;;  %vm4093_vm11 = vweird.f32 %v6231_v6 }
 0x325   : > { %v7813_v62 = vmax.f32 %v3373_v41, 1e-24  ;;  %v7816_v37 = vadd.f32 %v7686_v3, %v3266_v58  ;;  %v7823_v27 = vpop.eup %6232  ;;  %v4089_v22 = vsub.f32 1.0, %v4088_v63  ;;  %vm3539_vm12 = vweird.f32 %v7779_v51 }
 0x326   : > { %v2561_v56 = vpop.f32.mrf.mxu2  ;;  %v6235_v8 = vpop.eup %6234  ;;  %5146 = vst [vmem:[%s7734_s17 + $0x10] sm:$0xff] %v5110_v60  ;;  %v4864_v58 = vrot.slane %v4862_v34, 2  ;;  %v5880_v19 = vmul.f32 -1.442695, %v7819_v2  ;;  %v3543_v4 = vmul.f32 %v7823_v27, %v7781_v9  ;;  %vm4092_vm14 = vweird.f32 %v7771_v5 }
 0x327   : > { %v2954_v25 = vpop.f32.mrf.mxu3  ;;  %6236 = vrsqrt.f32 %v7813_v62  ;;  %v2614_v45 = vadd.f32 %v2561_v56, %v2229_v7  ;;  %v3342_v32 = vmul.f32 %v7816_v37, %v7816_v37  ;;  %v4090_v35 = vmul.f32 %v6231_v6, %v4089_v22  ;;  %vm4094_vm15 = vmor %vm4092_vm14, %vm4093_vm11 }
 0x328   : > { %v7832_v0 = vadd.f32 1.0, %v6235_v8  ;;  %v3531_v63 = vsel %vm7840_vm13, %v7737_v42, %v3527_v18  ;;  %v4099_v41 = vor.u32 1.1754944e-38, %v4098_v13  ;;  %v3217_v15 = vpop.f32.mrf.mxu0  ;;  %v7851_v60 = vor.u32 %v4864_v58, %v4861_v14  ;;  %v9383_v58 = vld [vmem:[#allocation5_spill] sm:$0xff] }
 0x329   : > { %v3007_v38 = vadd.f32 %v2954_v25, %v2614_v45  ;;  %3402 = vadd.xlane.f32.xlu0 %v3342_v32  ;;  %v4091_v16 = vadd.f32 %v6231_v6, %v4090_v35  ;;  %v3537_v22 = vmul.f32 %v7779_v51, %v3536_v50  ;;  %vm4097_vm0 = vcmp.eq.f32.partialorder %v4096_v33, 8.507059e+37 }
 0x32a   : > { %6238 = vrcp.f32 %v7832_v0  ;;  %v4866_v45 = vsel %vm1608_vm2, %v7622_v30, %v7851_v60  ;;  %vm3538_vm1 = vweird.f32 %v7739_v57  ;;  %v3544_v42 = vmul.f32 %v7823_v27, %v3543_v4 }
 0x32b   : > { %v3267_v34 = vadd.f32 %v3214_v24, %v3007_v38  ;;  %v4095_v56 = vsel %vm4094_vm15, %v6231_v6, %v4091_v16  ;;  %6240 = vpow2.f32 %v5880_v19  ;;  %v5026_v18 = vadd.f32 %v7658_v47, %v7721_v44  ;;  %6009 = vmatmul.msk.bf16.gmra.mxu1 %vm4954_vm6, %v4866_v45  ;;  %vm7867_vm3 = vmor %vm3538_vm1, %vm3539_vm12  ;;  %v7878_v32 = vpop.f32.mrf.mxu1 }
 0x32c   : > { %v3375_v25 = vpop.xlane.xlu1 %3374  ;;  %v4100_v5 = vsel %vm4097_vm0, %v4099_v41, %v4095_v56  ;;  %v3828_v44 = vmul.f32 %v3531_v63, %v7417_v59  ;;  %v3541_v50 = vsel %vm7867_vm3, %v7779_v51, %v3537_v22  ;;  %v7891_v59 = vadd.f32 %v7258_v39, %v7271_v49  ;;  %v6154_v63 = vld [vmem:[%s7329_s30 + $0x68] sm:$0xff] }
 0x32d   : > { %v7854_v8 = vpop.eup %6236  ;;  %v4585_v24 = vmul.f32 %v4100_v5, %v7677_v1  ;;  %v7871_v30 = vmax.f32 %v3375_v25, 1e-24  ;;  %v7875_v1 = vadd.f32 %v7686_v3, %v3267_v34  ;;  %v3545_v41 = vmul.f32 0.5, %v3544_v42 }
 0x32e   : > { %v2564_v6 = vpop.f32.mrf.mxu2  ;;  %v3553_v38 = vmul.f32 %v7854_v8, %v7813_v62  ;;  %v7897_v16 = vmul.f32 %v7587_v46, %v3828_v44  ;;  %v4113_v39 = vand.u32 2147483648, %v7832_v0  ;;  %v4111_v45 = vand.u32 2147483647, %v7832_v0 }
 0x32f   : > { %v2957_v33 = vpop.f32.mrf.mxu3  ;;  %v2615_v57 = vadd.f32 %v2564_v6, %v7243_v40  ;;  %v5111_v35 = vadd.f32 %v5026_v18, %v4585_v24  ;;  %v2231_v40 = vadd.f32 %v9383_v58, %v7253_v31  ;;  %6242 = vrsqrt.f32 %v7871_v30 }
 0x330   : > { %v6239_v14 = vpop.eup %6238  ;;  %v3343_v51 = vmul.f32 %v7875_v1, %v7875_v1  ;;  %v3829_v31 = vmul.f32 %v3541_v50, %v7434_v54  ;;  %v3554_v56 = vmul.f32 %v7854_v8, %v3553_v38  ;;  %v5881_v25 = vmul.f32 -1.442695, %v7897_v16  ;;  %v3219_v24 = vpop.f32.mrf.mxu0 }
 0x331   : > { %v4103_v19 = vmul.f32 %v6239_v14, %v7832_v0  ;;  %v6241_v7 = vpop.eup %6240  ;;  %5147 = vst [vmem:[%s7734_s17 + $0x18] sm:$0xff] %v5111_v35  ;;  %v3008_v4 = vadd.f32 %v2957_v33, %v2615_v57  ;;  %vm4108_vm4 = vweird.f32 %v6239_v14  ;;  %vm4107_vm5 = vweird.f32 %v7832_v0 }
 0x332   : > { %v7901_v22 = vadd.f32 1.0, %v6241_v7  ;;  %3404 = vadd.xlane.f32.xlu1 %v3343_v51  ;;  %v4868_v6 = vshrl.u32 %v6154_v63, 16  ;;  %v4871_v33 = vshll.u32 %v6154_v63, 16  ;;  %v7915_v50 = vmul.f32 %v7587_v46, %v3829_v31  ;;  %vm4109_vm7 = vmor %vm4107_vm5, %vm4108_vm4 }
 0x333   : > { %v4104_v34 = vsub.f32 1.0, %v4103_v19  ;;  %v3268_v49 = vadd.f32 %v3217_v15, %v3008_v4  ;;  %v3546_v35 = vsub.f32 1.5, %v3545_v41  ;;  %v3555_v38 = vmul.f32 0.5, %v3554_v56  ;;  %v7924_v4 = vpop.f32.mrf.mxu1 }
 0x334   : > { %6244 = vrcp.f32 %v7901_v22  ;;  %v3377_v54 = vpop.xlane.xlu2 %3376  ;;  %v4114_v0 = vor.u32 1.1754944e-38, %v4113_v39  ;;  %vm4112_vm8 = vcmp.eq.f32.partialorder %v4111_v45, 8.507059e+37  ;;  %v5029_v7 = vadd.f32 %v7658_v47, %v7773_v28 }
 0x335   : > { %v4105_v5 = vmul.f32 %v6239_v14, %v4104_v34  ;;  %6246 = vpow2.f32 %v5881_v25  ;;  %v7909_v13 = vpop.eup %6242  ;;  %v7912_v44 = vadd.f32 %v7686_v3, %v3268_v49  ;;  %vm3549_vm9 = vweird.f32 %v7823_v27 }
 0x336   : > { %v2566_v42 = vpop.f32.mrf.mxu2  ;;  %v3563_v58 = vmul.f32 %v7909_v13, %v7871_v30  ;;  %v4870_v56 = vrot.slane %v4868_v6, 1  ;;  %v5882_v39 = vmul.f32 -1.442695, %v7915_v50  ;;  %v7932_v28 = vmul.f32 %v7823_v27, %v3546_v35 }
 0x337   : > { %v2959_v18 = vpop.f32.mrf.mxu3  ;;  %v4106_v15 = vadd.f32 %v6239_v14, %v4105_v5  ;;  %v2616_v57 = vadd.f32 %v2566_v42, %v2231_v40  ;;  %v7922_v40 = vmax.f32 %v3377_v54, 1e-24  ;;  %v3344_v31 = vmul.f32 %v7912_v44, %v7912_v44 }
 0x338   : > { %v3556_v25 = vsub.f32 1.5, %v3555_v38  ;;  %v3564_v5 = vmul.f32 %v7909_v13, %v3563_v58  ;;  %vm3548_vm10 = vweird.f32 %v7781_v9  ;;  %vm3559_vm11 = vweird.f32 %v7854_v8 }
 0x339   : > { %v4110_v19 = vsel %vm4109_vm7, %v6239_v14, %v4106_v15  ;;  %v3009_v63 = vadd.f32 %v2959_v18, %v2616_v57  ;;  %v4873_v14 = vrot.slane %v4871_v33, 2  ;;  %3406 = vadd.xlane.f32.xlu2 %v3344_v31  ;;  %6248 = vrsqrt.f32 %v7922_v40  ;;  %vm7949_vm12 = vmor %vm3548_vm10, %vm3549_vm9 }
 0x33a   : > { %v4115_v51 = vsel %vm4112_vm8, %v4114_v0, %v4110_v19  ;;  %v6245_v41 = vpop.eup %6244  ;;  %6250 = vpow2.f32 %v5882_v39  ;;  %v4126_v15 = vand.u32 2147483647, %v7901_v22  ;;  %v4128_v57 = vand.u32 2147483648, %v7901_v22 }
 0x33b   : > { %v4586_v34 = vmul.f32 %v4115_v51, %v7756_v26  ;;  %v6247_v49 = vpop.eup %6246  ;;  %v4118_v45 = vmul.f32 %v6245_v41, %v7901_v22  ;;  %v7939_v26 = vor.u32 %v4873_v14, %v4870_v56  ;;  %v3269_v35 = vadd.f32 %v3219_v24, %v3009_v63  ;;  %v9388_v56 = vld [vmem:[#allocation6_spill] sm:$0xff] }
 0x33c   : > { %v7937_v42 = vadd.f32 1.0, %v6247_v49  ;;  %v3379_v38 = vpop.xlane.xlu0 %3378  ;;  %v3557_v9 = vmul.f32 %v7854_v8, %v3556_v25  ;;  %v3565_v58 = vmul.f32 0.5, %v3564_v5  ;;  %vm4123_vm13 = vweird.f32 %v6245_v41 }
 0x33d   : > { %v5112_v54 = vadd.f32 %v5029_v7, %v4586_v34  ;;  %v4119_v18 = vsub.f32 1.0, %v4118_v45  ;;  %v3222_v7 = vpop.f32.mrf.mxu0  ;;  %v3551_v24 = vsel %vm7949_vm12, %v7823_v27, %v7932_v28  ;;  %vm3558_vm14 = vweird.f32 %v7813_v62 }
 0x33e   : > { %v2569_v6 = vpop.f32.mrf.mxu2  ;;  %6252 = vrcp.f32 %v7937_v42  ;;  %v5031_v51 = vadd.f32 %v7658_v47, %v7821_v55  ;;  %v4875_v63 = vsel %vm1608_vm2, %v7851_v60, %v7939_v26  ;;  %vm7966_vm15 = vmor %vm3558_vm14, %vm3559_vm11  ;;  %vm4122_vm0 = vweird.f32 %v7901_v22  ;;  %v7984_v22 = vpop.f32.mrf.mxu1 }
 0x33f   : > { %v2962_v33 = vpop.f32.mrf.mxu3  ;;  %5148 = vst [vmem:[%s7734_s17 + $0x20] sm:$0xff] %v5112_v54  ;;  %v4120_v19 = vmul.f32 %v6245_v41, %v4119_v18  ;;  %v7973_v27 = vadd.f32 %v7658_v47, %v7878_v32  ;;  %6010 = vmatmul.msk.bf16.gmra.mxu1 %vm4954_vm6, %v4875_v63  ;;  %v7976_v62 = vmax.f32 %v3379_v38, 1e-24  ;;  %v7978_v55 = vpop.eup %6248  ;;  %vm4124_vm1 = vmor %vm4122_vm0, %vm4123_vm13  ;;  %vm4127_vm3 = vcmp.eq.f32.partialorder %v4126_v15, 8.507059e+37 }
 0x340   : > { %v4129_v60 = vor.u32 1.1754944e-38, %v4128_v57  ;;  %v2617_v14 = vadd.f32 %v2569_v6, %v9388_v56  ;;  %v7982_v39 = vadd.f32 %v7686_v3, %v3269_v35  ;;  %v6251_v49 = vpop.eup %6250  ;;  %v3561_v32 = vsel %vm7966_vm15, %v7854_v8, %v3557_v9  ;;  %v6155_v57 = vld [vmem:[%s7329_s30 + $0x70] sm:$0xff] }
 0x341   : > { %v4121_v34 = vadd.f32 %v6245_v41, %v4120_v19  ;;  %v3566_v28 = vsub.f32 1.5, %v3565_v58  ;;  %vm3569_vm4 = vweird.f32 %v7909_v13  ;;  %v7990_v18 = vadd.f32 1.0, %v6251_v49 }
 0x342   : > { %v3010_v54 = vadd.f32 %v2962_v33, %v2617_v14  ;;  %v3345_v6 = vmul.f32 %v7982_v39, %v7982_v39  ;;  %v3573_v38 = vmul.f32 %v7978_v55, %v7922_v40  ;;  %6254 = vrsqrt.f32 %v7976_v62 }
 0x343   : > { %v4125_v25 = vsel %vm4124_vm1, %v6245_v41, %v4121_v34  ;;  %v3831_v33 = vmul.f32 %v3561_v32, %v7459_v61  ;;  %v4141_v9 = vand.u32 2147483647, %v7937_v42  ;;  %v4143_v58 = vand.u32 2147483648, %v7937_v42 }
 0x344   : > { %v6253_v5 = vpop.eup %6252  ;;  %v4130_v45 = vsel %vm4127_vm3, %v4129_v60, %v4125_v25  ;;  %v3381_v15 = vpop.xlane.xlu1 %3380  ;;  %6256 = vrcp.f32 %v7990_v18  ;;  %3408 = vadd.xlane.f32.xlu0 %v3345_v6  ;;  %v3830_v31 = vmul.f32 %v3551_v24, %v7442_v29  ;;  %v3270_v34 = vadd.f32 %v3222_v7, %v3010_v54 }
 0x345   : > { %v4587_v35 = vmul.f32 %v4130_v45, %v7819_v2  ;;  %v4133_v8 = vmul.f32 %v6253_v5, %v7937_v42  ;;  %v8005_v2 = vmul.f32 %v7909_v13, %v3566_v28  ;;  %v8008_v60 = vmax.f32 %v3381_v15, 1e-24  ;;  %v3224_v32 = vpop.f32.mrf.mxu0 }
 0x346   : > { %v2571_v41 = vpop.f32.mrf.mxu2  ;;  %v4877_v56 = vshrl.u32 %v6155_v57, 16  ;;  %v4880_v14 = vshll.u32 %v6155_v57, 16  ;;  %v3574_v61 = vmul.f32 %v7978_v55, %v3573_v38  ;;  %vm4138_vm5 = vweird.f32 %v6253_v5  ;;  %v8020_v29 = vpop.f32.mrf.mxu1 }
 0x347   : > { %v2964_v0 = vpop.f32.mrf.mxu3  ;;  %v5113_v19 = vadd.f32 %v5031_v51, %v4587_v35  ;;  %v4134_v63 = vsub.f32 1.0, %v4133_v8  ;;  %v2618_v25 = vadd.f32 %v2571_v41, %v7891_v59  ;;  %vm3568_vm7 = vweird.f32 %v7871_v30 }
 0x348   : > { %vm4137_vm8 = vweird.f32 %v7937_v42  ;;  %vm8015_vm9 = vcmp.eq.f32.partialorder %v4141_v9, 8.507059e+37  ;;  %6258 = vrsqrt.f32 %v8008_v60  ;;  %v8022_v7 = vpop.eup %6254  ;;  %vm8026_vm10 = vmor %vm3568_vm7, %vm3569_vm4  ;;  %v4144_v30 = vor.u32 1.1754944e-38, %v4143_v58 }
 0x349   : > { %5149 = vst [vmem:[%s7734_s17 + $0x28] sm:$0xff] %v5113_v19  ;;  %v4135_v49 = vmul.f32 %v6253_v5, %v4134_v63  ;;  %v8031_v42 = vmul.f32 %v7587_v46, %v3830_v31  ;;  %v8034_v28 = vmul.f32 %v7587_v46, %v3831_v33  ;;  %vm4139_vm11 = vmor %vm4137_vm8, %vm4138_vm5  ;;  %v3011_v54 = vadd.f32 %v2964_v0, %v2618_v25 }
 0x34a   : > { %v6257_v45 = vpop.eup %6256  ;;  %v8038_v6 = vadd.f32 %v7686_v3, %v3270_v34  ;;  %v4879_v15 = vrot.slane %v4877_v56, 1  ;;  %v4882_v57 = vrot.slane %v4880_v14, 2  ;;  %v3571_v35 = vsel %vm8026_vm10, %v7909_v13, %v8005_v2 }
 0x34b   : > { %v4136_v59 = vadd.f32 %v6253_v5, %v4135_v49  ;;  %v3575_v38 = vmul.f32 0.5, %v3574_v61  ;;  %v4148_v41 = vmul.f32 %v6257_v45, %v7990_v18  ;;  %v3583_v0 = vmul.f32 %v8022_v7, %v7976_v62 }
 0x34c   : > { %v5883_v9 = vmul.f32 -1.442695, %v8031_v42  ;;  %v3346_v58 = vmul.f32 %v8038_v6, %v8038_v6  ;;  %v4158_v13 = vand.u32 2147483648, %v7990_v18  ;;  %v3271_v34 = vadd.f32 %v3224_v32, %v3011_v54  ;;  %v3383_v56 = vpop.xlane.xlu2 %3382 }
 0x34d   : > { %v4140_v8 = vsel %vm4139_vm11, %v6253_v5, %v4136_v59  ;;  %v4149_v63 = vsub.f32 1.0, %v4148_v41  ;;  %v8054_v5 = vor.u32 %v4882_v57, %v4879_v15  ;;  %v5884_v61 = vmul.f32 -1.442695, %v8034_v28 }
 0x34e   : > { %v2574_v46 = vpop.f32.mrf.mxu2  ;;  %v4145_v33 = vsel %vm8015_vm9, %v4144_v30, %v4140_v8  ;;  %v8056_v31 = vpop.eup %6258  ;;  %6260 = vpow2.f32 %v5883_v9  ;;  %3410 = vadd.xlane.f32.xlu1 %v3346_v58  ;;  %vm4153_vm12 = vweird.f32 %v6257_v45  ;;  %v4156_v25 = vand.u32 2147483647, %v7990_v18 }
 0x34f   : > { %v4588_v19 = vmul.f32 %v4145_v33, %v7897_v16  ;;  %v2967_v2 = vpop.f32.mrf.mxu3  ;;  %v2619_v14 = vadd.f32 %v2574_v46, %v7282_v11  ;;  %v4150_v16 = vmul.f32 %v6257_v45, %v4149_v63  ;;  %v3576_v51 = vsub.f32 1.5, %v3575_v38  ;;  %v8068_v59 = vpop.f32.mrf.mxu1 }
 0x350   : > { %vm4152_vm13 = vweird.f32 %v7990_v18  ;;  %v3593_v24 = vmul.f32 %v8056_v31, %v8008_v60  ;;  %v4884_v32 = vsel %vm1608_vm2, %v7939_v26, %v8054_v5  ;;  %v3227_v30 = vpop.f32.mrf.mxu0  ;;  %6262 = vpow2.f32 %v5884_v61 }
 0x351   : > { %v5114_v49 = vadd.f32 %v7973_v27, %v4588_v19  ;;  %v4151_v11 = vadd.f32 %v6257_v45, %v4150_v16  ;;  %6011 = vmatmul.msk.bf16.gmra.mxu1 %vm4954_vm6, %v4884_v32  ;;  %v8072_v27 = vmax.f32 %v3383_v56, 1e-24  ;;  %v3012_v54 = vadd.f32 %v2967_v2, %v2619_v14  ;;  %vm4154_vm14 = vmor %vm4152_vm13, %vm4153_vm12  ;;  %v6156_v19 = vld [vmem:[%s7329_s30 + $0x78] sm:$0xff]  ;;  %v9394_v56 = vld [vmem:[#allocation7_spill] sm:$0xff] }
 0x352   : > { %v3584_v18 = vmul.f32 %v8022_v7, %v3583_v0  ;;  %v4159_v15 = vor.u32 1.1754944e-38, %v4158_v13  ;;  %v8077_v57 = vadd.f32 %v7686_v3, %v3271_v34  ;;  %v3832_v26 = vmul.f32 %v3571_v35, %v7467_v53  ;;  %v8096_v13 = vld [vmem:[%s9336_s3] ss:$0 sm:$0xff]  ;;  %v9393_v34 = vld [vmem:[#allocation8_spill] sm:$0xff] }
 0x353   : > { %5150 = vst [vmem:[%s7734_s17 + $0x30] sm:$0xff] %v5114_v49  ;;  %vm3579_vm15 = vweird.f32 %v7978_v55  ;;  %v4155_v38 = vsel %vm4154_vm14, %v6257_v45, %v4151_v11  ;;  %vm4157_vm0 = vcmp.eq.f32.partialorder %v4156_v25, 8.507059e+37  ;;  %v5036_v8 = vadd.f32 %v7658_v47, %v7924_v4 }
 0x354   : > { %v6261_v46 = vpop.eup %6260  ;;  %v3577_v33 = vmul.f32 %v7978_v55, %v3576_v51  ;;  %v4160_v0 = vsel %vm4157_vm0, %v4159_v15, %v4155_v38  ;;  %v3594_v9 = vmul.f32 %v8056_v31, %v3593_v24  ;;  %v3347_v58 = vmul.f32 %v8077_v57, %v8077_v57  ;;  %v3385_v63 = vpop.xlane.xlu0 %3384 }
 0x355   : > { %v4589_v53 = vmul.f32 %v4160_v0, %v7915_v50  ;;  %v8089_v35 = vadd.f32 1.0, %v6261_v46  ;;  %6264 = vrsqrt.f32 %v8072_v27  ;;  %v3272_v45 = vadd.f32 %v3227_v30, %v3012_v54 }
 0x356   : > { %v2576_v41 = vpop.f32.mrf.mxu2  ;;  %vm3578_vm1 = vweird.f32 %v7922_v40  ;;  %v3585_v4 = vmul.f32 0.5, %v3584_v18  ;;  %3412 = vadd.xlane.f32.xlu2 %v3347_v58  ;;  %v8099_v2 = vmul.f32 %v8096_v13, %v3832_v26  ;;  %v6263_v50 = vpop.eup %6262  ;;  %v2235_v14 = vadd.f32 %v9394_v56, %v9393_v34 }
 0x357   : > { %vm8105_vm3 = vmor %vm3578_vm1, %vm3579_vm15  ;;  %v5115_v40 = vadd.f32 %v5036_v8, %v4589_v53  ;;  %6266 = vrcp.f32 %v8089_v35  ;;  %v2969_v49 = vpop.f32.mrf.mxu3  ;;  %v3595_v25 = vmul.f32 0.5, %v3594_v9  ;;  %v8113_v51 = vmax.f32 %v3385_v63, 1e-24  ;;  %v8130_v26 = vpop.f32.mrf.mxu1 }
 0x358   : > { %v3581_v16 = vsel %vm8105_vm3, %v7978_v55, %v3577_v33  ;;  %v4886_v24 = vshrl.u32 %v6156_v19, 16  ;;  %v8116_v32 = vadd.f32 1.0, %v6263_v50  ;;  %v2620_v11 = vadd.f32 %v2576_v41, %v2235_v14  ;;  %v3229_v41 = vpop.f32.mrf.mxu0 }
 0x359   : > { %5151 = vst [vmem:[%s7734_s17 + $0x38] sm:$0xff] %v5115_v40  ;;  %v5885_v30 = vmul.f32 -1.442695, %v8099_v2  ;;  %v8120_v54 = vadd.f32 %v7686_v3, %v3272_v45  ;;  %v8124_v18 = vadd.f32 %v7298_v12, %v7304_v43  ;;  %v8128_v55 = vadd.f32 %v7567_v23, %v7320_v10 }
 0x35a   : > { %v3586_v15 = vsub.f32 1.5, %v3585_v4  ;;  %v3833_v8 = vmul.f32 %v3581_v16, %v7484_v52  ;;  %vm3589_vm4 = vweird.f32 %v8022_v7  ;;  %6268 = vrcp.f32 %v8116_v32 }
 0x35b   : > { %v8132_v38 = vpop.eup %6264  ;;  %v4889_v46 = vshll.u32 %v6156_v19, 16  ;;  %v3596_v33 = vsub.f32 1.5, %v3595_v25  ;;  %v4171_v12 = vand.u32 2147483647, %v8089_v35  ;;  %6270 = vrsqrt.f32 %v8113_v51 }
 0x35c   : > { %v4888_v43 = vrot.slane %v4886_v24, 1  ;;  %v3387_v10 = vpop.xlane.xlu1 %3386  ;;  %vm3588_vm5 = vweird.f32 %v7976_v62  ;;  %v4173_v9 = vand.u32 2147483648, %v8089_v35  ;;  %v3013_v52 = vadd.f32 %v2969_v49, %v2620_v11 }
 0x35d   : > { %v6267_v0 = vpop.eup %6266  ;;  %6272 = vpow2.f32 %v5885_v30  ;;  %v3348_v58 = vmul.f32 %v8120_v54, %v8120_v54  ;;  %v8144_v19 = vmul.f32 %v8022_v7, %v3586_v15  ;;  %v8149_v45 = vadd.f32 %v7658_v47, %v7984_v22  ;;  %v9397_v47 = vld [vmem:[#allocation9_spill] sm:$0xff]  ;;  %vm8198_vm13 = vmor %vm3588_vm5, %vm3589_vm4 }
 0x35e   : > { %v2579_v23 = vpop.f32.mrf.mxu2  ;;  %v4163_v53 = vmul.f32 %v6267_v0, %v8089_v35  ;;  %v3603_v63 = vmul.f32 %v8132_v38, %v8072_v27  ;;  %vm3598_vm7 = vweird.f32 %v8008_v60  ;;  %vm3599_vm8 = vweird.f32 %v8056_v31 }
 0x35f   : > { %3414 = vadd.xlane.f32.xlu0 %v3348_v58  ;;  %v4891_v4 = vrot.slane %v4889_v46, 2  ;;  %v8155_v50 = vmax.f32 %v3387_v10, 1e-24  ;;  %v8158_v34 = vmul.f32 %v8096_v13, %v3833_v8  ;;  %v8161_v56 = vmul.f32 %v8056_v31, %v3596_v33  ;;  %v2972_v24 = vpop.f32.mrf.mxu3  ;;  %vm8220_vm15 = vmor %vm3598_vm7, %vm3599_vm8 }
 0x360   : > { %v4164_v14 = vsub.f32 1.0, %v4163_v53  ;;  %vm4167_vm9 = vweird.f32 %v8089_v35  ;;  %v2621_v22 = vadd.f32 %v2579_v23, %v9397_v47  ;;  %v6269_v61 = vpop.eup %6268  ;;  %vm8165_vm10 = vcmp.eq.f32.partialorder %v4171_v12, 8.507059e+37  ;;  %v3232_v53 = vpop.f32.mrf.mxu0 }
 0x361   : > { %v4174_v49 = vor.u32 1.1754944e-38, %v4173_v9  ;;  %v3273_v16 = vadd.f32 %v3229_v41, %v3013_v52  ;;  %v8169_v25 = vor.u32 %v4891_v4, %v4888_v43  ;;  %v8171_v11 = vpop.eup %6270  ;;  %vm4168_vm11 = vweird.f32 %v6267_v0  ;;  %v8184_v52 = vpop.f32.mrf.mxu1 }
 0x362   : > { %v4165_v30 = vmul.f32 %v6267_v0, %v4164_v14  ;;  %v3604_v15 = vmul.f32 %v8132_v38, %v3603_v63  ;;  %v4178_v8 = vmul.f32 %v6269_v61, %v8116_v32  ;;  %v4186_v33 = vand.u32 2147483647, %v8116_v32  ;;  %vm4169_vm12 = vmor %vm4167_vm9, %vm4168_vm11 }
 0x363   : > { %v6273_v46 = vpop.eup %6272  ;;  %v4893_v12 = vsel %vm1608_vm2, %v8054_v5, %v8169_v25  ;;  %6274 = vrsqrt.f32 %v8155_v50  ;;  %v5886_v41 = vmul.f32 -1.442695, %v8158_v34  ;;  %v3014_v9 = vadd.f32 %v2972_v24, %v2621_v22  ;;  %v8212_v24 = vld [vmem:[%s9339_s6] ss:$0 sm:$0xff] }
 0x364   : > { %v4166_v43 = vadd.f32 %v6267_v0, %v4165_v30  ;;  %v4179_v10 = vsub.f32 1.0, %v4178_v8  ;;  %v8181_v23 = vadd.f32 1.0, %v6273_v46  ;;  %6012 = vmatmul.msk.bf16.gmra.mxu1 %vm4954_vm6, %v4893_v12  ;;  %v4188_v58 = vand.u32 2147483648, %v8116_v32  ;;  %v3389_v47 = vpop.xlane.xlu2 %3388 }
 0x365   : > { %v3613_v5 = vmul.f32 %v8171_v11, %v8113_v51  ;;  %6276 = vpow2.f32 %v5886_v41  ;;  %v8192_v63 = vadd.f32 %v7686_v3, %v3273_v16  ;;  %vm4183_vm14 = vweird.f32 %v6269_v61 }
 0x366   : > { %v4170_v35 = vsel %vm4169_vm12, %v6267_v0, %v4166_v43  ;;  %v4180_v14 = vmul.f32 %v6269_v61, %v4179_v10  ;;  %6278 = vrcp.f32 %v8181_v23  ;;  %v2581_v22 = vpop.f32.mrf.mxu2  ;;  %v3591_v3 = vsel %vm8198_vm13, %v8022_v7, %v8144_v19 }
 0x367   : > { %v4175_v16 = vsel %vm8165_vm10, %v4174_v49, %v4170_v35  ;;  %v3605_v62 = vmul.f32 0.5, %v3604_v15  ;;  %v5041_v0 = vadd.f32 %v8212_v24, %v8020_v29  ;;  %vm4182_vm0 = vweird.f32 %v8116_v32 }
 0x368   : > { %v4590_v7 = vmul.f32 %v4175_v16, %v8031_v42  ;;  %v4181_v19 = vadd.f32 %v6269_v61, %v4180_v14  ;;  %v3274_v40 = vadd.f32 %v3232_v53, %v3014_v9  ;;  %vm4184_vm1 = vmor %vm4182_vm0, %vm4183_vm14  ;;  %v4189_v15 = vor.u32 1.1754944e-38, %v4188_v58  ;;  %v2974_v9 = vpop.f32.mrf.mxu3  ;;  %v6157_v14 = vld [vmem:[%s7329_s30 + $0x80] sm:$0xff]  ;;  %v3234_v30 = vpop.f32.mrf.mxu0 }
 0x369   : > { %v8226_v49 = vpop.eup %6274  ;;  %v3614_v29 = vmul.f32 %v8171_v11, %v3613_v5  ;;  %v3349_v60 = vmul.f32 %v8192_v63, %v8192_v63  ;;  %v8232_v8 = vmax.f32 %v3389_v47, 1e-24  ;;  %v3601_v42 = vsel %vm8220_vm15, %v8056_v31, %v8161_v56  ;;  %v8250_v56 = vld [vmem:[%s9335_s2] ss:$0 sm:$0xff]  ;;  %v8268_v47 = vpop.f32.mrf.mxu1 }
 0x36a   : > { %v5116_v32 = vadd.f32 %v8149_v45, %v4590_v7  ;;  %v4185_v46 = vsel %vm4184_vm1, %v6269_v61, %v4181_v19  ;;  %vm4187_vm3 = vcmp.eq.f32.partialorder %v4186_v33, 8.507059e+37  ;;  %v3606_v41 = vsub.f32 1.5, %v3605_v62 }
 0x36b   : > { %v6277_v12 = vpop.eup %6276  ;;  %v4190_v43 = vsel %vm4187_vm3, %v4189_v15, %v4185_v46  ;;  %3416 = vadd.xlane.f32.xlu1 %v3349_v60  ;;  %v2622_v10 = vadd.f32 %v2581_v22, %v8124_v18  ;;  %v3834_v58 = vmul.f32 %v3591_v3, %v7494_v36  ;;  %v3623_v31 = vmul.f32 %v8226_v49, %v8155_v50 }
 0x36c   : > { %v6279_v5 = vpop.eup %6278  ;;  %5152 = vst [vmem:[%s7734_s17 + $0x40] sm:$0xff] %v5116_v32  ;;  %v4591_v53 = vmul.f32 %v4190_v43, %v8034_v28  ;;  %v8245_v45 = vadd.f32 1.0, %v6277_v12  ;;  %v8253_v18 = vadd.f32 %v8250_v56, %v3274_v40  ;;  %v8255_v61 = vmul.f32 0.5, %v3614_v29  ;;  %v3391_v46 = vpop.xlane.xlu0 %3390 }
 0x36d   : > { %v4193_v36 = vmul.f32 %v6279_v5, %v8181_v23  ;;  %6280 = vrsqrt.f32 %v8232_v8  ;;  %v8260_v28 = vmul.f32 %v8096_v13, %v3834_v58  ;;  %vm3609_vm4 = vweird.f32 %v8132_v38  ;;  %v9407_v58 = vld [vmem:[#allocation11_spill] sm:$0xff] }
 0x36e   : > { %v5117_v33 = vadd.f32 %v5041_v0, %v4591_v53  ;;  %v4201_v4 = vand.u32 2147483647, %v8181_v23  ;;  %v5044_v35 = vadd.f32 %v8212_v24, %v8068_v59  ;;  %6282 = vrcp.f32 %v8245_v45  ;;  %v2584_v40 = vpop.f32.mrf.mxu2 }
 0x36f   : > { %v8271_v22 = vmul.f32 %v8132_v38, %v3606_v41  ;;  %v4194_v3 = vsub.f32 1.0, %v4193_v36  ;;  %v4203_v16 = vand.u32 2147483648, %v8181_v23  ;;  %v5887_v62 = vmul.f32 -1.442695, %v8260_v28 }
 0x370   : > { %vm3608_vm5 = vweird.f32 %v8072_v27  ;;  %5153 = vst [vmem:[%s7734_s17 + $0x48] sm:$0xff] %v5117_v33  ;;  %v3624_v0 = vmul.f32 %v8226_v49, %v3623_v31  ;;  %v8280_v59 = vadd.f32 %v8212_v24, %v8130_v26  ;;  %v3015_v7 = vadd.f32 %v2974_v9, %v2622_v10  ;;  %v9406_v10 = vld [vmem:[#allocation10_spill] sm:$0xff] }
 0x371   : > { %v3350_v19 = vmul.f32 %v8253_v18, %v8253_v18  ;;  %v3616_v15 = vsub.f32 1.5, %v8255_v61  ;;  %v4195_v29 = vmul.f32 %v6279_v5, %v4194_v3  ;;  %vm4198_vm7 = vweird.f32 %v6279_v5  ;;  %vm8328_vm14 = vmor %vm3608_vm5, %vm3609_vm4 }
 0x372   : > { %6284 = vpow2.f32 %v5887_v62  ;;  %vm3619_vm8 = vweird.f32 %v8171_v11  ;;  %vm4197_vm9 = vweird.f32 %v8181_v23  ;;  %vm8287_vm10 = vcmp.eq.f32.partialorder %v4201_v4, 8.507059e+37  ;;  %v2977_v62 = vpop.f32.mrf.mxu3 }
 0x373   : > { %3418 = vadd.xlane.f32.xlu2 %v3350_v19  ;;  %v4895_v26 = vshrl.u32 %v6157_v14, 16  ;;  %v4898_v32 = vshll.u32 %v6157_v14, 16  ;;  %v8291_v12 = vpop.eup %6280  ;;  %v4196_v41 = vadd.f32 %v6279_v5, %v4195_v29  ;;  %v4204_v43 = vor.u32 1.1754944e-38, %v4203_v16  ;;  %vm4199_vm12 = vmor %vm4197_vm9, %vm4198_vm7 }
 0x374   : > { %v2623_v9 = vadd.f32 %v2584_v40, %v9406_v10  ;;  %v3835_v53 = vmul.f32 %v3601_v42, %v9407_v58  ;;  %v6283_v31 = vpop.eup %6282  ;;  %vm3618_vm11 = vweird.f32 %v8113_v51  ;;  %v8297_v23 = vmul.f32 0.5, %v3624_v0 }
 0x375   : > { %v3275_v61 = vadd.f32 %v3234_v30, %v3015_v7  ;;  %v4897_v36 = vrot.slane %v4895_v26, 1  ;;  %v4900_v33 = vrot.slane %v4898_v32, 2  ;;  %v4200_v4 = vsel %vm4199_vm12, %v6279_v5, %v4196_v41  ;;  %v8322_v41 = vpop.f32.mrf.mxu1  ;;  %vm8356_vm3 = vmor %vm3618_vm11, %vm3619_vm8 }
 0x376   : > { %v4208_v14 = vmul.f32 %v6283_v31, %v8245_v45  ;;  %v4216_v3 = vand.u32 2147483647, %v8245_v45  ;;  %v8301_v16 = vmax.f32 %v3391_v46, 1e-24  ;;  %v4205_v42 = vsel %vm8287_vm10, %v4204_v43, %v4200_v4 }
 0x377   : > { %v4218_v19 = vand.u32 2147483648, %v8245_v45  ;;  %v3633_v0 = vmul.f32 %v8291_v12, %v8232_v8  ;;  %v8308_v40 = vor.u32 %v4900_v33, %v4897_v36  ;;  %v4592_v5 = vmul.f32 %v4205_v42, %v8099_v2  ;;  %v9412_v42 = vld [vmem:[#allocation3_spill] sm:$0xff] }
 0x378   : > { %v6285_v30 = vpop.eup %6284  ;;  %v4209_v7 = vsub.f32 1.0, %v4208_v14  ;;  %v3016_v29 = vadd.f32 %v2977_v62, %v2623_v9  ;;  %v8312_v26 = vmul.f32 %v8096_v13, %v3835_v53  ;;  %vm4213_vm13 = vweird.f32 %v6283_v31  ;;  %v3393_v9 = vpop.xlane.xlu1 %3392 }
 0x379   : > { %v8314_v32 = vadd.f32 1.0, %v6285_v30  ;;  %v4902_v60 = vsel %vm1608_vm2, %v8169_v25, %v8308_v40  ;;  %v8320_v46 = vadd.f32 %v8250_v56, %v3275_v61  ;;  %v5118_v43 = vadd.f32 %v5044_v35, %v4592_v5  ;;  %v3237_v35 = vpop.f32.mrf.mxu0  ;;  %v2586_v53 = vpop.f32.mrf.mxu2 }
 0x37a   : > { %v4210_v10 = vmul.f32 %v6283_v31, %v4209_v7  ;;  %6013 = vmatmul.msk.bf16.gmra.mxu1 %vm4954_vm6, %v4902_v60  ;;  %6286 = vrsqrt.f32 %v8301_v16  ;;  %v5888_v25 = vmul.f32 -1.442695, %v8312_v26  ;;  %v3611_v58 = vsel %vm8328_vm14, %v8132_v38, %v8271_v22 }
 0x37b   : > { %v8340_v27 = vmul.f32 %v8171_v11, %v3616_v15  ;;  %vm4212_vm15 = vweird.f32 %v8245_v45  ;;  %6288 = vrcp.f32 %v8314_v32  ;;  %5154 = vst [vmem:[%s7734_s17 + $0x50] sm:$0xff] %v5118_v43  ;;  %v3276_v36 = vadd.f32 %v3237_v35, %v3016_v29  ;;  %v6158_v45 = vld [vmem:[%s7329_s30 + $0x88] sm:$0xff] }
 0x37c   : > { %v4211_v61 = vadd.f32 %v6283_v31, %v4210_v10  ;;  %6290 = vpow2.f32 %v5888_v25  ;;  %v3351_v33 = vmul.f32 %v8320_v46, %v8320_v46  ;;  %v3626_v4 = vsub.f32 1.5, %v8297_v23  ;;  %vm4214_vm0 = vmor %vm4212_vm15, %vm4213_vm13  ;;  %v3395_v43 = vpop.xlane.xlu2 %3394 }
 0x37d   : > { %vm4217_vm1 = vcmp.eq.f32.partialorder %v4216_v3, 8.507059e+37  ;;  %v4219_v38 = vor.u32 1.1754944e-38, %v4218_v19  ;;  %v8349_v22 = vmax.f32 %v3393_v9, 1e-24  ;;  %v3634_v62 = vmul.f32 %v8291_v12, %v3633_v0  ;;  %v2979_v0 = vpop.f32.mrf.mxu3  ;;  %v8384_v10 = vpop.f32.mrf.mxu1 }
 0x37e   : > { %v4215_v14 = vsel %vm4214_vm0, %v6283_v31, %v4211_v61  ;;  %3420 = vadd.xlane.f32.xlu0 %v3351_v33  ;;  %v2624_v23 = vadd.f32 %v2586_v53, %v8128_v55  ;;  %v3836_v3 = vmul.f32 %v3611_v58, %v9412_v42  ;;  %v3621_v19 = vsel %vm8356_vm3, %v8171_v11, %v8340_v27 }
 0x37f   : > { %vm3628_vm4 = vweird.f32 %v8155_v50  ;;  %v4220_v51 = vsel %vm4217_vm1, %v4219_v38, %v4215_v14  ;;  %6292 = vrsqrt.f32 %v8349_v22  ;;  %vm3629_vm5 = vweird.f32 %v8226_v49 }
 0x380   : > { %v8369_v30 = vpop.eup %6286  ;;  %v4593_v31 = vmul.f32 %v4220_v51, %v8158_v34  ;;  %v8374_v55 = vmul.f32 %v8096_v13, %v3836_v3  ;;  %v8377_v5 = vadd.f32 %v8250_v56, %v3276_v36  ;;  %v3627_v11 = vmul.f32 %v8226_v49, %v3626_v4  ;;  %vm8399_vm7 = vmor %vm3628_vm4, %vm3629_vm5 }
 0x381   : > { %v6289_v7 = vpop.eup %6288  ;;  %v8382_v29 = vadd.f32 %v8212_v24, %v8184_v52  ;;  %v4904_v60 = vshrl.u32 %v6158_v45, 16  ;;  %v4907_v2 = vshll.u32 %v6158_v45, 16  ;;  %v3635_v9 = vmul.f32 0.5, %v3634_v62  ;;  %v3239_v14 = vpop.f32.mrf.mxu0 }
 0x382   : > { %v6291_v34 = vpop.eup %6290  ;;  %v5119_v25 = vadd.f32 %v8280_v59, %v4593_v31  ;;  %v4223_v58 = vmul.f32 %v6289_v7, %v8314_v32  ;;  %v3017_v27 = vadd.f32 %v2979_v0, %v2624_v23  ;;  %v3643_v35 = vmul.f32 %v8369_v30, %v8301_v16 }
 0x383   : > { %v8390_v53 = vadd.f32 1.0, %v6291_v34  ;;  %v5889_v52 = vmul.f32 -1.442695, %v8374_v55  ;;  %v3352_v61 = vmul.f32 %v8377_v5, %v8377_v5  ;;  %v4906_v33 = vrot.slane %v4904_v60, 1 }
 0x384   : > { %5155 = vst [vmem:[%s7734_s17 + $0x58] sm:$0xff] %v5119_v25  ;;  %v4224_v36 = vsub.f32 1.0, %v4223_v58  ;;  %v4909_v4 = vrot.slane %v4907_v2, 2  ;;  %v8404_v38 = vmax.f32 %v3395_v43, 1e-24  ;;  %v3631_v15 = vsel %vm8399_vm7, %v8226_v49, %v3627_v11  ;;  %v3397_v51 = vpop.xlane.xlu0 %3396  ;;  %v9415_v43 = vld [vmem:[#allocation2_spill] sm:$0xff] }
 0x385   : > { %v8406_v45 = vpop.eup %6292  ;;  %vm3639_vm8 = vweird.f32 %v8291_v12  ;;  %v4233_v50 = vand.u32 2147483648, %v8314_v32  ;;  %6294 = vrcp.f32 %v8390_v53  ;;  %3422 = vadd.xlane.f32.xlu1 %v3352_v61  ;;  %vm4228_vm9 = vweird.f32 %v6289_v7  ;;  %v8431_v25 = vpop.f32.mrf.mxu1 }
 0x386   : > { %v4225_v62 = vmul.f32 %v6289_v7, %v4224_v36  ;;  %v4231_v23 = vand.u32 2147483647, %v8314_v32  ;;  %v3277_v42 = vadd.f32 %v3239_v14, %v3017_v27  ;;  %v3636_v3 = vsub.f32 1.5, %v3635_v9 }
 0x387   : > { %vm3638_vm10 = vweird.f32 %v8232_v8  ;;  %vm4227_vm11 = vweird.f32 %v8314_v32  ;;  %6296 = vpow2.f32 %v5889_v52  ;;  %v8417_v49 = vor.u32 %v4909_v4, %v4906_v33 }
 0x388   : > { %v4226_v31 = vadd.f32 %v6289_v7, %v4225_v62  ;;  %v3644_v0 = vmul.f32 %v8369_v30, %v3643_v35  ;;  %v3653_v11 = vmul.f32 %v8406_v45, %v8349_v22  ;;  %6298 = vrsqrt.f32 %v8404_v38  ;;  %vm4229_vm12 = vmor %vm4227_vm11, %vm4228_vm9  ;;  %v6159_v35 = vld [vmem:[%s7329_s30 + $0x90] sm:$0xff] }
 0x389   : > { %v4234_v60 = vor.u32 1.1754944e-38, %v4233_v50  ;;  %v8425_v2 = vadd.f32 %v8212_v24, %v8268_v47  ;;  %v4911_v32 = vsel %vm1608_vm2, %v8308_v40, %v8417_v49  ;;  %v3837_v34 = vmul.f32 %v3621_v19, %v9415_v43  ;;  %v9416_v19 = vld [vmem:[#allocation4_spill] sm:$0xff]  ;;  %vm8470_vm14 = vmor %vm3638_vm10, %vm3639_vm8 }
 0x38a   : > { %v4230_v9 = vsel %vm4229_vm12, %v6289_v7, %v4226_v31  ;;  %vm4232_vm13 = vcmp.eq.f32.partialorder %v4231_v23, 8.507059e+37  ;;  %6014 = vmatmul.msk.bf16.gmra.mxu1 %vm4954_vm6, %v4911_v32  ;;  %v8435_v58 = vadd.f32 %v8250_v56, %v3277_v42  ;;  %v8437_v27 = vmax.f32 %v3397_v51, 1e-24 }
 0x38b   : > { %v6295_v47 = vpop.eup %6294  ;;  %v8441_v52 = vmul.f32 %v8291_v12, %v3636_v3  ;;  %v4235_v61 = vsel %vm4232_vm13, %v4234_v60, %v4230_v9  ;;  %v8444_v40 = vmul.f32 %v8096_v13, %v3837_v34  ;;  %v3838_v59 = vmul.f32 %v3631_v15, %v9416_v19 }
 0x38c   : > { %v4594_v7 = vmul.f32 %v4235_v61, %v8260_v28  ;;  %v3645_v36 = vmul.f32 0.5, %v3644_v0  ;;  %v4238_v33 = vmul.f32 %v6295_v47, %v8390_v53  ;;  %v3654_v56 = vmul.f32 %v8406_v45, %v3653_v11  ;;  %v3399_v19 = vpop.xlane.xlu1 %3398 }
 0x38d   : > { %v6297_v4 = vpop.eup %6296  ;;  %v4246_v50 = vand.u32 2147483647, %v8390_v53  ;;  %v5890_v14 = vmul.f32 -1.442695, %v8444_v40  ;;  %v3353_v62 = vmul.f32 %v8435_v58, %v8435_v58  ;;  %6300 = vrsqrt.f32 %v8437_v27 }
 0x38e   : > { %v8455_v23 = vpop.eup %6298  ;;  %v5120_v28 = vadd.f32 %v8382_v29, %v4594_v7  ;;  %v4239_v15 = vsub.f32 1.0, %v4238_v33  ;;  %v8458_v42 = vadd.f32 1.0, %v6297_v4  ;;  %v4913_v3 = vshrl.u32 %v6159_v35, 16 }
 0x38f   : > { %v4248_v51 = vand.u32 2147483648, %v8390_v53  ;;  %v3663_v31 = vmul.f32 %v8455_v23, %v8404_v38  ;;  %6302 = vpow2.f32 %v5890_v14  ;;  %3424 = vadd.xlane.f32.xlu2 %v3353_v62  ;;  %v8464_v0 = vmul.f32 %v8096_v13, %v3838_v59  ;;  %v8484_v59 = vpop.f32.mrf.mxu1 }
 0x390   : > { %5156 = vst [vmem:[%s7734_s17 + $0x60] sm:$0xff] %v5120_v28  ;;  %v4240_v11 = vmul.f32 %v6295_v47, %v4239_v15  ;;  %vm4243_vm15 = vweird.f32 %v6295_v47  ;;  %v3655_v60 = vmul.f32 0.5, %v3654_v56  ;;  %6304 = vrcp.f32 %v8458_v42 }
 0x391   : > { %v3641_v32 = vsel %vm8470_vm14, %v8291_v12, %v8441_v52  ;;  %vm3648_vm0 = vweird.f32 %v8301_v16  ;;  %v3664_v43 = vmul.f32 %v8455_v23, %v3663_v31  ;;  %v5891_v8 = vmul.f32 -1.442695, %v8464_v0 }
 0x392   : > { %v4241_v34 = vadd.f32 %v6295_v47, %v4240_v11  ;;  %vm4242_vm1 = vweird.f32 %v8390_v53  ;;  %v4915_v9 = vrot.slane %v4913_v3, 1  ;;  %v4916_v61 = vshll.u32 %v6159_v35, 16 }
 0x393   : > { %v8486_v7 = vpop.eup %6300  ;;  %v3646_v33 = vsub.f32 1.5, %v3645_v36  ;;  %vm3649_vm3 = vweird.f32 %v8369_v30  ;;  %vm4244_vm4 = vmor %vm4242_vm1, %vm4243_vm15  ;;  %v4249_v12 = vor.u32 1.1754944e-38, %v4248_v51  ;;  %6306 = vpow2.f32 %v5891_v8 }
 0x394   : > { %v4245_v52 = vsel %vm4244_vm4, %v6295_v47, %v4241_v34  ;;  %vm4247_vm5 = vcmp.eq.f32.partialorder %v4246_v50, 8.507059e+37  ;;  %v3656_v56 = vsub.f32 1.5, %v3655_v60  ;;  %v4918_v4 = vrot.slane %v4916_v61, 2  ;;  %vm8518_vm9 = vmor %vm3648_vm0, %vm3649_vm3 }
 0x395   : > { %v6303_v14 = vpop.eup %6302  ;;  %v4250_v53 = vsel %vm4247_vm5, %v4249_v12, %v4245_v52  ;;  %vm3658_vm7 = vweird.f32 %v8349_v22  ;;  %v3665_v35 = vmul.f32 0.5, %v3664_v43  ;;  %v8491_v62 = vmax.f32 %v3399_v19, 1e-24 }
 0x396   : > { %v6305_v28 = vpop.eup %6304  ;;  %v4595_v36 = vmul.f32 %v4250_v53, %v8312_v26  ;;  %v8494_v15 = vadd.f32 1.0, %v6303_v14  ;;  %v3673_v3 = vmul.f32 %v8486_v7, %v8437_v27  ;;  %v8498_v47 = vor.u32 %v4918_v4, %v4915_v9  ;;  %v3401_v14 = vpop.xlane.xlu2 %3400 }
 0x397   : > { %v3647_v50 = vmul.f32 %v8369_v30, %v3646_v33  ;;  %v4253_v51 = vmul.f32 %v6305_v28, %v8458_v42  ;;  %6308 = vrsqrt.f32 %v8491_v62  ;;  %v3839_v31 = vmul.f32 %v3641_v32, %v7574_v48  ;;  %v8529_v19 = vpop.f32.mrf.mxu1 }
 0x398   : > { %v5121_v29 = vadd.f32 %v8425_v2, %v4595_v36  ;;  %v8506_v26 = vmul.f32 %v8406_v45, %v3656_v56  ;;  %vm3659_vm8 = vweird.f32 %v8406_v45  ;;  %6310 = vrcp.f32 %v8494_v15 }
 0x399   : > { %v6307_v11 = vpop.eup %6306  ;;  %v4254_v60 = vsub.f32 1.0, %v4253_v51  ;;  %v4261_v43 = vand.u32 2147483647, %v8458_v42  ;;  %v4263_v8 = vand.u32 2147483648, %v8458_v42  ;;  %v5054_v34 = vadd.f32 %v8212_v24, %v8322_v41  ;;  %vm8533_vm10 = vmor %vm3658_vm7, %vm3659_vm8 }
 0x39a   : > { %5157 = vst [vmem:[%s7734_s17 + $0x68] sm:$0xff] %v5121_v29  ;;  %v3666_v2 = vsub.f32 1.5, %v3665_v35  ;;  %v3674_v32 = vmul.f32 %v8486_v7, %v3673_v3  ;;  %v8524_v9 = vadd.f32 1.0, %v6307_v11  ;;  %v4920_v61 = vsel %vm1608_vm2, %v8417_v49, %v8498_v47 }
 0x39b   : > { %v4255_v41 = vmul.f32 %v6305_v28, %v4254_v60  ;;  %vm4258_vm11 = vweird.f32 %v6305_v28  ;;  %v4276_v33 = vand.u32 2147483647, %v8494_v15  ;;  %6015 = vmatmul.msk.bf16.gmra.mxu1 %vm4954_vm6, %v4920_v61  ;;  %v8540_v12 = vmul.f32 %v8096_v13, %v3839_v31 }
 0x39c   : > { %v3651_v49 = vsel %vm8518_vm9, %v8369_v30, %v3647_v50  ;;  %v3661_v22 = vsel %vm8533_vm10, %v8406_v45, %v8506_v26  ;;  %v8551_v52 = vadd.f32 %v8212_v24, %v8384_v10  ;;  %6312 = vrcp.f32 %v8524_v9  ;;  %v4654_v50 = vld [vmem:[%s7329_s30 + $0x98] sm:$0x3] }
 0x39d   : > { %v8554_v56 = vpop.eup %6308  ;;  %v4256_v4 = vadd.f32 %v6305_v28, %v4255_v41  ;;  %vm4257_vm12 = vweird.f32 %v8458_v42  ;;  %vm4262_vm13 = vcmp.eq.f32.partialorder %v4261_v43, 8.507059e+37  ;;  %v5892_v30 = vmul.f32 -1.442695, %v8540_v12 }
 0x39e   : > { %v6311_v53 = vpop.eup %6310  ;;  %vm4259_vm14 = vmor %vm4257_vm12, %vm4258_vm11  ;;  %v4264_v35 = vor.u32 1.1754944e-38, %v4263_v8  ;;  %v8560_v36 = vmul.f32 %v8455_v23, %v3666_v2  ;;  %v4278_v10 = vand.u32 2147483648, %v8494_v15  ;;  %v8563_v3 = vmul.f32 0.5, %v3674_v32  ;;  %v9425_v8 = vld [vmem:[#allocation12_spill] sm:$0xff]  ;;  %v3403_v32 = vpop.xlane.xlu0 %3402 }
 0x39f   : > { %v4260_v51 = vsel %vm4259_vm14, %v6305_v28, %v4256_v4  ;;  %v4268_v31 = vmul.f32 %v6311_v53, %v8494_v15  ;;  %vm4272_vm15 = vweird.f32 %v8494_v15  ;;  %vm8568_vm0 = vcmp.eq.f32.partialorder %v4276_v33, 8.507059e+37  ;;  %v9426_v15 = vld [vmem:[#allocation13_spill] sm:$0xff] }
 0x3a0   : > { %v4265_v29 = vsel %vm4262_vm13, %v4264_v35, %v4260_v51  ;;  %vm3669_vm1 = vweird.f32 %v8455_v23  ;;  %v3683_v11 = vmul.f32 %v8554_v56, %v8491_v62  ;;  %6314 = vpow2.f32 %v5892_v30 }
 0x3a1   : > { %v8575_v60 = vmax.f32 %v3401_v14, 1e-24  ;;  %v4596_v43 = vmul.f32 %v4265_v29, %v8374_v55  ;;  %v4269_v28 = vsub.f32 1.0, %v4268_v31  ;;  %v3840_v48 = vmul.f32 %v3651_v49, %v9425_v8  ;;  %v8584_v14 = vpop.f32.mrf.mxu1 }
 0x3a2   : > { %v4740_v2 = vunpack.c.l.b16 %v4654_v50  ;;  %v6313_v61 = vpop.eup %6312  ;;  %vm3668_vm3 = vweird.f32 %v8404_v38  ;;  %v4279_v41 = vor.u32 1.1754944e-38, %v4278_v10  ;;  %v3676_v33 = vsub.f32 1.5, %v8563_v3 }
 0x3a3   : > { %vm4287_vm4 = vweird.f32 %v8524_v9  ;;  %6316 = vrsqrt.f32 %v8575_v60  ;;  %v5122_v4 = vadd.f32 %v5054_v34, %v4596_v43  ;;  %v4270_v30 = vmul.f32 %v6311_v53, %v4269_v28  ;;  %vm8625_vm10 = vmor %vm3668_vm3, %vm3669_vm1 }
 0x3a4   : > { %vm4273_vm5 = vweird.f32 %v6311_v53  ;;  %v4283_v55 = vmul.f32 %v6313_v61, %v8524_v9  ;;  %v3684_v49 = vmul.f32 %v8554_v56, %v3683_v11  ;;  %v8588_v35 = vmul.f32 %v8096_v13, %v3840_v48 }
 0x3a5   : > { %v4759_v50 = vpack.c.b16 %v4740_v2, %v4740_v2  ;;  %v8590_v10 = vmax.f32 %v3403_v32, 1e-24  ;;  %5158 = vst [vmem:[%s7734_s17 + $0x70] sm:$0xff] %v5122_v4  ;;  %v4271_v3 = vadd.f32 %v6311_v53, %v4270_v30  ;;  %v4291_v31 = vand.u32 2147483647, %v8524_v9  ;;  %vm4274_vm7 = vmor %vm4272_vm15, %vm4273_vm5 }
 0x3a6   : > { %v4284_v51 = vsub.f32 1.0, %v4283_v55  ;;  %v4293_v34 = vand.u32 2147483648, %v8524_v9  ;;  %v6315_v29 = vpop.eup %6314  ;;  %vm4288_vm8 = vweird.f32 %v6313_v61  ;;  %v5893_v11 = vmul.f32 -1.442695, %v8588_v35 }
 0x3a7   : > { %v4922_v43 = vshrl.u32 %v4759_v50, 16  ;;  %v4925_v28 = vshll.u32 %v4759_v50, 16  ;;  %v4275_v8 = vsel %vm4274_vm7, %v6311_v53, %v4271_v3  ;;  %v8598_v2 = vadd.f32 1.0, %v6315_v29  ;;  %vm4289_vm11 = vmor %vm4287_vm4, %vm4288_vm8 }
 0x3a8   : > { %v4285_v48 = vmul.f32 %v6313_v61, %v4284_v51  ;;  %6318 = vrsqrt.f32 %v8590_v10  ;;  %v4280_v4 = vsel %vm8568_vm0, %v4279_v41, %v4275_v8  ;;  %v3685_v30 = vmul.f32 0.5, %v3684_v49  ;;  %v3405_v41 = vpop.xlane.xlu1 %3404 }
 0x3a9   : > { %v8601_v32 = vpop.eup %6316  ;;  %6320 = vpow2.f32 %v5893_v11  ;;  %v3841_v55 = vmul.f32 %v3661_v22, %v9426_v15  ;;  %v4597_v53 = vmul.f32 %v4280_v4, %v8444_v40  ;;  %v4924_v3 = vrot.slane %v4922_v43, 1  ;;  %v8630_v49 = vpop.f32.mrf.mxu1 }
 0x3aa   : > { %v4286_v50 = vadd.f32 %v6313_v61, %v4285_v48  ;;  %6322 = vrcp.f32 %v8598_v2  ;;  %vm3678_vm9 = vweird.f32 %v8437_v27  ;;  %v4294_v42 = vor.u32 1.1754944e-38, %v4293_v34 }
 0x3ab   : > { %v5059_v16 = vadd.f32 %v8212_v24, %v8431_v25  ;;  %v3693_v45 = vmul.f32 %v8601_v32, %v8575_v60  ;;  %v5123_v26 = vadd.f32 %v8551_v52, %v4597_v53  ;;  %vm4292_vm12 = vcmp.eq.f32.partialorder %v4291_v31, 8.507059e+37 }
 0x3ac   : > { %v4290_v9 = vsel %vm4289_vm11, %v6313_v61, %v4286_v50  ;;  %v4927_v22 = vrot.slane %v4925_v28, 2  ;;  %v3671_v25 = vsel %vm8625_vm10, %v8455_v23, %v8560_v36  ;;  %vm3679_vm13 = vweird.f32 %v8486_v7 }
 0x3ad   : > { %v4295_v38 = vsel %vm4292_vm12, %v4294_v42, %v4290_v9  ;;  %v3686_v51 = vsub.f32 1.5, %v3685_v30  ;;  %5159 = vst [vmem:[%s7734_s17 + $0x78] sm:$0xff] %v5123_v26  ;;  %v3677_v52 = vmul.f32 %v8486_v7, %v3676_v33  ;;  %v8643_v29 = vmul.f32 %v8096_v13, %v3841_v55  ;;  %vm8660_vm15 = vmor %vm3678_vm9, %vm3679_vm13  ;;  %v9431_v55 = vld [vmem:[#allocation14_spill] sm:$0xff] }
 0x3ae   : > { %v8637_v34 = vpop.eup %6318  ;;  %v4598_v61 = vmul.f32 %v4295_v38, %v8464_v0  ;;  %v4928_v31 = vor.u32 %v4927_v22, %v4924_v3  ;;  %vm3688_vm14 = vweird.f32 %v8491_v62  ;;  %v3694_v23 = vmul.f32 %v8601_v32, %v3693_v45  ;;  %v3407_v45 = vpop.xlane.xlu2 %3406 }
 0x3af   : > { %v6321_v11 = vpop.eup %6320  ;;  %v3703_v36 = vmul.f32 %v8637_v34, %v8590_v10  ;;  %v8649_v43 = vmax.f32 %v3405_v41, 1e-24  ;;  %v5894_v48 = vmul.f32 -1.442695, %v8643_v29  ;;  %v3687_v30 = vmul.f32 %v8554_v56, %v3686_v51 }
 0x3b0   : > { %v6323_v28 = vpop.eup %6322  ;;  %v5124_v8 = vadd.f32 %v5059_v16, %v4598_v61  ;;  %v8651_v33 = vadd.f32 1.0, %v6321_v11  ;;  %v4929_v0 = vsel %vm1608_vm2, %v8498_v47, %v4928_v31  ;;  %vm3689_vm0 = vweird.f32 %v8554_v56 }
 0x3b1   : > { %v4298_v15 = vmul.f32 %v6323_v28, %v8598_v2  ;;  %6016 = vmatmul.msk.bf16.gmra.mxu1 %vm4954_vm6, %v4929_v0  ;;  %v3842_v47 = vmul.f32 %v3671_v25, %v9431_v55  ;;  %v3681_v53 = vsel %vm8660_vm15, %v8486_v7, %v3677_v52  ;;  %v5061_v27 = vadd.f32 %v8212_v24, %v8484_v59  ;;  %vm8684_vm2 = vmor %vm3688_vm14, %vm3689_vm0  ;;  %v8694_v26 = vpop.f32.mrf.mxu1 }
 0x3b2   : > { %5160 = vst [vmem:[%s7734_s17 + $0x80] sm:$0xff] %v5124_v8  ;;  %6324 = vrcp.f32 %v8651_v33  ;;  %v8678_v50 = vadd.f32 %v8212_v24, %v8529_v19  ;;  %v4306_v42 = vand.u32 2147483647, %v8598_v2  ;;  %v4308_v16 = vand.u32 2147483648, %v8598_v2 }
 0x3b3   : > { %v4299_v3 = vsub.f32 1.0, %v4298_v15  ;;  %6326 = vpow2.f32 %v5894_v48  ;;  %v3695_v59 = vmul.f32 0.5, %v3694_v23  ;;  %v3704_v40 = vmul.f32 %v8637_v34, %v3703_v36 }
 0x3b4   : > { %v8691_v19 = vadd.f32 %v8212_v24, %v8584_v14  ;;  %6328 = vrsqrt.f32 %v8649_v43  ;;  %v3691_v9 = vsel %vm8684_vm2, %v8554_v56, %v3687_v30  ;;  %vm4303_vm6 = vweird.f32 %v6323_v28 }
 0x3b5   : > { %v4300_v62 = vmul.f32 %v6323_v28, %v4299_v3  ;;  %v8700_v22 = vmul.f32 %v8096_v13, %v3842_v47  ;;  %vm4302_vm1 = vweird.f32 %v8598_v2  ;;  %vm3698_vm3 = vweird.f32 %v8575_v60 }
 0x3b6   : > { %vm3699_vm4 = vweird.f32 %v8601_v32  ;;  %v8705_v14 = vmax.f32 %v3407_v45, 1e-24  ;;  %v3843_v41 = vmul.f32 %v3681_v53, %v7689_v17  ;;  %vm8708_vm5 = vcmp.eq.f32.partialorder %v4306_v42, 8.507059e+37  ;;  %vm4304_vm7 = vmor %vm4302_vm1, %vm4303_vm6 }
 0x3b7   : > { %v4301_v25 = vadd.f32 %v6323_v28, %v4300_v62  ;;  %v4309_v56 = vor.u32 1.1754944e-38, %v4308_v16  ;;  %v5895_v51 = vmul.f32 -1.442695, %v8700_v22  ;;  %v3696_v61 = vsub.f32 1.5, %v3695_v59  ;;  %v3409_v55 = vpop.xlane.xlu0 %3408  ;;  %v8748_v59 = vld [vmem:[%s9336_s3] ss:$0 sm:$0xff]  ;;  %vm8758_vm13 = vmor %vm3698_vm3, %vm3699_vm4 }
 0x3b8   : > { %v6325_v52 = vpop.eup %6324  ;;  %v3705_v2 = vmul.f32 0.5, %v3704_v40  ;;  %vm3709_vm8 = vweird.f32 %v8637_v34  ;;  %6330 = vrsqrt.f32 %v8705_v14  ;;  %v8716_v31 = vmul.f32 %v8096_v13, %v3843_v41 }
 0x3b9   : > { %v6327_v17 = vpop.eup %6326  ;;  %v4305_v11 = vsel %vm4304_vm7, %v6323_v28, %v4301_v25  ;;  %v4313_v23 = vmul.f32 %v6325_v52, %v8651_v33  ;;  %v4321_v36 = vand.u32 2147483647, %v8651_v33  ;;  %v3844_v8 = vmul.f32 %v3691_v9, %v7753_v21 }
 0x3ba   : > { %v8721_v0 = vpop.eup %6328  ;;  %v4310_v48 = vsel %vm8708_vm5, %v4309_v56, %v4305_v11  ;;  %vm3708_vm9 = vweird.f32 %v8590_v10  ;;  %v8726_v4 = vadd.f32 1.0, %v6327_v17  ;;  %6332 = vpow2.f32 %v5895_v51 }
 0x3bb   : > { %v5896_v13 = vmul.f32 -1.442695, %v8716_v31  ;;  %v4599_v28 = vmul.f32 %v4310_v48, %v8540_v12  ;;  %v4314_v30 = vsub.f32 1.0, %v4313_v23  ;;  %v4323_v15 = vand.u32 2147483648, %v8651_v33  ;;  %vm8788_vm0 = vmor %vm3708_vm9, %vm3709_vm8 }
 0x3bc   : > { %v3713_v21 = vmul.f32 %v8721_v0, %v8649_v43  ;;  %v3697_v47 = vmul.f32 %v8601_v32, %v3696_v61  ;;  %vm4318_vm11 = vweird.f32 %v6325_v52  ;;  %v3706_v53 = vsub.f32 1.5, %v3705_v2  ;;  %v5073_v40 = vpop.f32.mrf.mxu1 }
 0x3bd   : > { %6334 = vrcp.f32 %v8726_v4  ;;  %v5125_v3 = vadd.f32 %v5061_v27, %v4599_v28  ;;  %v4315_v42 = vmul.f32 %v6325_v52, %v4314_v30  ;;  %vm4317_vm10 = vweird.f32 %v8651_v33 }
 0x3be   : > { %v3714_v16 = vmul.f32 %v8721_v0, %v3713_v21  ;;  %6336 = vpow2.f32 %v5896_v13  ;;  %v8736_v12 = vpop.eup %6330  ;;  %vm8739_vm12 = vcmp.eq.f32.partialorder %v4321_v36, 8.507059e+37  ;;  %v8743_v7 = vmax.f32 %v3409_v55, 1e-24  ;;  %vm4319_vm14 = vmor %vm4317_vm10, %vm4318_vm11 }
 0x3bf   : > { %v8751_v27 = vmul.f32 %v8748_v59, %v3844_v8  ;;  %5161 = vst [vmem:[%s7734_s17 + $0x88] sm:$0xff] %v5125_v3  ;;  %v4316_v9 = vadd.f32 %v6325_v52, %v4315_v42  ;;  %v4324_v62 = vor.u32 1.1754944e-38, %v4323_v15  ;;  %v3723_v25 = vmul.f32 %v8736_v12, %v8705_v14 }
 0x3c0   : > { %v3715_v41 = vmul.f32 0.5, %v3714_v16  ;;  %v6333_v38 = vpop.eup %6332  ;;  %v3701_v56 = vsel %vm8758_vm13, %v8601_v32, %v3697_v47  ;;  %v3707_v51 = vmul.f32 %v8637_v34, %v3706_v53  ;;  %vm3718_vm15 = vweird.f32 %v8649_v43 }
 0x3c1   : > { %6338 = vrsqrt.f32 %v8743_v7  ;;  %v5897_v60 = vmul.f32 -1.442695, %v8751_v27  ;;  %v4320_v61 = vsel %vm4319_vm14, %v6325_v52, %v4316_v9  ;;  %v8772_v2 = vadd.f32 1.0, %v6333_v38  ;;  %v3411_v15 = vpop.xlane.xlu1 %3410 }
 0x3c2   : > { %v8776_v17 = vadd.f32 %v8212_v24, %v8630_v49  ;;  %v3724_v11 = vmul.f32 %v8736_v12, %v3723_v25  ;;  %v4325_v23 = vsel %vm8739_vm12, %v4324_v62, %v4320_v61  ;;  %v4336_v36 = vand.u32 2147483647, %v8726_v4 }
 0x3c3   : > { %v6335_v32 = vpop.eup %6334  ;;  %v4338_v8 = vand.u32 2147483648, %v8726_v4  ;;  %6340 = vpow2.f32 %v5897_v60  ;;  %v4600_v52 = vmul.f32 %v4325_v23, %v8588_v35  ;;  %v3716_v28 = vsub.f32 1.5, %v3715_v41 }
 0x3c4   : > { %v6337_v48 = vpop.eup %6336  ;;  %v4328_v13 = vmul.f32 %v6335_v32, %v8726_v4  ;;  %v8795_v30 = vadd.f32 %v8212_v24, %v8694_v26  ;;  %v3711_v35 = vsel %vm8788_vm0, %v8637_v34, %v3707_v51  ;;  %vm3719_vm2 = vweird.f32 %v8721_v0  ;;  %v8815_v16 = vpop.f32.mrf.mxu1 }
 0x3c5   : > { %6342 = vrcp.f32 %v8772_v2  ;;  %v3845_v10 = vmul.f32 %v3701_v56, %v7801_v20  ;;  %v5126_v21 = vadd.f32 %v8678_v50, %v4600_v52  ;;  %vm4332_vm6 = vweird.f32 %v8726_v4  ;;  %vm8836_vm7 = vmor %vm3718_vm15, %vm3719_vm2 }
 0x3c6   : > { %v4329_v55 = vsub.f32 1.0, %v4328_v13  ;;  %v3725_v47 = vmul.f32 0.5, %v3724_v11  ;;  %vm8807_vm1 = vcmp.eq.f32.partialorder %v4336_v36, 8.507059e+37  ;;  %v4339_v3 = vor.u32 1.1754944e-38, %v4338_v8 }
 0x3c7   : > { %v8805_v26 = vpop.eup %6338  ;;  %v8811_v34 = vadd.f32 1.0, %v6337_v48  ;;  %v8813_v42 = vmax.f32 %v3411_v15, 1e-24  ;;  %5162 = vst [vmem:[%s7734_s17 + $0x90] sm:$0xff] %v5126_v21  ;;  %vm4333_vm3 = vweird.f32 %v6335_v32  ;;  %v8819_v50 = vmul.f32 %v8721_v0, %v3716_v28 }
 0x3c8   : > { %v4330_v20 = vmul.f32 %v6335_v32, %v4329_v55  ;;  %vm3728_vm4 = vweird.f32 %v8705_v14  ;;  %vm3729_vm5 = vweird.f32 %v8736_v12  ;;  %v3733_v33 = vmul.f32 %v8805_v26, %v8743_v7  ;;  %vm4334_vm8 = vmor %vm4332_vm6, %vm4333_vm3 }
 0x3c9   : > { %v6341_v45 = vpop.eup %6340  ;;  %6344 = vrcp.f32 %v8811_v34  ;;  %v8827_v9 = vadd.f32 %v8212_v24, %v5073_v40  ;;  %v8830_v62 = vmul.f32 %v8748_v59, %v3845_v10  ;;  %v4351_v38 = vand.u32 2147483647, %v8772_v2  ;;  %v3413_v4 = vpop.xlane.xlu2 %3412  ;;  %vm8881_vm13 = vmor %vm3728_vm4, %vm3729_vm5 }
 0x3ca   : > { %v4331_v41 = vadd.f32 %v6335_v32, %v4330_v20  ;;  %v3726_v56 = vsub.f32 1.5, %v3725_v47  ;;  %v8841_v51 = vadd.f32 1.0, %v6341_v45  ;;  %vm4347_vm9 = vweird.f32 %v8772_v2 }
 0x3cb   : > { %v6343_v60 = vpop.eup %6342  ;;  %v4353_v24 = vand.u32 2147483648, %v8772_v2  ;;  %6346 = vrsqrt.f32 %v8813_v42  ;;  %v3846_v43 = vmul.f32 %v3711_v35, %v7816_v37  ;;  %v3721_v61 = vsel %vm8836_vm7, %v8721_v0, %v8819_v50 }
 0x3cc   : > { %v4335_v40 = vsel %vm4334_vm8, %v6335_v32, %v4331_v41  ;;  %v4343_v11 = vmul.f32 %v6343_v60, %v8772_v2  ;;  %v4366_v23 = vand.u32 2147483647, %v8811_v34  ;;  %v4368_v8 = vand.u32 2147483648, %v8811_v34 }
 0x3cd   : > { %v4340_v36 = vsel %vm8807_vm1, %v4339_v3, %v4335_v40  ;;  %v3734_v48 = vmul.f32 %v8805_v26, %v3733_v33  ;;  %6348 = vrcp.f32 %v8841_v51  ;;  %vm8862_vm11 = vcmp.eq.f32.partialorder %v4351_v38, 8.507059e+37 }
 0x3ce   : > { %v4601_v37 = vmul.f32 %v4340_v36, %v8643_v29  ;;  %v4344_v32 = vsub.f32 1.0, %v4343_v11  ;;  %v8867_v0 = vmul.f32 %v8736_v12, %v3726_v56  ;;  %v4354_v13 = vor.u32 1.1754944e-38, %v4353_v24  ;;  %v8889_v3 = vpop.f32.mrf.mxu1 }
 0x3cf   : > { %v6345_v49 = vpop.eup %6344  ;;  %vm4362_vm10 = vweird.f32 %v8811_v34  ;;  %v5898_v28 = vmul.f32 -1.442695, %v8830_v62  ;;  %v8871_v15 = vmax.f32 %v3413_v4, 1e-24  ;;  %vm4348_vm12 = vweird.f32 %v6343_v60 }
 0x3d0   : > { %v5127_v35 = vadd.f32 %v8691_v19, %v4601_v37  ;;  %v4345_v29 = vmul.f32 %v6343_v60, %v4344_v32  ;;  %v4358_v10 = vmul.f32 %v6345_v49, %v8811_v34  ;;  %vm8885_vm14 = vcmp.eq.f32.partialorder %v4366_v23, 8.507059e+37  ;;  %vm4349_vm15 = vmor %vm4347_vm9, %vm4348_vm12 }
 0x3d1   : > { %v8875_v21 = vpop.eup %6346  ;;  %v4369_v53 = vor.u32 1.1754944e-38, %v4368_v8  ;;  %v3735_v19 = vmul.f32 0.5, %v3734_v48  ;;  %6350 = vpow2.f32 %v5898_v28  ;;  %v3731_v14 = vsel %vm8881_vm13, %v8736_v12, %v8867_v0 }
 0x3d2   : > { %5163 = vst [vmem:[%s7734_s17 + $0x98] sm:$0xff] %v5127_v35  ;;  %v4346_v20 = vadd.f32 %v6343_v60, %v4345_v29  ;;  %v4359_v50 = vsub.f32 1.0, %v4358_v10  ;;  %v3743_v45 = vmul.f32 %v8875_v21, %v8813_v42  ;;  %vm3738_vm0 = vweird.f32 %v8743_v7  ;;  %v3415_v4 = vpop.xlane.xlu0 %3414 }
 0x3d3   : > { %v6349_v33 = vpop.eup %6348  ;;  %v4381_v41 = vand.u32 2147483647, %v8841_v51  ;;  %v4383_v25 = vand.u32 2147483648, %v8841_v51  ;;  %6352 = vrsqrt.f32 %v8871_v15  ;;  %v8906_v38 = vmul.f32 %v8748_v59, %v3846_v43 }
 0x3d4   : > { %v4350_v12 = vsel %vm4349_vm15, %v6343_v60, %v4346_v20  ;;  %v4360_v56 = vmul.f32 %v6345_v49, %v4359_v50  ;;  %vm4363_vm2 = vweird.f32 %v6345_v49  ;;  %v4373_v24 = vmul.f32 %v6349_v33, %v8841_v51 }
 0x3d5   : > { %v4355_v2 = vsel %vm8862_vm11, %v4354_v13, %v4350_v12  ;;  %v3736_v40 = vsub.f32 1.5, %v3735_v19  ;;  %v3744_v11 = vmul.f32 %v8875_v21, %v3743_v45  ;;  %v5899_v23 = vmul.f32 -1.442695, %v8906_v38  ;;  %vm4364_vm6 = vmor %vm4362_vm10, %vm4363_vm2 }
 0x3d6   : > { %v4602_v36 = vmul.f32 %v4355_v2, %v8700_v22  ;;  %v4361_v8 = vadd.f32 %v6345_v49, %v4360_v56  ;;  %v4374_v48 = vsub.f32 1.0, %v4373_v24  ;;  %v8914_v43 = vmax.f32 %v3415_v4, 1e-24  ;;  %v5080_v10 = vpop.f32.mrf.mxu1 }
 0x3d7   : > { %v6351_v60 = vpop.eup %6350  ;;  %vm4378_vm1 = vweird.f32 %v6349_v33  ;;  %v3745_v37 = vmul.f32 0.5, %v3744_v11  ;;  %6354 = vpow2.f32 %v5899_v23  ;;  %v3847_v32 = vmul.f32 %v3721_v61, %v7875_v1 }
 0x3d8   : > { %v5128_v52 = vadd.f32 %v8776_v17, %v4602_v36  ;;  %v4365_v0 = vsel %vm4364_vm6, %v6345_v49, %v4361_v8  ;;  %v4375_v13 = vmul.f32 %v6349_v33, %v4374_v48  ;;  %v8920_v28 = vadd.f32 1.0, %v6351_v60 }
 0x3d9   : > { %v8922_v22 = vpop.eup %6352  ;;  %v4370_v35 = vsel %vm8885_vm14, %v4369_v53, %v4365_v0  ;;  %v3737_v29 = vmul.f32 %v8805_v26, %v3736_v40  ;;  %vm3739_vm3 = vweird.f32 %v8805_v26  ;;  %6356 = vrsqrt.f32 %v8914_v43 }
 0x3da   : > { %5164 = vst [vmem:[%s7734_s17 + $0xa0] sm:$0xff] %v5128_v52  ;;  %v4603_v1 = vmul.f32 %v4370_v35, %v8716_v31  ;;  %v4376_v34 = vadd.f32 %v6349_v33, %v4375_v13  ;;  %vm4377_vm4 = vweird.f32 %v8841_v51  ;;  %6358 = vrcp.f32 %v8920_v28  ;;  %vm8940_vm7 = vmor %vm3738_vm0, %vm3739_vm3 }
 0x3db   : > { %vm4379_vm5 = vmor %vm4377_vm4, %vm4378_vm1  ;;  %v4384_v17 = vor.u32 1.1754944e-38, %v4383_v25  ;;  %v3746_v61 = vsub.f32 1.5, %v3745_v37  ;;  %v3753_v49 = vmul.f32 %v8922_v22, %v8871_v15  ;;  %v3848_v55 = vmul.f32 %v3731_v14, %v7912_v44 }
 0x3dc   : > { %v5129_v47 = vadd.f32 %v8795_v30, %v4603_v1  ;;  %v4380_v51 = vsel %vm4379_vm5, %v6349_v33, %v4376_v34  ;;  %vm4382_vm8 = vcmp.eq.f32.partialorder %v4381_v41, 8.507059e+37  ;;  %v8945_v53 = vmul.f32 %v8748_v59, %v3847_v32 }
 0x3dd   : > { %v6355_v19 = vpop.eup %6354  ;;  %v3741_v20 = vsel %vm8940_vm7, %v8805_v26, %v3737_v29  ;;  %v4385_v50 = vsel %vm4382_vm8, %v4384_v17, %v4380_v51  ;;  %vm3748_vm9 = vweird.f32 %v8813_v42  ;;  %v3754_v7 = vmul.f32 %v8922_v22, %v3753_v49  ;;  %v8964_v26 = vld [vmem:[%s9339_s6] ss:$0 sm:$0xff] }
 0x3de   : > { %5165 = vst [vmem:[%s7734_s17 + $0xa8] sm:$0xff] %v5129_v47  ;;  %v4604_v44 = vmul.f32 %v4385_v50, %v8751_v27  ;;  %v8954_v30 = vadd.f32 1.0, %v6355_v19  ;;  %v5900_v14 = vmul.f32 -1.442695, %v8945_v53  ;;  %v3747_v33 = vmul.f32 %v8875_v21, %v3746_v61  ;;  %v3417_v11 = vpop.xlane.xlu1 %3416 }
 0x3df   : > { %v8957_v45 = vpop.eup %6356  ;;  %vm3749_vm11 = vweird.f32 %v8875_v21  ;;  %v8968_v27 = vadd.f32 %v8964_v26, %v8815_v16  ;;  %v8971_v41 = vmul.f32 %v8748_v59, %v3848_v55  ;;  %v3755_v56 = vmul.f32 0.5, %v3754_v7 }
 0x3e0   : > { %v6359_v25 = vpop.eup %6358  ;;  %v5130_v12 = vadd.f32 %v8827_v9, %v4604_v44  ;;  %6360 = vrcp.f32 %v8954_v30  ;;  %v3849_v24 = vmul.f32 %v3741_v20, %v7982_v39  ;;  %v4396_v40 = vand.u32 2147483647, %v8920_v28  ;;  %vm8991_vm13 = vmor %vm3748_vm9, %vm3749_vm11 }
 0x3e1   : > { %v4388_v2 = vmul.f32 %v6359_v25, %v8920_v28  ;;  %vm3758_vm10 = vweird.f32 %v8871_v15  ;;  %v8981_v16 = vadd.f32 %v8964_v26, %v8889_v3  ;;  %vm4392_vm12 = vweird.f32 %v8920_v28  ;;  %v5083_v52 = vpop.f32.mrf.mxu1 }
 0x3e2   : > { %5166 = vst [vmem:[%s7734_s17 + $0xb0] sm:$0xff] %v5130_v12  ;;  %v3756_v9 = vsub.f32 1.5, %v3755_v56  ;;  %v3763_v23 = vmul.f32 %v8957_v45, %v8914_v43  ;;  %6362 = vpow2.f32 %v5900_v14  ;;  %v4398_v3 = vand.u32 2147483648, %v8920_v28 }
 0x3e3   : > { %v4389_v4 = vsub.f32 1.0, %v4388_v2  ;;  %vm3759_vm14 = vweird.f32 %v8922_v22  ;;  %v8997_v36 = vmax.f32 %v3417_v11, 1e-24  ;;  %v3751_v8 = vsel %vm8991_vm13, %v8875_v21, %v3747_v33 }
 0x3e4   : > { %v3764_v48 = vmul.f32 %v8957_v45, %v3763_v23  ;;  %v5901_v60 = vmul.f32 -1.442695, %v8971_v41  ;;  %v9005_v42 = vmul.f32 %v8748_v59, %v3849_v24  ;;  %vm4393_vm15 = vweird.f32 %v6359_v25  ;;  %vm9028_vm3 = vmor %vm3758_vm10, %vm3759_vm14 }
 0x3e5   : > { %v4390_v37 = vmul.f32 %v6359_v25, %v4389_v4  ;;  %vm9007_vm0 = vcmp.eq.f32.partialorder %v4396_v40, 8.507059e+37  ;;  %6364 = vrsqrt.f32 %v8997_v36  ;;  %v3757_v13 = vmul.f32 %v8922_v22, %v3756_v9  ;;  %vm4394_vm2 = vmor %vm4392_vm12, %vm4393_vm15 }
 0x3e6   : > { %v6361_v0 = vpop.eup %6360  ;;  %v3765_v21 = vmul.f32 0.5, %v3764_v48  ;;  %6366 = vpow2.f32 %v5901_v60  ;;  %v5902_v35 = vmul.f32 -1.442695, %v9005_v42  ;;  %v4399_v1 = vor.u32 1.1754944e-38, %v4398_v3  ;;  %v3419_v55 = vpop.xlane.xlu2 %3418 }
 0x3e7   : > { %v4391_v29 = vadd.f32 %v6359_v25, %v4390_v37  ;;  %v4403_v34 = vmul.f32 %v6361_v0, %v8954_v30  ;;  %v9016_v17 = vadd.f32 %v8964_v26, %v5080_v10  ;;  %vm4407_vm6 = vweird.f32 %v8954_v30 }
 0x3e8   : > { %v6363_v61 = vpop.eup %6362  ;;  %v4411_v49 = vand.u32 2147483647, %v8954_v30  ;;  %vm3768_vm1 = vweird.f32 %v8914_v43  ;;  %6368 = vpow2.f32 %v5902_v35  ;;  %v3850_v47 = vmul.f32 %v3751_v8, %v8038_v6 }
 0x3e9   : > { %v4395_v31 = vsel %vm4394_vm2, %v6359_v25, %v4391_v29  ;;  %v4404_v28 = vsub.f32 1.0, %v4403_v34  ;;  %v4413_v51 = vand.u32 2147483648, %v8954_v30  ;;  %v9033_v19 = vadd.f32 1.0, %v6363_v61 }
 0x3ea   : > { %v4400_v20 = vsel %vm9007_vm0, %v4399_v1, %v4395_v31  ;;  %v3761_v6 = vsel %vm9028_vm3, %v8922_v22, %v3757_v13  ;;  %v3766_v50 = vsub.f32 1.5, %v3765_v21  ;;  %v9040_v44 = vmax.f32 %v3419_v55, 1e-24 }
 0x3eb   : > { %v9042_v15 = vpop.eup %6364  ;;  %v4605_v7 = vmul.f32 %v4400_v20, %v8830_v62  ;;  %v4405_v14 = vmul.f32 %v6361_v0, %v4404_v28  ;;  %vm4408_vm4 = vweird.f32 %v6361_v0  ;;  %6370 = vrcp.f32 %v9033_v19 }
 0x3ec   : > { %v6367_v33 = vpop.eup %6366  ;;  %vm9046_vm5 = vcmp.eq.f32.partialorder %v4411_v49, 8.507059e+37  ;;  %vm3769_vm7 = vweird.f32 %v8957_v45  ;;  %v3773_v22 = vmul.f32 %v9042_v15, %v8997_v36  ;;  %v9054_v12 = vmul.f32 %v8748_v59, %v3850_v47  ;;  %vm4409_vm8 = vmor %vm4407_vm6, %vm4408_vm4 }
 0x3ed   : > { %v5131_v62 = vadd.f32 %v8968_v27, %v4605_v7  ;;  %v4406_v56 = vadd.f32 %v6361_v0, %v4405_v14  ;;  %v9057_v24 = vadd.f32 1.0, %v6367_v33  ;;  %v3851_v2 = vmul.f32 %v3761_v6, %v8077_v57  ;;  %v9071_v57 = vpop.f32.mrf.mxu1  ;;  %vm9082_vm11 = vmor %vm3768_vm1, %vm3769_vm7 }
 0x3ee   : > { %v6369_v40 = vpop.eup %6368  ;;  %v4414_v11 = vor.u32 1.1754944e-38, %v4413_v51  ;;  %v3767_v9 = vmul.f32 %v8957_v45, %v3766_v50  ;;  %v3774_v23 = vmul.f32 %v9042_v15, %v3773_v22  ;;  %6372 = vrsqrt.f32 %v9040_v44 }
 0x3ef   : > { %5167 = vst [vmem:[%s7734_s17 + $0xb8] sm:$0xff] %v5131_v62  ;;  %v4410_v39 = vsel %vm4409_vm8, %v6361_v0, %v4406_v56  ;;  %vm3778_vm9 = vweird.f32 %v8997_v36  ;;  %6374 = vrcp.f32 %v9057_v24  ;;  %v9069_v27 = vadd.f32 %v8964_v26, %v5083_v52 }
 0x3f0   : > { %v4415_v30 = vsel %vm9046_vm5, %v4414_v11, %v4410_v39  ;;  %v4426_v4 = vand.u32 2147483647, %v9033_v19  ;;  %v3775_v3 = vmul.f32 0.5, %v3774_v23  ;;  %v5903_v8 = vmul.f32 -1.442695, %v9054_v12 }
 0x3f1   : > { %v6371_v48 = vpop.eup %6370  ;;  %v4606_v60 = vmul.f32 %v4415_v30, %v8906_v38  ;;  %v4428_v32 = vand.u32 2147483648, %v9033_v19  ;;  %v9087_v52 = vadd.f32 1.0, %v6369_v40  ;;  %v9090_v0 = vmul.f32 %v8748_v59, %v3851_v2  ;;  %v3421_v1 = vpop.xlane.xlu0 %3420 }
 0x3f2   : > { %v3771_v38 = vsel %vm9082_vm11, %v8957_v45, %v3767_v9  ;;  %v4418_v13 = vmul.f32 %v6371_v48, %v9033_v19  ;;  %vm4422_vm10 = vweird.f32 %v9033_v19  ;;  %v3776_v43 = vsub.f32 1.5, %v3775_v3 }
 0x3f3   : > { %v5132_v21 = vadd.f32 %v8981_v16, %v4606_v60  ;;  %v4441_v35 = vand.u32 2147483647, %v9057_v24  ;;  %v4443_v29 = vand.u32 2147483648, %v9057_v24  ;;  %6376 = vrcp.f32 %v9087_v52 }
 0x3f4   : > { %v9101_v34 = vpop.eup %6372  ;;  %v4419_v61 = vsub.f32 1.0, %v4418_v13  ;;  %vm9103_vm12 = vcmp.eq.f32.partialorder %v4426_v4, 8.507059e+37  ;;  %vm3779_vm13 = vweird.f32 %v9042_v15  ;;  %v9108_v45 = vmax.f32 %v3421_v1, 1e-24 }
 0x3f5   : > { %v6375_v55 = vpop.eup %6374  ;;  %5168 = vst [vmem:[%s7734_s17 + $0xc0] sm:$0xff] %v5132_v21  ;;  %v4429_v16 = vor.u32 1.1754944e-38, %v4428_v32  ;;  %v9112_v47 = vmul.f32 %v9042_v15, %v3776_v43  ;;  %v3783_v31 = vmul.f32 %v9101_v34, %v9040_v44  ;;  %6378 = vpow2.f32 %v5903_v8  ;;  %vm9128_vm2 = vmor %vm3778_vm9, %vm3779_vm13 }
 0x3f6   : > { %v4420_v10 = vmul.f32 %v6371_v48, %v4419_v61  ;;  %vm4423_vm14 = vweird.f32 %v6371_v48  ;;  %v4433_v28 = vmul.f32 %v6375_v55, %v9057_v24  ;;  %vm4437_vm15 = vweird.f32 %v9057_v24 }
 0x3f7   : > { %vm9118_vm0 = vcmp.eq.f32.partialorder %v4441_v35, 8.507059e+37  ;;  %v4444_v20 = vor.u32 1.1754944e-38, %v4443_v29  ;;  %v3784_v6 = vmul.f32 %v9101_v34, %v3783_v31  ;;  %6380 = vrsqrt.f32 %v9108_v45  ;;  %vm4424_vm6 = vmor %vm4422_vm10, %vm4423_vm14  ;;  %v9141_v36 = vpop.f32.mrf.mxu1 }
 0x3f8   : > { %v4421_v50 = vadd.f32 %v6371_v48, %v4420_v10  ;;  %v4434_v14 = vsub.f32 1.0, %v4433_v28  ;;  %v4456_v33 = vand.u32 2147483647, %v9087_v52  ;;  %v4458_v25 = vand.u32 2147483648, %v9087_v52  ;;  %v3423_v23 = vpop.xlane.xlu1 %3422 }
 0x3f9   : > { %v6377_v22 = vpop.eup %6376  ;;  %v3781_v62 = vsel %vm9128_vm2, %v9042_v15, %v9112_v47  ;;  %v3785_v56 = vmul.f32 0.5, %v3784_v6  ;;  %vm3789_vm1 = vweird.f32 %v9101_v34  ;;  %v3852_v2 = vmul.f32 %v3771_v38, %v8120_v54 }
 0x3fa   : > { %v4425_v40 = vsel %vm4424_vm6, %v6371_v48, %v4421_v50  ;;  %v4435_v11 = vmul.f32 %v6375_v55, %v4434_v14  ;;  %vm4438_vm3 = vweird.f32 %v6375_v55  ;;  %v4448_v9 = vmul.f32 %v6377_v22, %v9087_v52 }
 0x3fb   : > { %v6379_v19 = vpop.eup %6378  ;;  %v4430_v39 = vsel %vm9103_vm12, %v4429_v16, %v4425_v40  ;;  %v3786_v30 = vsub.f32 1.5, %v3785_v56  ;;  %v9147_v4 = vmax.f32 %v3423_v23, 1e-24  ;;  %v5904_v15 = vmul.f32 -1.442695, %v9090_v0  ;;  %vm4439_vm4 = vmor %vm4437_vm15, %vm4438_vm3 }
 0x3fc   : > { %v4607_v3 = vmul.f32 %v4430_v39, %v8945_v53  ;;  %v4436_v8 = vadd.f32 %v6375_v55, %v4435_v11  ;;  %v4449_v60 = vsub.f32 1.0, %v4448_v9  ;;  %v9151_v54 = vadd.f32 1.0, %v6379_v19 }
 0x3fd   : > { %v9153_v48 = vpop.eup %6380  ;;  %v3787_v37 = vmul.f32 %v9101_v34, %v3786_v30  ;;  %vm4453_vm5 = vweird.f32 %v6377_v22  ;;  %6382 = vrsqrt.f32 %v9147_v4  ;;  %v9160_v32 = vmul.f32 %v8748_v59, %v3852_v2 }
 0x3fe   : > { %v5133_v53 = vadd.f32 %v9016_v17, %v4607_v3  ;;  %v4440_v38 = vsel %vm4439_vm4, %v6375_v55, %v4436_v8  ;;  %v4450_v13 = vmul.f32 %v6377_v22, %v4449_v60  ;;  %v3793_v43 = vmul.f32 %v9153_v48, %v9108_v45 }
 0x3ff   : > { %v4445_v21 = vsel %vm9118_vm0, %v4444_v20, %v4440_v38  ;;  %vm3788_vm7 = vweird.f32 %v9040_v44  ;;  %vm4452_vm8 = vweird.f32 %v9087_v52  ;;  %6384 = vrcp.f32 %v9151_v54  ;;  %v9180_v52 = vpop.f32.mrf.mxu1 }
 0x400   : > { %5169 = vst [vmem:[%s7734_s17 + $0xc8] sm:$0xff] %v5133_v53  ;;  %v4608_v24 = vmul.f32 %v4445_v21, %v8971_v41  ;;  %vm9174_vm9 = vmor %vm3788_vm7, %vm3789_vm1  ;;  %v4451_v35 = vadd.f32 %v6377_v22, %v4450_v13  ;;  %vm4457_vm11 = vcmp.eq.f32.partialorder %v4456_v33, 8.507059e+37  ;;  %v3794_v29 = vmul.f32 %v9153_v48, %v3793_v43 }
 0x401   : > { %vm4454_vm10 = vmor %vm4452_vm8, %vm4453_vm5  ;;  %v4459_v44 = vor.u32 1.1754944e-38, %v4458_v25  ;;  %6386 = vpow2.f32 %v5904_v15  ;;  %v5905_v1 = vmul.f32 -1.442695, %v9160_v32  ;;  %v3853_v41 = vmul.f32 %v3781_v62, %v8192_v63 }
 0x402   : > { %v5134_v61 = vadd.f32 %v9069_v27, %v4608_v24  ;;  %v3791_v49 = vsel %vm9174_vm9, %v9101_v34, %v3787_v37  ;;  %v4455_v55 = vsel %vm4454_vm10, %v6377_v22, %v4451_v35  ;;  %v3795_v16 = vmul.f32 0.5, %v3794_v29  ;;  %v3425_v27 = vpop.xlane.xlu2 %3424 }
 0x403   : > { %v9188_v47 = vpop.eup %6382  ;;  %v4460_v31 = vsel %vm4457_vm11, %v4459_v44, %v4455_v55  ;;  %v5086_v10 = vadd.f32 %v8964_v26, %v9071_v57  ;;  %6388 = vpow2.f32 %v5905_v1  ;;  %vm3799_vm12 = vweird.f32 %v9153_v48 }
 0x404   : > { %5170 = vst [vmem:[%s7734_s17 + $0xd0] sm:$0xff] %v5134_v61  ;;  %v4609_v28 = vmul.f32 %v4460_v31, %v9005_v42  ;;  %v3796_v51 = vsub.f32 1.5, %v3795_v16  ;;  %v3803_v63 = vmul.f32 %v9188_v47, %v9147_v4  ;;  %v9197_v20 = vmax.f32 %v3425_v27, 1e-24 }
 0x405   : > { %v6385_v34 = vpop.eup %6384  ;;  %v9200_v6 = vmul.f32 %v8748_v59, %v3853_v41  ;;  %v3854_v57 = vmul.f32 %v3791_v49, %v8253_v18  ;;  %vm3798_vm13 = vweird.f32 %v9108_v45  ;;  %v4471_v33 = vand.u32 2147483647, %v9151_v54 }
 0x406   : > { %v5135_v50 = vadd.f32 %v5086_v10, %v4609_v28  ;;  %v3797_v7 = vmul.f32 %v9153_v48, %v3796_v51  ;;  %v4463_v42 = vmul.f32 %v6385_v34, %v9151_v54  ;;  %vm3800_vm14 = vmor %vm3798_vm13, %vm3799_vm12  ;;  %v3804_v25 = vmul.f32 %v9188_v47, %v3803_v63 }
 0x407   : > { %v6387_v14 = vpop.eup %6386  ;;  %6390 = vrsqrt.f32 %v9197_v20  ;;  %v5906_v22 = vmul.f32 -1.442695, %v9200_v6  ;;  %v9215_v45 = vmul.f32 %v8748_v59, %v3854_v57  ;;  %v4473_v40 = vand.u32 2147483648, %v9151_v54  ;;  %v5093_v9 = vpop.f32.mrf.mxu1 }
 0x408   : > { %5171 = vst [vmem:[%s7734_s17 + $0xd8] sm:$0xff] %v5135_v50  ;;  %v3801_v18 = vsel %vm3800_vm14, %v9153_v48, %v3797_v7  ;;  %v4464_v62 = vsub.f32 1.0, %v4463_v42  ;;  %v9212_v56 = vadd.f32 1.0, %v6387_v14  ;;  %v3805_v11 = vmul.f32 0.5, %v3804_v25 }
 0x409   : > { %v6389_v2 = vpop.eup %6388  ;;  %6392 = vpow2.f32 %v5906_v22  ;;  %v3855_v23 = vmul.f32 %v3801_v18, %v8320_v46  ;;  %vm4468_vm15 = vweird.f32 %v6385_v34  ;;  %vm4467_vm0 = vweird.f32 %v9151_v54 }
 0x40a   : > { %v4465_v19 = vmul.f32 %v6385_v34, %v4464_v62  ;;  %6394 = vrcp.f32 %v9212_v56  ;;  %v3806_v39 = vsub.f32 1.5, %v3805_v11  ;;  %v9220_v30 = vadd.f32 1.0, %v6389_v2  ;;  %vm4469_vm2 = vmor %vm4467_vm0, %vm4468_vm15 }
 0x40b   : > { %v5089_v3 = vadd.f32 %v8964_v26, %v9141_v36  ;;  %v5907_v8 = vmul.f32 -1.442695, %v9215_v45  ;;  %vm4472_vm6 = vcmp.eq.f32.partialorder %v4471_v33, 8.507059e+37  ;;  %v4474_v46 = vor.u32 1.1754944e-38, %v4473_v40 }
 0x40c   : > { %v4466_v15 = vadd.f32 %v6385_v34, %v4465_v19  ;;  %6396 = vrcp.f32 %v9220_v30  ;;  %v9230_v48 = vmul.f32 %v8748_v59, %v3855_v23  ;;  %v3807_v53 = vmul.f32 %v9188_v47, %v3806_v39 }
 0x40d   : > { %v9226_v60 = vpop.eup %6390  ;;  %vm3809_vm1 = vweird.f32 %v9188_v47  ;;  %vm3808_vm3 = vweird.f32 %v9147_v4  ;;  %6398 = vpow2.f32 %v5907_v8  ;;  %v5091_v21 = vadd.f32 %v8964_v26, %v9180_v52 }
 0x40e   : > { %v4470_v37 = vsel %vm4469_vm2, %v6385_v34, %v4466_v15  ;;  %v3813_v36 = vmul.f32 %v9226_v60, %v9197_v20  ;;  %vm9243_vm4 = vmor %vm3808_vm3, %vm3809_vm1  ;;  %vm4482_vm5 = vweird.f32 %v9212_v56  ;;  %vm3818_vm7 = vweird.f32 %v9197_v20 }
 0x40f   : > { %v6393_v54 = vpop.eup %6392  ;;  %v4475_v38 = vsel %vm4472_vm6, %v4474_v46, %v4470_v37  ;;  %v3811_v44 = vsel %vm9243_vm4, %v9188_v47, %v3807_v53  ;;  %v4486_v61 = vand.u32 2147483647, %v9212_v56  ;;  %v4488_v49 = vand.u32 2147483648, %v9212_v56  ;;  %v5095_v16 = vpop.f32.mrf.mxu1 }
 0x410   : > { %v6395_v13 = vpop.eup %6394  ;;  %v4610_v43 = vmul.f32 %v4475_v38, %v9054_v12  ;;  %v3814_v24 = vmul.f32 %v9226_v60, %v3813_v36  ;;  %v9241_v17 = vadd.f32 1.0, %v6393_v54  ;;  %v5908_v12 = vmul.f32 -1.442695, %v9230_v48 }
 0x411   : > { %v4478_v29 = vmul.f32 %v6395_v13, %v9212_v56  ;;  %v5094_v55 = vadd.f32 %v8964_v26, %v5093_v9  ;;  %v4501_v28 = vand.u32 2147483647, %v9220_v30  ;;  %vm4483_vm8 = vweird.f32 %v6395_v13 }
 0x412   : > { %v5136_v4 = vadd.f32 %v5089_v3, %v4610_v43  ;;  %v3815_v52 = vmul.f32 0.5, %v3814_v24  ;;  %6400 = vrcp.f32 %v9241_v17  ;;  %v6397_v1 = vpop.eup %6396  ;;  %v4503_v63 = vand.u32 2147483648, %v9220_v30  ;;  %vm4484_vm10 = vmor %vm4482_vm5, %vm4483_vm8 }
 0x413   : > { %v4479_v41 = vsub.f32 1.0, %v4478_v29  ;;  %v4493_v10 = vmul.f32 %v6397_v1, %v9220_v30  ;;  %6402 = vpow2.f32 %v5908_v12  ;;  %v6399_v47 = vpop.eup %6398  ;;  %v3856_v27 = vmul.f32 %v3811_v44, %v8377_v5 }
 0x414   : > { %5172 = vst [vmem:[%s7734_s17 + $0xe0] sm:$0xff] %v5136_v4  ;;  %v3816_v31 = vsub.f32 1.5, %v3815_v52  ;;  %vm3819_vm9 = vweird.f32 %v9226_v60  ;;  %v9265_v50 = vadd.f32 1.0, %v6399_v47  ;;  %vm4487_vm11 = vcmp.eq.f32.partialorder %v4486_v61, 8.507059e+37 }
 0x415   : > { %v4480_v51 = vmul.f32 %v6395_v13, %v4479_v41  ;;  %v4494_v57 = vsub.f32 1.0, %v4493_v10  ;;  %v4489_v42 = vor.u32 1.1754944e-38, %v4488_v49  ;;  %v9268_v14 = vmul.f32 %v8748_v59, %v3856_v27  ;;  %vm9276_vm14 = vmor %vm3818_vm7, %vm3819_vm9 }
 0x416   : > { %v3817_v34 = vmul.f32 %v9226_v60, %v3816_v31  ;;  %vm4497_vm12 = vweird.f32 %v9220_v30  ;;  %vm4498_vm13 = vweird.f32 %v6397_v1  ;;  %6404 = vrcp.f32 %v9265_v50 }
 0x417   : > { %v4481_v7 = vadd.f32 %v6395_v13, %v4480_v51  ;;  %v4495_v25 = vmul.f32 %v6397_v1, %v4494_v57  ;;  %vm9280_vm15 = vcmp.eq.f32.partialorder %v4501_v28, 8.507059e+37  ;;  %v4504_v62 = vor.u32 1.1754944e-38, %v4503_v63  ;;  %vm4499_vm0 = vmor %vm4497_vm12, %vm4498_vm13 }
 0x418   : > { %v6401_v33 = vpop.eup %6400  ;;  %v3821_v11 = vsel %vm9276_vm14, %v9226_v60, %v3817_v34  ;;  %v5909_v20 = vmul.f32 -1.442695, %v9268_v14  ;;  %v4516_v39 = vand.u32 2147483647, %v9241_v17  ;;  %v4518_v30 = vand.u32 2147483648, %v9241_v17  ;;  %v5098_v37 = vpop.f32.mrf.mxu1 }
 0x419   : > { %v4485_v5 = vsel %vm4484_vm10, %v6395_v13, %v4481_v7  ;;  %v4508_v56 = vmul.f32 %v6401_v33, %v9241_v17  ;;  %v6403_v2 = vpop.eup %6402  ;;  %v4496_v9 = vadd.f32 %v6397_v1, %v4495_v25  ;;  %vm4513_vm2 = vweird.f32 %v6401_v33 }
 0x41a   : > { %v4490_v40 = vsel %vm4487_vm11, %v4489_v42, %v4485_v5  ;;  %v9292_v3 = vadd.f32 1.0, %v6403_v2  ;;  %6406 = vpow2.f32 %v5909_v20  ;;  %vm4512_vm6 = vweird.f32 %v9241_v17 }
 0x41b   : > { %v4611_v23 = vmul.f32 %v4490_v40, %v9090_v0  ;;  %v4509_v19 = vsub.f32 1.0, %v4508_v56  ;;  %v4500_v15 = vsel %vm4499_vm0, %v6397_v1, %v4496_v9  ;;  %v3857_v0 = vmul.f32 %v3821_v11, %v8435_v58  ;;  %vm4514_vm1 = vmor %vm4512_vm6, %vm4513_vm2 }
 0x41c   : > { %v4505_v60 = vsel %vm9280_vm15, %v4504_v62, %v4500_v15  ;;  %v6405_v53 = vpop.eup %6404  ;;  %6408 = vrcp.f32 %v9292_v3  ;;  %v4519_v43 = vor.u32 1.1754944e-38, %v4518_v30  ;;  %vm4517_vm3 = vcmp.eq.f32.partialorder %v4516_v39, 8.507059e+37 }
 0x41d   : > { %v5137_v8 = vadd.f32 %v5091_v21, %v4611_v23  ;;  %v4510_v46 = vmul.f32 %v6401_v33, %v4509_v19  ;;  %v4612_v36 = vmul.f32 %v4505_v60, %v9160_v32  ;;  %v4523_v38 = vmul.f32 %v6405_v53, %v9265_v50 }
 0x41e   : > { %v9304_v21 = vmul.f32 %v8748_v59, %v3857_v0  ;;  %v5096_v24 = vadd.f32 %v8964_v26, %v5095_v16  ;;  %v4531_v12 = vand.u32 2147483647, %v9265_v50  ;;  %v4533_v17 = vand.u32 2147483648, %v9265_v50 }
 0x41f   : > { %5173 = vst [vmem:[%s7734_s17 + $0xe8] sm:$0xff] %v5137_v8  ;;  %v4511_v54 = vadd.f32 %v6401_v33, %v4510_v46  ;;  %v5138_v13 = vadd.f32 %v5094_v55, %v4612_v36  ;;  %v4524_v32 = vsub.f32 1.0, %v4523_v38  ;;  %vm4528_vm4 = vweird.f32 %v6405_v53 }
 0x420   : > { %v6407_v35 = vpop.eup %6406  ;;  %v5910_v4 = vmul.f32 -1.442695, %v9304_v21  ;;  %vm4527_vm5 = vweird.f32 %v9265_v50  ;;  %v4534_v55 = vor.u32 1.1754944e-38, %v4533_v17  ;;  %vm4532_vm8 = vcmp.eq.f32.partialorder %v4531_v12, 8.507059e+37  ;;  %v5100_v10 = vpop.f32.mrf.mxu1 }
 0x421   : > { %v4515_v58 = vsel %vm4514_vm1, %v6401_v33, %v4511_v54  ;;  %5174 = vst [vmem:[%s7734_s17 + $0xf0] sm:$0xff] %v5138_v13  ;;  %v4525_v52 = vmul.f32 %v6405_v53, %v4524_v32  ;;  %v4040_v59 = vadd.f32 1.0, %v6407_v35  ;;  %vm4529_vm7 = vmor %vm4527_vm5, %vm4528_vm4  ;;  %v5099_v31 = vadd.f32 %v8964_v26, %v5098_v37 }
 0x422   : > { %v4520_v29 = vsel %vm4517_vm3, %v4519_v43, %v4515_v58  ;;  %v6409_v1 = vpop.eup %6408  ;;  %6410 = vpow2.f32 %v5910_v4  ;;  %v4548_v47 = vand.u32 2147483648, %v9292_v3  ;;  %v4546_v27 = vand.u32 2147483647, %v9292_v3 }
 0x423   : > { %v4613_v44 = vmul.f32 %v4520_v29, %v9200_v6  ;;  %v4526_v61 = vadd.f32 %v6405_v53, %v4525_v52  ;;  %v4538_v49 = vmul.f32 %v6409_v1, %v9292_v3  ;;  %6412 = vrcp.f32 %v4040_v59 }
 0x424   : > { %vm4543_vm9 = vweird.f32 %v6409_v1  ;;  %vm4542_vm11 = vweird.f32 %v9292_v3  ;;  %v4549_v33 = vor.u32 1.1754944e-38, %v4548_v47  ;;  %vm4547_vm12 = vcmp.eq.f32.partialorder %v4546_v27, 8.507059e+37 }
 0x425   : > { %v5139_v41 = vadd.f32 %v5096_v24, %v4613_v44  ;;  %v4530_v16 = vsel %vm4529_vm7, %v6405_v53, %v4526_v61  ;;  %v4539_v6 = vsub.f32 1.0, %v4538_v49  ;;  %vm4544_vm10 = vmor %vm4542_vm11, %vm4543_vm9  ;;  %v5101_v18 = vadd.f32 %v8964_v26, %v5100_v10 }
 0x426   : > { %v4535_v28 = vsel %vm4532_vm8, %v4534_v55, %v4530_v16  ;;  %v4563_v56 = vand.u32 2147483648, %v4040_v59  ;;  %v4561_v11 = vand.u32 2147483647, %v4040_v59  ;;  %vm4557_vm14 = vweird.f32 %v4040_v59 }
 0x427   : > { %5175 = vst [vmem:[%s7734_s17 + $0xf8] sm:$0xff] %v5139_v41  ;;  %v4614_v51 = vmul.f32 %v4535_v28, %v9215_v45  ;;  %v4540_v63 = vmul.f32 %v6409_v1, %v4539_v6 }
 0x428   : > { %v6411_v34 = vpop.eup %6410  ;;  %v4564_v19 = vor.u32 1.1754944e-38, %v4563_v56  ;;  %vm4562_vm0 = vcmp.eq.f32.partialorder %v4561_v11, 8.507059e+37 }
 0x429   : > { %v5140_v57 = vadd.f32 %v5099_v31, %v4614_v51  ;;  %v4541_v50 = vadd.f32 %v6409_v1, %v4540_v63  ;;  %v4041_v7 = vadd.f32 1.0, %v6411_v34  ;;  %v6413_v42 = vpop.eup %6412 }
 0x42a   : > { %v4553_v5 = vmul.f32 %v6413_v42, %v4040_v59  ;;  %vm4558_vm13 = vweird.f32 %v6413_v42 }
 0x42b   : > { %5176 = vst [vmem:[%s7734_s17 + $0x100] sm:$0xff] %v5140_v57  ;;  %v4545_v25 = vsel %vm4544_vm10, %v6409_v1, %v4541_v50  ;;  %6414 = vrcp.f32 %v4041_v7  ;;  %vm4559_vm15 = vmor %vm4557_vm14, %vm4558_vm13  ;;  %v4578_v60 = vand.u32 2147483648, %v4041_v7  ;;  %v4576_v37 = vand.u32 2147483647, %v4041_v7 }
 0x42c   : > { %v4550_v45 = vsel %vm4547_vm12, %v4549_v33, %v4545_v25  ;;  %v4554_v62 = vsub.f32 1.0, %v4553_v5  ;;  %vm4572_vm6 = vweird.f32 %v4041_v7 }
 0x42d   : > { %v4615_v22 = vmul.f32 %v4550_v45, %v9230_v48  ;;  %v4579_v36 = vor.u32 1.1754944e-38, %v4578_v60  ;;  %vm4577_vm3 = vcmp.eq.f32.partialorder %v4576_v37, 8.507059e+37 }
 0x42e   : > { %v4555_v40 = vmul.f32 %v6413_v42, %v4554_v62  ;;  %v5103_v9 = vpop.f32.mrf.mxu1 }
 0x42f   : > { %v5141_v2 = vadd.f32 %v5101_v18, %v4615_v22  ;;  %v5104_v48 = vadd.f32 %v8964_v26, %v5103_v9 }
 0x430   : > { %v4556_v23 = vadd.f32 %v6413_v42, %v4555_v40 }
 0x431   : > { %v6415_v20 = vpop.eup %6414  ;;  %5177 = vst [vmem:[%s7734_s17 + $0x108] sm:$0xff] %v5141_v2 }
 0x432   : > { %v4568_v39 = vmul.f32 %v6415_v20, %v4041_v7  ;;  %v4560_v30 = vsel %vm4559_vm15, %v6413_v42, %v4556_v23  ;;  %vm4573_vm2 = vweird.f32 %v6415_v20 }
 0x433   : > { %v4565_v15 = vsel %vm4562_vm0, %v4564_v19, %v4560_v30  ;;  %vm4574_vm1 = vmor %vm4572_vm6, %vm4573_vm2 }
 0x434   : > { %v4569_v3 = vsub.f32 1.0, %v4568_v39  ;;  %v4616_v8 = vmul.f32 %v4565_v15, %v9268_v14 }
 0x436   : > { %v4570_v46 = vmul.f32 %v6415_v20, %v4569_v3  ;;  %v5142_v0 = vadd.f32 %v5104_v48, %v4616_v8  ;;  %v5105_v54 = vpop.f32.mrf.mxu1 }
 0x437   : > { %v5106_v58 = vadd.f32 %v8964_v26, %v5105_v54 }
 0x438   : > { %v4571_v53 = vadd.f32 %v6415_v20, %v4570_v46  ;;  %5178 = vst [vmem:[%s7734_s17 + $0x110] sm:$0xff] %v5142_v0 }
 0x43a   : > { %v4575_v38 = vsel %vm4574_vm1, %v6415_v20, %v4571_v53 }
 0x43b   : > { %v4580_v13 = vsel %vm4577_vm3, %v4579_v36, %v4575_v38 }
 0x43c   : > { %v4617_v43 = vmul.f32 %v4580_v13, %v9304_v21 }
 0x43e   : > { %v5143_v14 = vadd.f32 %v5106_v58, %v4617_v43 }
 0x440   : > { %5179 = vst [vmem:[%s7734_s17 + $0x118] sm:$0xff] %v5143_v14 }
 0x441 PF: > { %s17_s24 = sadd.s32 1, %s6437_s24  }
 0x442   : > { %p14_p4 = scmp.ge.s32.totalorder %s17_s24, 4  }
 0x444   :  { %16 = sbr.rel (!%p14_p4) target bundleno = 1 (0x1), region = 89 }

</bundles_post_ra>
